<compile_context>
chip_gen: v7x
topology: tpu7x:2x2x1
jax: 0.10.0
libtpu: 0.0.40
codegen_flags: <defaults>
</compile_context>

<pallas_src>
import functools
import math

import jax
import jax.numpy as jnp
from jax.experimental import pallas as pl
from jax.experimental.pallas import tpu as pltpu


LN_EPS = 1e-4              # Glow-TTS channel LayerNorm eps
NEG_INF = -1e4             # masked_fill value used by the reference
MXU_DTYPE = jnp.bfloat16   # matmul operand dtype (f32 accumulation)


# --------------------------------------------------------------------------
# in-kernel helpers
# --------------------------------------------------------------------------

def _ln(x, g_ref, b_ref, eps=LN_EPS):
    """Channel LayerNorm over the last (lane) dim, in f32.  x: (T, C)."""
    g = g_ref[...].astype(jnp.float32)
    b = b_ref[...].astype(jnp.float32)
    mean = jnp.mean(x, axis=-1, keepdims=True)
    xc = x - mean
    var = jnp.mean(xc * xc, axis=-1, keepdims=True)
    return xc * jax.lax.rsqrt(var + eps) * g + b


def _conv_time(x, w_ref, b_ref, K, pad, T):
    """K-tap 1D conv along time (sublane axis) with zero boundary padding.

    x: (T, Cin) f32.  w_ref: (K*Cin, Cout) MXU_DTYPE, tap-major rows.
    Taps are lane-concatenated into one (T, K*Cin) slab feeding a single MXU
    matmul with contraction K*Cin (better systolic fill than K small matmuls).
    """
    bias = b_ref[...].astype(jnp.float32)
    w = w_ref[...]
    if K == 1:
        return jnp.dot(x.astype(MXU_DTYPE), w,
                       preferred_element_type=jnp.float32) + bias
    assert pad <= 8 and (K - 1 - pad) <= 8, "kernel_size too large"
    cin = x.shape[-1]
    z = jnp.zeros((8, cin), jnp.float32)
    xp = jnp.concatenate([z, x, z], axis=0)                    # (T + 16, Cin)
    base = 8 - pad
    taps = [xp[base + k: base + k + T, :] for k in range(K)]
    xcat = jnp.concatenate(taps, axis=1).astype(MXU_DTYPE)     # (T, K*Cin)
    return jnp.dot(xcat, w, preferred_element_type=jnp.float32) + bias


# --------------------------------------------------------------------------
# Pallas kernels (one batch element per grid step; (1, T, C) activation blocks)
# --------------------------------------------------------------------------

def _prenet_kernel(*refs, n_layers, K, T, pad):
    """Full ConvReluNorm prenet: n_layers x (main conv/LN/ReLU + controlnet
    conv/LN/ReLU/zero-conv + add), then zero-init residual proj and mask."""
    x_ref, m_ref = refs[0], refs[1]
    o_ref = refs[-1]
    wrefs = refs[2:-1]

    x_org = x_ref[0].astype(jnp.float32)                       # (T, C)
    m = m_ref[0].astype(jnp.float32)                           # (T, 1)
    x = x_org
    idx = 0
    for _ in range(n_layers):
        (w, b, g, gb, wc, bc, gc, gbc, wz, bz) = wrefs[idx:idx + 10]
        idx += 10
        xm = x * m
        # main branch: conv -> LayerNorm -> ReLU
        a = _conv_time(xm, w, b, K, pad, T)
        a = jnp.maximum(_ln(a, g, gb), 0.0)
        # controlnet branch: conv -> LayerNorm -> ReLU -> 1x1 zero-conv
        c = _conv_time(xm, wc, bc, K, pad, T)
        c = jnp.maximum(_ln(c, gc, gbc), 0.0)
        c = jnp.dot(c.astype(MXU_DTYPE), wz[...],
                    preferred_element_type=jnp.float32) + bz[...].astype(jnp.float32)
        x = a + c
    wp, bp = wrefs[idx], wrefs[idx + 1]
    y = jnp.dot(x.astype(MXU_DTYPE), wp[...],
                preferred_element_type=jnp.float32) + bp[...].astype(jnp.float32)
    o_ref[0] = ((x_org + y) * m).astype(o_ref.dtype)


def _dual_attn_kernel(x_ref, mc_ref, mr_ref,
                      g1, b1, wqkv1, bqkv1, wo1, bo1, rkb1, rvb1,
                      g2, b2, wqkv2, bqkv2, wo2, bo2, rkb2, rvb2,
                      om_ref, oc_ref, *, n_heads, d, T, W, scale):
    """x*mask -> [main, controlnet] x (LN -> fused QKV -> rel-pos attention ->
    out proj -> residual).  Both branches share the masked input and all
    (T,T) mask / band structures."""
    R = 2 * W + 1
    C = n_heads * d

    x = x_ref[0].astype(jnp.float32)                           # (T, C)
    mcol = mc_ref[0].astype(jnp.float32)                       # (T, 1)
    mrow = mr_ref[0].astype(jnp.float32)                       # (1, T)
    xm = x * mcol

    # loop-invariant (T, T) structures -- built once, shared by both branches
    # and every head.
    rel_pos = (jax.lax.broadcasted_iota(jnp.int32, (T, T), 1)
               - jax.lax.broadcasted_iota(jnp.int32, (T, T), 0))   # j - i
    pad_mask = (mcol * mrow) == 0.0                                # (T, T) bool
    band = [rel_pos == (r - W) for r in range(R)]                  # one-hot bands

    def branch(g, b, wqkv, bqkv, wo, bo, rkb, rvb):
        xn = _ln(xm, g, b).astype(MXU_DTYPE)
        qkv = jnp.dot(xn, wqkv[...], preferred_element_type=jnp.float32) \
            + bqkv[...].astype(jnp.float32)                        # (T, 3C)
        q_all = qkv[:, :C].astype(MXU_DTYPE)
        # relative-key logits for ALL heads in one block-diagonal MXU matmul
        rel_all = jnp.dot(q_all, rkb[...],
                          preferred_element_type=jnp.float32) * scale   # (T, H*R)

        outs, prels = [], []
        for h in range(n_heads):
            q = q_all[:, h * d:(h + 1) * d]
            k = qkv[:, C + h * d:C + (h + 1) * d].astype(MXU_DTYPE)
            v = qkv[:, 2 * C + h * d:2 * C + (h + 1) * d].astype(MXU_DTYPE)

            scores = jax.lax.dot_general(
                q, k, (((1,), (1,)), ((), ())),
                preferred_element_type=jnp.float32) * scale
            rl = rel_all[:, h * R:(h + 1) * R]                     # (T, R)
            for r in range(R):                                     # band scatter
                scores = scores + jnp.where(band[r], rl[:, r:r + 1], 0.0)
            scores = jnp.where(pad_mask, jnp.float32(NEG_INF), scores)

            mx = jnp.max(scores, axis=-1, keepdims=True)
            p = jnp.exp(scores - mx)
            inv = 1.0 / jnp.sum(p, axis=-1, keepdims=True)         # exact softmax
            p = p * inv

            outs.append(jnp.dot(p.astype(MXU_DTYPE), v,
                                preferred_element_type=jnp.float32))   # (T, d)
            # band gather of the attention weights (abs -> rel)
            prels.append(jnp.concatenate(
                [jnp.sum(jnp.where(band[r], p, 0.0), axis=-1, keepdims=True)
                 for r in range(R)], axis=1))                          # (T, R)

        out = jnp.concatenate(outs, axis=1)                        # (T, C)
        p_rel = jnp.concatenate(prels, axis=1)                     # (T, H*R)
        # relative-value contribution for ALL heads: one block-diagonal matmul
        out = out + jnp.dot(p_rel.astype(MXU_DTYPE), rvb[...],
                            preferred_element_type=jnp.float32)
        y = jnp.dot(out.astype(MXU_DTYPE), wo[...],
                    preferred_element_type=jnp.float32) + bo[...].astype(jnp.float32)
        return xm + y

    om_ref[0] = branch(g1, b1, wqkv1, bqkv1, wo1, bo1, rkb1, rvb1).astype(om_ref.dtype)
    oc_ref[0] = branch(g2, b2, wqkv2, bqkv2, wo2, bo2, rkb2, rvb2).astype(oc_ref.dtype)


def _dual_ffn_kernel(xm_ref, xc_ref, mc_ref,
                     g1, b1, w1a, b1a, w2a, b2a,
                     g2, b2, w1c, b1c, w2c, b2c,
                     wz, bz, lg, lb, o_ref, *, K, T, pad, final):
    """[main, controlnet] x (LN -> conv1 -> ReLU -> conv2 -> mask -> residual),
    then zero-conv(controlnet) + main (+ last LayerNorm * mask on final layer)."""
    m = mc_ref[0].astype(jnp.float32)

    def ffn_branch(x, g, b, w1, bb1, w2, bb2):
        xn = _ln(x, g, b)
        h = jnp.maximum(_conv_time(xn * m, w1, bb1, K, pad, T), 0.0)
        y = _conv_time(h * m, w2, bb2, K, pad, T)
        return x + y * m

    xmain = ffn_branch(xm_ref[0].astype(jnp.float32), g1, b1, w1a, b1a, w2a, b2a)
    xcn = ffn_branch(xc_ref[0].astype(jnp.float32), g2, b2, w1c, b1c, w2c, b2c)

    y = jnp.dot(xcn.astype(MXU_DTYPE), wz[...],
                preferred_element_type=jnp.float32) + bz[...].astype(jnp.float32)
    x = xmain + y
    if final:
        x = _ln(x, lg, lb) * m
    o_ref[0] = x.astype(o_ref.dtype)


# --------------------------------------------------------------------------
# pallas_call wrappers
# --------------------------------------------------------------------------

def _act_spec(d1, d2):
    return pl.BlockSpec((1, d1, d2), lambda i: (i, 0, 0))


def _w_spec(shape):
    zeros = (0,) * len(shape)
    return pl.BlockSpec(shape, lambda i, _z=zeros: _z)


def _cparams():
    return pltpu.CompilerParams(
        dimension_semantics=("parallel",),
        vmem_limit_bytes=48 * 1024 * 1024)


def prenet_forward(x, mask_col, p):
    B, T, C = x.shape
    layers = p['layers']
    K = layers[0]['w'].shape[0] // C
    args = [x, mask_col]
    specs = [_act_spec(T, C), _act_spec(T, 1)]
    for lp in layers:
        for name in ('w', 'b', 'g', 'gb', 'wc', 'bc', 'gc', 'gbc', 'wz', 'bz'):
            arr = lp[name]
            args.append(arr)
            specs.append(_w_spec(arr.shape))
    args += [p['proj']['w'], p['proj']['b']]
    specs += [_w_spec(p['proj']['w'].shape), _w_spec(p['proj']['b'].shape)]
    kern = functools.partial(_prenet_kernel, n_layers=len(layers), K=K, T=T, pad=K // 2)
    return pl.pallas_call(
        kern,
        out_shape=jax.ShapeDtypeStruct((B, T, C), x.dtype),
        grid=(B,),
        in_specs=specs,
        out_specs=_act_spec(T, C),
        compiler_params=_cparams(),
    )(*args)


def dual_attn(x, mask_col, mask_row, lp, n_heads, window):
    B, T, C = x.shape
    d = C // n_heads
    kern = functools.partial(_dual_attn_kernel, n_heads=n_heads, d=d, T=T,
                             W=window, scale=1.0 / math.sqrt(d))
    args = [x, mask_col, mask_row]
    specs = [_act_spec(T, C), _act_spec(T, 1), _act_spec(1, T)]
    for ap, lnp in ((lp['attn'], lp['ln1']), (lp['attn_cn'], lp['ln1_cn'])):
        branch_args = [lnp['g'], lnp['b'], ap['wqkv'], ap['bqkv'],
                       ap['wo'], ap['bo'], ap['rkb'], ap['rvb']]
        args += branch_args
        specs += [_w_spec(a.shape) for a in branch_args]
    out_shape = (jax.ShapeDtypeStruct((B, T, C), x.dtype),
                 jax.ShapeDtypeStruct((B, T, C), x.dtype))
    return pl.pallas_call(
        kern,
        out_shape=out_shape,
        grid=(B,),
        in_specs=specs,
        out_specs=(_act_spec(T, C), _act_spec(T, C)),
        compiler_params=_cparams(),
    )(*args)


def dual_ffn(x_main, x_cn, mask_col, lp, last_ln, final):
    B, T, C = x_main.shape
    fp1, fp2 = lp['ffn'], lp['ffn_cn']
    K = fp1['w1'].shape[0] // C
    kern = functools.partial(_dual_ffn_kernel, K=K, T=T, pad=K // 2, final=final)
    args = [x_main, x_cn, mask_col,
            lp['ln2']['g'], lp['ln2']['b'],
            fp1['w1'], fp1['b1'], fp1['w2'], fp1['b2'],
            lp['ln2_cn']['g'], lp['ln2_cn']['b'],
            fp2['w1'], fp2['b1'], fp2['w2'], fp2['b2'],
            lp['zero_conv']['w'], lp['zero_conv']['b'],
            last_ln['g'], last_ln['b']]
    specs = [_act_spec(T, C), _act_spec(T, C), _act_spec(T, 1)] + \
            [_w_spec(a.shape) for a in args[3:]]
    return pl.pallas_call(
        kern,
        out_shape=jax.ShapeDtypeStruct((B, T, C), x_main.dtype),
        grid=(B,),
        in_specs=specs,
        out_specs=_act_spec(T, C),
        compiler_params=_cparams(),
    )(*args)


# --------------------------------------------------------------------------
# Module forward
# --------------------------------------------------------------------------

def encoder_forward(x, mask_col, mask_row, p, n_heads, window):
    layers = p['layers']
    assert len(layers) >= 1
    for li, lp in enumerate(layers):
        x_main, x_cn = dual_attn(x, mask_col, mask_row, lp, n_heads, window)
        x = dual_ffn(x_main, x_cn, mask_col, lp, p['last_ln'],
                     final=(li == len(layers) - 1))
    return x


def rel_transformer_encoder_controlnet(tokens, params, *, hidden, n_heads,
                                       window_size):
    """tokens: (B, T) int32.  Returns (B, T, hidden) == PyTorch out.transpose(1,2)."""
    B, T = tokens.shape
    x_lengths = jnp.sum((tokens > 0).astype(jnp.int32), axis=-1)
    # TODO(synk): token-embedding lookup stays in plain JAX (data-dependent row gather).
    x = jnp.take(params['emb'], tokens, axis=0) * math.sqrt(hidden)       # (B, T, C)
    pos = jnp.arange(T)
    mask_col = (pos[None, :, None] < x_lengths[:, None, None]).astype(jnp.float32)  # (B,T,1)
    mask_row = (pos[None, None, :] < x_lengths[:, None, None]).astype(jnp.float32)  # (B,1,T)
    x = prenet_forward(x, mask_col, params['pre'])
    x = encoder_forward(x, mask_col, mask_row, params['enc'], n_heads, window_size)
    return x


# --------------------------------------------------------------------------
# Deterministic parameter init (matches PyTorch module structure; matmul
# weights stored in MXU_DTYPE, biases / LN params in f32)
# --------------------------------------------------------------------------

def init_params(key, *, n_vocab, hidden, filter_ch, n_heads, n_layers,
                kernel_size, window_size):
    keys = iter(jax.random.split(key, 1024))

    def nk():
        return next(keys)

    def conv_w(K, cin, cout):
        s = 1.0 / math.sqrt(cin * K)
        w = jax.random.uniform(nk(), (K, cin, cout), jnp.float32, -s, s)
        b = jax.random.uniform(nk(), (1, cout), jnp.float32, -s, s)
        return w.reshape(K * cin, cout).astype(MXU_DTYPE), b   # tap-major rows

    def mat_w(cin, cout, zero=False):
        if zero:
            return (jnp.zeros((cin, cout), MXU_DTYPE),
                    jnp.zeros((1, cout), jnp.float32))
        s = 1.0 / math.sqrt(cin)
        w = jax.random.uniform(nk(), (cin, cout), jnp.float32, -s, s)
        b = jax.random.uniform(nk(), (1, cout), jnp.float32, -s, s)
        return w.astype(MXU_DTYPE), b

    def ln_p(c):
        return {'g': jnp.ones((1, c), jnp.float32),
                'b': jnp.zeros((1, c), jnp.float32)}

    emb = jax.random.normal(nk(), (n_vocab, hidden), jnp.float32) * hidden ** -0.5
    emb = emb.at[0].set(0.0)                                   # padding_idx=0

    # prenet: ConvReluNorm(hidden, hidden, hidden, kernel=5, n_layers=3)
    pre = {'layers': []}
    for _ in range(3):
        w, b = conv_w(5, hidden, hidden)
        wc, bc = conv_w(5, hidden, hidden)
        wz, bz = mat_w(hidden, hidden, zero=True)              # zero conv
        lnm, lnc = ln_p(hidden), ln_p(hidden)
        pre['layers'].append({'w': w, 'b': b, 'g': lnm['g'], 'gb': lnm['b'],
                              'wc': wc, 'bc': bc, 'gc': lnc['g'], 'gbc': lnc['b'],
                              'wz': wz, 'bz': bz})
    wpr, bpr = mat_w(hidden, hidden, zero=True)                # zero-init proj
    pre['proj'] = {'w': wpr, 'b': bpr}

    d = hidden // n_heads
    R = 2 * window_size + 1

    def attn_p():
        wq, bq = mat_w(hidden, hidden)
        wk, bk = mat_w(hidden, hidden)
        wv, bv = mat_w(hidden, hidden)
        wo, bo = mat_w(hidden, hidden)
        rel_k = jax.random.normal(nk(), (R, d), jnp.float32) * d ** -0.5
        rel_v = jax.random.normal(nk(), (R, d), jnp.float32) * d ** -0.5
        # Block-diagonal packings (heads share rel embeddings) so rel-key logits
        # and the rel-value contribution for all heads each need one MXU matmul.
        rkb = jnp.zeros((hidden, n_heads * R), jnp.float32)
        rvb = jnp.zeros((n_heads * R, hidden), jnp.float32)
        for h in range(n_heads):
            rkb = rkb.at[h * d:(h + 1) * d, h * R:(h + 1) * R].set(rel_k.T)
            rvb = rvb.at[h * R:(h + 1) * R, h * d:(h + 1) * d].set(rel_v)
        return {'wqkv': jnp.concatenate([wq, wk, wv], axis=1),
                'bqkv': jnp.concatenate([bq, bk, bv], axis=1),
                'wo': wo, 'bo': bo,
                'rkb': rkb.astype(MXU_DTYPE), 'rvb': rvb.astype(MXU_DTYPE)}

    def ffn_p():
        w1, b1 = conv_w(kernel_size, hidden, filter_ch)
        w2, b2 = conv_w(kernel_size, filter_ch, hidden)
        return {'w1': w1, 'b1': b1, 'w2': w2, 'b2': b2}

    enc = {'layers': [], 'last_ln': ln_p(hidden)}
    for _ in range(n_layers):
        wz, bz = mat_w(hidden, hidden, zero=True)
        enc['layers'].append({
            'attn': attn_p(), 'ln1': ln_p(hidden),
            'ffn': ffn_p(), 'ln2': ln_p(hidden),
            'attn_cn': attn_p(), 'ln1_cn': ln_p(hidden),
            'ffn_cn': ffn_p(), 'ln2_cn': ln_p(hidden),
            'zero_conv': {'w': wz, 'b': bz},
        })

    return {'emb': emb, 'pre': pre, 'enc': enc}


# --------------------------------------------------------------------------

if __name__ == "__main__":
    key = jax.random.PRNGKey(0)
    B, T = 2, 16
    n_vocab, hidden, filter_ch = 50, 32, 64
    n_heads, n_layers, kernel_size, window_size = 2, 2, 3, 4

    pkey, tkey = jax.random.split(key)
    params = init_params(pkey, n_vocab=n_vocab, hidden=hidden,
                         filter_ch=filter_ch, n_heads=n_heads,
                         n_layers=n_layers, kernel_size=kernel_size,
                         window_size=window_size)

    tokens = jax.random.randint(tkey, (B, T), 1, n_vocab, dtype=jnp.int32)
    tokens = tokens.at[0, 12:].set(0)          # shorter sequence in batch 0

    fwd = jax.jit(functools.partial(rel_transformer_encoder_controlnet,
                                    hidden=hidden, n_heads=n_heads,
                                    window_size=window_size))
    out = fwd(tokens, params)
    jax.block_until_ready(out)

    assert out.shape == (B, T, hidden) and out.dtype == jnp.float32
    assert bool(jnp.all(jnp.isfinite(out)))
    # masked positions must be exactly zero (final x * x_mask)
    assert bool(jnp.all(out[0, 12:] == 0.0))
    print("KERNEL_OK")
</pallas_src>

<mosaic_0001>
module attributes {stable_mosaic.version = 11 : i64} {
  func.func @_prenet_kernel(%arg0: i32, %arg1: memref<1x16x32xf32, #tpu.memory_space<vmem>>, %arg2: memref<1x16x1xf32, #tpu.memory_space<vmem>>, %arg3: memref<160x32xbf16, #tpu.memory_space<vmem>>, %arg4: memref<1x32xf32, #tpu.memory_space<vmem>>, %arg5: memref<1x32xf32, #tpu.memory_space<vmem>>, %arg6: memref<1x32xf32, #tpu.memory_space<vmem>>, %arg7: memref<160x32xbf16, #tpu.memory_space<vmem>>, %arg8: memref<1x32xf32, #tpu.memory_space<vmem>>, %arg9: memref<1x32xf32, #tpu.memory_space<vmem>>, %arg10: memref<1x32xf32, #tpu.memory_space<vmem>>, %arg11: memref<32x32xbf16, #tpu.memory_space<vmem>>, %arg12: memref<1x32xf32, #tpu.memory_space<vmem>>, %arg13: memref<160x32xbf16, #tpu.memory_space<vmem>>, %arg14: memref<1x32xf32, #tpu.memory_space<vmem>>, %arg15: memref<1x32xf32, #tpu.memory_space<vmem>>, %arg16: memref<1x32xf32, #tpu.memory_space<vmem>>, %arg17: memref<160x32xbf16, #tpu.memory_space<vmem>>, %arg18: memref<1x32xf32, #tpu.memory_space<vmem>>, %arg19: memref<1x32xf32, #tpu.memory_space<vmem>>, %arg20: memref<1x32xf32, #tpu.memory_space<vmem>>, %arg21: memref<32x32xbf16, #tpu.memory_space<vmem>>, %arg22: memref<1x32xf32, #tpu.memory_space<vmem>>, %arg23: memref<160x32xbf16, #tpu.memory_space<vmem>>, %arg24: memref<1x32xf32, #tpu.memory_space<vmem>>, %arg25: memref<1x32xf32, #tpu.memory_space<vmem>>, %arg26: memref<1x32xf32, #tpu.memory_space<vmem>>, %arg27: memref<160x32xbf16, #tpu.memory_space<vmem>>, %arg28: memref<1x32xf32, #tpu.memory_space<vmem>>, %arg29: memref<1x32xf32, #tpu.memory_space<vmem>>, %arg30: memref<1x32xf32, #tpu.memory_space<vmem>>, %arg31: memref<32x32xbf16, #tpu.memory_space<vmem>>, %arg32: memref<1x32xf32, #tpu.memory_space<vmem>>, %arg33: memref<32x32xbf16, #tpu.memory_space<vmem>>, %arg34: memref<1x32xf32, #tpu.memory_space<vmem>>, %arg35: memref<1x16x32xf32, #tpu.memory_space<vmem>>) attributes {dimension_semantics = [#tpu.dimension_semantics<parallel>], iteration_bounds = array<i64: 2>, scalar_prefetch = 0 : i64, scratch_operands = 0 : i64, tpu.core_type = #tpu.core_type<tc>, window_params = [{transform_indices = @transform_0, window_bounds = array<i64: 1, 16, 32>}, {transform_indices = @transform_1, window_bounds = array<i64: 1, 16, 1>}, {pipeline_mode = #tpu.pipeline_mode<synchronous>, transform_indices = @transform_2, window_bounds = array<i64: 160, 32>}, {pipeline_mode = #tpu.pipeline_mode<synchronous>, transform_indices = @transform_3, window_bounds = array<i64: 1, 32>}, {pipeline_mode = #tpu.pipeline_mode<synchronous>, transform_indices = @transform_4, window_bounds = array<i64: 1, 32>}, {pipeline_mode = #tpu.pipeline_mode<synchronous>, transform_indices = @transform_5, window_bounds = array<i64: 1, 32>}, {pipeline_mode = #tpu.pipeline_mode<synchronous>, transform_indices = @transform_6, window_bounds = array<i64: 160, 32>}, {pipeline_mode = #tpu.pipeline_mode<synchronous>, transform_indices = @transform_7, window_bounds = array<i64: 1, 32>}, {pipeline_mode = #tpu.pipeline_mode<synchronous>, transform_indices = @transform_8, window_bounds = array<i64: 1, 32>}, {pipeline_mode = #tpu.pipeline_mode<synchronous>, transform_indices = @transform_9, window_bounds = array<i64: 1, 32>}, {pipeline_mode = #tpu.pipeline_mode<synchronous>, transform_indices = @transform_10, window_bounds = array<i64: 32, 32>}, {pipeline_mode = #tpu.pipeline_mode<synchronous>, transform_indices = @transform_11, window_bounds = array<i64: 1, 32>}, {pipeline_mode = #tpu.pipeline_mode<synchronous>, transform_indices = @transform_12, window_bounds = array<i64: 160, 32>}, {pipeline_mode = #tpu.pipeline_mode<synchronous>, transform_indices = @transform_13, window_bounds = array<i64: 1, 32>}, {pipeline_mode = #tpu.pipeline_mode<synchronous>, transform_indices = @transform_14, window_bounds = array<i64: 1, 32>}, {pipeline_mode = #tpu.pipeline_mode<synchronous>, transform_indices = @transform_15, window_bounds = array<i64: 1, 32>}, {pipeline_mode = #tpu.pipeline_mode<synchronous>, transform_indices = @transform_16, window_bounds = array<i64: 160, 32>}, {pipeline_mode = #tpu.pipeline_mode<synchronous>, transform_indices = @transform_17, window_bounds = array<i64: 1, 32>}, {pipeline_mode = #tpu.pipeline_mode<synchronous>, transform_indices = @transform_18, window_bounds = array<i64: 1, 32>}, {pipeline_mode = #tpu.pipeline_mode<synchronous>, transform_indices = @transform_19, window_bounds = array<i64: 1, 32>}, {pipeline_mode = #tpu.pipeline_mode<synchronous>, transform_indices = @transform_20, window_bounds = array<i64: 32, 32>}, {pipeline_mode = #tpu.pipeline_mode<synchronous>, transform_indices = @transform_21, window_bounds = array<i64: 1, 32>}, {pipeline_mode = #tpu.pipeline_mode<synchronous>, transform_indices = @transform_22, window_bounds = array<i64: 160, 32>}, {pipeline_mode = #tpu.pipeline_mode<synchronous>, transform_indices = @transform_23, window_bounds = array<i64: 1, 32>}, {pipeline_mode = #tpu.pipeline_mode<synchronous>, transform_indices = @transform_24, window_bounds = array<i64: 1, 32>}, {pipeline_mode = #tpu.pipeline_mode<synchronous>, transform_indices = @transform_25, window_bounds = array<i64: 1, 32>}, {pipeline_mode = #tpu.pipeline_mode<synchronous>, transform_indices = @transform_26, window_bounds = array<i64: 160, 32>}, {pipeline_mode = #tpu.pipeline_mode<synchronous>, transform_indices = @transform_27, window_bounds = array<i64: 1, 32>}, {pipeline_mode = #tpu.pipeline_mode<synchronous>, transform_indices = @transform_28, window_bounds = array<i64: 1, 32>}, {pipeline_mode = #tpu.pipeline_mode<synchronous>, transform_indices = @transform_29, window_bounds = array<i64: 1, 32>}, {pipeline_mode = #tpu.pipeline_mode<synchronous>, transform_indices = @transform_30, window_bounds = array<i64: 32, 32>}, {pipeline_mode = #tpu.pipeline_mode<synchronous>, transform_indices = @transform_31, window_bounds = array<i64: 1, 32>}, {pipeline_mode = #tpu.pipeline_mode<synchronous>, transform_indices = @transform_32, window_bounds = array<i64: 32, 32>}, {pipeline_mode = #tpu.pipeline_mode<synchronous>, transform_indices = @transform_33, window_bounds = array<i64: 1, 32>}, {transform_indices = @transform_34, window_bounds = array<i64: 1, 16, 32>}]} {
    %c0 = arith.constant 0 : index
    %c0_0 = arith.constant 0 : index
    %c0_1 = arith.constant 0 : index
    %0 = vector.load %arg1[%c0, %c0_0, %c0_1] : memref<1x16x32xf32, #tpu.memory_space<vmem>>, vector<1x16x32xf32>
    %1 = vector.shape_cast %0 : vector<1x16x32xf32> to vector<16x32xf32>
    %c0_2 = arith.constant 0 : index
    %c0_3 = arith.constant 0 : index
    %c0_4 = arith.constant 0 : index
    %2 = vector.load %arg2[%c0_2, %c0_3, %c0_4] : memref<1x16x1xf32, #tpu.memory_space<vmem>>, vector<1x16x1xf32>
    %3 = vector.shape_cast %2 : vector<1x16x1xf32> to vector<16x1xf32>
    %4 = vector.broadcast %3 : vector<16x1xf32> to vector<16x32xf32>
    %5 = arith.mulf %1, %4 : vector<16x32xf32>
    %c0_5 = arith.constant 0 : index
    %c0_6 = arith.constant 0 : index
    %6 = vector.load %arg4[%c0_5, %c0_6] : memref<1x32xf32, #tpu.memory_space<vmem>>, vector<1x32xf32>
    %c0_7 = arith.constant 0 : index
    %c0_8 = arith.constant 0 : index
    %7 = vector.load %arg3[%c0_7, %c0_8] : memref<160x32xbf16, #tpu.memory_space<vmem>>, vector<160x32xbf16>
    %cst = arith.constant 0.000000e+00 : f32
    %8 = vector.broadcast %cst : f32 to vector<8x32xf32>
    %9 = tpu.concatenate %8, %5, %8 in 0 : vector<8x32xf32>, vector<16x32xf32>, vector<8x32xf32> -> vector<32x32xf32>
    %10 = vector.extract_strided_slice %9 {offsets = [6, 0], sizes = [16, 32], strides = [1, 1]} : vector<32x32xf32> to vector<16x32xf32>
    %11 = vector.extract_strided_slice %9 {offsets = [7, 0], sizes = [16, 32], strides = [1, 1]} : vector<32x32xf32> to vector<16x32xf32>
    %12 = vector.extract_strided_slice %9 {offsets = [8, 0], sizes = [16, 32], strides = [1, 1]} : vector<32x32xf32> to vector<16x32xf32>
    %13 = vector.extract_strided_slice %9 {offsets = [9, 0], sizes = [16, 32], strides = [1, 1]} : vector<32x32xf32> to vector<16x32xf32>
    %14 = vector.extract_strided_slice %9 {offsets = [10, 0], sizes = [16, 32], strides = [1, 1]} : vector<32x32xf32> to vector<16x32xf32>
    %15 = tpu.concatenate %10, %11, %12, %13, %14 in 1 : vector<16x32xf32>, vector<16x32xf32>, vector<16x32xf32>, vector<16x32xf32>, vector<16x32xf32> -> vector<16x160xf32>
    %16 = arith.truncf %15 : vector<16x160xf32> to vector<16x160xbf16>
    %cst_9 = arith.constant dense<0.000000e+00> : vector<16x32xf32>
    %17 = tpu.matmul %16, %7, %cst_9 {dimension_numbers = #tpu.dot_dimension_numbers<[1], [0], [0], [1], [0, 0, 1, 1], [], []>} : vector<16x160xbf16>, vector<160x32xbf16>, vector<16x32xf32> -> vector<16x32xf32>
    %18 = vector.broadcast %6 : vector<1x32xf32> to vector<16x32xf32>
    %19 = arith.addf %17, %18 : vector<16x32xf32>
    %c0_10 = arith.constant 0 : index
    %c0_11 = arith.constant 0 : index
    %20 = vector.load %arg5[%c0_10, %c0_11] : memref<1x32xf32, #tpu.memory_space<vmem>>, vector<1x32xf32>
    %c0_12 = arith.constant 0 : index
    %c0_13 = arith.constant 0 : index
    %21 = vector.load %arg6[%c0_12, %c0_13] : memref<1x32xf32, #tpu.memory_space<vmem>>, vector<1x32xf32>
    %cst_14 = arith.constant dense<0.000000e+00> : vector<16xf32>
    %22 = vector.multi_reduction <add>, %19, %cst_14 [1] : vector<16x32xf32> to vector<16xf32>
    %23 = vector.shape_cast %22 : vector<16xf32> to vector<16x1xf32>
    %cst_15 = arith.constant 3.200000e+01 : f32
    %24 = vector.broadcast %cst_15 : f32 to vector<16x1xf32>
    %25 = arith.divf %23, %24 : vector<16x1xf32>
    %26 = vector.broadcast %25 : vector<16x1xf32> to vector<16x32xf32>
    %27 = arith.subf %19, %26 : vector<16x32xf32>
    %28 = arith.mulf %27, %27 : vector<16x32xf32>
    %cst_16 = arith.constant dense<0.000000e+00> : vector<16xf32>
    %29 = vector.multi_reduction <add>, %28, %cst_16 [1] : vector<16x32xf32> to vector<16xf32>
    %30 = vector.shape_cast %29 : vector<16xf32> to vector<16x1xf32>
    %cst_17 = arith.constant 3.200000e+01 : f32
    %31 = vector.broadcast %cst_17 : f32 to vector<16x1xf32>
    %32 = arith.divf %30, %31 : vector<16x1xf32>
    %cst_18 = arith.constant 9.99999974E-5 : f32
    %33 = vector.broadcast %cst_18 : f32 to vector<16x1xf32>
    %34 = arith.addf %32, %33 : vector<16x1xf32>
    %35 = math.rsqrt %34 : vector<16x1xf32>
    %36 = vector.broadcast %35 : vector<16x1xf32> to vector<16x32xf32>
    %37 = arith.mulf %27, %36 : vector<16x32xf32>
    %38 = vector.broadcast %20 : vector<1x32xf32> to vector<16x32xf32>
    %39 = arith.mulf %37, %38 : vector<16x32xf32>
    %40 = vector.broadcast %21 : vector<1x32xf32> to vector<16x32xf32>
    %41 = arith.addf %39, %40 : vector<16x32xf32>
    %cst_19 = arith.constant 0.000000e+00 : f32
    %42 = vector.broadcast %cst_19 : f32 to vector<16x32xf32>
    %43 = arith.maximumf %41, %42 : vector<16x32xf32>
    %c0_20 = arith.constant 0 : index
    %c0_21 = arith.constant 0 : index
    %44 = vector.load %arg8[%c0_20, %c0_21] : memref<1x32xf32, #tpu.memory_space<vmem>>, vector<1x32xf32>
    %c0_22 = arith.constant 0 : index
    %c0_23 = arith.constant 0 : index
    %45 = vector.load %arg7[%c0_22, %c0_23] : memref<160x32xbf16, #tpu.memory_space<vmem>>, vector<160x32xbf16>
    %cst_24 = arith.constant 0.000000e+00 : f32
    %46 = vector.broadcast %cst_24 : f32 to vector<8x32xf32>
    %47 = tpu.concatenate %46, %5, %46 in 0 : vector<8x32xf32>, vector<16x32xf32>, vector<8x32xf32> -> vector<32x32xf32>
    %48 = vector.extract_strided_slice %47 {offsets = [6, 0], sizes = [16, 32], strides = [1, 1]} : vector<32x32xf32> to vector<16x32xf32>
    %49 = vector.extract_strided_slice %47 {offsets = [7, 0], sizes = [16, 32], strides = [1, 1]} : vector<32x32xf32> to vector<16x32xf32>
    %50 = vector.extract_strided_slice %47 {offsets = [8, 0], sizes = [16, 32], strides = [1, 1]} : vector<32x32xf32> to vector<16x32xf32>
    %51 = vector.extract_strided_slice %47 {offsets = [9, 0], sizes = [16, 32], strides = [1, 1]} : vector<32x32xf32> to vector<16x32xf32>
    %52 = vector.extract_strided_slice %47 {offsets = [10, 0], sizes = [16, 32], strides = [1, 1]} : vector<32x32xf32> to vector<16x32xf32>
    %53 = tpu.concatenate %48, %49, %50, %51, %52 in 1 : vector<16x32xf32>, vector<16x32xf32>, vector<16x32xf32>, vector<16x32xf32>, vector<16x32xf32> -> vector<16x160xf32>
    %54 = arith.truncf %53 : vector<16x160xf32> to vector<16x160xbf16>
    %cst_25 = arith.constant dense<0.000000e+00> : vector<16x32xf32>
    %55 = tpu.matmul %54, %45, %cst_25 {dimension_numbers = #tpu.dot_dimension_numbers<[1], [0], [0], [1], [0, 0, 1, 1], [], []>} : vector<16x160xbf16>, vector<160x32xbf16>, vector<16x32xf32> -> vector<16x32xf32>
    %56 = vector.broadcast %44 : vector<1x32xf32> to vector<16x32xf32>
    %57 = arith.addf %55, %56 : vector<16x32xf32>
    %c0_26 = arith.constant 0 : index
    %c0_27 = arith.constant 0 : index
    %58 = vector.load %arg9[%c0_26, %c0_27] : memref<1x32xf32, #tpu.memory_space<vmem>>, vector<1x32xf32>
    %c0_28 = arith.constant 0 : index
    %c0_29 = arith.constant 0 : index
    %59 = vector.load %arg10[%c0_28, %c0_29] : memref<1x32xf32, #tpu.memory_space<vmem>>, vector<1x32xf32>
    %cst_30 = arith.constant dense<0.000000e+00> : vector<16xf32>
    %60 = vector.multi_reduction <add>, %57, %cst_30 [1] : vector<16x32xf32> to vector<16xf32>
    %61 = vector.shape_cast %60 : vector<16xf32> to vector<16x1xf32>
    %cst_31 = arith.constant 3.200000e+01 : f32
    %62 = vector.broadcast %cst_31 : f32 to vector<16x1xf32>
    %63 = arith.divf %61, %62 : vector<16x1xf32>
    %64 = vector.broadcast %63 : vector<16x1xf32> to vector<16x32xf32>
    %65 = arith.subf %57, %64 : vector<16x32xf32>
    %66 = arith.mulf %65, %65 : vector<16x32xf32>
    %cst_32 = arith.constant dense<0.000000e+00> : vector<16xf32>
    %67 = vector.multi_reduction <add>, %66, %cst_32 [1] : vector<16x32xf32> to vector<16xf32>
    %68 = vector.shape_cast %67 : vector<16xf32> to vector<16x1xf32>
    %cst_33 = arith.constant 3.200000e+01 : f32
    %69 = vector.broadcast %cst_33 : f32 to vector<16x1xf32>
    %70 = arith.divf %68, %69 : vector<16x1xf32>
    %cst_34 = arith.constant 9.99999974E-5 : f32
    %71 = vector.broadcast %cst_34 : f32 to vector<16x1xf32>
    %72 = arith.addf %70, %71 : vector<16x1xf32>
    %73 = math.rsqrt %72 : vector<16x1xf32>
    %74 = vector.broadcast %73 : vector<16x1xf32> to vector<16x32xf32>
    %75 = arith.mulf %65, %74 : vector<16x32xf32>
    %76 = vector.broadcast %58 : vector<1x32xf32> to vector<16x32xf32>
    %77 = arith.mulf %75, %76 : vector<16x32xf32>
    %78 = vector.broadcast %59 : vector<1x32xf32> to vector<16x32xf32>
    %79 = arith.addf %77, %78 : vector<16x32xf32>
    %cst_35 = arith.constant 0.000000e+00 : f32
    %80 = vector.broadcast %cst_35 : f32 to vector<16x32xf32>
    %81 = arith.maximumf %79, %80 : vector<16x32xf32>
    %82 = arith.truncf %81 : vector<16x32xf32> to vector<16x32xbf16>
    %c0_36 = arith.constant 0 : index
    %c0_37 = arith.constant 0 : index
    %83 = vector.load %arg11[%c0_36, %c0_37] : memref<32x32xbf16, #tpu.memory_space<vmem>>, vector<32x32xbf16>
    %cst_38 = arith.constant dense<0.000000e+00> : vector<16x32xf32>
    %84 = tpu.matmul %82, %83, %cst_38 {dimension_numbers = #tpu.dot_dimension_numbers<[1], [0], [0], [1], [0, 0, 1, 1], [], []>} : vector<16x32xbf16>, vector<32x32xbf16>, vector<16x32xf32> -> vector<16x32xf32>
    %c0_39 = arith.constant 0 : index
    %c0_40 = arith.constant 0 : index
    %85 = vector.load %arg12[%c0_39, %c0_40] : memref<1x32xf32, #tpu.memory_space<vmem>>, vector<1x32xf32>
    %86 = vector.broadcast %85 : vector<1x32xf32> to vector<16x32xf32>
    %87 = arith.addf %84, %86 : vector<16x32xf32>
    %88 = arith.addf %43, %87 : vector<16x32xf32>
    %89 = vector.broadcast %3 : vector<16x1xf32> to vector<16x32xf32>
    %90 = arith.mulf %88, %89 : vector<16x32xf32>
    %c0_41 = arith.constant 0 : index
    %c0_42 = arith.constant 0 : index
    %91 = vector.load %arg14[%c0_41, %c0_42] : memref<1x32xf32, #tpu.memory_space<vmem>>, vector<1x32xf32>
    %c0_43 = arith.constant 0 : index
    %c0_44 = arith.constant 0 : index
    %92 = vector.load %arg13[%c0_43, %c0_44] : memref<160x32xbf16, #tpu.memory_space<vmem>>, vector<160x32xbf16>
    %cst_45 = arith.constant 0.000000e+00 : f32
    %93 = vector.broadcast %cst_45 : f32 to vector<8x32xf32>
    %94 = tpu.concatenate %93, %90, %93 in 0 : vector<8x32xf32>, vector<16x32xf32>, vector<8x32xf32> -> vector<32x32xf32>
    %95 = vector.extract_strided_slice %94 {offsets = [6, 0], sizes = [16, 32], strides = [1, 1]} : vector<32x32xf32> to vector<16x32xf32>
    %96 = vector.extract_strided_slice %94 {offsets = [7, 0], sizes = [16, 32], strides = [1, 1]} : vector<32x32xf32> to vector<16x32xf32>
    %97 = vector.extract_strided_slice %94 {offsets = [8, 0], sizes = [16, 32], strides = [1, 1]} : vector<32x32xf32> to vector<16x32xf32>
    %98 = vector.extract_strided_slice %94 {offsets = [9, 0], sizes = [16, 32], strides = [1, 1]} : vector<32x32xf32> to vector<16x32xf32>
    %99 = vector.extract_strided_slice %94 {offsets = [10, 0], sizes = [16, 32], strides = [1, 1]} : vector<32x32xf32> to vector<16x32xf32>
    %100 = tpu.concatenate %95, %96, %97, %98, %99 in 1 : vector<16x32xf32>, vector<16x32xf32>, vector<16x32xf32>, vector<16x32xf32>, vector<16x32xf32> -> vector<16x160xf32>
    %101 = arith.truncf %100 : vector<16x160xf32> to vector<16x160xbf16>
    %cst_46 = arith.constant dense<0.000000e+00> : vector<16x32xf32>
    %102 = tpu.matmul %101, %92, %cst_46 {dimension_numbers = #tpu.dot_dimension_numbers<[1], [0], [0], [1], [0, 0, 1, 1], [], []>} : vector<16x160xbf16>, vector<160x32xbf16>, vector<16x32xf32> -> vector<16x32xf32>
    %103 = vector.broadcast %91 : vector<1x32xf32> to vector<16x32xf32>
    %104 = arith.addf %102, %103 : vector<16x32xf32>
    %c0_47 = arith.constant 0 : index
    %c0_48 = arith.constant 0 : index
    %105 = vector.load %arg15[%c0_47, %c0_48] : memref<1x32xf32, #tpu.memory_space<vmem>>, vector<1x32xf32>
    %c0_49 = arith.constant 0 : index
    %c0_50 = arith.constant 0 : index
    %106 = vector.load %arg16[%c0_49, %c0_50] : memref<1x32xf32, #tpu.memory_space<vmem>>, vector<1x32xf32>
    %cst_51 = arith.constant dense<0.000000e+00> : vector<16xf32>
    %107 = vector.multi_reduction <add>, %104, %cst_51 [1] : vector<16x32xf32> to vector<16xf32>
    %108 = vector.shape_cast %107 : vector<16xf32> to vector<16x1xf32>
    %cst_52 = arith.constant 3.200000e+01 : f32
    %109 = vector.broadcast %cst_52 : f32 to vector<16x1xf32>
    %110 = arith.divf %108, %109 : vector<16x1xf32>
    %111 = vector.broadcast %110 : vector<16x1xf32> to vector<16x32xf32>
    %112 = arith.subf %104, %111 : vector<16x32xf32>
    %113 = arith.mulf %112, %112 : vector<16x32xf32>
    %cst_53 = arith.constant dense<0.000000e+00> : vector<16xf32>
    %114 = vector.multi_reduction <add>, %113, %cst_53 [1] : vector<16x32xf32> to vector<16xf32>
    %115 = vector.shape_cast %114 : vector<16xf32> to vector<16x1xf32>
    %cst_54 = arith.constant 3.200000e+01 : f32
    %116 = vector.broadcast %cst_54 : f32 to vector<16x1xf32>
    %117 = arith.divf %115, %116 : vector<16x1xf32>
    %cst_55 = arith.constant 9.99999974E-5 : f32
    %118 = vector.broadcast %cst_55 : f32 to vector<16x1xf32>
    %119 = arith.addf %117, %118 : vector<16x1xf32>
    %120 = math.rsqrt %119 : vector<16x1xf32>
    %121 = vector.broadcast %120 : vector<16x1xf32> to vector<16x32xf32>
    %122 = arith.mulf %112, %121 : vector<16x32xf32>
    %123 = vector.broadcast %105 : vector<1x32xf32> to vector<16x32xf32>
    %124 = arith.mulf %122, %123 : vector<16x32xf32>
    %125 = vector.broadcast %106 : vector<1x32xf32> to vector<16x32xf32>
    %126 = arith.addf %124, %125 : vector<16x32xf32>
    %cst_56 = arith.constant 0.000000e+00 : f32
    %127 = vector.broadcast %cst_56 : f32 to vector<16x32xf32>
    %128 = arith.maximumf %126, %127 : vector<16x32xf32>
    %c0_57 = arith.constant 0 : index
    %c0_58 = arith.constant 0 : index
    %129 = vector.load %arg18[%c0_57, %c0_58] : memref<1x32xf32, #tpu.memory_space<vmem>>, vector<1x32xf32>
    %c0_59 = arith.constant 0 : index
    %c0_60 = arith.constant 0 : index
    %130 = vector.load %arg17[%c0_59, %c0_60] : memref<160x32xbf16, #tpu.memory_space<vmem>>, vector<160x32xbf16>
    %cst_61 = arith.constant 0.000000e+00 : f32
    %131 = vector.broadcast %cst_61 : f32 to vector<8x32xf32>
    %132 = tpu.concatenate %131, %90, %131 in 0 : vector<8x32xf32>, vector<16x32xf32>, vector<8x32xf32> -> vector<32x32xf32>
    %133 = vector.extract_strided_slice %132 {offsets = [6, 0], sizes = [16, 32], strides = [1, 1]} : vector<32x32xf32> to vector<16x32xf32>
    %134 = vector.extract_strided_slice %132 {offsets = [7, 0], sizes = [16, 32], strides = [1, 1]} : vector<32x32xf32> to vector<16x32xf32>
    %135 = vector.extract_strided_slice %132 {offsets = [8, 0], sizes = [16, 32], strides = [1, 1]} : vector<32x32xf32> to vector<16x32xf32>
    %136 = vector.extract_strided_slice %132 {offsets = [9, 0], sizes = [16, 32], strides = [1, 1]} : vector<32x32xf32> to vector<16x32xf32>
    %137 = vector.extract_strided_slice %132 {offsets = [10, 0], sizes = [16, 32], strides = [1, 1]} : vector<32x32xf32> to vector<16x32xf32>
    %138 = tpu.concatenate %133, %134, %135, %136, %137 in 1 : vector<16x32xf32>, vector<16x32xf32>, vector<16x32xf32>, vector<16x32xf32>, vector<16x32xf32> -> vector<16x160xf32>
    %139 = arith.truncf %138 : vector<16x160xf32> to vector<16x160xbf16>
    %cst_62 = arith.constant dense<0.000000e+00> : vector<16x32xf32>
    %140 = tpu.matmul %139, %130, %cst_62 {dimension_numbers = #tpu.dot_dimension_numbers<[1], [0], [0], [1], [0, 0, 1, 1], [], []>} : vector<16x160xbf16>, vector<160x32xbf16>, vector<16x32xf32> -> vector<16x32xf32>
    %141 = vector.broadcast %129 : vector<1x32xf32> to vector<16x32xf32>
    %142 = arith.addf %140, %141 : vector<16x32xf32>
    %c0_63 = arith.constant 0 : index
    %c0_64 = arith.constant 0 : index
    %143 = vector.load %arg19[%c0_63, %c0_64] : memref<1x32xf32, #tpu.memory_space<vmem>>, vector<1x32xf32>
    %c0_65 = arith.constant 0 : index
    %c0_66 = arith.constant 0 : index
    %144 = vector.load %arg20[%c0_65, %c0_66] : memref<1x32xf32, #tpu.memory_space<vmem>>, vector<1x32xf32>
    %cst_67 = arith.constant dense<0.000000e+00> : vector<16xf32>
    %145 = vector.multi_reduction <add>, %142, %cst_67 [1] : vector<16x32xf32> to vector<16xf32>
    %146 = vector.shape_cast %145 : vector<16xf32> to vector<16x1xf32>
    %cst_68 = arith.constant 3.200000e+01 : f32
    %147 = vector.broadcast %cst_68 : f32 to vector<16x1xf32>
    %148 = arith.divf %146, %147 : vector<16x1xf32>
    %149 = vector.broadcast %148 : vector<16x1xf32> to vector<16x32xf32>
    %150 = arith.subf %142, %149 : vector<16x32xf32>
    %151 = arith.mulf %150, %150 : vector<16x32xf32>
    %cst_69 = arith.constant dense<0.000000e+00> : vector<16xf32>
    %152 = vector.multi_reduction <add>, %151, %cst_69 [1] : vector<16x32xf32> to vector<16xf32>
    %153 = vector.shape_cast %152 : vector<16xf32> to vector<16x1xf32>
    %cst_70 = arith.constant 3.200000e+01 : f32
    %154 = vector.broadcast %cst_70 : f32 to vector<16x1xf32>
    %155 = arith.divf %153, %154 : vector<16x1xf32>
    %cst_71 = arith.constant 9.99999974E-5 : f32
    %156 = vector.broadcast %cst_71 : f32 to vector<16x1xf32>
    %157 = arith.addf %155, %156 : vector<16x1xf32>
    %158 = math.rsqrt %157 : vector<16x1xf32>
    %159 = vector.broadcast %158 : vector<16x1xf32> to vector<16x32xf32>
    %160 = arith.mulf %150, %159 : vector<16x32xf32>
    %161 = vector.broadcast %143 : vector<1x32xf32> to vector<16x32xf32>
    %162 = arith.mulf %160, %161 : vector<16x32xf32>
    %163 = vector.broadcast %144 : vector<1x32xf32> to vector<16x32xf32>
    %164 = arith.addf %162, %163 : vector<16x32xf32>
    %cst_72 = arith.constant 0.000000e+00 : f32
    %165 = vector.broadcast %cst_72 : f32 to vector<16x32xf32>
    %166 = arith.maximumf %164, %165 : vector<16x32xf32>
    %167 = arith.truncf %166 : vector<16x32xf32> to vector<16x32xbf16>
    %c0_73 = arith.constant 0 : index
    %c0_74 = arith.constant 0 : index
    %168 = vector.load %arg21[%c0_73, %c0_74] : memref<32x32xbf16, #tpu.memory_space<vmem>>, vector<32x32xbf16>
    %cst_75 = arith.constant dense<0.000000e+00> : vector<16x32xf32>
    %169 = tpu.matmul %167, %168, %cst_75 {dimension_numbers = #tpu.dot_dimension_numbers<[1], [0], [0], [1], [0, 0, 1, 1], [], []>} : vector<16x32xbf16>, vector<32x32xbf16>, vector<16x32xf32> -> vector<16x32xf32>
    %c0_76 = arith.constant 0 : index
    %c0_77 = arith.constant 0 : index
    %170 = vector.load %arg22[%c0_76, %c0_77] : memref<1x32xf32, #tpu.memory_space<vmem>>, vector<1x32xf32>
    %171 = vector.broadcast %170 : vector<1x32xf32> to vector<16x32xf32>
    %172 = arith.addf %169, %171 : vector<16x32xf32>
    %173 = arith.addf %128, %172 : vector<16x32xf32>
    %174 = vector.broadcast %3 : vector<16x1xf32> to vector<16x32xf32>
    %175 = arith.mulf %173, %174 : vector<16x32xf32>
    %c0_78 = arith.constant 0 : index
    %c0_79 = arith.constant 0 : index
    %176 = vector.load %arg24[%c0_78, %c0_79] : memref<1x32xf32, #tpu.memory_space<vmem>>, vector<1x32xf32>
    %c0_80 = arith.constant 0 : index
    %c0_81 = arith.constant 0 : index
    %177 = vector.load %arg23[%c0_80, %c0_81] : memref<160x32xbf16, #tpu.memory_space<vmem>>, vector<160x32xbf16>
    %cst_82 = arith.constant 0.000000e+00 : f32
    %178 = vector.broadcast %cst_82 : f32 to vector<8x32xf32>
    %179 = tpu.concatenate %178, %175, %178 in 0 : vector<8x32xf32>, vector<16x32xf32>, vector<8x32xf32> -> vector<32x32xf32>
    %180 = vector.extract_strided_slice %179 {offsets = [6, 0], sizes = [16, 32], strides = [1, 1]} : vector<32x32xf32> to vector<16x32xf32>
    %181 = vector.extract_strided_slice %179 {offsets = [7, 0], sizes = [16, 32], strides = [1, 1]} : vector<32x32xf32> to vector<16x32xf32>
    %182 = vector.extract_strided_slice %179 {offsets = [8, 0], sizes = [16, 32], strides = [1, 1]} : vector<32x32xf32> to vector<16x32xf32>
    %183 = vector.extract_strided_slice %179 {offsets = [9, 0], sizes = [16, 32], strides = [1, 1]} : vector<32x32xf32> to vector<16x32xf32>
    %184 = vector.extract_strided_slice %179 {offsets = [10, 0], sizes = [16, 32], strides = [1, 1]} : vector<32x32xf32> to vector<16x32xf32>
    %185 = tpu.concatenate %180, %181, %182, %183, %184 in 1 : vector<16x32xf32>, vector<16x32xf32>, vector<16x32xf32>, vector<16x32xf32>, vector<16x32xf32> -> vector<16x160xf32>
    %186 = arith.truncf %185 : vector<16x160xf32> to vector<16x160xbf16>
    %cst_83 = arith.constant dense<0.000000e+00> : vector<16x32xf32>
    %187 = tpu.matmul %186, %177, %cst_83 {dimension_numbers = #tpu.dot_dimension_numbers<[1], [0], [0], [1], [0, 0, 1, 1], [], []>} : vector<16x160xbf16>, vector<160x32xbf16>, vector<16x32xf32> -> vector<16x32xf32>
    %188 = vector.broadcast %176 : vector<1x32xf32> to vector<16x32xf32>
    %189 = arith.addf %187, %188 : vector<16x32xf32>
    %c0_84 = arith.constant 0 : index
    %c0_85 = arith.constant 0 : index
    %190 = vector.load %arg25[%c0_84, %c0_85] : memref<1x32xf32, #tpu.memory_space<vmem>>, vector<1x32xf32>
    %c0_86 = arith.constant 0 : index
    %c0_87 = arith.constant 0 : index
    %191 = vector.load %arg26[%c0_86, %c0_87] : memref<1x32xf32, #tpu.memory_space<vmem>>, vector<1x32xf32>
    %cst_88 = arith.constant dense<0.000000e+00> : vector<16xf32>
    %192 = vector.multi_reduction <add>, %189, %cst_88 [1] : vector<16x32xf32> to vector<16xf32>
    %193 = vector.shape_cast %192 : vector<16xf32> to vector<16x1xf32>
    %cst_89 = arith.constant 3.200000e+01 : f32
    %194 = vector.broadcast %cst_89 : f32 to vector<16x1xf32>
    %195 = arith.divf %193, %194 : vector<16x1xf32>
    %196 = vector.broadcast %195 : vector<16x1xf32> to vector<16x32xf32>
    %197 = arith.subf %189, %196 : vector<16x32xf32>
    %198 = arith.mulf %197, %197 : vector<16x32xf32>
    %cst_90 = arith.constant dense<0.000000e+00> : vector<16xf32>
    %199 = vector.multi_reduction <add>, %198, %cst_90 [1] : vector<16x32xf32> to vector<16xf32>
    %200 = vector.shape_cast %199 : vector<16xf32> to vector<16x1xf32>
    %cst_91 = arith.constant 3.200000e+01 : f32
    %201 = vector.broadcast %cst_91 : f32 to vector<16x1xf32>
    %202 = arith.divf %200, %201 : vector<16x1xf32>
    %cst_92 = arith.constant 9.99999974E-5 : f32
    %203 = vector.broadcast %cst_92 : f32 to vector<16x1xf32>
    %204 = arith.addf %202, %203 : vector<16x1xf32>
    %205 = math.rsqrt %204 : vector<16x1xf32>
    %206 = vector.broadcast %205 : vector<16x1xf32> to vector<16x32xf32>
    %207 = arith.mulf %197, %206 : vector<16x32xf32>
    %208 = vector.broadcast %190 : vector<1x32xf32> to vector<16x32xf32>
    %209 = arith.mulf %207, %208 : vector<16x32xf32>
    %210 = vector.broadcast %191 : vector<1x32xf32> to vector<16x32xf32>
    %211 = arith.addf %209, %210 : vector<16x32xf32>
    %cst_93 = arith.constant 0.000000e+00 : f32
    %212 = vector.broadcast %cst_93 : f32 to vector<16x32xf32>
    %213 = arith.maximumf %211, %212 : vector<16x32xf32>
    %c0_94 = arith.constant 0 : index
    %c0_95 = arith.constant 0 : index
    %214 = vector.load %arg28[%c0_94, %c0_95] : memref<1x32xf32, #tpu.memory_space<vmem>>, vector<1x32xf32>
    %c0_96 = arith.constant 0 : index
    %c0_97 = arith.constant 0 : index
    %215 = vector.load %arg27[%c0_96, %c0_97] : memref<160x32xbf16, #tpu.memory_space<vmem>>, vector<160x32xbf16>
    %cst_98 = arith.constant 0.000000e+00 : f32
    %216 = vector.broadcast %cst_98 : f32 to vector<8x32xf32>
    %217 = tpu.concatenate %216, %175, %216 in 0 : vector<8x32xf32>, vector<16x32xf32>, vector<8x32xf32> -> vector<32x32xf32>
    %218 = vector.extract_strided_slice %217 {offsets = [6, 0], sizes = [16, 32], strides = [1, 1]} : vector<32x32xf32> to vector<16x32xf32>
    %219 = vector.extract_strided_slice %217 {offsets = [7, 0], sizes = [16, 32], strides = [1, 1]} : vector<32x32xf32> to vector<16x32xf32>
    %220 = vector.extract_strided_slice %217 {offsets = [8, 0], sizes = [16, 32], strides = [1, 1]} : vector<32x32xf32> to vector<16x32xf32>
    %221 = vector.extract_strided_slice %217 {offsets = [9, 0], sizes = [16, 32], strides = [1, 1]} : vector<32x32xf32> to vector<16x32xf32>
    %222 = vector.extract_strided_slice %217 {offsets = [10, 0], sizes = [16, 32], strides = [1, 1]} : vector<32x32xf32> to vector<16x32xf32>
    %223 = tpu.concatenate %218, %219, %220, %221, %222 in 1 : vector<16x32xf32>, vector<16x32xf32>, vector<16x32xf32>, vector<16x32xf32>, vector<16x32xf32> -> vector<16x160xf32>
    %224 = arith.truncf %223 : vector<16x160xf32> to vector<16x160xbf16>
    %cst_99 = arith.constant dense<0.000000e+00> : vector<16x32xf32>
    %225 = tpu.matmul %224, %215, %cst_99 {dimension_numbers = #tpu.dot_dimension_numbers<[1], [0], [0], [1], [0, 0, 1, 1], [], []>} : vector<16x160xbf16>, vector<160x32xbf16>, vector<16x32xf32> -> vector<16x32xf32>
    %226 = vector.broadcast %214 : vector<1x32xf32> to vector<16x32xf32>
    %227 = arith.addf %225, %226 : vector<16x32xf32>
    %c0_100 = arith.constant 0 : index
    %c0_101 = arith.constant 0 : index
    %228 = vector.load %arg29[%c0_100, %c0_101] : memref<1x32xf32, #tpu.memory_space<vmem>>, vector<1x32xf32>
    %c0_102 = arith.constant 0 : index
    %c0_103 = arith.constant 0 : index
    %229 = vector.load %arg30[%c0_102, %c0_103] : memref<1x32xf32, #tpu.memory_space<vmem>>, vector<1x32xf32>
    %cst_104 = arith.constant dense<0.000000e+00> : vector<16xf32>
    %230 = vector.multi_reduction <add>, %227, %cst_104 [1] : vector<16x32xf32> to vector<16xf32>
    %231 = vector.shape_cast %230 : vector<16xf32> to vector<16x1xf32>
    %cst_105 = arith.constant 3.200000e+01 : f32
    %232 = vector.broadcast %cst_105 : f32 to vector<16x1xf32>
    %233 = arith.divf %231, %232 : vector<16x1xf32>
    %234 = vector.broadcast %233 : vector<16x1xf32> to vector<16x32xf32>
    %235 = arith.subf %227, %234 : vector<16x32xf32>
    %236 = arith.mulf %235, %235 : vector<16x32xf32>
    %cst_106 = arith.constant dense<0.000000e+00> : vector<16xf32>
    %237 = vector.multi_reduction <add>, %236, %cst_106 [1] : vector<16x32xf32> to vector<16xf32>
    %238 = vector.shape_cast %237 : vector<16xf32> to vector<16x1xf32>
    %cst_107 = arith.constant 3.200000e+01 : f32
    %239 = vector.broadcast %cst_107 : f32 to vector<16x1xf32>
    %240 = arith.divf %238, %239 : vector<16x1xf32>
    %cst_108 = arith.constant 9.99999974E-5 : f32
    %241 = vector.broadcast %cst_108 : f32 to vector<16x1xf32>
    %242 = arith.addf %240, %241 : vector<16x1xf32>
    %243 = math.rsqrt %242 : vector<16x1xf32>
    %244 = vector.broadcast %243 : vector<16x1xf32> to vector<16x32xf32>
    %245 = arith.mulf %235, %244 : vector<16x32xf32>
    %246 = vector.broadcast %228 : vector<1x32xf32> to vector<16x32xf32>
    %247 = arith.mulf %245, %246 : vector<16x32xf32>
    %248 = vector.broadcast %229 : vector<1x32xf32> to vector<16x32xf32>
    %249 = arith.addf %247, %248 : vector<16x32xf32>
    %cst_109 = arith.constant 0.000000e+00 : f32
    %250 = vector.broadcast %cst_109 : f32 to vector<16x32xf32>
    %251 = arith.maximumf %249, %250 : vector<16x32xf32>
    %252 = arith.truncf %251 : vector<16x32xf32> to vector<16x32xbf16>
    %c0_110 = arith.constant 0 : index
    %c0_111 = arith.constant 0 : index
    %253 = vector.load %arg31[%c0_110, %c0_111] : memref<32x32xbf16, #tpu.memory_space<vmem>>, vector<32x32xbf16>
    %cst_112 = arith.constant dense<0.000000e+00> : vector<16x32xf32>
    %254 = tpu.matmul %252, %253, %cst_112 {dimension_numbers = #tpu.dot_dimension_numbers<[1], [0], [0], [1], [0, 0, 1, 1], [], []>} : vector<16x32xbf16>, vector<32x32xbf16>, vector<16x32xf32> -> vector<16x32xf32>
    %c0_113 = arith.constant 0 : index
    %c0_114 = arith.constant 0 : index
    %255 = vector.load %arg32[%c0_113, %c0_114] : memref<1x32xf32, #tpu.memory_space<vmem>>, vector<1x32xf32>
    %256 = vector.broadcast %255 : vector<1x32xf32> to vector<16x32xf32>
    %257 = arith.addf %254, %256 : vector<16x32xf32>
    %258 = arith.addf %213, %257 : vector<16x32xf32>
    %259 = arith.truncf %258 : vector<16x32xf32> to vector<16x32xbf16>
    %c0_115 = arith.constant 0 : index
    %c0_116 = arith.constant 0 : index
    %260 = vector.load %arg33[%c0_115, %c0_116] : memref<32x32xbf16, #tpu.memory_space<vmem>>, vector<32x32xbf16>
    %cst_117 = arith.constant dense<0.000000e+00> : vector<16x32xf32>
    %261 = tpu.matmul %259, %260, %cst_117 {dimension_numbers = #tpu.dot_dimension_numbers<[1], [0], [0], [1], [0, 0, 1, 1], [], []>} : vector<16x32xbf16>, vector<32x32xbf16>, vector<16x32xf32> -> vector<16x32xf32>
    %c0_118 = arith.constant 0 : index
    %c0_119 = arith.constant 0 : index
    %262 = vector.load %arg34[%c0_118, %c0_119] : memref<1x32xf32, #tpu.memory_space<vmem>>, vector<1x32xf32>
    %263 = vector.broadcast %262 : vector<1x32xf32> to vector<16x32xf32>
    %264 = arith.addf %261, %263 : vector<16x32xf32>
    %265 = arith.addf %1, %264 : vector<16x32xf32>
    %266 = vector.broadcast %3 : vector<16x1xf32> to vector<16x32xf32>
    %267 = arith.mulf %265, %266 : vector<16x32xf32>
    %c0_120 = arith.constant 0 : index
    %c0_121 = arith.constant 0 : index
    %c0_122 = arith.constant 0 : index
    %268 = vector.load %arg35[%c0_120, %c0_121, %c0_122] : memref<1x16x32xf32, #tpu.memory_space<vmem>>, vector<1x16x32xf32>
    %269 = vector.shape_cast %268 : vector<1x16x32xf32> to vector<16x32xf32>
    %270 = vector.shape_cast %267 : vector<16x32xf32> to vector<1x16x32xf32>
    tpu.vector_store %arg35[%c0_120, %c0_121, %c0_122], %270 {strides = array<i32>} : memref<1x16x32xf32, #tpu.memory_space<vmem>>, vector<1x16x32xf32>,
    return
  }
  func.func @transform_0(%arg0: i32) -> (i32, i32, i32) {
    %c0_i32 = arith.constant 0 : i32
    %c0_i32_0 = arith.constant 0 : i32
    %c0_i32_1 = arith.constant 0 : i32
    return %arg0, %c0_i32, %c0_i32_0 : i32, i32, i32
  }
  func.func @transform_1(%arg0: i32) -> (i32, i32, i32) {
    %c0_i32 = arith.constant 0 : i32
    %c0_i32_0 = arith.constant 0 : i32
    %c0_i32_1 = arith.constant 0 : i32
    return %arg0, %c0_i32, %c0_i32_0 : i32, i32, i32
  }
  func.func @transform_2(%arg0: i32) -> (i32, i32) {
    %c0_i32 = arith.constant 0 : i32
    %c0_i32_0 = arith.constant 0 : i32
    %c0_i32_1 = arith.constant 0 : i32
    return %c0_i32, %c0_i32_0 : i32, i32
  }
  func.func @transform_3(%arg0: i32) -> (i32, i32) {
    %c0_i32 = arith.constant 0 : i32
    %c0_i32_0 = arith.constant 0 : i32
    %c0_i32_1 = arith.constant 0 : i32
    return %c0_i32, %c0_i32_0 : i32, i32
  }
  func.func @transform_4(%arg0: i32) -> (i32, i32) {
    %c0_i32 = arith.constant 0 : i32
    %c0_i32_0 = arith.constant 0 : i32
    %c0_i32_1 = arith.constant 0 : i32
    return %c0_i32, %c0_i32_0 : i32, i32
  }
  func.func @transform_5(%arg0: i32) -> (i32, i32) {
    %c0_i32 = arith.constant 0 : i32
    %c0_i32_0 = arith.constant 0 : i32
    %c0_i32_1 = arith.constant 0 : i32
    return %c0_i32, %c0_i32_0 : i32, i32
  }
  func.func @transform_6(%arg0: i32) -> (i32, i32) {
    %c0_i32 = arith.constant 0 : i32
    %c0_i32_0 = arith.constant 0 : i32
    %c0_i32_1 = arith.constant 0 : i32
    return %c0_i32, %c0_i32_0 : i32, i32
  }
  func.func @transform_7(%arg0: i32) -> (i32, i32) {
    %c0_i32 = arith.constant 0 : i32
    %c0_i32_0 = arith.constant 0 : i32
    %c0_i32_1 = arith.constant 0 : i32
    return %c0_i32, %c0_i32_0 : i32, i32
  }
  func.func @transform_8(%arg0: i32) -> (i32, i32) {
    %c0_i32 = arith.constant 0 : i32
    %c0_i32_0 = arith.constant 0 : i32
    %c0_i32_1 = arith.constant 0 : i32
    return %c0_i32, %c0_i32_0 : i32, i32
  }
  func.func @transform_9(%arg0: i32) -> (i32, i32) {
    %c0_i32 = arith.constant 0 : i32
    %c0_i32_0 = arith.constant 0 : i32
    %c0_i32_1 = arith.constant 0 : i32
    return %c0_i32, %c0_i32_0 : i32, i32
  }
  func.func @transform_10(%arg0: i32) -> (i32, i32) {
    %c0_i32 = arith.constant 0 : i32
    %c0_i32_0 = arith.constant 0 : i32
    %c0_i32_1 = arith.constant 0 : i32
    return %c0_i32, %c0_i32_0 : i32, i32
  }
  func.func @transform_11(%arg0: i32) -> (i32, i32) {
    %c0_i32 = arith.constant 0 : i32
    %c0_i32_0 = arith.constant 0 : i32
    %c0_i32_1 = arith.constant 0 : i32
    return %c0_i32, %c0_i32_0 : i32, i32
  }
  func.func @transform_12(%arg0: i32) -> (i32, i32) {
    %c0_i32 = arith.constant 0 : i32
    %c0_i32_0 = arith.constant 0 : i32
    %c0_i32_1 = arith.constant 0 : i32
    return %c0_i32, %c0_i32_0 : i32, i32
  }
  func.func @transform_13(%arg0: i32) -> (i32, i32) {
    %c0_i32 = arith.constant 0 : i32
    %c0_i32_0 = arith.constant 0 : i32
    %c0_i32_1 = arith.constant 0 : i32
    return %c0_i32, %c0_i32_0 : i32, i32
  }
  func.func @transform_14(%arg0: i32) -> (i32, i32) {
    %c0_i32 = arith.constant 0 : i32
    %c0_i32_0 = arith.constant 0 : i32
    %c0_i32_1 = arith.constant 0 : i32
    return %c0_i32, %c0_i32_0 : i32, i32
  }
  func.func @transform_15(%arg0: i32) -> (i32, i32) {
    %c0_i32 = arith.constant 0 : i32
    %c0_i32_0 = arith.constant 0 : i32
    %c0_i32_1 = arith.constant 0 : i32
    return %c0_i32, %c0_i32_0 : i32, i32
  }
  func.func @transform_16(%arg0: i32) -> (i32, i32) {
    %c0_i32 = arith.constant 0 : i32
    %c0_i32_0 = arith.constant 0 : i32
    %c0_i32_1 = arith.constant 0 : i32
    return %c0_i32, %c0_i32_0 : i32, i32
  }
  func.func @transform_17(%arg0: i32) -> (i32, i32) {
    %c0_i32 = arith.constant 0 : i32
    %c0_i32_0 = arith.constant 0 : i32
    %c0_i32_1 = arith.constant 0 : i32
    return %c0_i32, %c0_i32_0 : i32, i32
  }
  func.func @transform_18(%arg0: i32) -> (i32, i32) {
    %c0_i32 = arith.constant 0 : i32
    %c0_i32_0 = arith.constant 0 : i32
    %c0_i32_1 = arith.constant 0 : i32
    return %c0_i32, %c0_i32_0 : i32, i32
  }
  func.func @transform_19(%arg0: i32) -> (i32, i32) {
    %c0_i32 = arith.constant 0 : i32
    %c0_i32_0 = arith.constant 0 : i32
    %c0_i32_1 = arith.constant 0 : i32
    return %c0_i32, %c0_i32_0 : i32, i32
  }
  func.func @transform_20(%arg0: i32) -> (i32, i32) {
    %c0_i32 = arith.constant 0 : i32
    %c0_i32_0 = arith.constant 0 : i32
    %c0_i32_1 = arith.constant 0 : i32
    return %c0_i32, %c0_i32_0 : i32, i32
  }
  func.func @transform_21(%arg0: i32) -> (i32, i32) {
    %c0_i32 = arith.constant 0 : i32
    %c0_i32_0 = arith.constant 0 : i32
    %c0_i32_1 = arith.constant 0 : i32
    return %c0_i32, %c0_i32_0 : i32, i32
  }
  func.func @transform_22(%arg0: i32) -> (i32, i32) {
    %c0_i32 = arith.constant 0 : i32
    %c0_i32_0 = arith.constant 0 : i32
    %c0_i32_1 = arith.constant 0 : i32
    return %c0_i32, %c0_i32_0 : i32, i32
  }
  func.func @transform_23(%arg0: i32) -> (i32, i32) {
    %c0_i32 = arith.constant 0 : i32
    %c0_i32_0 = arith.constant 0 : i32
    %c0_i32_1 = arith.constant 0 : i32
    return %c0_i32, %c0_i32_0 : i32, i32
  }
  func.func @transform_24(%arg0: i32) -> (i32, i32) {
    %c0_i32 = arith.constant 0 : i32
    %c0_i32_0 = arith.constant 0 : i32
    %c0_i32_1 = arith.constant 0 : i32
    return %c0_i32, %c0_i32_0 : i32, i32
  }
  func.func @transform_25(%arg0: i32) -> (i32, i32) {
    %c0_i32 = arith.constant 0 : i32
    %c0_i32_0 = arith.constant 0 : i32
    %c0_i32_1 = arith.constant 0 : i32
    return %c0_i32, %c0_i32_0 : i32, i32
  }
  func.func @transform_26(%arg0: i32) -> (i32, i32) {
    %c0_i32 = arith.constant 0 : i32
    %c0_i32_0 = arith.constant 0 : i32
    %c0_i32_1 = arith.constant 0 : i32
    return %c0_i32, %c0_i32_0 : i32, i32
  }
  func.func @transform_27(%arg0: i32) -> (i32, i32) {
    %c0_i32 = arith.constant 0 : i32
    %c0_i32_0 = arith.constant 0 : i32
    %c0_i32_1 = arith.constant 0 : i32
    return %c0_i32, %c0_i32_0 : i32, i32
  }
  func.func @transform_28(%arg0: i32) -> (i32, i32) {
    %c0_i32 = arith.constant 0 : i32
    %c0_i32_0 = arith.constant 0 : i32
    %c0_i32_1 = arith.constant 0 : i32
    return %c0_i32, %c0_i32_0 : i32, i32
  }
  func.func @transform_29(%arg0: i32) -> (i32, i32) {
    %c0_i32 = arith.constant 0 : i32
    %c0_i32_0 = arith.constant 0 : i32
    %c0_i32_1 = arith.constant 0 : i32
    return %c0_i32, %c0_i32_0 : i32, i32
  }
  func.func @transform_30(%arg0: i32) -> (i32, i32) {
    %c0_i32 = arith.constant 0 : i32
    %c0_i32_0 = arith.constant 0 : i32
    %c0_i32_1 = arith.constant 0 : i32
    return %c0_i32, %c0_i32_0 : i32, i32
  }
  func.func @transform_31(%arg0: i32) -> (i32, i32) {
    %c0_i32 = arith.constant 0 : i32
    %c0_i32_0 = arith.constant 0 : i32
    %c0_i32_1 = arith.constant 0 : i32
    return %c0_i32, %c0_i32_0 : i32, i32
  }
  func.func @transform_32(%arg0: i32) -> (i32, i32) {
    %c0_i32 = arith.constant 0 : i32
    %c0_i32_0 = arith.constant 0 : i32
    %c0_i32_1 = arith.constant 0 : i32
    return %c0_i32, %c0_i32_0 : i32, i32
  }
  func.func @transform_33(%arg0: i32) -> (i32, i32) {
    %c0_i32 = arith.constant 0 : i32
    %c0_i32_0 = arith.constant 0 : i32
    %c0_i32_1 = arith.constant 0 : i32
    return %c0_i32, %c0_i32_0 : i32, i32
  }
  func.func @transform_34(%arg0: i32) -> (i32, i32, i32) {
    %c0_i32 = arith.constant 0 : i32
    %c0_i32_0 = arith.constant 0 : i32
    %c0_i32_1 = arith.constant 0 : i32
    return %arg0, %c0_i32, %c0_i32_0 : i32, i32, i32
  }
}

module attributes {stable_mosaic.version = 11 : i64} {
  func.func @_dual_attn_kernel(%arg0: i32, %arg1: memref<1x16x32xf32, #tpu.memory_space<vmem>>, %arg2: memref<1x16x1xf32, #tpu.memory_space<vmem>>, %arg3: memref<1x1x16xf32, #tpu.memory_space<vmem>>, %arg4: memref<1x32xf32, #tpu.memory_space<vmem>>, %arg5: memref<1x32xf32, #tpu.memory_space<vmem>>, %arg6: memref<32x96xbf16, #tpu.memory_space<vmem>>, %arg7: memref<1x96xf32, #tpu.memory_space<vmem>>, %arg8: memref<32x32xbf16, #tpu.memory_space<vmem>>, %arg9: memref<1x32xf32, #tpu.memory_space<vmem>>, %arg10: memref<32x18xbf16, #tpu.memory_space<vmem>>, %arg11: memref<18x32xbf16, #tpu.memory_space<vmem>>, %arg12: memref<1x32xf32, #tpu.memory_space<vmem>>, %arg13: memref<1x32xf32, #tpu.memory_space<vmem>>, %arg14: memref<32x96xbf16, #tpu.memory_space<vmem>>, %arg15: memref<1x96xf32, #tpu.memory_space<vmem>>, %arg16: memref<32x32xbf16, #tpu.memory_space<vmem>>, %arg17: memref<1x32xf32, #tpu.memory_space<vmem>>, %arg18: memref<32x18xbf16, #tpu.memory_space<vmem>>, %arg19: memref<18x32xbf16, #tpu.memory_space<vmem>>, %arg20: memref<1x16x32xf32, #tpu.memory_space<vmem>>, %arg21: memref<1x16x32xf32, #tpu.memory_space<vmem>>) attributes {dimension_semantics = [#tpu.dimension_semantics<parallel>], iteration_bounds = array<i64: 2>, scalar_prefetch = 0 : i64, scratch_operands = 0 : i64, tpu.core_type = #tpu.core_type<tc>, window_params = [{transform_indices = @transform_0, window_bounds = array<i64: 1, 16, 32>}, {transform_indices = @transform_1, window_bounds = array<i64: 1, 16, 1>}, {transform_indices = @transform_2, window_bounds = array<i64: 1, 1, 16>}, {pipeline_mode = #tpu.pipeline_mode<synchronous>, transform_indices = @transform_3, window_bounds = array<i64: 1, 32>}, {pipeline_mode = #tpu.pipeline_mode<synchronous>, transform_indices = @transform_4, window_bounds = array<i64: 1, 32>}, {pipeline_mode = #tpu.pipeline_mode<synchronous>, transform_indices = @transform_5, window_bounds = array<i64: 32, 96>}, {pipeline_mode = #tpu.pipeline_mode<synchronous>, transform_indices = @transform_6, window_bounds = array<i64: 1, 96>}, {pipeline_mode = #tpu.pipeline_mode<synchronous>, transform_indices = @transform_7, window_bounds = array<i64: 32, 32>}, {pipeline_mode = #tpu.pipeline_mode<synchronous>, transform_indices = @transform_8, window_bounds = array<i64: 1, 32>}, {pipeline_mode = #tpu.pipeline_mode<synchronous>, transform_indices = @transform_9, window_bounds = array<i64: 32, 18>}, {pipeline_mode = #tpu.pipeline_mode<synchronous>, transform_indices = @transform_10, window_bounds = array<i64: 18, 32>}, {pipeline_mode = #tpu.pipeline_mode<synchronous>, transform_indices = @transform_11, window_bounds = array<i64: 1, 32>}, {pipeline_mode = #tpu.pipeline_mode<synchronous>, transform_indices = @transform_12, window_bounds = array<i64: 1, 32>}, {pipeline_mode = #tpu.pipeline_mode<synchronous>, transform_indices = @transform_13, window_bounds = array<i64: 32, 96>}, {pipeline_mode = #tpu.pipeline_mode<synchronous>, transform_indices = @transform_14, window_bounds = array<i64: 1, 96>}, {pipeline_mode = #tpu.pipeline_mode<synchronous>, transform_indices = @transform_15, window_bounds = array<i64: 32, 32>}, {pipeline_mode = #tpu.pipeline_mode<synchronous>, transform_indices = @transform_16, window_bounds = array<i64: 1, 32>}, {pipeline_mode = #tpu.pipeline_mode<synchronous>, transform_indices = @transform_17, window_bounds = array<i64: 32, 18>}, {pipeline_mode = #tpu.pipeline_mode<synchronous>, transform_indices = @transform_18, window_bounds = array<i64: 18, 32>}, {transform_indices = @transform_19, window_bounds = array<i64: 1, 16, 32>}, {transform_indices = @transform_20, window_bounds = array<i64: 1, 16, 32>}]} {
    %c0 = arith.constant 0 : index
    %c0_0 = arith.constant 0 : index
    %c0_1 = arith.constant 0 : index
    %0 = vector.load %arg1[%c0, %c0_0, %c0_1] : memref<1x16x32xf32, #tpu.memory_space<vmem>>, vector<1x16x32xf32>
    %1 = vector.shape_cast %0 : vector<1x16x32xf32> to vector<16x32xf32>
    %c0_2 = arith.constant 0 : index
    %c0_3 = arith.constant 0 : index
    %c0_4 = arith.constant 0 : index
    %2 = vector.load %arg2[%c0_2, %c0_3, %c0_4] : memref<1x16x1xf32, #tpu.memory_space<vmem>>, vector<1x16x1xf32>
    %3 = vector.shape_cast %2 : vector<1x16x1xf32> to vector<16x1xf32>
    %c0_5 = arith.constant 0 : index
    %c0_6 = arith.constant 0 : index
    %c0_7 = arith.constant 0 : index
    %4 = vector.load %arg3[%c0_5, %c0_6, %c0_7] : memref<1x1x16xf32, #tpu.memory_space<vmem>>, vector<1x1x16xf32>
    %5 = vector.shape_cast %4 : vector<1x1x16xf32> to vector<1x16xf32>
    %6 = vector.broadcast %3 : vector<16x1xf32> to vector<16x32xf32>
    %7 = arith.mulf %1, %6 : vector<16x32xf32>
    %8 = tpu.iota {dimensions = array<i32: 1>} : vector<16x16xi32>
    %9 = tpu.iota {dimensions = array<i32: 0>} : vector<16x16xi32>
    %10 = arith.subi %8, %9 : vector<16x16xi32>
    %11 = vector.broadcast %3 : vector<16x1xf32> to vector<16x16xf32>
    %12 = vector.broadcast %5 : vector<1x16xf32> to vector<16x16xf32>
    %13 = arith.mulf %11, %12 : vector<16x16xf32>
    %cst = arith.constant 0.000000e+00 : f32
    %14 = vector.broadcast %cst : f32 to vector<16x16xf32>
    %15 = arith.cmpf oeq, %13, %14 : vector<16x16xf32>
    %c-4_i32 = arith.constant -4 : i32
    %16 = vector.broadcast %c-4_i32 : i32 to vector<16x16xi32>
    %17 = arith.cmpi eq, %10, %16 : vector<16x16xi32>
    %c-3_i32 = arith.constant -3 : i32
    %18 = vector.broadcast %c-3_i32 : i32 to vector<16x16xi32>
    %19 = arith.cmpi eq, %10, %18 : vector<16x16xi32>
    %c-2_i32 = arith.constant -2 : i32
    %20 = vector.broadcast %c-2_i32 : i32 to vector<16x16xi32>
    %21 = arith.cmpi eq, %10, %20 : vector<16x16xi32>
    %c-1_i32 = arith.constant -1 : i32
    %22 = vector.broadcast %c-1_i32 : i32 to vector<16x16xi32>
    %23 = arith.cmpi eq, %10, %22 : vector<16x16xi32>
    %c0_i32 = arith.constant 0 : i32
    %24 = vector.broadcast %c0_i32 : i32 to vector<16x16xi32>
    %25 = arith.cmpi eq, %10, %24 : vector<16x16xi32>
    %c1_i32 = arith.constant 1 : i32
    %26 = vector.broadcast %c1_i32 : i32 to vector<16x16xi32>
    %27 = arith.cmpi eq, %10, %26 : vector<16x16xi32>
    %c2_i32 = arith.constant 2 : i32
    %28 = vector.broadcast %c2_i32 : i32 to vector<16x16xi32>
    %29 = arith.cmpi eq, %10, %28 : vector<16x16xi32>
    %c3_i32 = arith.constant 3 : i32
    %30 = vector.broadcast %c3_i32 : i32 to vector<16x16xi32>
    %31 = arith.cmpi eq, %10, %30 : vector<16x16xi32>
    %c4_i32 = arith.constant 4 : i32
    %32 = vector.broadcast %c4_i32 : i32 to vector<16x16xi32>
    %33 = arith.cmpi eq, %10, %32 : vector<16x16xi32>
    %c0_8 = arith.constant 0 : index
    %c0_9 = arith.constant 0 : index
    %34 = vector.load %arg4[%c0_8, %c0_9] : memref<1x32xf32, #tpu.memory_space<vmem>>, vector<1x32xf32>
    %c0_10 = arith.constant 0 : index
    %c0_11 = arith.constant 0 : index
    %35 = vector.load %arg5[%c0_10, %c0_11] : memref<1x32xf32, #tpu.memory_space<vmem>>, vector<1x32xf32>
    %cst_12 = arith.constant dense<0.000000e+00> : vector<16xf32>
    %36 = vector.multi_reduction <add>, %7, %cst_12 [1] : vector<16x32xf32> to vector<16xf32>
    %37 = vector.shape_cast %36 : vector<16xf32> to vector<16x1xf32>
    %cst_13 = arith.constant 3.200000e+01 : f32
    %38 = vector.broadcast %cst_13 : f32 to vector<16x1xf32>
    %39 = arith.divf %37, %38 : vector<16x1xf32>
    %40 = vector.broadcast %39 : vector<16x1xf32> to vector<16x32xf32>
    %41 = arith.subf %7, %40 : vector<16x32xf32>
    %42 = arith.mulf %41, %41 : vector<16x32xf32>
    %cst_14 = arith.constant dense<0.000000e+00> : vector<16xf32>
    %43 = vector.multi_reduction <add>, %42, %cst_14 [1] : vector<16x32xf32> to vector<16xf32>
    %44 = vector.shape_cast %43 : vector<16xf32> to vector<16x1xf32>
    %cst_15 = arith.constant 3.200000e+01 : f32
    %45 = vector.broadcast %cst_15 : f32 to vector<16x1xf32>
    %46 = arith.divf %44, %45 : vector<16x1xf32>
    %cst_16 = arith.constant 9.99999974E-5 : f32
    %47 = vector.broadcast %cst_16 : f32 to vector<16x1xf32>
    %48 = arith.addf %46, %47 : vector<16x1xf32>
    %49 = math.rsqrt %48 : vector<16x1xf32>
    %50 = vector.broadcast %49 : vector<16x1xf32> to vector<16x32xf32>
    %51 = arith.mulf %41, %50 : vector<16x32xf32>
    %52 = vector.broadcast %34 : vector<1x32xf32> to vector<16x32xf32>
    %53 = arith.mulf %51, %52 : vector<16x32xf32>
    %54 = vector.broadcast %35 : vector<1x32xf32> to vector<16x32xf32>
    %55 = arith.addf %53, %54 : vector<16x32xf32>
    %56 = arith.truncf %55 : vector<16x32xf32> to vector<16x32xbf16>
    %c0_17 = arith.constant 0 : index
    %c0_18 = arith.constant 0 : index
    %57 = vector.load %arg6[%c0_17, %c0_18] : memref<32x96xbf16, #tpu.memory_space<vmem>>, vector<32x96xbf16>
    %cst_19 = arith.constant dense<0.000000e+00> : vector<16x96xf32>
    %58 = tpu.matmul %56, %57, %cst_19 {dimension_numbers = #tpu.dot_dimension_numbers<[1], [0], [0], [1], [0, 0, 1, 1], [], []>} : vector<16x32xbf16>, vector<32x96xbf16>, vector<16x96xf32> -> vector<16x96xf32>
    %c0_20 = arith.constant 0 : index
    %c0_21 = arith.constant 0 : index
    %59 = vector.load %arg7[%c0_20, %c0_21] : memref<1x96xf32, #tpu.memory_space<vmem>>, vector<1x96xf32>
    %60 = vector.broadcast %59 : vector<1x96xf32> to vector<16x96xf32>
    %61 = arith.addf %58, %60 : vector<16x96xf32>
    %62 = vector.extract_strided_slice %61 {offsets = [0, 0], sizes = [16, 32], strides = [1, 1]} : vector<16x96xf32> to vector<16x32xf32>
    %63 = arith.truncf %62 : vector<16x32xf32> to vector<16x32xbf16>
    %c0_22 = arith.constant 0 : index
    %c0_23 = arith.constant 0 : index
    %64 = vector.load %arg10[%c0_22, %c0_23] : memref<32x18xbf16, #tpu.memory_space<vmem>>, vector<32x18xbf16>
    %cst_24 = arith.constant dense<0.000000e+00> : vector<16x18xf32>
    %65 = tpu.matmul %63, %64, %cst_24 {dimension_numbers = #tpu.dot_dimension_numbers<[1], [0], [0], [1], [0, 0, 1, 1], [], []>} : vector<16x32xbf16>, vector<32x18xbf16>, vector<16x18xf32> -> vector<16x18xf32>
    %cst_25 = arith.constant 2.500000e-01 : f32
    %66 = vector.broadcast %cst_25 : f32 to vector<16x18xf32>
    %67 = arith.mulf %65, %66 : vector<16x18xf32>
    %68 = vector.extract_strided_slice %63 {offsets = [0, 0], sizes = [16, 16], strides = [1, 1]} : vector<16x32xbf16> to vector<16x16xbf16>
    %69 = vector.extract_strided_slice %61 {offsets = [0, 32], sizes = [16, 16], strides = [1, 1]} : vector<16x96xf32> to vector<16x16xf32>
    %70 = arith.truncf %69 : vector<16x16xf32> to vector<16x16xbf16>
    %71 = vector.extract_strided_slice %61 {offsets = [0, 64], sizes = [16, 16], strides = [1, 1]} : vector<16x96xf32> to vector<16x16xf32>
    %72 = arith.truncf %71 : vector<16x16xf32> to vector<16x16xbf16>
    %cst_26 = arith.constant dense<0.000000e+00> : vector<16x16xf32>
    %73 = tpu.matmul %68, %70, %cst_26 {dimension_numbers = #tpu.dot_dimension_numbers<[1], [1], [0], [0], [0, 0, 1, 0], [], []>} : vector<16x16xbf16>, vector<16x16xbf16>, vector<16x16xf32> -> vector<16x16xf32>
    %cst_27 = arith.constant 2.500000e-01 : f32
    %74 = vector.broadcast %cst_27 : f32 to vector<16x16xf32>
    %75 = arith.mulf %73, %74 : vector<16x16xf32>
    %76 = vector.extract_strided_slice %67 {offsets = [0, 0], sizes = [16, 9], strides = [1, 1]} : vector<16x18xf32> to vector<16x9xf32>
    %77 = vector.extract_strided_slice %76 {offsets = [0, 0], sizes = [16, 1], strides = [1, 1]} : vector<16x9xf32> to vector<16x1xf32>
    %cst_28 = arith.constant 0.000000e+00 : f32
    %78 = vector.shape_cast %77 : vector<16x1xf32> to vector<16x1xf32>
    %79 = vector.broadcast %78 : vector<16x1xf32> to vector<16x16xf32>
    %80 = vector.broadcast %cst_28 : f32 to vector<16x16xf32>
    %81 = arith.select %17, %79, %80 : vector<16x16xi1>, vector<16x16xf32>
    %82 = arith.addf %75, %81 : vector<16x16xf32>
    %83 = vector.extract_strided_slice %76 {offsets = [0, 1], sizes = [16, 1], strides = [1, 1]} : vector<16x9xf32> to vector<16x1xf32>
    %cst_29 = arith.constant 0.000000e+00 : f32
    %84 = vector.shape_cast %83 : vector<16x1xf32> to vector<16x1xf32>
    %85 = vector.broadcast %84 : vector<16x1xf32> to vector<16x16xf32>
    %86 = vector.broadcast %cst_29 : f32 to vector<16x16xf32>
    %87 = arith.select %19, %85, %86 : vector<16x16xi1>, vector<16x16xf32>
    %88 = arith.addf %82, %87 : vector<16x16xf32>
    %89 = vector.extract_strided_slice %76 {offsets = [0, 2], sizes = [16, 1], strides = [1, 1]} : vector<16x9xf32> to vector<16x1xf32>
    %cst_30 = arith.constant 0.000000e+00 : f32
    %90 = vector.shape_cast %89 : vector<16x1xf32> to vector<16x1xf32>
    %91 = vector.broadcast %90 : vector<16x1xf32> to vector<16x16xf32>
    %92 = vector.broadcast %cst_30 : f32 to vector<16x16xf32>
    %93 = arith.select %21, %91, %92 : vector<16x16xi1>, vector<16x16xf32>
    %94 = arith.addf %88, %93 : vector<16x16xf32>
    %95 = vector.extract_strided_slice %76 {offsets = [0, 3], sizes = [16, 1], strides = [1, 1]} : vector<16x9xf32> to vector<16x1xf32>
    %cst_31 = arith.constant 0.000000e+00 : f32
    %96 = vector.shape_cast %95 : vector<16x1xf32> to vector<16x1xf32>
    %97 = vector.broadcast %96 : vector<16x1xf32> to vector<16x16xf32>
    %98 = vector.broadcast %cst_31 : f32 to vector<16x16xf32>
    %99 = arith.select %23, %97, %98 : vector<16x16xi1>, vector<16x16xf32>
    %100 = arith.addf %94, %99 : vector<16x16xf32>
    %101 = vector.extract_strided_slice %76 {offsets = [0, 4], sizes = [16, 1], strides = [1, 1]} : vector<16x9xf32> to vector<16x1xf32>
    %cst_32 = arith.constant 0.000000e+00 : f32
    %102 = vector.shape_cast %101 : vector<16x1xf32> to vector<16x1xf32>
    %103 = vector.broadcast %102 : vector<16x1xf32> to vector<16x16xf32>
    %104 = vector.broadcast %cst_32 : f32 to vector<16x16xf32>
    %105 = arith.select %25, %103, %104 : vector<16x16xi1>, vector<16x16xf32>
    %106 = arith.addf %100, %105 : vector<16x16xf32>
    %107 = vector.extract_strided_slice %76 {offsets = [0, 5], sizes = [16, 1], strides = [1, 1]} : vector<16x9xf32> to vector<16x1xf32>
    %cst_33 = arith.constant 0.000000e+00 : f32
    %108 = vector.shape_cast %107 : vector<16x1xf32> to vector<16x1xf32>
    %109 = vector.broadcast %108 : vector<16x1xf32> to vector<16x16xf32>
    %110 = vector.broadcast %cst_33 : f32 to vector<16x16xf32>
    %111 = arith.select %27, %109, %110 : vector<16x16xi1>, vector<16x16xf32>
    %112 = arith.addf %106, %111 : vector<16x16xf32>
    %113 = vector.extract_strided_slice %76 {offsets = [0, 6], sizes = [16, 1], strides = [1, 1]} : vector<16x9xf32> to vector<16x1xf32>
    %cst_34 = arith.constant 0.000000e+00 : f32
    %114 = vector.shape_cast %113 : vector<16x1xf32> to vector<16x1xf32>
    %115 = vector.broadcast %114 : vector<16x1xf32> to vector<16x16xf32>
    %116 = vector.broadcast %cst_34 : f32 to vector<16x16xf32>
    %117 = arith.select %29, %115, %116 : vector<16x16xi1>, vector<16x16xf32>
    %118 = arith.addf %112, %117 : vector<16x16xf32>
    %119 = vector.extract_strided_slice %76 {offsets = [0, 7], sizes = [16, 1], strides = [1, 1]} : vector<16x9xf32> to vector<16x1xf32>
    %cst_35 = arith.constant 0.000000e+00 : f32
    %120 = vector.shape_cast %119 : vector<16x1xf32> to vector<16x1xf32>
    %121 = vector.broadcast %120 : vector<16x1xf32> to vector<16x16xf32>
    %122 = vector.broadcast %cst_35 : f32 to vector<16x16xf32>
    %123 = arith.select %31, %121, %122 : vector<16x16xi1>, vector<16x16xf32>
    %124 = arith.addf %118, %123 : vector<16x16xf32>
    %125 = vector.extract_strided_slice %76 {offsets = [0, 8], sizes = [16, 1], strides = [1, 1]} : vector<16x9xf32> to vector<16x1xf32>
    %cst_36 = arith.constant 0.000000e+00 : f32
    %126 = vector.shape_cast %125 : vector<16x1xf32> to vector<16x1xf32>
    %127 = vector.broadcast %126 : vector<16x1xf32> to vector<16x16xf32>
    %128 = vector.broadcast %cst_36 : f32 to vector<16x16xf32>
    %129 = arith.select %33, %127, %128 : vector<16x16xi1>, vector<16x16xf32>
    %130 = arith.addf %124, %129 : vector<16x16xf32>
    %cst_37 = arith.constant -1.000000e+04 : f32
    %131 = vector.broadcast %cst_37 : f32 to vector<16x16xf32>
    %132 = arith.select %15, %131, %130 : vector<16x16xi1>, vector<16x16xf32>
    %cst_38 = arith.constant dense<0xFF800000> : vector<16xf32>
    %133 = vector.multi_reduction <maximumf>, %132, %cst_38 [1] : vector<16x16xf32> to vector<16xf32>
    %134 = vector.shape_cast %133 : vector<16xf32> to vector<16x1xf32>
    %135 = vector.broadcast %134 : vector<16x1xf32> to vector<16x16xf32>
    %136 = arith.subf %132, %135 : vector<16x16xf32>
    %137 = math.exp %136 : vector<16x16xf32>
    %cst_39 = arith.constant dense<0.000000e+00> : vector<16xf32>
    %138 = vector.multi_reduction <add>, %137, %cst_39 [1] : vector<16x16xf32> to vector<16xf32>
    %139 = vector.shape_cast %138 : vector<16xf32> to vector<16x1xf32>
    %cst_40 = arith.constant 1.000000e+00 : f32
    %140 = vector.broadcast %cst_40 : f32 to vector<16x1xf32>
    %141 = arith.divf %140, %139 : vector<16x1xf32>
    %142 = vector.broadcast %141 : vector<16x1xf32> to vector<16x16xf32>
    %143 = arith.mulf %137, %142 : vector<16x16xf32>
    %144 = arith.truncf %143 : vector<16x16xf32> to vector<16x16xbf16>
    %cst_41 = arith.constant dense<0.000000e+00> : vector<16x16xf32>
    %145 = tpu.matmul %144, %72, %cst_41 {dimension_numbers = #tpu.dot_dimension_numbers<[1], [0], [0], [1], [0, 0, 1, 1], [], []>} : vector<16x16xbf16>, vector<16x16xbf16>, vector<16x16xf32> -> vector<16x16xf32>
    %cst_42 = arith.constant 0.000000e+00 : f32
    %146 = vector.broadcast %cst_42 : f32 to vector<16x16xf32>
    %147 = arith.select %17, %143, %146 : vector<16x16xi1>, vector<16x16xf32>
    %cst_43 = arith.constant dense<0.000000e+00> : vector<16xf32>
    %148 = vector.multi_reduction <add>, %147, %cst_43 [1] : vector<16x16xf32> to vector<16xf32>
    %149 = vector.shape_cast %148 : vector<16xf32> to vector<16x1xf32>
    %cst_44 = arith.constant 0.000000e+00 : f32
    %150 = vector.broadcast %cst_44 : f32 to vector<16x16xf32>
    %151 = arith.select %19, %143, %150 : vector<16x16xi1>, vector<16x16xf32>
    %cst_45 = arith.constant dense<0.000000e+00> : vector<16xf32>
    %152 = vector.multi_reduction <add>, %151, %cst_45 [1] : vector<16x16xf32> to vector<16xf32>
    %153 = vector.shape_cast %152 : vector<16xf32> to vector<16x1xf32>
    %cst_46 = arith.constant 0.000000e+00 : f32
    %154 = vector.broadcast %cst_46 : f32 to vector<16x16xf32>
    %155 = arith.select %21, %143, %154 : vector<16x16xi1>, vector<16x16xf32>
    %cst_47 = arith.constant dense<0.000000e+00> : vector<16xf32>
    %156 = vector.multi_reduction <add>, %155, %cst_47 [1] : vector<16x16xf32> to vector<16xf32>
    %157 = vector.shape_cast %156 : vector<16xf32> to vector<16x1xf32>
    %cst_48 = arith.constant 0.000000e+00 : f32
    %158 = vector.broadcast %cst_48 : f32 to vector<16x16xf32>
    %159 = arith.select %23, %143, %158 : vector<16x16xi1>, vector<16x16xf32>
    %cst_49 = arith.constant dense<0.000000e+00> : vector<16xf32>
    %160 = vector.multi_reduction <add>, %159, %cst_49 [1] : vector<16x16xf32> to vector<16xf32>
    %161 = vector.shape_cast %160 : vector<16xf32> to vector<16x1xf32>
    %cst_50 = arith.constant 0.000000e+00 : f32
    %162 = vector.broadcast %cst_50 : f32 to vector<16x16xf32>
    %163 = arith.select %25, %143, %162 : vector<16x16xi1>, vector<16x16xf32>
    %cst_51 = arith.constant dense<0.000000e+00> : vector<16xf32>
    %164 = vector.multi_reduction <add>, %163, %cst_51 [1] : vector<16x16xf32> to vector<16xf32>
    %165 = vector.shape_cast %164 : vector<16xf32> to vector<16x1xf32>
    %cst_52 = arith.constant 0.000000e+00 : f32
    %166 = vector.broadcast %cst_52 : f32 to vector<16x16xf32>
    %167 = arith.select %27, %143, %166 : vector<16x16xi1>, vector<16x16xf32>
    %cst_53 = arith.constant dense<0.000000e+00> : vector<16xf32>
    %168 = vector.multi_reduction <add>, %167, %cst_53 [1] : vector<16x16xf32> to vector<16xf32>
    %169 = vector.shape_cast %168 : vector<16xf32> to vector<16x1xf32>
    %cst_54 = arith.constant 0.000000e+00 : f32
    %170 = vector.broadcast %cst_54 : f32 to vector<16x16xf32>
    %171 = arith.select %29, %143, %170 : vector<16x16xi1>, vector<16x16xf32>
    %cst_55 = arith.constant dense<0.000000e+00> : vector<16xf32>
    %172 = vector.multi_reduction <add>, %171, %cst_55 [1] : vector<16x16xf32> to vector<16xf32>
    %173 = vector.shape_cast %172 : vector<16xf32> to vector<16x1xf32>
    %cst_56 = arith.constant 0.000000e+00 : f32
    %174 = vector.broadcast %cst_56 : f32 to vector<16x16xf32>
    %175 = arith.select %31, %143, %174 : vector<16x16xi1>, vector<16x16xf32>
    %cst_57 = arith.constant dense<0.000000e+00> : vector<16xf32>
    %176 = vector.multi_reduction <add>, %175, %cst_57 [1] : vector<16x16xf32> to vector<16xf32>
    %177 = vector.shape_cast %176 : vector<16xf32> to vector<16x1xf32>
    %cst_58 = arith.constant 0.000000e+00 : f32
    %178 = vector.broadcast %cst_58 : f32 to vector<16x16xf32>
    %179 = arith.select %33, %143, %178 : vector<16x16xi1>, vector<16x16xf32>
    %cst_59 = arith.constant dense<0.000000e+00> : vector<16xf32>
    %180 = vector.multi_reduction <add>, %179, %cst_59 [1] : vector<16x16xf32> to vector<16xf32>
    %181 = vector.shape_cast %180 : vector<16xf32> to vector<16x1xf32>
    %182 = tpu.concatenate %149, %153, %157, %161, %165, %169, %173, %177, %181 in 1 : vector<16x1xf32>, vector<16x1xf32>, vector<16x1xf32>, vector<16x1xf32>, vector<16x1xf32>, vector<16x1xf32>, vector<16x1xf32>, vector<16x1xf32>, vector<16x1xf32> -> vector<16x9xf32>
    %183 = vector.extract_strided_slice %63 {offsets = [0, 16], sizes = [16, 16], strides = [1, 1]} : vector<16x32xbf16> to vector<16x16xbf16>
    %184 = vector.extract_strided_slice %61 {offsets = [0, 48], sizes = [16, 16], strides = [1, 1]} : vector<16x96xf32> to vector<16x16xf32>
    %185 = arith.truncf %184 : vector<16x16xf32> to vector<16x16xbf16>
    %186 = vector.extract_strided_slice %61 {offsets = [0, 80], sizes = [16, 16], strides = [1, 1]} : vector<16x96xf32> to vector<16x16xf32>
    %187 = arith.truncf %186 : vector<16x16xf32> to vector<16x16xbf16>
    %cst_60 = arith.constant dense<0.000000e+00> : vector<16x16xf32>
    %188 = tpu.matmul %183, %185, %cst_60 {dimension_numbers = #tpu.dot_dimension_numbers<[1], [1], [0], [0], [0, 0, 1, 0], [], []>} : vector<16x16xbf16>, vector<16x16xbf16>, vector<16x16xf32> -> vector<16x16xf32>
    %cst_61 = arith.constant 2.500000e-01 : f32
    %189 = vector.broadcast %cst_61 : f32 to vector<16x16xf32>
    %190 = arith.mulf %188, %189 : vector<16x16xf32>
    %191 = vector.extract_strided_slice %67 {offsets = [0, 9], sizes = [16, 9], strides = [1, 1]} : vector<16x18xf32> to vector<16x9xf32>
    %192 = vector.extract_strided_slice %191 {offsets = [0, 0], sizes = [16, 1], strides = [1, 1]} : vector<16x9xf32> to vector<16x1xf32>
    %cst_62 = arith.constant 0.000000e+00 : f32
    %193 = vector.shape_cast %192 : vector<16x1xf32> to vector<16x1xf32>
    %194 = vector.broadcast %193 : vector<16x1xf32> to vector<16x16xf32>
    %195 = vector.broadcast %cst_62 : f32 to vector<16x16xf32>
    %196 = arith.select %17, %194, %195 : vector<16x16xi1>, vector<16x16xf32>
    %197 = arith.addf %190, %196 : vector<16x16xf32>
    %198 = vector.extract_strided_slice %191 {offsets = [0, 1], sizes = [16, 1], strides = [1, 1]} : vector<16x9xf32> to vector<16x1xf32>
    %cst_63 = arith.constant 0.000000e+00 : f32
    %199 = vector.shape_cast %198 : vector<16x1xf32> to vector<16x1xf32>
    %200 = vector.broadcast %199 : vector<16x1xf32> to vector<16x16xf32>
    %201 = vector.broadcast %cst_63 : f32 to vector<16x16xf32>
    %202 = arith.select %19, %200, %201 : vector<16x16xi1>, vector<16x16xf32>
    %203 = arith.addf %197, %202 : vector<16x16xf32>
    %204 = vector.extract_strided_slice %191 {offsets = [0, 2], sizes = [16, 1], strides = [1, 1]} : vector<16x9xf32> to vector<16x1xf32>
    %cst_64 = arith.constant 0.000000e+00 : f32
    %205 = vector.shape_cast %204 : vector<16x1xf32> to vector<16x1xf32>
    %206 = vector.broadcast %205 : vector<16x1xf32> to vector<16x16xf32>
    %207 = vector.broadcast %cst_64 : f32 to vector<16x16xf32>
    %208 = arith.select %21, %206, %207 : vector<16x16xi1>, vector<16x16xf32>
    %209 = arith.addf %203, %208 : vector<16x16xf32>
    %210 = vector.extract_strided_slice %191 {offsets = [0, 3], sizes = [16, 1], strides = [1, 1]} : vector<16x9xf32> to vector<16x1xf32>
    %cst_65 = arith.constant 0.000000e+00 : f32
    %211 = vector.shape_cast %210 : vector<16x1xf32> to vector<16x1xf32>
    %212 = vector.broadcast %211 : vector<16x1xf32> to vector<16x16xf32>
    %213 = vector.broadcast %cst_65 : f32 to vector<16x16xf32>
    %214 = arith.select %23, %212, %213 : vector<16x16xi1>, vector<16x16xf32>
    %215 = arith.addf %209, %214 : vector<16x16xf32>
    %216 = vector.extract_strided_slice %191 {offsets = [0, 4], sizes = [16, 1], strides = [1, 1]} : vector<16x9xf32> to vector<16x1xf32>
    %cst_66 = arith.constant 0.000000e+00 : f32
    %217 = vector.shape_cast %216 : vector<16x1xf32> to vector<16x1xf32>
    %218 = vector.broadcast %217 : vector<16x1xf32> to vector<16x16xf32>
    %219 = vector.broadcast %cst_66 : f32 to vector<16x16xf32>
    %220 = arith.select %25, %218, %219 : vector<16x16xi1>, vector<16x16xf32>
    %221 = arith.addf %215, %220 : vector<16x16xf32>
    %222 = vector.extract_strided_slice %191 {offsets = [0, 5], sizes = [16, 1], strides = [1, 1]} : vector<16x9xf32> to vector<16x1xf32>
    %cst_67 = arith.constant 0.000000e+00 : f32
    %223 = vector.shape_cast %222 : vector<16x1xf32> to vector<16x1xf32>
    %224 = vector.broadcast %223 : vector<16x1xf32> to vector<16x16xf32>
    %225 = vector.broadcast %cst_67 : f32 to vector<16x16xf32>
    %226 = arith.select %27, %224, %225 : vector<16x16xi1>, vector<16x16xf32>
    %227 = arith.addf %221, %226 : vector<16x16xf32>
    %228 = vector.extract_strided_slice %191 {offsets = [0, 6], sizes = [16, 1], strides = [1, 1]} : vector<16x9xf32> to vector<16x1xf32>
    %cst_68 = arith.constant 0.000000e+00 : f32
    %229 = vector.shape_cast %228 : vector<16x1xf32> to vector<16x1xf32>
    %230 = vector.broadcast %229 : vector<16x1xf32> to vector<16x16xf32>
    %231 = vector.broadcast %cst_68 : f32 to vector<16x16xf32>
    %232 = arith.select %29, %230, %231 : vector<16x16xi1>, vector<16x16xf32>
    %233 = arith.addf %227, %232 : vector<16x16xf32>
    %234 = vector.extract_strided_slice %191 {offsets = [0, 7], sizes = [16, 1], strides = [1, 1]} : vector<16x9xf32> to vector<16x1xf32>
    %cst_69 = arith.constant 0.000000e+00 : f32
    %235 = vector.shape_cast %234 : vector<16x1xf32> to vector<16x1xf32>
    %236 = vector.broadcast %235 : vector<16x1xf32> to vector<16x16xf32>
    %237 = vector.broadcast %cst_69 : f32 to vector<16x16xf32>
    %238 = arith.select %31, %236, %237 : vector<16x16xi1>, vector<16x16xf32>
    %239 = arith.addf %233, %238 : vector<16x16xf32>
    %240 = vector.extract_strided_slice %191 {offsets = [0, 8], sizes = [16, 1], strides = [1, 1]} : vector<16x9xf32> to vector<16x1xf32>
    %cst_70 = arith.constant 0.000000e+00 : f32
    %241 = vector.shape_cast %240 : vector<16x1xf32> to vector<16x1xf32>
    %242 = vector.broadcast %241 : vector<16x1xf32> to vector<16x16xf32>
    %243 = vector.broadcast %cst_70 : f32 to vector<16x16xf32>
    %244 = arith.select %33, %242, %243 : vector<16x16xi1>, vector<16x16xf32>
    %245 = arith.addf %239, %244 : vector<16x16xf32>
    %cst_71 = arith.constant -1.000000e+04 : f32
    %246 = vector.broadcast %cst_71 : f32 to vector<16x16xf32>
    %247 = arith.select %15, %246, %245 : vector<16x16xi1>, vector<16x16xf32>
    %cst_72 = arith.constant dense<0xFF800000> : vector<16xf32>
    %248 = vector.multi_reduction <maximumf>, %247, %cst_72 [1] : vector<16x16xf32> to vector<16xf32>
    %249 = vector.shape_cast %248 : vector<16xf32> to vector<16x1xf32>
    %250 = vector.broadcast %249 : vector<16x1xf32> to vector<16x16xf32>
    %251 = arith.subf %247, %250 : vector<16x16xf32>
    %252 = math.exp %251 : vector<16x16xf32>
    %cst_73 = arith.constant dense<0.000000e+00> : vector<16xf32>
    %253 = vector.multi_reduction <add>, %252, %cst_73 [1] : vector<16x16xf32> to vector<16xf32>
    %254 = vector.shape_cast %253 : vector<16xf32> to vector<16x1xf32>
    %cst_74 = arith.constant 1.000000e+00 : f32
    %255 = vector.broadcast %cst_74 : f32 to vector<16x1xf32>
    %256 = arith.divf %255, %254 : vector<16x1xf32>
    %257 = vector.broadcast %256 : vector<16x1xf32> to vector<16x16xf32>
    %258 = arith.mulf %252, %257 : vector<16x16xf32>
    %259 = arith.truncf %258 : vector<16x16xf32> to vector<16x16xbf16>
    %cst_75 = arith.constant dense<0.000000e+00> : vector<16x16xf32>
    %260 = tpu.matmul %259, %187, %cst_75 {dimension_numbers = #tpu.dot_dimension_numbers<[1], [0], [0], [1], [0, 0, 1, 1], [], []>} : vector<16x16xbf16>, vector<16x16xbf16>, vector<16x16xf32> -> vector<16x16xf32>
    %cst_76 = arith.constant 0.000000e+00 : f32
    %261 = vector.broadcast %cst_76 : f32 to vector<16x16xf32>
    %262 = arith.select %17, %258, %261 : vector<16x16xi1>, vector<16x16xf32>
    %cst_77 = arith.constant dense<0.000000e+00> : vector<16xf32>
    %263 = vector.multi_reduction <add>, %262, %cst_77 [1] : vector<16x16xf32> to vector<16xf32>
    %264 = vector.shape_cast %263 : vector<16xf32> to vector<16x1xf32>
    %cst_78 = arith.constant 0.000000e+00 : f32
    %265 = vector.broadcast %cst_78 : f32 to vector<16x16xf32>
    %266 = arith.select %19, %258, %265 : vector<16x16xi1>, vector<16x16xf32>
    %cst_79 = arith.constant dense<0.000000e+00> : vector<16xf32>
    %267 = vector.multi_reduction <add>, %266, %cst_79 [1] : vector<16x16xf32> to vector<16xf32>
    %268 = vector.shape_cast %267 : vector<16xf32> to vector<16x1xf32>
    %cst_80 = arith.constant 0.000000e+00 : f32
    %269 = vector.broadcast %cst_80 : f32 to vector<16x16xf32>
    %270 = arith.select %21, %258, %269 : vector<16x16xi1>, vector<16x16xf32>
    %cst_81 = arith.constant dense<0.000000e+00> : vector<16xf32>
    %271 = vector.multi_reduction <add>, %270, %cst_81 [1] : vector<16x16xf32> to vector<16xf32>
    %272 = vector.shape_cast %271 : vector<16xf32> to vector<16x1xf32>
    %cst_82 = arith.constant 0.000000e+00 : f32
    %273 = vector.broadcast %cst_82 : f32 to vector<16x16xf32>
    %274 = arith.select %23, %258, %273 : vector<16x16xi1>, vector<16x16xf32>
    %cst_83 = arith.constant dense<0.000000e+00> : vector<16xf32>
    %275 = vector.multi_reduction <add>, %274, %cst_83 [1] : vector<16x16xf32> to vector<16xf32>
    %276 = vector.shape_cast %275 : vector<16xf32> to vector<16x1xf32>
    %cst_84 = arith.constant 0.000000e+00 : f32
    %277 = vector.broadcast %cst_84 : f32 to vector<16x16xf32>
    %278 = arith.select %25, %258, %277 : vector<16x16xi1>, vector<16x16xf32>
    %cst_85 = arith.constant dense<0.000000e+00> : vector<16xf32>
    %279 = vector.multi_reduction <add>, %278, %cst_85 [1] : vector<16x16xf32> to vector<16xf32>
    %280 = vector.shape_cast %279 : vector<16xf32> to vector<16x1xf32>
    %cst_86 = arith.constant 0.000000e+00 : f32
    %281 = vector.broadcast %cst_86 : f32 to vector<16x16xf32>
    %282 = arith.select %27, %258, %281 : vector<16x16xi1>, vector<16x16xf32>
    %cst_87 = arith.constant dense<0.000000e+00> : vector<16xf32>
    %283 = vector.multi_reduction <add>, %282, %cst_87 [1] : vector<16x16xf32> to vector<16xf32>
    %284 = vector.shape_cast %283 : vector<16xf32> to vector<16x1xf32>
    %cst_88 = arith.constant 0.000000e+00 : f32
    %285 = vector.broadcast %cst_88 : f32 to vector<16x16xf32>
    %286 = arith.select %29, %258, %285 : vector<16x16xi1>, vector<16x16xf32>
    %cst_89 = arith.constant dense<0.000000e+00> : vector<16xf32>
    %287 = vector.multi_reduction <add>, %286, %cst_89 [1] : vector<16x16xf32> to vector<16xf32>
    %288 = vector.shape_cast %287 : vector<16xf32> to vector<16x1xf32>
    %cst_90 = arith.constant 0.000000e+00 : f32
    %289 = vector.broadcast %cst_90 : f32 to vector<16x16xf32>
    %290 = arith.select %31, %258, %289 : vector<16x16xi1>, vector<16x16xf32>
    %cst_91 = arith.constant dense<0.000000e+00> : vector<16xf32>
    %291 = vector.multi_reduction <add>, %290, %cst_91 [1] : vector<16x16xf32> to vector<16xf32>
    %292 = vector.shape_cast %291 : vector<16xf32> to vector<16x1xf32>
    %cst_92 = arith.constant 0.000000e+00 : f32
    %293 = vector.broadcast %cst_92 : f32 to vector<16x16xf32>
    %294 = arith.select %33, %258, %293 : vector<16x16xi1>, vector<16x16xf32>
    %cst_93 = arith.constant dense<0.000000e+00> : vector<16xf32>
    %295 = vector.multi_reduction <add>, %294, %cst_93 [1] : vector<16x16xf32> to vector<16xf32>
    %296 = vector.shape_cast %295 : vector<16xf32> to vector<16x1xf32>
    %297 = tpu.concatenate %264, %268, %272, %276, %280, %284, %288, %292, %296 in 1 : vector<16x1xf32>, vector<16x1xf32>, vector<16x1xf32>, vector<16x1xf32>, vector<16x1xf32>, vector<16x1xf32>, vector<16x1xf32>, vector<16x1xf32>, vector<16x1xf32> -> vector<16x9xf32>
    %298 = tpu.concatenate %145, %260 in 1 : vector<16x16xf32>, vector<16x16xf32> -> vector<16x32xf32>
    %299 = tpu.concatenate %182, %297 in 1 : vector<16x9xf32>, vector<16x9xf32> -> vector<16x18xf32>
    %300 = arith.truncf %299 : vector<16x18xf32> to vector<16x18xbf16>
    %c0_94 = arith.constant 0 : index
    %c0_95 = arith.constant 0 : index
    %301 = vector.load %arg11[%c0_94, %c0_95] : memref<18x32xbf16, #tpu.memory_space<vmem>>, vector<18x32xbf16>
    %cst_96 = arith.constant dense<0.000000e+00> : vector<16x32xf32>
    %302 = tpu.matmul %300, %301, %cst_96 {dimension_numbers = #tpu.dot_dimension_numbers<[1], [0], [0], [1], [0, 0, 1, 1], [], []>} : vector<16x18xbf16>, vector<18x32xbf16>, vector<16x32xf32> -> vector<16x32xf32>
    %303 = arith.addf %298, %302 : vector<16x32xf32>
    %304 = arith.truncf %303 : vector<16x32xf32> to vector<16x32xbf16>
    %c0_97 = arith.constant 0 : index
    %c0_98 = arith.constant 0 : index
    %305 = vector.load %arg8[%c0_97, %c0_98] : memref<32x32xbf16, #tpu.memory_space<vmem>>, vector<32x32xbf16>
    %cst_99 = arith.constant dense<0.000000e+00> : vector<16x32xf32>
    %306 = tpu.matmul %304, %305, %cst_99 {dimension_numbers = #tpu.dot_dimension_numbers<[1], [0], [0], [1], [0, 0, 1, 1], [], []>} : vector<16x32xbf16>, vector<32x32xbf16>, vector<16x32xf32> -> vector<16x32xf32>
    %c0_100 = arith.constant 0 : index
    %c0_101 = arith.constant 0 : index
    %307 = vector.load %arg9[%c0_100, %c0_101] : memref<1x32xf32, #tpu.memory_space<vmem>>, vector<1x32xf32>
    %308 = vector.broadcast %307 : vector<1x32xf32> to vector<16x32xf32>
    %309 = arith.addf %306, %308 : vector<16x32xf32>
    %310 = arith.addf %7, %309 : vector<16x32xf32>
    %c0_102 = arith.constant 0 : index
    %c0_103 = arith.constant 0 : index
    %c0_104 = arith.constant 0 : index
    %311 = vector.load %arg20[%c0_102, %c0_103, %c0_104] : memref<1x16x32xf32, #tpu.memory_space<vmem>>, vector<1x16x32xf32>
    %312 = vector.shape_cast %311 : vector<1x16x32xf32> to vector<16x32xf32>
    %313 = vector.shape_cast %310 : vector<16x32xf32> to vector<1x16x32xf32>
    tpu.vector_store %arg20[%c0_102, %c0_103, %c0_104], %313 {strides = array<i32>} : memref<1x16x32xf32, #tpu.memory_space<vmem>>, vector<1x16x32xf32>,
    %c0_105 = arith.constant 0 : index
    %c0_106 = arith.constant 0 : index
    %314 = vector.load %arg12[%c0_105, %c0_106] : memref<1x32xf32, #tpu.memory_space<vmem>>, vector<1x32xf32>
    %c0_107 = arith.constant 0 : index
    %c0_108 = arith.constant 0 : index
    %315 = vector.load %arg13[%c0_107, %c0_108] : memref<1x32xf32, #tpu.memory_space<vmem>>, vector<1x32xf32>
    %cst_109 = arith.constant dense<0.000000e+00> : vector<16xf32>
    %316 = vector.multi_reduction <add>, %7, %cst_109 [1] : vector<16x32xf32> to vector<16xf32>
    %317 = vector.shape_cast %316 : vector<16xf32> to vector<16x1xf32>
    %cst_110 = arith.constant 3.200000e+01 : f32
    %318 = vector.broadcast %cst_110 : f32 to vector<16x1xf32>
    %319 = arith.divf %317, %318 : vector<16x1xf32>
    %320 = vector.broadcast %319 : vector<16x1xf32> to vector<16x32xf32>
    %321 = arith.subf %7, %320 : vector<16x32xf32>
    %322 = arith.mulf %321, %321 : vector<16x32xf32>
    %cst_111 = arith.constant dense<0.000000e+00> : vector<16xf32>
    %323 = vector.multi_reduction <add>, %322, %cst_111 [1] : vector<16x32xf32> to vector<16xf32>
    %324 = vector.shape_cast %323 : vector<16xf32> to vector<16x1xf32>
    %cst_112 = arith.constant 3.200000e+01 : f32
    %325 = vector.broadcast %cst_112 : f32 to vector<16x1xf32>
    %326 = arith.divf %324, %325 : vector<16x1xf32>
    %cst_113 = arith.constant 9.99999974E-5 : f32
    %327 = vector.broadcast %cst_113 : f32 to vector<16x1xf32>
    %328 = arith.addf %326, %327 : vector<16x1xf32>
    %329 = math.rsqrt %328 : vector<16x1xf32>
    %330 = vector.broadcast %329 : vector<16x1xf32> to vector<16x32xf32>
    %331 = arith.mulf %321, %330 : vector<16x32xf32>
    %332 = vector.broadcast %314 : vector<1x32xf32> to vector<16x32xf32>
    %333 = arith.mulf %331, %332 : vector<16x32xf32>
    %334 = vector.broadcast %315 : vector<1x32xf32> to vector<16x32xf32>
    %335 = arith.addf %333, %334 : vector<16x32xf32>
    %336 = arith.truncf %335 : vector<16x32xf32> to vector<16x32xbf16>
    %c0_114 = arith.constant 0 : index
    %c0_115 = arith.constant 0 : index
    %337 = vector.load %arg14[%c0_114, %c0_115] : memref<32x96xbf16, #tpu.memory_space<vmem>>, vector<32x96xbf16>
    %cst_116 = arith.constant dense<0.000000e+00> : vector<16x96xf32>
    %338 = tpu.matmul %336, %337, %cst_116 {dimension_numbers = #tpu.dot_dimension_numbers<[1], [0], [0], [1], [0, 0, 1, 1], [], []>} : vector<16x32xbf16>, vector<32x96xbf16>, vector<16x96xf32> -> vector<16x96xf32>
    %c0_117 = arith.constant 0 : index
    %c0_118 = arith.constant 0 : index
    %339 = vector.load %arg15[%c0_117, %c0_118] : memref<1x96xf32, #tpu.memory_space<vmem>>, vector<1x96xf32>
    %340 = vector.broadcast %339 : vector<1x96xf32> to vector<16x96xf32>
    %341 = arith.addf %338, %340 : vector<16x96xf32>
    %342 = vector.extract_strided_slice %341 {offsets = [0, 0], sizes = [16, 32], strides = [1, 1]} : vector<16x96xf32> to vector<16x32xf32>
    %343 = arith.truncf %342 : vector<16x32xf32> to vector<16x32xbf16>
    %c0_119 = arith.constant 0 : index
    %c0_120 = arith.constant 0 : index
    %344 = vector.load %arg18[%c0_119, %c0_120] : memref<32x18xbf16, #tpu.memory_space<vmem>>, vector<32x18xbf16>
    %cst_121 = arith.constant dense<0.000000e+00> : vector<16x18xf32>
    %345 = tpu.matmul %343, %344, %cst_121 {dimension_numbers = #tpu.dot_dimension_numbers<[1], [0], [0], [1], [0, 0, 1, 1], [], []>} : vector<16x32xbf16>, vector<32x18xbf16>, vector<16x18xf32> -> vector<16x18xf32>
    %cst_122 = arith.constant 2.500000e-01 : f32
    %346 = vector.broadcast %cst_122 : f32 to vector<16x18xf32>
    %347 = arith.mulf %345, %346 : vector<16x18xf32>
    %348 = vector.extract_strided_slice %343 {offsets = [0, 0], sizes = [16, 16], strides = [1, 1]} : vector<16x32xbf16> to vector<16x16xbf16>
    %349 = vector.extract_strided_slice %341 {offsets = [0, 32], sizes = [16, 16], strides = [1, 1]} : vector<16x96xf32> to vector<16x16xf32>
    %350 = arith.truncf %349 : vector<16x16xf32> to vector<16x16xbf16>
    %351 = vector.extract_strided_slice %341 {offsets = [0, 64], sizes = [16, 16], strides = [1, 1]} : vector<16x96xf32> to vector<16x16xf32>
    %352 = arith.truncf %351 : vector<16x16xf32> to vector<16x16xbf16>
    %cst_123 = arith.constant dense<0.000000e+00> : vector<16x16xf32>
    %353 = tpu.matmul %348, %350, %cst_123 {dimension_numbers = #tpu.dot_dimension_numbers<[1], [1], [0], [0], [0, 0, 1, 0], [], []>} : vector<16x16xbf16>, vector<16x16xbf16>, vector<16x16xf32> -> vector<16x16xf32>
    %cst_124 = arith.constant 2.500000e-01 : f32
    %354 = vector.broadcast %cst_124 : f32 to vector<16x16xf32>
    %355 = arith.mulf %353, %354 : vector<16x16xf32>
    %356 = vector.extract_strided_slice %347 {offsets = [0, 0], sizes = [16, 9], strides = [1, 1]} : vector<16x18xf32> to vector<16x9xf32>
    %357 = vector.extract_strided_slice %356 {offsets = [0, 0], sizes = [16, 1], strides = [1, 1]} : vector<16x9xf32> to vector<16x1xf32>
    %cst_125 = arith.constant 0.000000e+00 : f32
    %358 = vector.shape_cast %357 : vector<16x1xf32> to vector<16x1xf32>
    %359 = vector.broadcast %358 : vector<16x1xf32> to vector<16x16xf32>
    %360 = vector.broadcast %cst_125 : f32 to vector<16x16xf32>
    %361 = arith.select %17, %359, %360 : vector<16x16xi1>, vector<16x16xf32>
    %362 = arith.addf %355, %361 : vector<16x16xf32>
    %363 = vector.extract_strided_slice %356 {offsets = [0, 1], sizes = [16, 1], strides = [1, 1]} : vector<16x9xf32> to vector<16x1xf32>
    %cst_126 = arith.constant 0.000000e+00 : f32
    %364 = vector.shape_cast %363 : vector<16x1xf32> to vector<16x1xf32>
    %365 = vector.broadcast %364 : vector<16x1xf32> to vector<16x16xf32>
    %366 = vector.broadcast %cst_126 : f32 to vector<16x16xf32>
    %367 = arith.select %19, %365, %366 : vector<16x16xi1>, vector<16x16xf32>
    %368 = arith.addf %362, %367 : vector<16x16xf32>
    %369 = vector.extract_strided_slice %356 {offsets = [0, 2], sizes = [16, 1], strides = [1, 1]} : vector<16x9xf32> to vector<16x1xf32>
    %cst_127 = arith.constant 0.000000e+00 : f32
    %370 = vector.shape_cast %369 : vector<16x1xf32> to vector<16x1xf32>
    %371 = vector.broadcast %370 : vector<16x1xf32> to vector<16x16xf32>
    %372 = vector.broadcast %cst_127 : f32 to vector<16x16xf32>
    %373 = arith.select %21, %371, %372 : vector<16x16xi1>, vector<16x16xf32>
    %374 = arith.addf %368, %373 : vector<16x16xf32>
    %375 = vector.extract_strided_slice %356 {offsets = [0, 3], sizes = [16, 1], strides = [1, 1]} : vector<16x9xf32> to vector<16x1xf32>
    %cst_128 = arith.constant 0.000000e+00 : f32
    %376 = vector.shape_cast %375 : vector<16x1xf32> to vector<16x1xf32>
    %377 = vector.broadcast %376 : vector<16x1xf32> to vector<16x16xf32>
    %378 = vector.broadcast %cst_128 : f32 to vector<16x16xf32>
    %379 = arith.select %23, %377, %378 : vector<16x16xi1>, vector<16x16xf32>
    %380 = arith.addf %374, %379 : vector<16x16xf32>
    %381 = vector.extract_strided_slice %356 {offsets = [0, 4], sizes = [16, 1], strides = [1, 1]} : vector<16x9xf32> to vector<16x1xf32>
    %cst_129 = arith.constant 0.000000e+00 : f32
    %382 = vector.shape_cast %381 : vector<16x1xf32> to vector<16x1xf32>
    %383 = vector.broadcast %382 : vector<16x1xf32> to vector<16x16xf32>
    %384 = vector.broadcast %cst_129 : f32 to vector<16x16xf32>
    %385 = arith.select %25, %383, %384 : vector<16x16xi1>, vector<16x16xf32>
    %386 = arith.addf %380, %385 : vector<16x16xf32>
    %387 = vector.extract_strided_slice %356 {offsets = [0, 5], sizes = [16, 1], strides = [1, 1]} : vector<16x9xf32> to vector<16x1xf32>
    %cst_130 = arith.constant 0.000000e+00 : f32
    %388 = vector.shape_cast %387 : vector<16x1xf32> to vector<16x1xf32>
    %389 = vector.broadcast %388 : vector<16x1xf32> to vector<16x16xf32>
    %390 = vector.broadcast %cst_130 : f32 to vector<16x16xf32>
    %391 = arith.select %27, %389, %390 : vector<16x16xi1>, vector<16x16xf32>
    %392 = arith.addf %386, %391 : vector<16x16xf32>
    %393 = vector.extract_strided_slice %356 {offsets = [0, 6], sizes = [16, 1], strides = [1, 1]} : vector<16x9xf32> to vector<16x1xf32>
    %cst_131 = arith.constant 0.000000e+00 : f32
    %394 = vector.shape_cast %393 : vector<16x1xf32> to vector<16x1xf32>
    %395 = vector.broadcast %394 : vector<16x1xf32> to vector<16x16xf32>
    %396 = vector.broadcast %cst_131 : f32 to vector<16x16xf32>
    %397 = arith.select %29, %395, %396 : vector<16x16xi1>, vector<16x16xf32>
    %398 = arith.addf %392, %397 : vector<16x16xf32>
    %399 = vector.extract_strided_slice %356 {offsets = [0, 7], sizes = [16, 1], strides = [1, 1]} : vector<16x9xf32> to vector<16x1xf32>
    %cst_132 = arith.constant 0.000000e+00 : f32
    %400 = vector.shape_cast %399 : vector<16x1xf32> to vector<16x1xf32>
    %401 = vector.broadcast %400 : vector<16x1xf32> to vector<16x16xf32>
    %402 = vector.broadcast %cst_132 : f32 to vector<16x16xf32>
    %403 = arith.select %31, %401, %402 : vector<16x16xi1>, vector<16x16xf32>
    %404 = arith.addf %398, %403 : vector<16x16xf32>
    %405 = vector.extract_strided_slice %356 {offsets = [0, 8], sizes = [16, 1], strides = [1, 1]} : vector<16x9xf32> to vector<16x1xf32>
    %cst_133 = arith.constant 0.000000e+00 : f32
    %406 = vector.shape_cast %405 : vector<16x1xf32> to vector<16x1xf32>
    %407 = vector.broadcast %406 : vector<16x1xf32> to vector<16x16xf32>
    %408 = vector.broadcast %cst_133 : f32 to vector<16x16xf32>
    %409 = arith.select %33, %407, %408 : vector<16x16xi1>, vector<16x16xf32>
    %410 = arith.addf %404, %409 : vector<16x16xf32>
    %cst_134 = arith.constant -1.000000e+04 : f32
    %411 = vector.broadcast %cst_134 : f32 to vector<16x16xf32>
    %412 = arith.select %15, %411, %410 : vector<16x16xi1>, vector<16x16xf32>
    %cst_135 = arith.constant dense<0xFF800000> : vector<16xf32>
    %413 = vector.multi_reduction <maximumf>, %412, %cst_135 [1] : vector<16x16xf32> to vector<16xf32>
    %414 = vector.shape_cast %413 : vector<16xf32> to vector<16x1xf32>
    %415 = vector.broadcast %414 : vector<16x1xf32> to vector<16x16xf32>
    %416 = arith.subf %412, %415 : vector<16x16xf32>
    %417 = math.exp %416 : vector<16x16xf32>
    %cst_136 = arith.constant dense<0.000000e+00> : vector<16xf32>
    %418 = vector.multi_reduction <add>, %417, %cst_136 [1] : vector<16x16xf32> to vector<16xf32>
    %419 = vector.shape_cast %418 : vector<16xf32> to vector<16x1xf32>
    %cst_137 = arith.constant 1.000000e+00 : f32
    %420 = vector.broadcast %cst_137 : f32 to vector<16x1xf32>
    %421 = arith.divf %420, %419 : vector<16x1xf32>
    %422 = vector.broadcast %421 : vector<16x1xf32> to vector<16x16xf32>
    %423 = arith.mulf %417, %422 : vector<16x16xf32>
    %424 = arith.truncf %423 : vector<16x16xf32> to vector<16x16xbf16>
    %cst_138 = arith.constant dense<0.000000e+00> : vector<16x16xf32>
    %425 = tpu.matmul %424, %352, %cst_138 {dimension_numbers = #tpu.dot_dimension_numbers<[1], [0], [0], [1], [0, 0, 1, 1], [], []>} : vector<16x16xbf16>, vector<16x16xbf16>, vector<16x16xf32> -> vector<16x16xf32>
    %cst_139 = arith.constant 0.000000e+00 : f32
    %426 = vector.broadcast %cst_139 : f32 to vector<16x16xf32>
    %427 = arith.select %17, %423, %426 : vector<16x16xi1>, vector<16x16xf32>
    %cst_140 = arith.constant dense<0.000000e+00> : vector<16xf32>
    %428 = vector.multi_reduction <add>, %427, %cst_140 [1] : vector<16x16xf32> to vector<16xf32>
    %429 = vector.shape_cast %428 : vector<16xf32> to vector<16x1xf32>
    %cst_141 = arith.constant 0.000000e+00 : f32
    %430 = vector.broadcast %cst_141 : f32 to vector<16x16xf32>
    %431 = arith.select %19, %423, %430 : vector<16x16xi1>, vector<16x16xf32>
    %cst_142 = arith.constant dense<0.000000e+00> : vector<16xf32>
    %432 = vector.multi_reduction <add>, %431, %cst_142 [1] : vector<16x16xf32> to vector<16xf32>
    %433 = vector.shape_cast %432 : vector<16xf32> to vector<16x1xf32>
    %cst_143 = arith.constant 0.000000e+00 : f32
    %434 = vector.broadcast %cst_143 : f32 to vector<16x16xf32>
    %435 = arith.select %21, %423, %434 : vector<16x16xi1>, vector<16x16xf32>
    %cst_144 = arith.constant dense<0.000000e+00> : vector<16xf32>
    %436 = vector.multi_reduction <add>, %435, %cst_144 [1] : vector<16x16xf32> to vector<16xf32>
    %437 = vector.shape_cast %436 : vector<16xf32> to vector<16x1xf32>
    %cst_145 = arith.constant 0.000000e+00 : f32
    %438 = vector.broadcast %cst_145 : f32 to vector<16x16xf32>
    %439 = arith.select %23, %423, %438 : vector<16x16xi1>, vector<16x16xf32>
    %cst_146 = arith.constant dense<0.000000e+00> : vector<16xf32>
    %440 = vector.multi_reduction <add>, %439, %cst_146 [1] : vector<16x16xf32> to vector<16xf32>
    %441 = vector.shape_cast %440 : vector<16xf32> to vector<16x1xf32>
    %cst_147 = arith.constant 0.000000e+00 : f32
    %442 = vector.broadcast %cst_147 : f32 to vector<16x16xf32>
    %443 = arith.select %25, %423, %442 : vector<16x16xi1>, vector<16x16xf32>
    %cst_148 = arith.constant dense<0.000000e+00> : vector<16xf32>
    %444 = vector.multi_reduction <add>, %443, %cst_148 [1] : vector<16x16xf32> to vector<16xf32>
    %445 = vector.shape_cast %444 : vector<16xf32> to vector<16x1xf32>
    %cst_149 = arith.constant 0.000000e+00 : f32
    %446 = vector.broadcast %cst_149 : f32 to vector<16x16xf32>
    %447 = arith.select %27, %423, %446 : vector<16x16xi1>, vector<16x16xf32>
    %cst_150 = arith.constant dense<0.000000e+00> : vector<16xf32>
    %448 = vector.multi_reduction <add>, %447, %cst_150 [1] : vector<16x16xf32> to vector<16xf32>
    %449 = vector.shape_cast %448 : vector<16xf32> to vector<16x1xf32>
    %cst_151 = arith.constant 0.000000e+00 : f32
    %450 = vector.broadcast %cst_151 : f32 to vector<16x16xf32>
    %451 = arith.select %29, %423, %450 : vector<16x16xi1>, vector<16x16xf32>
    %cst_152 = arith.constant dense<0.000000e+00> : vector<16xf32>
    %452 = vector.multi_reduction <add>, %451, %cst_152 [1] : vector<16x16xf32> to vector<16xf32>
    %453 = vector.shape_cast %452 : vector<16xf32> to vector<16x1xf32>
    %cst_153 = arith.constant 0.000000e+00 : f32
    %454 = vector.broadcast %cst_153 : f32 to vector<16x16xf32>
    %455 = arith.select %31, %423, %454 : vector<16x16xi1>, vector<16x16xf32>
    %cst_154 = arith.constant dense<0.000000e+00> : vector<16xf32>
    %456 = vector.multi_reduction <add>, %455, %cst_154 [1] : vector<16x16xf32> to vector<16xf32>
    %457 = vector.shape_cast %456 : vector<16xf32> to vector<16x1xf32>
    %cst_155 = arith.constant 0.000000e+00 : f32
    %458 = vector.broadcast %cst_155 : f32 to vector<16x16xf32>
    %459 = arith.select %33, %423, %458 : vector<16x16xi1>, vector<16x16xf32>
    %cst_156 = arith.constant dense<0.000000e+00> : vector<16xf32>
    %460 = vector.multi_reduction <add>, %459, %cst_156 [1] : vector<16x16xf32> to vector<16xf32>
    %461 = vector.shape_cast %460 : vector<16xf32> to vector<16x1xf32>
    %462 = tpu.concatenate %429, %433, %437, %441, %445, %449, %453, %457, %461 in 1 : vector<16x1xf32>, vector<16x1xf32>, vector<16x1xf32>, vector<16x1xf32>, vector<16x1xf32>, vector<16x1xf32>, vector<16x1xf32>, vector<16x1xf32>, vector<16x1xf32> -> vector<16x9xf32>
    %463 = vector.extract_strided_slice %343 {offsets = [0, 16], sizes = [16, 16], strides = [1, 1]} : vector<16x32xbf16> to vector<16x16xbf16>
    %464 = vector.extract_strided_slice %341 {offsets = [0, 48], sizes = [16, 16], strides = [1, 1]} : vector<16x96xf32> to vector<16x16xf32>
    %465 = arith.truncf %464 : vector<16x16xf32> to vector<16x16xbf16>
    %466 = vector.extract_strided_slice %341 {offsets = [0, 80], sizes = [16, 16], strides = [1, 1]} : vector<16x96xf32> to vector<16x16xf32>
    %467 = arith.truncf %466 : vector<16x16xf32> to vector<16x16xbf16>
    %cst_157 = arith.constant dense<0.000000e+00> : vector<16x16xf32>
    %468 = tpu.matmul %463, %465, %cst_157 {dimension_numbers = #tpu.dot_dimension_numbers<[1], [1], [0], [0], [0, 0, 1, 0], [], []>} : vector<16x16xbf16>, vector<16x16xbf16>, vector<16x16xf32> -> vector<16x16xf32>
    %cst_158 = arith.constant 2.500000e-01 : f32
    %469 = vector.broadcast %cst_158 : f32 to vector<16x16xf32>
    %470 = arith.mulf %468, %469 : vector<16x16xf32>
    %471 = vector.extract_strided_slice %347 {offsets = [0, 9], sizes = [16, 9], strides = [1, 1]} : vector<16x18xf32> to vector<16x9xf32>
    %472 = vector.extract_strided_slice %471 {offsets = [0, 0], sizes = [16, 1], strides = [1, 1]} : vector<16x9xf32> to vector<16x1xf32>
    %cst_159 = arith.constant 0.000000e+00 : f32
    %473 = vector.shape_cast %472 : vector<16x1xf32> to vector<16x1xf32>
    %474 = vector.broadcast %473 : vector<16x1xf32> to vector<16x16xf32>
    %475 = vector.broadcast %cst_159 : f32 to vector<16x16xf32>
    %476 = arith.select %17, %474, %475 : vector<16x16xi1>, vector<16x16xf32>
    %477 = arith.addf %470, %476 : vector<16x16xf32>
    %478 = vector.extract_strided_slice %471 {offsets = [0, 1], sizes = [16, 1], strides = [1, 1]} : vector<16x9xf32> to vector<16x1xf32>
    %cst_160 = arith.constant 0.000000e+00 : f32
    %479 = vector.shape_cast %478 : vector<16x1xf32> to vector<16x1xf32>
    %480 = vector.broadcast %479 : vector<16x1xf32> to vector<16x16xf32>
    %481 = vector.broadcast %cst_160 : f32 to vector<16x16xf32>
    %482 = arith.select %19, %480, %481 : vector<16x16xi1>, vector<16x16xf32>
    %483 = arith.addf %477, %482 : vector<16x16xf32>
    %484 = vector.extract_strided_slice %471 {offsets = [0, 2], sizes = [16, 1], strides = [1, 1]} : vector<16x9xf32> to vector<16x1xf32>
    %cst_161 = arith.constant 0.000000e+00 : f32
    %485 = vector.shape_cast %484 : vector<16x1xf32> to vector<16x1xf32>
    %486 = vector.broadcast %485 : vector<16x1xf32> to vector<16x16xf32>
    %487 = vector.broadcast %cst_161 : f32 to vector<16x16xf32>
    %488 = arith.select %21, %486, %487 : vector<16x16xi1>, vector<16x16xf32>
    %489 = arith.addf %483, %488 : vector<16x16xf32>
    %490 = vector.extract_strided_slice %471 {offsets = [0, 3], sizes = [16, 1], strides = [1, 1]} : vector<16x9xf32> to vector<16x1xf32>
    %cst_162 = arith.constant 0.000000e+00 : f32
    %491 = vector.shape_cast %490 : vector<16x1xf32> to vector<16x1xf32>
    %492 = vector.broadcast %491 : vector<16x1xf32> to vector<16x16xf32>
    %493 = vector.broadcast %cst_162 : f32 to vector<16x16xf32>
    %494 = arith.select %23, %492, %493 : vector<16x16xi1>, vector<16x16xf32>
    %495 = arith.addf %489, %494 : vector<16x16xf32>
    %496 = vector.extract_strided_slice %471 {offsets = [0, 4], sizes = [16, 1], strides = [1, 1]} : vector<16x9xf32> to vector<16x1xf32>
    %cst_163 = arith.constant 0.000000e+00 : f32
    %497 = vector.shape_cast %496 : vector<16x1xf32> to vector<16x1xf32>
    %498 = vector.broadcast %497 : vector<16x1xf32> to vector<16x16xf32>
    %499 = vector.broadcast %cst_163 : f32 to vector<16x16xf32>
    %500 = arith.select %25, %498, %499 : vector<16x16xi1>, vector<16x16xf32>
    %501 = arith.addf %495, %500 : vector<16x16xf32>
    %502 = vector.extract_strided_slice %471 {offsets = [0, 5], sizes = [16, 1], strides = [1, 1]} : vector<16x9xf32> to vector<16x1xf32>
    %cst_164 = arith.constant 0.000000e+00 : f32
    %503 = vector.shape_cast %502 : vector<16x1xf32> to vector<16x1xf32>
    %504 = vector.broadcast %503 : vector<16x1xf32> to vector<16x16xf32>
    %505 = vector.broadcast %cst_164 : f32 to vector<16x16xf32>
    %506 = arith.select %27, %504, %505 : vector<16x16xi1>, vector<16x16xf32>
    %507 = arith.addf %501, %506 : vector<16x16xf32>
    %508 = vector.extract_strided_slice %471 {offsets = [0, 6], sizes = [16, 1], strides = [1, 1]} : vector<16x9xf32> to vector<16x1xf32>
    %cst_165 = arith.constant 0.000000e+00 : f32
    %509 = vector.shape_cast %508 : vector<16x1xf32> to vector<16x1xf32>
    %510 = vector.broadcast %509 : vector<16x1xf32> to vector<16x16xf32>
    %511 = vector.broadcast %cst_165 : f32 to vector<16x16xf32>
    %512 = arith.select %29, %510, %511 : vector<16x16xi1>, vector<16x16xf32>
    %513 = arith.addf %507, %512 : vector<16x16xf32>
    %514 = vector.extract_strided_slice %471 {offsets = [0, 7], sizes = [16, 1], strides = [1, 1]} : vector<16x9xf32> to vector<16x1xf32>
    %cst_166 = arith.constant 0.000000e+00 : f32
    %515 = vector.shape_cast %514 : vector<16x1xf32> to vector<16x1xf32>
    %516 = vector.broadcast %515 : vector<16x1xf32> to vector<16x16xf32>
    %517 = vector.broadcast %cst_166 : f32 to vector<16x16xf32>
    %518 = arith.select %31, %516, %517 : vector<16x16xi1>, vector<16x16xf32>
    %519 = arith.addf %513, %518 : vector<16x16xf32>
    %520 = vector.extract_strided_slice %471 {offsets = [0, 8], sizes = [16, 1], strides = [1, 1]} : vector<16x9xf32> to vector<16x1xf32>
    %cst_167 = arith.constant 0.000000e+00 : f32
    %521 = vector.shape_cast %520 : vector<16x1xf32> to vector<16x1xf32>
    %522 = vector.broadcast %521 : vector<16x1xf32> to vector<16x16xf32>
    %523 = vector.broadcast %cst_167 : f32 to vector<16x16xf32>
    %524 = arith.select %33, %522, %523 : vector<16x16xi1>, vector<16x16xf32>
    %525 = arith.addf %519, %524 : vector<16x16xf32>
    %cst_168 = arith.constant -1.000000e+04 : f32
    %526 = vector.broadcast %cst_168 : f32 to vector<16x16xf32>
    %527 = arith.select %15, %526, %525 : vector<16x16xi1>, vector<16x16xf32>
    %cst_169 = arith.constant dense<0xFF800000> : vector<16xf32>
    %528 = vector.multi_reduction <maximumf>, %527, %cst_169 [1] : vector<16x16xf32> to vector<16xf32>
    %529 = vector.shape_cast %528 : vector<16xf32> to vector<16x1xf32>
    %530 = vector.broadcast %529 : vector<16x1xf32> to vector<16x16xf32>
    %531 = arith.subf %527, %530 : vector<16x16xf32>
    %532 = math.exp %531 : vector<16x16xf32>
    %cst_170 = arith.constant dense<0.000000e+00> : vector<16xf32>
    %533 = vector.multi_reduction <add>, %532, %cst_170 [1] : vector<16x16xf32> to vector<16xf32>
    %534 = vector.shape_cast %533 : vector<16xf32> to vector<16x1xf32>
    %cst_171 = arith.constant 1.000000e+00 : f32
    %535 = vector.broadcast %cst_171 : f32 to vector<16x1xf32>
    %536 = arith.divf %535, %534 : vector<16x1xf32>
    %537 = vector.broadcast %536 : vector<16x1xf32> to vector<16x16xf32>
    %538 = arith.mulf %532, %537 : vector<16x16xf32>
    %539 = arith.truncf %538 : vector<16x16xf32> to vector<16x16xbf16>
    %cst_172 = arith.constant dense<0.000000e+00> : vector<16x16xf32>
    %540 = tpu.matmul %539, %467, %cst_172 {dimension_numbers = #tpu.dot_dimension_numbers<[1], [0], [0], [1], [0, 0, 1, 1], [], []>} : vector<16x16xbf16>, vector<16x16xbf16>, vector<16x16xf32> -> vector<16x16xf32>
    %cst_173 = arith.constant 0.000000e+00 : f32
    %541 = vector.broadcast %cst_173 : f32 to vector<16x16xf32>
    %542 = arith.select %17, %538, %541 : vector<16x16xi1>, vector<16x16xf32>
    %cst_174 = arith.constant dense<0.000000e+00> : vector<16xf32>
    %543 = vector.multi_reduction <add>, %542, %cst_174 [1] : vector<16x16xf32> to vector<16xf32>
    %544 = vector.shape_cast %543 : vector<16xf32> to vector<16x1xf32>
    %cst_175 = arith.constant 0.000000e+00 : f32
    %545 = vector.broadcast %cst_175 : f32 to vector<16x16xf32>
    %546 = arith.select %19, %538, %545 : vector<16x16xi1>, vector<16x16xf32>
    %cst_176 = arith.constant dense<0.000000e+00> : vector<16xf32>
    %547 = vector.multi_reduction <add>, %546, %cst_176 [1] : vector<16x16xf32> to vector<16xf32>
    %548 = vector.shape_cast %547 : vector<16xf32> to vector<16x1xf32>
    %cst_177 = arith.constant 0.000000e+00 : f32
    %549 = vector.broadcast %cst_177 : f32 to vector<16x16xf32>
    %550 = arith.select %21, %538, %549 : vector<16x16xi1>, vector<16x16xf32>
    %cst_178 = arith.constant dense<0.000000e+00> : vector<16xf32>
    %551 = vector.multi_reduction <add>, %550, %cst_178 [1] : vector<16x16xf32> to vector<16xf32>
    %552 = vector.shape_cast %551 : vector<16xf32> to vector<16x1xf32>
    %cst_179 = arith.constant 0.000000e+00 : f32
    %553 = vector.broadcast %cst_179 : f32 to vector<16x16xf32>
    %554 = arith.select %23, %538, %553 : vector<16x16xi1>, vector<16x16xf32>
    %cst_180 = arith.constant dense<0.000000e+00> : vector<16xf32>
    %555 = vector.multi_reduction <add>, %554, %cst_180 [1] : vector<16x16xf32> to vector<16xf32>
    %556 = vector.shape_cast %555 : vector<16xf32> to vector<16x1xf32>
    %cst_181 = arith.constant 0.000000e+00 : f32
    %557 = vector.broadcast %cst_181 : f32 to vector<16x16xf32>
    %558 = arith.select %25, %538, %557 : vector<16x16xi1>, vector<16x16xf32>
    %cst_182 = arith.constant dense<0.000000e+00> : vector<16xf32>
    %559 = vector.multi_reduction <add>, %558, %cst_182 [1] : vector<16x16xf32> to vector<16xf32>
    %560 = vector.shape_cast %559 : vector<16xf32> to vector<16x1xf32>
    %cst_183 = arith.constant 0.000000e+00 : f32
    %561 = vector.broadcast %cst_183 : f32 to vector<16x16xf32>
    %562 = arith.select %27, %538, %561 : vector<16x16xi1>, vector<16x16xf32>
    %cst_184 = arith.constant dense<0.000000e+00> : vector<16xf32>
    %563 = vector.multi_reduction <add>, %562, %cst_184 [1] : vector<16x16xf32> to vector<16xf32>
    %564 = vector.shape_cast %563 : vector<16xf32> to vector<16x1xf32>
    %cst_185 = arith.constant 0.000000e+00 : f32
    %565 = vector.broadcast %cst_185 : f32 to vector<16x16xf32>
    %566 = arith.select %29, %538, %565 : vector<16x16xi1>, vector<16x16xf32>
    %cst_186 = arith.constant dense<0.000000e+00> : vector<16xf32>
    %567 = vector.multi_reduction <add>, %566, %cst_186 [1] : vector<16x16xf32> to vector<16xf32>
    %568 = vector.shape_cast %567 : vector<16xf32> to vector<16x1xf32>
    %cst_187 = arith.constant 0.000000e+00 : f32
    %569 = vector.broadcast %cst_187 : f32 to vector<16x16xf32>
    %570 = arith.select %31, %538, %569 : vector<16x16xi1>, vector<16x16xf32>
    %cst_188 = arith.constant dense<0.000000e+00> : vector<16xf32>
    %571 = vector.multi_reduction <add>, %570, %cst_188 [1] : vector<16x16xf32> to vector<16xf32>
    %572 = vector.shape_cast %571 : vector<16xf32> to vector<16x1xf32>
    %cst_189 = arith.constant 0.000000e+00 : f32
    %573 = vector.broadcast %cst_189 : f32 to vector<16x16xf32>
    %574 = arith.select %33, %538, %573 : vector<16x16xi1>, vector<16x16xf32>
    %cst_190 = arith.constant dense<0.000000e+00> : vector<16xf32>
    %575 = vector.multi_reduction <add>, %574, %cst_190 [1] : vector<16x16xf32> to vector<16xf32>
    %576 = vector.shape_cast %575 : vector<16xf32> to vector<16x1xf32>
    %577 = tpu.concatenate %544, %548, %552, %556, %560, %564, %568, %572, %576 in 1 : vector<16x1xf32>, vector<16x1xf32>, vector<16x1xf32>, vector<16x1xf32>, vector<16x1xf32>, vector<16x1xf32>, vector<16x1xf32>, vector<16x1xf32>, vector<16x1xf32> -> vector<16x9xf32>
    %578 = tpu.concatenate %425, %540 in 1 : vector<16x16xf32>, vector<16x16xf32> -> vector<16x32xf32>
    %579 = tpu.concatenate %462, %577 in 1 : vector<16x9xf32>, vector<16x9xf32> -> vector<16x18xf32>
    %580 = arith.truncf %579 : vector<16x18xf32> to vector<16x18xbf16>
    %c0_191 = arith.constant 0 : index
    %c0_192 = arith.constant 0 : index
    %581 = vector.load %arg19[%c0_191, %c0_192] : memref<18x32xbf16, #tpu.memory_space<vmem>>, vector<18x32xbf16>
    %cst_193 = arith.constant dense<0.000000e+00> : vector<16x32xf32>
    %582 = tpu.matmul %580, %581, %cst_193 {dimension_numbers = #tpu.dot_dimension_numbers<[1], [0], [0], [1], [0, 0, 1, 1], [], []>} : vector<16x18xbf16>, vector<18x32xbf16>, vector<16x32xf32> -> vector<16x32xf32>
    %583 = arith.addf %578, %582 : vector<16x32xf32>
    %584 = arith.truncf %583 : vector<16x32xf32> to vector<16x32xbf16>
    %c0_194 = arith.constant 0 : index
    %c0_195 = arith.constant 0 : index
    %585 = vector.load %arg16[%c0_194, %c0_195] : memref<32x32xbf16, #tpu.memory_space<vmem>>, vector<32x32xbf16>
    %cst_196 = arith.constant dense<0.000000e+00> : vector<16x32xf32>
    %586 = tpu.matmul %584, %585, %cst_196 {dimension_numbers = #tpu.dot_dimension_numbers<[1], [0], [0], [1], [0, 0, 1, 1], [], []>} : vector<16x32xbf16>, vector<32x32xbf16>, vector<16x32xf32> -> vector<16x32xf32>
    %c0_197 = arith.constant 0 : index
    %c0_198 = arith.constant 0 : index
    %587 = vector.load %arg17[%c0_197, %c0_198] : memref<1x32xf32, #tpu.memory_space<vmem>>, vector<1x32xf32>
    %588 = vector.broadcast %587 : vector<1x32xf32> to vector<16x32xf32>
    %589 = arith.addf %586, %588 : vector<16x32xf32>
    %590 = arith.addf %7, %589 : vector<16x32xf32>
    %c0_199 = arith.constant 0 : index
    %c0_200 = arith.constant 0 : index
    %c0_201 = arith.constant 0 : index
    %591 = vector.load %arg21[%c0_199, %c0_200, %c0_201] : memref<1x16x32xf32, #tpu.memory_space<vmem>>, vector<1x16x32xf32>
    %592 = vector.shape_cast %591 : vector<1x16x32xf32> to vector<16x32xf32>
    %593 = vector.shape_cast %590 : vector<16x32xf32> to vector<1x16x32xf32>
    tpu.vector_store %arg21[%c0_199, %c0_200, %c0_201], %593 {strides = array<i32>} : memref<1x16x32xf32, #tpu.memory_space<vmem>>, vector<1x16x32xf32>,
    return
  }
  func.func @transform_0(%arg0: i32) -> (i32, i32, i32) {
    %c0_i32 = arith.constant 0 : i32
    %c0_i32_0 = arith.constant 0 : i32
    %c0_i32_1 = arith.constant 0 : i32
    return %arg0, %c0_i32, %c0_i32_0 : i32, i32, i32
  }
  func.func @transform_1(%arg0: i32) -> (i32, i32, i32) {
    %c0_i32 = arith.constant 0 : i32
    %c0_i32_0 = arith.constant 0 : i32
    %c0_i32_1 = arith.constant 0 : i32
    return %arg0, %c0_i32, %c0_i32_0 : i32, i32, i32
  }
  func.func @transform_2(%arg0: i32) -> (i32, i32, i32) {
    %c0_i32 = arith.constant 0 : i32
    %c0_i32_0 = arith.constant 0 : i32
    %c0_i32_1 = arith.constant 0 : i32
    return %arg0, %c0_i32, %c0_i32_0 : i32, i32, i32
  }
  func.func @transform_3(%arg0: i32) -> (i32, i32) {
    %c0_i32 = arith.constant 0 : i32
    %c0_i32_0 = arith.constant 0 : i32
    %c0_i32_1 = arith.constant 0 : i32
    return %c0_i32, %c0_i32_0 : i32, i32
  }
  func.func @transform_4(%arg0: i32) -> (i32, i32) {
    %c0_i32 = arith.constant 0 : i32
    %c0_i32_0 = arith.constant 0 : i32
    %c0_i32_1 = arith.constant 0 : i32
    return %c0_i32, %c0_i32_0 : i32, i32
  }
  func.func @transform_5(%arg0: i32) -> (i32, i32) {
    %c0_i32 = arith.constant 0 : i32
    %c0_i32_0 = arith.constant 0 : i32
    %c0_i32_1 = arith.constant 0 : i32
    return %c0_i32, %c0_i32_0 : i32, i32
  }
  func.func @transform_6(%arg0: i32) -> (i32, i32) {
    %c0_i32 = arith.constant 0 : i32
    %c0_i32_0 = arith.constant 0 : i32
    %c0_i32_1 = arith.constant 0 : i32
    return %c0_i32, %c0_i32_0 : i32, i32
  }
  func.func @transform_7(%arg0: i32) -> (i32, i32) {
    %c0_i32 = arith.constant 0 : i32
    %c0_i32_0 = arith.constant 0 : i32
    %c0_i32_1 = arith.constant 0 : i32
    return %c0_i32, %c0_i32_0 : i32, i32
  }
  func.func @transform_8(%arg0: i32) -> (i32, i32) {
    %c0_i32 = arith.constant 0 : i32
    %c0_i32_0 = arith.constant 0 : i32
    %c0_i32_1 = arith.constant 0 : i32
    return %c0_i32, %c0_i32_0 : i32, i32
  }
  func.func @transform_9(%arg0: i32) -> (i32, i32) {
    %c0_i32 = arith.constant 0 : i32
    %c0_i32_0 = arith.constant 0 : i32
    %c0_i32_1 = arith.constant 0 : i32
    return %c0_i32, %c0_i32_0 : i32, i32
  }
  func.func @transform_10(%arg0: i32) -> (i32, i32) {
    %c0_i32 = arith.constant 0 : i32
    %c0_i32_0 = arith.constant 0 : i32
    %c0_i32_1 = arith.constant 0 : i32
    return %c0_i32, %c0_i32_0 : i32, i32
  }
  func.func @transform_11(%arg0: i32) -> (i32, i32) {
    %c0_i32 = arith.constant 0 : i32
    %c0_i32_0 = arith.constant 0 : i32
    %c0_i32_1 = arith.constant 0 : i32
    return %c0_i32, %c0_i32_0 : i32, i32
  }
  func.func @transform_12(%arg0: i32) -> (i32, i32) {
    %c0_i32 = arith.constant 0 : i32
    %c0_i32_0 = arith.constant 0 : i32
    %c0_i32_1 = arith.constant 0 : i32
    return %c0_i32, %c0_i32_0 : i32, i32
  }
  func.func @transform_13(%arg0: i32) -> (i32, i32) {
    %c0_i32 = arith.constant 0 : i32
    %c0_i32_0 = arith.constant 0 : i32
    %c0_i32_1 = arith.constant 0 : i32
    return %c0_i32, %c0_i32_0 : i32, i32
  }
  func.func @transform_14(%arg0: i32) -> (i32, i32) {
    %c0_i32 = arith.constant 0 : i32
    %c0_i32_0 = arith.constant 0 : i32
    %c0_i32_1 = arith.constant 0 : i32
    return %c0_i32, %c0_i32_0 : i32, i32
  }
  func.func @transform_15(%arg0: i32) -> (i32, i32) {
    %c0_i32 = arith.constant 0 : i32
    %c0_i32_0 = arith.constant 0 : i32
    %c0_i32_1 = arith.constant 0 : i32
    return %c0_i32, %c0_i32_0 : i32, i32
  }
  func.func @transform_16(%arg0: i32) -> (i32, i32) {
    %c0_i32 = arith.constant 0 : i32
    %c0_i32_0 = arith.constant 0 : i32
    %c0_i32_1 = arith.constant 0 : i32
    return %c0_i32, %c0_i32_0 : i32, i32
  }
  func.func @transform_17(%arg0: i32) -> (i32, i32) {
    %c0_i32 = arith.constant 0 : i32
    %c0_i32_0 = arith.constant 0 : i32
    %c0_i32_1 = arith.constant 0 : i32
    return %c0_i32, %c0_i32_0 : i32, i32
  }
  func.func @transform_18(%arg0: i32) -> (i32, i32) {
    %c0_i32 = arith.constant 0 : i32
    %c0_i32_0 = arith.constant 0 : i32
    %c0_i32_1 = arith.constant 0 : i32
    return %c0_i32, %c0_i32_0 : i32, i32
  }
  func.func @transform_19(%arg0: i32) -> (i32, i32, i32) {
    %c0_i32 = arith.constant 0 : i32
    %c0_i32_0 = arith.constant 0 : i32
    %c0_i32_1 = arith.constant 0 : i32
    return %arg0, %c0_i32, %c0_i32_0 : i32, i32, i32
  }
  func.func @transform_20(%arg0: i32) -> (i32, i32, i32) {
    %c0_i32 = arith.constant 0 : i32
    %c0_i32_0 = arith.constant 0 : i32
    %c0_i32_1 = arith.constant 0 : i32
    return %arg0, %c0_i32, %c0_i32_0 : i32, i32, i32
  }
}

module attributes {stable_mosaic.version = 11 : i64} {
  func.func @_dual_ffn_kernel(%arg0: i32, %arg1: memref<1x16x32xf32, #tpu.memory_space<vmem>>, %arg2: memref<1x16x32xf32, #tpu.memory_space<vmem>>, %arg3: memref<1x16x1xf32, #tpu.memory_space<vmem>>, %arg4: memref<1x32xf32, #tpu.memory_space<vmem>>, %arg5: memref<1x32xf32, #tpu.memory_space<vmem>>, %arg6: memref<96x64xbf16, #tpu.memory_space<vmem>>, %arg7: memref<1x64xf32, #tpu.memory_space<vmem>>, %arg8: memref<192x32xbf16, #tpu.memory_space<vmem>>, %arg9: memref<1x32xf32, #tpu.memory_space<vmem>>, %arg10: memref<1x32xf32, #tpu.memory_space<vmem>>, %arg11: memref<1x32xf32, #tpu.memory_space<vmem>>, %arg12: memref<96x64xbf16, #tpu.memory_space<vmem>>, %arg13: memref<1x64xf32, #tpu.memory_space<vmem>>, %arg14: memref<192x32xbf16, #tpu.memory_space<vmem>>, %arg15: memref<1x32xf32, #tpu.memory_space<vmem>>, %arg16: memref<32x32xbf16, #tpu.memory_space<vmem>>, %arg17: memref<1x32xf32, #tpu.memory_space<vmem>>, %arg18: memref<1x32xf32, #tpu.memory_space<vmem>>, %arg19: memref<1x32xf32, #tpu.memory_space<vmem>>, %arg20: memref<1x16x32xf32, #tpu.memory_space<vmem>>) attributes {dimension_semantics = [#tpu.dimension_semantics<parallel>], iteration_bounds = array<i64: 2>, scalar_prefetch = 0 : i64, scratch_operands = 0 : i64, tpu.core_type = #tpu.core_type<tc>, window_params = [{transform_indices = @transform_0, window_bounds = array<i64: 1, 16, 32>}, {transform_indices = @transform_1, window_bounds = array<i64: 1, 16, 32>}, {transform_indices = @transform_2, window_bounds = array<i64: 1, 16, 1>}, {pipeline_mode = #tpu.pipeline_mode<synchronous>, transform_indices = @transform_3, window_bounds = array<i64: 1, 32>}, {pipeline_mode = #tpu.pipeline_mode<synchronous>, transform_indices = @transform_4, window_bounds = array<i64: 1, 32>}, {pipeline_mode = #tpu.pipeline_mode<synchronous>, transform_indices = @transform_5, window_bounds = array<i64: 96, 64>}, {pipeline_mode = #tpu.pipeline_mode<synchronous>, transform_indices = @transform_6, window_bounds = array<i64: 1, 64>}, {pipeline_mode = #tpu.pipeline_mode<synchronous>, transform_indices = @transform_7, window_bounds = array<i64: 192, 32>}, {pipeline_mode = #tpu.pipeline_mode<synchronous>, transform_indices = @transform_8, window_bounds = array<i64: 1, 32>}, {pipeline_mode = #tpu.pipeline_mode<synchronous>, transform_indices = @transform_9, window_bounds = array<i64: 1, 32>}, {pipeline_mode = #tpu.pipeline_mode<synchronous>, transform_indices = @transform_10, window_bounds = array<i64: 1, 32>}, {pipeline_mode = #tpu.pipeline_mode<synchronous>, transform_indices = @transform_11, window_bounds = array<i64: 96, 64>}, {pipeline_mode = #tpu.pipeline_mode<synchronous>, transform_indices = @transform_12, window_bounds = array<i64: 1, 64>}, {pipeline_mode = #tpu.pipeline_mode<synchronous>, transform_indices = @transform_13, window_bounds = array<i64: 192, 32>}, {pipeline_mode = #tpu.pipeline_mode<synchronous>, transform_indices = @transform_14, window_bounds = array<i64: 1, 32>}, {pipeline_mode = #tpu.pipeline_mode<synchronous>, transform_indices = @transform_15, window_bounds = array<i64: 32, 32>}, {pipeline_mode = #tpu.pipeline_mode<synchronous>, transform_indices = @transform_16, window_bounds = array<i64: 1, 32>}, {pipeline_mode = #tpu.pipeline_mode<synchronous>, transform_indices = @transform_17, window_bounds = array<i64: 1, 32>}, {pipeline_mode = #tpu.pipeline_mode<synchronous>, transform_indices = @transform_18, window_bounds = array<i64: 1, 32>}, {transform_indices = @transform_19, window_bounds = array<i64: 1, 16, 32>}]} {
    %c0 = arith.constant 0 : index
    %c0_0 = arith.constant 0 : index
    %c0_1 = arith.constant 0 : index
    %0 = vector.load %arg3[%c0, %c0_0, %c0_1] : memref<1x16x1xf32, #tpu.memory_space<vmem>>, vector<1x16x1xf32>
    %1 = vector.shape_cast %0 : vector<1x16x1xf32> to vector<16x1xf32>
    %c0_2 = arith.constant 0 : index
    %c0_3 = arith.constant 0 : index
    %c0_4 = arith.constant 0 : index
    %2 = vector.load %arg1[%c0_2, %c0_3, %c0_4] : memref<1x16x32xf32, #tpu.memory_space<vmem>>, vector<1x16x32xf32>
    %3 = vector.shape_cast %2 : vector<1x16x32xf32> to vector<16x32xf32>
    %c0_5 = arith.constant 0 : index
    %c0_6 = arith.constant 0 : index
    %4 = vector.load %arg4[%c0_5, %c0_6] : memref<1x32xf32, #tpu.memory_space<vmem>>, vector<1x32xf32>
    %c0_7 = arith.constant 0 : index
    %c0_8 = arith.constant 0 : index
    %5 = vector.load %arg5[%c0_7, %c0_8] : memref<1x32xf32, #tpu.memory_space<vmem>>, vector<1x32xf32>
    %cst = arith.constant dense<0.000000e+00> : vector<16xf32>
    %6 = vector.multi_reduction <add>, %3, %cst [1] : vector<16x32xf32> to vector<16xf32>
    %7 = vector.shape_cast %6 : vector<16xf32> to vector<16x1xf32>
    %cst_9 = arith.constant 3.200000e+01 : f32
    %8 = vector.broadcast %cst_9 : f32 to vector<16x1xf32>
    %9 = arith.divf %7, %8 : vector<16x1xf32>
    %10 = vector.broadcast %9 : vector<16x1xf32> to vector<16x32xf32>
    %11 = arith.subf %3, %10 : vector<16x32xf32>
    %12 = arith.mulf %11, %11 : vector<16x32xf32>
    %cst_10 = arith.constant dense<0.000000e+00> : vector<16xf32>
    %13 = vector.multi_reduction <add>, %12, %cst_10 [1] : vector<16x32xf32> to vector<16xf32>
    %14 = vector.shape_cast %13 : vector<16xf32> to vector<16x1xf32>
    %cst_11 = arith.constant 3.200000e+01 : f32
    %15 = vector.broadcast %cst_11 : f32 to vector<16x1xf32>
    %16 = arith.divf %14, %15 : vector<16x1xf32>
    %cst_12 = arith.constant 9.99999974E-5 : f32
    %17 = vector.broadcast %cst_12 : f32 to vector<16x1xf32>
    %18 = arith.addf %16, %17 : vector<16x1xf32>
    %19 = math.rsqrt %18 : vector<16x1xf32>
    %20 = vector.broadcast %19 : vector<16x1xf32> to vector<16x32xf32>
    %21 = arith.mulf %11, %20 : vector<16x32xf32>
    %22 = vector.broadcast %4 : vector<1x32xf32> to vector<16x32xf32>
    %23 = arith.mulf %21, %22 : vector<16x32xf32>
    %24 = vector.broadcast %5 : vector<1x32xf32> to vector<16x32xf32>
    %25 = arith.addf %23, %24 : vector<16x32xf32>
    %26 = vector.broadcast %1 : vector<16x1xf32> to vector<16x32xf32>
    %27 = arith.mulf %25, %26 : vector<16x32xf32>
    %c0_13 = arith.constant 0 : index
    %c0_14 = arith.constant 0 : index
    %28 = vector.load %arg7[%c0_13, %c0_14] : memref<1x64xf32, #tpu.memory_space<vmem>>, vector<1x64xf32>
    %c0_15 = arith.constant 0 : index
    %c0_16 = arith.constant 0 : index
    %29 = vector.load %arg6[%c0_15, %c0_16] : memref<96x64xbf16, #tpu.memory_space<vmem>>, vector<96x64xbf16>
    %cst_17 = arith.constant 0.000000e+00 : f32
    %30 = vector.broadcast %cst_17 : f32 to vector<8x32xf32>
    %31 = tpu.concatenate %30, %27, %30 in 0 : vector<8x32xf32>, vector<16x32xf32>, vector<8x32xf32> -> vector<32x32xf32>
    %32 = vector.extract_strided_slice %31 {offsets = [7, 0], sizes = [16, 32], strides = [1, 1]} : vector<32x32xf32> to vector<16x32xf32>
    %33 = vector.extract_strided_slice %31 {offsets = [8, 0], sizes = [16, 32], strides = [1, 1]} : vector<32x32xf32> to vector<16x32xf32>
    %34 = vector.extract_strided_slice %31 {offsets = [9, 0], sizes = [16, 32], strides = [1, 1]} : vector<32x32xf32> to vector<16x32xf32>
    %35 = tpu.concatenate %32, %33, %34 in 1 : vector<16x32xf32>, vector<16x32xf32>, vector<16x32xf32> -> vector<16x96xf32>
    %36 = arith.truncf %35 : vector<16x96xf32> to vector<16x96xbf16>
    %cst_18 = arith.constant dense<0.000000e+00> : vector<16x64xf32>
    %37 = tpu.matmul %36, %29, %cst_18 {dimension_numbers = #tpu.dot_dimension_numbers<[1], [0], [0], [1], [0, 0, 1, 1], [], []>} : vector<16x96xbf16>, vector<96x64xbf16>, vector<16x64xf32> -> vector<16x64xf32>
    %38 = vector.broadcast %28 : vector<1x64xf32> to vector<16x64xf32>
    %39 = arith.addf %37, %38 : vector<16x64xf32>
    %cst_19 = arith.constant 0.000000e+00 : f32
    %40 = vector.broadcast %cst_19 : f32 to vector<16x64xf32>
    %41 = arith.maximumf %39, %40 : vector<16x64xf32>
    %42 = vector.broadcast %1 : vector<16x1xf32> to vector<16x64xf32>
    %43 = arith.mulf %41, %42 : vector<16x64xf32>
    %c0_20 = arith.constant 0 : index
    %c0_21 = arith.constant 0 : index
    %44 = vector.load %arg9[%c0_20, %c0_21] : memref<1x32xf32, #tpu.memory_space<vmem>>, vector<1x32xf32>
    %c0_22 = arith.constant 0 : index
    %c0_23 = arith.constant 0 : index
    %45 = vector.load %arg8[%c0_22, %c0_23] : memref<192x32xbf16, #tpu.memory_space<vmem>>, vector<192x32xbf16>
    %cst_24 = arith.constant 0.000000e+00 : f32
    %46 = vector.broadcast %cst_24 : f32 to vector<8x64xf32>
    %47 = tpu.concatenate %46, %43, %46 in 0 : vector<8x64xf32>, vector<16x64xf32>, vector<8x64xf32> -> vector<32x64xf32>
    %48 = vector.extract_strided_slice %47 {offsets = [7, 0], sizes = [16, 64], strides = [1, 1]} : vector<32x64xf32> to vector<16x64xf32>
    %49 = vector.extract_strided_slice %47 {offsets = [8, 0], sizes = [16, 64], strides = [1, 1]} : vector<32x64xf32> to vector<16x64xf32>
    %50 = vector.extract_strided_slice %47 {offsets = [9, 0], sizes = [16, 64], strides = [1, 1]} : vector<32x64xf32> to vector<16x64xf32>
    %51 = tpu.concatenate %48, %49, %50 in 1 : vector<16x64xf32>, vector<16x64xf32>, vector<16x64xf32> -> vector<16x192xf32>
    %52 = arith.truncf %51 : vector<16x192xf32> to vector<16x192xbf16>
    %cst_25 = arith.constant dense<0.000000e+00> : vector<16x32xf32>
    %53 = tpu.matmul %52, %45, %cst_25 {dimension_numbers = #tpu.dot_dimension_numbers<[1], [0], [0], [1], [0, 0, 1, 1], [], []>} : vector<16x192xbf16>, vector<192x32xbf16>, vector<16x32xf32> -> vector<16x32xf32>
    %54 = vector.broadcast %44 : vector<1x32xf32> to vector<16x32xf32>
    %55 = arith.addf %53, %54 : vector<16x32xf32>
    %56 = vector.broadcast %1 : vector<16x1xf32> to vector<16x32xf32>
    %57 = arith.mulf %55, %56 : vector<16x32xf32>
    %58 = arith.addf %3, %57 : vector<16x32xf32>
    %c0_26 = arith.constant 0 : index
    %c0_27 = arith.constant 0 : index
    %c0_28 = arith.constant 0 : index
    %59 = vector.load %arg2[%c0_26, %c0_27, %c0_28] : memref<1x16x32xf32, #tpu.memory_space<vmem>>, vector<1x16x32xf32>
    %60 = vector.shape_cast %59 : vector<1x16x32xf32> to vector<16x32xf32>
    %c0_29 = arith.constant 0 : index
    %c0_30 = arith.constant 0 : index
    %61 = vector.load %arg10[%c0_29, %c0_30] : memref<1x32xf32, #tpu.memory_space<vmem>>, vector<1x32xf32>
    %c0_31 = arith.constant 0 : index
    %c0_32 = arith.constant 0 : index
    %62 = vector.load %arg11[%c0_31, %c0_32] : memref<1x32xf32, #tpu.memory_space<vmem>>, vector<1x32xf32>
    %cst_33 = arith.constant dense<0.000000e+00> : vector<16xf32>
    %63 = vector.multi_reduction <add>, %60, %cst_33 [1] : vector<16x32xf32> to vector<16xf32>
    %64 = vector.shape_cast %63 : vector<16xf32> to vector<16x1xf32>
    %cst_34 = arith.constant 3.200000e+01 : f32
    %65 = vector.broadcast %cst_34 : f32 to vector<16x1xf32>
    %66 = arith.divf %64, %65 : vector<16x1xf32>
    %67 = vector.broadcast %66 : vector<16x1xf32> to vector<16x32xf32>
    %68 = arith.subf %60, %67 : vector<16x32xf32>
    %69 = arith.mulf %68, %68 : vector<16x32xf32>
    %cst_35 = arith.constant dense<0.000000e+00> : vector<16xf32>
    %70 = vector.multi_reduction <add>, %69, %cst_35 [1] : vector<16x32xf32> to vector<16xf32>
    %71 = vector.shape_cast %70 : vector<16xf32> to vector<16x1xf32>
    %cst_36 = arith.constant 3.200000e+01 : f32
    %72 = vector.broadcast %cst_36 : f32 to vector<16x1xf32>
    %73 = arith.divf %71, %72 : vector<16x1xf32>
    %cst_37 = arith.constant 9.99999974E-5 : f32
    %74 = vector.broadcast %cst_37 : f32 to vector<16x1xf32>
    %75 = arith.addf %73, %74 : vector<16x1xf32>
    %76 = math.rsqrt %75 : vector<16x1xf32>
    %77 = vector.broadcast %76 : vector<16x1xf32> to vector<16x32xf32>
    %78 = arith.mulf %68, %77 : vector<16x32xf32>
    %79 = vector.broadcast %61 : vector<1x32xf32> to vector<16x32xf32>
    %80 = arith.mulf %78, %79 : vector<16x32xf32>
    %81 = vector.broadcast %62 : vector<1x32xf32> to vector<16x32xf32>
    %82 = arith.addf %80, %81 : vector<16x32xf32>
    %83 = vector.broadcast %1 : vector<16x1xf32> to vector<16x32xf32>
    %84 = arith.mulf %82, %83 : vector<16x32xf32>
    %c0_38 = arith.constant 0 : index
    %c0_39 = arith.constant 0 : index
    %85 = vector.load %arg13[%c0_38, %c0_39] : memref<1x64xf32, #tpu.memory_space<vmem>>, vector<1x64xf32>
    %c0_40 = arith.constant 0 : index
    %c0_41 = arith.constant 0 : index
    %86 = vector.load %arg12[%c0_40, %c0_41] : memref<96x64xbf16, #tpu.memory_space<vmem>>, vector<96x64xbf16>
    %cst_42 = arith.constant 0.000000e+00 : f32
    %87 = vector.broadcast %cst_42 : f32 to vector<8x32xf32>
    %88 = tpu.concatenate %87, %84, %87 in 0 : vector<8x32xf32>, vector<16x32xf32>, vector<8x32xf32> -> vector<32x32xf32>
    %89 = vector.extract_strided_slice %88 {offsets = [7, 0], sizes = [16, 32], strides = [1, 1]} : vector<32x32xf32> to vector<16x32xf32>
    %90 = vector.extract_strided_slice %88 {offsets = [8, 0], sizes = [16, 32], strides = [1, 1]} : vector<32x32xf32> to vector<16x32xf32>
    %91 = vector.extract_strided_slice %88 {offsets = [9, 0], sizes = [16, 32], strides = [1, 1]} : vector<32x32xf32> to vector<16x32xf32>
    %92 = tpu.concatenate %89, %90, %91 in 1 : vector<16x32xf32>, vector<16x32xf32>, vector<16x32xf32> -> vector<16x96xf32>
    %93 = arith.truncf %92 : vector<16x96xf32> to vector<16x96xbf16>
    %cst_43 = arith.constant dense<0.000000e+00> : vector<16x64xf32>
    %94 = tpu.matmul %93, %86, %cst_43 {dimension_numbers = #tpu.dot_dimension_numbers<[1], [0], [0], [1], [0, 0, 1, 1], [], []>} : vector<16x96xbf16>, vector<96x64xbf16>, vector<16x64xf32> -> vector<16x64xf32>
    %95 = vector.broadcast %85 : vector<1x64xf32> to vector<16x64xf32>
    %96 = arith.addf %94, %95 : vector<16x64xf32>
    %cst_44 = arith.constant 0.000000e+00 : f32
    %97 = vector.broadcast %cst_44 : f32 to vector<16x64xf32>
    %98 = arith.maximumf %96, %97 : vector<16x64xf32>
    %99 = vector.broadcast %1 : vector<16x1xf32> to vector<16x64xf32>
    %100 = arith.mulf %98, %99 : vector<16x64xf32>
    %c0_45 = arith.constant 0 : index
    %c0_46 = arith.constant 0 : index
    %101 = vector.load %arg15[%c0_45, %c0_46] : memref<1x32xf32, #tpu.memory_space<vmem>>, vector<1x32xf32>
    %c0_47 = arith.constant 0 : index
    %c0_48 = arith.constant 0 : index
    %102 = vector.load %arg14[%c0_47, %c0_48] : memref<192x32xbf16, #tpu.memory_space<vmem>>, vector<192x32xbf16>
    %cst_49 = arith.constant 0.000000e+00 : f32
    %103 = vector.broadcast %cst_49 : f32 to vector<8x64xf32>
    %104 = tpu.concatenate %103, %100, %103 in 0 : vector<8x64xf32>, vector<16x64xf32>, vector<8x64xf32> -> vector<32x64xf32>
    %105 = vector.extract_strided_slice %104 {offsets = [7, 0], sizes = [16, 64], strides = [1, 1]} : vector<32x64xf32> to vector<16x64xf32>
    %106 = vector.extract_strided_slice %104 {offsets = [8, 0], sizes = [16, 64], strides = [1, 1]} : vector<32x64xf32> to vector<16x64xf32>
    %107 = vector.extract_strided_slice %104 {offsets = [9, 0], sizes = [16, 64], strides = [1, 1]} : vector<32x64xf32> to vector<16x64xf32>
    %108 = tpu.concatenate %105, %106, %107 in 1 : vector<16x64xf32>, vector<16x64xf32>, vector<16x64xf32> -> vector<16x192xf32>
    %109 = arith.truncf %108 : vector<16x192xf32> to vector<16x192xbf16>
    %cst_50 = arith.constant dense<0.000000e+00> : vector<16x32xf32>
    %110 = tpu.matmul %109, %102, %cst_50 {dimension_numbers = #tpu.dot_dimension_numbers<[1], [0], [0], [1], [0, 0, 1, 1], [], []>} : vector<16x192xbf16>, vector<192x32xbf16>, vector<16x32xf32> -> vector<16x32xf32>
    %111 = vector.broadcast %101 : vector<1x32xf32> to vector<16x32xf32>
    %112 = arith.addf %110, %111 : vector<16x32xf32>
    %113 = vector.broadcast %1 : vector<16x1xf32> to vector<16x32xf32>
    %114 = arith.mulf %112, %113 : vector<16x32xf32>
    %115 = arith.addf %60, %114 : vector<16x32xf32>
    %116 = arith.truncf %115 : vector<16x32xf32> to vector<16x32xbf16>
    %c0_51 = arith.constant 0 : index
    %c0_52 = arith.constant 0 : index
    %117 = vector.load %arg16[%c0_51, %c0_52] : memref<32x32xbf16, #tpu.memory_space<vmem>>, vector<32x32xbf16>
    %cst_53 = arith.constant dense<0.000000e+00> : vector<16x32xf32>
    %118 = tpu.matmul %116, %117, %cst_53 {dimension_numbers = #tpu.dot_dimension_numbers<[1], [0], [0], [1], [0, 0, 1, 1], [], []>} : vector<16x32xbf16>, vector<32x32xbf16>, vector<16x32xf32> -> vector<16x32xf32>
    %c0_54 = arith.constant 0 : index
    %c0_55 = arith.constant 0 : index
    %119 = vector.load %arg17[%c0_54, %c0_55] : memref<1x32xf32, #tpu.memory_space<vmem>>, vector<1x32xf32>
    %120 = vector.broadcast %119 : vector<1x32xf32> to vector<16x32xf32>
    %121 = arith.addf %118, %120 : vector<16x32xf32>
    %122 = arith.addf %58, %121 : vector<16x32xf32>
    %c0_56 = arith.constant 0 : index
    %c0_57 = arith.constant 0 : index
    %c0_58 = arith.constant 0 : index
    %123 = vector.load %arg20[%c0_56, %c0_57, %c0_58] : memref<1x16x32xf32, #tpu.memory_space<vmem>>, vector<1x16x32xf32>
    %124 = vector.shape_cast %123 : vector<1x16x32xf32> to vector<16x32xf32>
    %125 = vector.shape_cast %122 : vector<16x32xf32> to vector<1x16x32xf32>
    tpu.vector_store %arg20[%c0_56, %c0_57, %c0_58], %125 {strides = array<i32>} : memref<1x16x32xf32, #tpu.memory_space<vmem>>, vector<1x16x32xf32>,
    return
  }
  func.func @transform_0(%arg0: i32) -> (i32, i32, i32) {
    %c0_i32 = arith.constant 0 : i32
    %c0_i32_0 = arith.constant 0 : i32
    %c0_i32_1 = arith.constant 0 : i32
    return %arg0, %c0_i32, %c0_i32_0 : i32, i32, i32
  }
  func.func @transform_1(%arg0: i32) -> (i32, i32, i32) {
    %c0_i32 = arith.constant 0 : i32
    %c0_i32_0 = arith.constant 0 : i32
    %c0_i32_1 = arith.constant 0 : i32
    return %arg0, %c0_i32, %c0_i32_0 : i32, i32, i32
  }
  func.func @transform_2(%arg0: i32) -> (i32, i32, i32) {
    %c0_i32 = arith.constant 0 : i32
    %c0_i32_0 = arith.constant 0 : i32
    %c0_i32_1 = arith.constant 0 : i32
    return %arg0, %c0_i32, %c0_i32_0 : i32, i32, i32
  }
  func.func @transform_3(%arg0: i32) -> (i32, i32) {
    %c0_i32 = arith.constant 0 : i32
    %c0_i32_0 = arith.constant 0 : i32
    %c0_i32_1 = arith.constant 0 : i32
    return %c0_i32, %c0_i32_0 : i32, i32
  }
  func.func @transform_4(%arg0: i32) -> (i32, i32) {
    %c0_i32 = arith.constant 0 : i32
    %c0_i32_0 = arith.constant 0 : i32
    %c0_i32_1 = arith.constant 0 : i32
    return %c0_i32, %c0_i32_0 : i32, i32
  }
  func.func @transform_5(%arg0: i32) -> (i32, i32) {
    %c0_i32 = arith.constant 0 : i32
    %c0_i32_0 = arith.constant 0 : i32
    %c0_i32_1 = arith.constant 0 : i32
    return %c0_i32, %c0_i32_0 : i32, i32
  }
  func.func @transform_6(%arg0: i32) -> (i32, i32) {
    %c0_i32 = arith.constant 0 : i32
    %c0_i32_0 = arith.constant 0 : i32
    %c0_i32_1 = arith.constant 0 : i32
    return %c0_i32, %c0_i32_0 : i32, i32
  }
  func.func @transform_7(%arg0: i32) -> (i32, i32) {
    %c0_i32 = arith.constant 0 : i32
    %c0_i32_0 = arith.constant 0 : i32
    %c0_i32_1 = arith.constant 0 : i32
    return %c0_i32, %c0_i32_0 : i32, i32
  }
  func.func @transform_8(%arg0: i32) -> (i32, i32) {
    %c0_i32 = arith.constant 0 : i32
    %c0_i32_0 = arith.constant 0 : i32
    %c0_i32_1 = arith.constant 0 : i32
    return %c0_i32, %c0_i32_0 : i32, i32
  }
  func.func @transform_9(%arg0: i32) -> (i32, i32) {
    %c0_i32 = arith.constant 0 : i32
    %c0_i32_0 = arith.constant 0 : i32
    %c0_i32_1 = arith.constant 0 : i32
    return %c0_i32, %c0_i32_0 : i32, i32
  }
  func.func @transform_10(%arg0: i32) -> (i32, i32) {
    %c0_i32 = arith.constant 0 : i32
    %c0_i32_0 = arith.constant 0 : i32
    %c0_i32_1 = arith.constant 0 : i32
    return %c0_i32, %c0_i32_0 : i32, i32
  }
  func.func @transform_11(%arg0: i32) -> (i32, i32) {
    %c0_i32 = arith.constant 0 : i32
    %c0_i32_0 = arith.constant 0 : i32
    %c0_i32_1 = arith.constant 0 : i32
    return %c0_i32, %c0_i32_0 : i32, i32
  }
  func.func @transform_12(%arg0: i32) -> (i32, i32) {
    %c0_i32 = arith.constant 0 : i32
    %c0_i32_0 = arith.constant 0 : i32
    %c0_i32_1 = arith.constant 0 : i32
    return %c0_i32, %c0_i32_0 : i32, i32
  }
  func.func @transform_13(%arg0: i32) -> (i32, i32) {
    %c0_i32 = arith.constant 0 : i32
    %c0_i32_0 = arith.constant 0 : i32
    %c0_i32_1 = arith.constant 0 : i32
    return %c0_i32, %c0_i32_0 : i32, i32
  }
  func.func @transform_14(%arg0: i32) -> (i32, i32) {
    %c0_i32 = arith.constant 0 : i32
    %c0_i32_0 = arith.constant 0 : i32
    %c0_i32_1 = arith.constant 0 : i32
    return %c0_i32, %c0_i32_0 : i32, i32
  }
  func.func @transform_15(%arg0: i32) -> (i32, i32) {
    %c0_i32 = arith.constant 0 : i32
    %c0_i32_0 = arith.constant 0 : i32
    %c0_i32_1 = arith.constant 0 : i32
    return %c0_i32, %c0_i32_0 : i32, i32
  }
  func.func @transform_16(%arg0: i32) -> (i32, i32) {
    %c0_i32 = arith.constant 0 : i32
    %c0_i32_0 = arith.constant 0 : i32
    %c0_i32_1 = arith.constant 0 : i32
    return %c0_i32, %c0_i32_0 : i32, i32
  }
  func.func @transform_17(%arg0: i32) -> (i32, i32) {
    %c0_i32 = arith.constant 0 : i32
    %c0_i32_0 = arith.constant 0 : i32
    %c0_i32_1 = arith.constant 0 : i32
    return %c0_i32, %c0_i32_0 : i32, i32
  }
  func.func @transform_18(%arg0: i32) -> (i32, i32) {
    %c0_i32 = arith.constant 0 : i32
    %c0_i32_0 = arith.constant 0 : i32
    %c0_i32_1 = arith.constant 0 : i32
    return %c0_i32, %c0_i32_0 : i32, i32
  }
  func.func @transform_19(%arg0: i32) -> (i32, i32, i32) {
    %c0_i32 = arith.constant 0 : i32
    %c0_i32_0 = arith.constant 0 : i32
    %c0_i32_1 = arith.constant 0 : i32
    return %arg0, %c0_i32, %c0_i32_0 : i32, i32, i32
  }
}

module attributes {stable_mosaic.version = 11 : i64} {
  func.func @_dual_ffn_kernel(%arg0: i32, %arg1: memref<1x16x32xf32, #tpu.memory_space<vmem>>, %arg2: memref<1x16x32xf32, #tpu.memory_space<vmem>>, %arg3: memref<1x16x1xf32, #tpu.memory_space<vmem>>, %arg4: memref<1x32xf32, #tpu.memory_space<vmem>>, %arg5: memref<1x32xf32, #tpu.memory_space<vmem>>, %arg6: memref<96x64xbf16, #tpu.memory_space<vmem>>, %arg7: memref<1x64xf32, #tpu.memory_space<vmem>>, %arg8: memref<192x32xbf16, #tpu.memory_space<vmem>>, %arg9: memref<1x32xf32, #tpu.memory_space<vmem>>, %arg10: memref<1x32xf32, #tpu.memory_space<vmem>>, %arg11: memref<1x32xf32, #tpu.memory_space<vmem>>, %arg12: memref<96x64xbf16, #tpu.memory_space<vmem>>, %arg13: memref<1x64xf32, #tpu.memory_space<vmem>>, %arg14: memref<192x32xbf16, #tpu.memory_space<vmem>>, %arg15: memref<1x32xf32, #tpu.memory_space<vmem>>, %arg16: memref<32x32xbf16, #tpu.memory_space<vmem>>, %arg17: memref<1x32xf32, #tpu.memory_space<vmem>>, %arg18: memref<1x32xf32, #tpu.memory_space<vmem>>, %arg19: memref<1x32xf32, #tpu.memory_space<vmem>>, %arg20: memref<1x16x32xf32, #tpu.memory_space<vmem>>) attributes {dimension_semantics = [#tpu.dimension_semantics<parallel>], iteration_bounds = array<i64: 2>, scalar_prefetch = 0 : i64, scratch_operands = 0 : i64, tpu.core_type = #tpu.core_type<tc>, window_params = [{transform_indices = @transform_0, window_bounds = array<i64: 1, 16, 32>}, {transform_indices = @transform_1, window_bounds = array<i64: 1, 16, 32>}, {transform_indices = @transform_2, window_bounds = array<i64: 1, 16, 1>}, {pipeline_mode = #tpu.pipeline_mode<synchronous>, transform_indices = @transform_3, window_bounds = array<i64: 1, 32>}, {pipeline_mode = #tpu.pipeline_mode<synchronous>, transform_indices = @transform_4, window_bounds = array<i64: 1, 32>}, {pipeline_mode = #tpu.pipeline_mode<synchronous>, transform_indices = @transform_5, window_bounds = array<i64: 96, 64>}, {pipeline_mode = #tpu.pipeline_mode<synchronous>, transform_indices = @transform_6, window_bounds = array<i64: 1, 64>}, {pipeline_mode = #tpu.pipeline_mode<synchronous>, transform_indices = @transform_7, window_bounds = array<i64: 192, 32>}, {pipeline_mode = #tpu.pipeline_mode<synchronous>, transform_indices = @transform_8, window_bounds = array<i64: 1, 32>}, {pipeline_mode = #tpu.pipeline_mode<synchronous>, transform_indices = @transform_9, window_bounds = array<i64: 1, 32>}, {pipeline_mode = #tpu.pipeline_mode<synchronous>, transform_indices = @transform_10, window_bounds = array<i64: 1, 32>}, {pipeline_mode = #tpu.pipeline_mode<synchronous>, transform_indices = @transform_11, window_bounds = array<i64: 96, 64>}, {pipeline_mode = #tpu.pipeline_mode<synchronous>, transform_indices = @transform_12, window_bounds = array<i64: 1, 64>}, {pipeline_mode = #tpu.pipeline_mode<synchronous>, transform_indices = @transform_13, window_bounds = array<i64: 192, 32>}, {pipeline_mode = #tpu.pipeline_mode<synchronous>, transform_indices = @transform_14, window_bounds = array<i64: 1, 32>}, {pipeline_mode = #tpu.pipeline_mode<synchronous>, transform_indices = @transform_15, window_bounds = array<i64: 32, 32>}, {pipeline_mode = #tpu.pipeline_mode<synchronous>, transform_indices = @transform_16, window_bounds = array<i64: 1, 32>}, {pipeline_mode = #tpu.pipeline_mode<synchronous>, transform_indices = @transform_17, window_bounds = array<i64: 1, 32>}, {pipeline_mode = #tpu.pipeline_mode<synchronous>, transform_indices = @transform_18, window_bounds = array<i64: 1, 32>}, {transform_indices = @transform_19, window_bounds = array<i64: 1, 16, 32>}]} {
    %c0 = arith.constant 0 : index
    %c0_0 = arith.constant 0 : index
    %c0_1 = arith.constant 0 : index
    %0 = vector.load %arg3[%c0, %c0_0, %c0_1] : memref<1x16x1xf32, #tpu.memory_space<vmem>>, vector<1x16x1xf32>
    %1 = vector.shape_cast %0 : vector<1x16x1xf32> to vector<16x1xf32>
    %c0_2 = arith.constant 0 : index
    %c0_3 = arith.constant 0 : index
    %c0_4 = arith.constant 0 : index
    %2 = vector.load %arg1[%c0_2, %c0_3, %c0_4] : memref<1x16x32xf32, #tpu.memory_space<vmem>>, vector<1x16x32xf32>
    %3 = vector.shape_cast %2 : vector<1x16x32xf32> to vector<16x32xf32>
    %c0_5 = arith.constant 0 : index
    %c0_6 = arith.constant 0 : index
    %4 = vector.load %arg4[%c0_5, %c0_6] : memref<1x32xf32, #tpu.memory_space<vmem>>, vector<1x32xf32>
    %c0_7 = arith.constant 0 : index
    %c0_8 = arith.constant 0 : index
    %5 = vector.load %arg5[%c0_7, %c0_8] : memref<1x32xf32, #tpu.memory_space<vmem>>, vector<1x32xf32>
    %cst = arith.constant dense<0.000000e+00> : vector<16xf32>
    %6 = vector.multi_reduction <add>, %3, %cst [1] : vector<16x32xf32> to vector<16xf32>
    %7 = vector.shape_cast %6 : vector<16xf32> to vector<16x1xf32>
    %cst_9 = arith.constant 3.200000e+01 : f32
    %8 = vector.broadcast %cst_9 : f32 to vector<16x1xf32>
    %9 = arith.divf %7, %8 : vector<16x1xf32>
    %10 = vector.broadcast %9 : vector<16x1xf32> to vector<16x32xf32>
    %11 = arith.subf %3, %10 : vector<16x32xf32>
    %12 = arith.mulf %11, %11 : vector<16x32xf32>
    %cst_10 = arith.constant dense<0.000000e+00> : vector<16xf32>
    %13 = vector.multi_reduction <add>, %12, %cst_10 [1] : vector<16x32xf32> to vector<16xf32>
    %14 = vector.shape_cast %13 : vector<16xf32> to vector<16x1xf32>
    %cst_11 = arith.constant 3.200000e+01 : f32
    %15 = vector.broadcast %cst_11 : f32 to vector<16x1xf32>
    %16 = arith.divf %14, %15 : vector<16x1xf32>
    %cst_12 = arith.constant 9.99999974E-5 : f32
    %17 = vector.broadcast %cst_12 : f32 to vector<16x1xf32>
    %18 = arith.addf %16, %17 : vector<16x1xf32>
    %19 = math.rsqrt %18 : vector<16x1xf32>
    %20 = vector.broadcast %19 : vector<16x1xf32> to vector<16x32xf32>
    %21 = arith.mulf %11, %20 : vector<16x32xf32>
    %22 = vector.broadcast %4 : vector<1x32xf32> to vector<16x32xf32>
    %23 = arith.mulf %21, %22 : vector<16x32xf32>
    %24 = vector.broadcast %5 : vector<1x32xf32> to vector<16x32xf32>
    %25 = arith.addf %23, %24 : vector<16x32xf32>
    %26 = vector.broadcast %1 : vector<16x1xf32> to vector<16x32xf32>
    %27 = arith.mulf %25, %26 : vector<16x32xf32>
    %c0_13 = arith.constant 0 : index
    %c0_14 = arith.constant 0 : index
    %28 = vector.load %arg7[%c0_13, %c0_14] : memref<1x64xf32, #tpu.memory_space<vmem>>, vector<1x64xf32>
    %c0_15 = arith.constant 0 : index
    %c0_16 = arith.constant 0 : index
    %29 = vector.load %arg6[%c0_15, %c0_16] : memref<96x64xbf16, #tpu.memory_space<vmem>>, vector<96x64xbf16>
    %cst_17 = arith.constant 0.000000e+00 : f32
    %30 = vector.broadcast %cst_17 : f32 to vector<8x32xf32>
    %31 = tpu.concatenate %30, %27, %30 in 0 : vector<8x32xf32>, vector<16x32xf32>, vector<8x32xf32> -> vector<32x32xf32>
    %32 = vector.extract_strided_slice %31 {offsets = [7, 0], sizes = [16, 32], strides = [1, 1]} : vector<32x32xf32> to vector<16x32xf32>
    %33 = vector.extract_strided_slice %31 {offsets = [8, 0], sizes = [16, 32], strides = [1, 1]} : vector<32x32xf32> to vector<16x32xf32>
    %34 = vector.extract_strided_slice %31 {offsets = [9, 0], sizes = [16, 32], strides = [1, 1]} : vector<32x32xf32> to vector<16x32xf32>
    %35 = tpu.concatenate %32, %33, %34 in 1 : vector<16x32xf32>, vector<16x32xf32>, vector<16x32xf32> -> vector<16x96xf32>
    %36 = arith.truncf %35 : vector<16x96xf32> to vector<16x96xbf16>
    %cst_18 = arith.constant dense<0.000000e+00> : vector<16x64xf32>
    %37 = tpu.matmul %36, %29, %cst_18 {dimension_numbers = #tpu.dot_dimension_numbers<[1], [0], [0], [1], [0, 0, 1, 1], [], []>} : vector<16x96xbf16>, vector<96x64xbf16>, vector<16x64xf32> -> vector<16x64xf32>
    %38 = vector.broadcast %28 : vector<1x64xf32> to vector<16x64xf32>
    %39 = arith.addf %37, %38 : vector<16x64xf32>
    %cst_19 = arith.constant 0.000000e+00 : f32
    %40 = vector.broadcast %cst_19 : f32 to vector<16x64xf32>
    %41 = arith.maximumf %39, %40 : vector<16x64xf32>
    %42 = vector.broadcast %1 : vector<16x1xf32> to vector<16x64xf32>
    %43 = arith.mulf %41, %42 : vector<16x64xf32>
    %c0_20 = arith.constant 0 : index
    %c0_21 = arith.constant 0 : index
    %44 = vector.load %arg9[%c0_20, %c0_21] : memref<1x32xf32, #tpu.memory_space<vmem>>, vector<1x32xf32>
    %c0_22 = arith.constant 0 : index
    %c0_23 = arith.constant 0 : index
    %45 = vector.load %arg8[%c0_22, %c0_23] : memref<192x32xbf16, #tpu.memory_space<vmem>>, vector<192x32xbf16>
    %cst_24 = arith.constant 0.000000e+00 : f32
    %46 = vector.broadcast %cst_24 : f32 to vector<8x64xf32>
    %47 = tpu.concatenate %46, %43, %46 in 0 : vector<8x64xf32>, vector<16x64xf32>, vector<8x64xf32> -> vector<32x64xf32>
    %48 = vector.extract_strided_slice %47 {offsets = [7, 0], sizes = [16, 64], strides = [1, 1]} : vector<32x64xf32> to vector<16x64xf32>
    %49 = vector.extract_strided_slice %47 {offsets = [8, 0], sizes = [16, 64], strides = [1, 1]} : vector<32x64xf32> to vector<16x64xf32>
    %50 = vector.extract_strided_slice %47 {offsets = [9, 0], sizes = [16, 64], strides = [1, 1]} : vector<32x64xf32> to vector<16x64xf32>
    %51 = tpu.concatenate %48, %49, %50 in 1 : vector<16x64xf32>, vector<16x64xf32>, vector<16x64xf32> -> vector<16x192xf32>
    %52 = arith.truncf %51 : vector<16x192xf32> to vector<16x192xbf16>
    %cst_25 = arith.constant dense<0.000000e+00> : vector<16x32xf32>
    %53 = tpu.matmul %52, %45, %cst_25 {dimension_numbers = #tpu.dot_dimension_numbers<[1], [0], [0], [1], [0, 0, 1, 1], [], []>} : vector<16x192xbf16>, vector<192x32xbf16>, vector<16x32xf32> -> vector<16x32xf32>
    %54 = vector.broadcast %44 : vector<1x32xf32> to vector<16x32xf32>
    %55 = arith.addf %53, %54 : vector<16x32xf32>
    %56 = vector.broadcast %1 : vector<16x1xf32> to vector<16x32xf32>
    %57 = arith.mulf %55, %56 : vector<16x32xf32>
    %58 = arith.addf %3, %57 : vector<16x32xf32>
    %c0_26 = arith.constant 0 : index
    %c0_27 = arith.constant 0 : index
    %c0_28 = arith.constant 0 : index
    %59 = vector.load %arg2[%c0_26, %c0_27, %c0_28] : memref<1x16x32xf32, #tpu.memory_space<vmem>>, vector<1x16x32xf32>
    %60 = vector.shape_cast %59 : vector<1x16x32xf32> to vector<16x32xf32>
    %c0_29 = arith.constant 0 : index
    %c0_30 = arith.constant 0 : index
    %61 = vector.load %arg10[%c0_29, %c0_30] : memref<1x32xf32, #tpu.memory_space<vmem>>, vector<1x32xf32>
    %c0_31 = arith.constant 0 : index
    %c0_32 = arith.constant 0 : index
    %62 = vector.load %arg11[%c0_31, %c0_32] : memref<1x32xf32, #tpu.memory_space<vmem>>, vector<1x32xf32>
    %cst_33 = arith.constant dense<0.000000e+00> : vector<16xf32>
    %63 = vector.multi_reduction <add>, %60, %cst_33 [1] : vector<16x32xf32> to vector<16xf32>
    %64 = vector.shape_cast %63 : vector<16xf32> to vector<16x1xf32>
    %cst_34 = arith.constant 3.200000e+01 : f32
    %65 = vector.broadcast %cst_34 : f32 to vector<16x1xf32>
    %66 = arith.divf %64, %65 : vector<16x1xf32>
    %67 = vector.broadcast %66 : vector<16x1xf32> to vector<16x32xf32>
    %68 = arith.subf %60, %67 : vector<16x32xf32>
    %69 = arith.mulf %68, %68 : vector<16x32xf32>
    %cst_35 = arith.constant dense<0.000000e+00> : vector<16xf32>
    %70 = vector.multi_reduction <add>, %69, %cst_35 [1] : vector<16x32xf32> to vector<16xf32>
    %71 = vector.shape_cast %70 : vector<16xf32> to vector<16x1xf32>
    %cst_36 = arith.constant 3.200000e+01 : f32
    %72 = vector.broadcast %cst_36 : f32 to vector<16x1xf32>
    %73 = arith.divf %71, %72 : vector<16x1xf32>
    %cst_37 = arith.constant 9.99999974E-5 : f32
    %74 = vector.broadcast %cst_37 : f32 to vector<16x1xf32>
    %75 = arith.addf %73, %74 : vector<16x1xf32>
    %76 = math.rsqrt %75 : vector<16x1xf32>
    %77 = vector.broadcast %76 : vector<16x1xf32> to vector<16x32xf32>
    %78 = arith.mulf %68, %77 : vector<16x32xf32>
    %79 = vector.broadcast %61 : vector<1x32xf32> to vector<16x32xf32>
    %80 = arith.mulf %78, %79 : vector<16x32xf32>
    %81 = vector.broadcast %62 : vector<1x32xf32> to vector<16x32xf32>
    %82 = arith.addf %80, %81 : vector<16x32xf32>
    %83 = vector.broadcast %1 : vector<16x1xf32> to vector<16x32xf32>
    %84 = arith.mulf %82, %83 : vector<16x32xf32>
    %c0_38 = arith.constant 0 : index
    %c0_39 = arith.constant 0 : index
    %85 = vector.load %arg13[%c0_38, %c0_39] : memref<1x64xf32, #tpu.memory_space<vmem>>, vector<1x64xf32>
    %c0_40 = arith.constant 0 : index
    %c0_41 = arith.constant 0 : index
    %86 = vector.load %arg12[%c0_40, %c0_41] : memref<96x64xbf16, #tpu.memory_space<vmem>>, vector<96x64xbf16>
    %cst_42 = arith.constant 0.000000e+00 : f32
    %87 = vector.broadcast %cst_42 : f32 to vector<8x32xf32>
    %88 = tpu.concatenate %87, %84, %87 in 0 : vector<8x32xf32>, vector<16x32xf32>, vector<8x32xf32> -> vector<32x32xf32>
    %89 = vector.extract_strided_slice %88 {offsets = [7, 0], sizes = [16, 32], strides = [1, 1]} : vector<32x32xf32> to vector<16x32xf32>
    %90 = vector.extract_strided_slice %88 {offsets = [8, 0], sizes = [16, 32], strides = [1, 1]} : vector<32x32xf32> to vector<16x32xf32>
    %91 = vector.extract_strided_slice %88 {offsets = [9, 0], sizes = [16, 32], strides = [1, 1]} : vector<32x32xf32> to vector<16x32xf32>
    %92 = tpu.concatenate %89, %90, %91 in 1 : vector<16x32xf32>, vector<16x32xf32>, vector<16x32xf32> -> vector<16x96xf32>
    %93 = arith.truncf %92 : vector<16x96xf32> to vector<16x96xbf16>
    %cst_43 = arith.constant dense<0.000000e+00> : vector<16x64xf32>
    %94 = tpu.matmul %93, %86, %cst_43 {dimension_numbers = #tpu.dot_dimension_numbers<[1], [0], [0], [1], [0, 0, 1, 1], [], []>} : vector<16x96xbf16>, vector<96x64xbf16>, vector<16x64xf32> -> vector<16x64xf32>
    %95 = vector.broadcast %85 : vector<1x64xf32> to vector<16x64xf32>
    %96 = arith.addf %94, %95 : vector<16x64xf32>
    %cst_44 = arith.constant 0.000000e+00 : f32
    %97 = vector.broadcast %cst_44 : f32 to vector<16x64xf32>
    %98 = arith.maximumf %96, %97 : vector<16x64xf32>
    %99 = vector.broadcast %1 : vector<16x1xf32> to vector<16x64xf32>
    %100 = arith.mulf %98, %99 : vector<16x64xf32>
    %c0_45 = arith.constant 0 : index
    %c0_46 = arith.constant 0 : index
    %101 = vector.load %arg15[%c0_45, %c0_46] : memref<1x32xf32, #tpu.memory_space<vmem>>, vector<1x32xf32>
    %c0_47 = arith.constant 0 : index
    %c0_48 = arith.constant 0 : index
    %102 = vector.load %arg14[%c0_47, %c0_48] : memref<192x32xbf16, #tpu.memory_space<vmem>>, vector<192x32xbf16>
    %cst_49 = arith.constant 0.000000e+00 : f32
    %103 = vector.broadcast %cst_49 : f32 to vector<8x64xf32>
    %104 = tpu.concatenate %103, %100, %103 in 0 : vector<8x64xf32>, vector<16x64xf32>, vector<8x64xf32> -> vector<32x64xf32>
    %105 = vector.extract_strided_slice %104 {offsets = [7, 0], sizes = [16, 64], strides = [1, 1]} : vector<32x64xf32> to vector<16x64xf32>
    %106 = vector.extract_strided_slice %104 {offsets = [8, 0], sizes = [16, 64], strides = [1, 1]} : vector<32x64xf32> to vector<16x64xf32>
    %107 = vector.extract_strided_slice %104 {offsets = [9, 0], sizes = [16, 64], strides = [1, 1]} : vector<32x64xf32> to vector<16x64xf32>
    %108 = tpu.concatenate %105, %106, %107 in 1 : vector<16x64xf32>, vector<16x64xf32>, vector<16x64xf32> -> vector<16x192xf32>
    %109 = arith.truncf %108 : vector<16x192xf32> to vector<16x192xbf16>
    %cst_50 = arith.constant dense<0.000000e+00> : vector<16x32xf32>
    %110 = tpu.matmul %109, %102, %cst_50 {dimension_numbers = #tpu.dot_dimension_numbers<[1], [0], [0], [1], [0, 0, 1, 1], [], []>} : vector<16x192xbf16>, vector<192x32xbf16>, vector<16x32xf32> -> vector<16x32xf32>
    %111 = vector.broadcast %101 : vector<1x32xf32> to vector<16x32xf32>
    %112 = arith.addf %110, %111 : vector<16x32xf32>
    %113 = vector.broadcast %1 : vector<16x1xf32> to vector<16x32xf32>
    %114 = arith.mulf %112, %113 : vector<16x32xf32>
    %115 = arith.addf %60, %114 : vector<16x32xf32>
    %116 = arith.truncf %115 : vector<16x32xf32> to vector<16x32xbf16>
    %c0_51 = arith.constant 0 : index
    %c0_52 = arith.constant 0 : index
    %117 = vector.load %arg16[%c0_51, %c0_52] : memref<32x32xbf16, #tpu.memory_space<vmem>>, vector<32x32xbf16>
    %cst_53 = arith.constant dense<0.000000e+00> : vector<16x32xf32>
    %118 = tpu.matmul %116, %117, %cst_53 {dimension_numbers = #tpu.dot_dimension_numbers<[1], [0], [0], [1], [0, 0, 1, 1], [], []>} : vector<16x32xbf16>, vector<32x32xbf16>, vector<16x32xf32> -> vector<16x32xf32>
    %c0_54 = arith.constant 0 : index
    %c0_55 = arith.constant 0 : index
    %119 = vector.load %arg17[%c0_54, %c0_55] : memref<1x32xf32, #tpu.memory_space<vmem>>, vector<1x32xf32>
    %120 = vector.broadcast %119 : vector<1x32xf32> to vector<16x32xf32>
    %121 = arith.addf %118, %120 : vector<16x32xf32>
    %122 = arith.addf %58, %121 : vector<16x32xf32>
    %c0_56 = arith.constant 0 : index
    %c0_57 = arith.constant 0 : index
    %123 = vector.load %arg18[%c0_56, %c0_57] : memref<1x32xf32, #tpu.memory_space<vmem>>, vector<1x32xf32>
    %c0_58 = arith.constant 0 : index
    %c0_59 = arith.constant 0 : index
    %124 = vector.load %arg19[%c0_58, %c0_59] : memref<1x32xf32, #tpu.memory_space<vmem>>, vector<1x32xf32>
    %cst_60 = arith.constant dense<0.000000e+00> : vector<16xf32>
    %125 = vector.multi_reduction <add>, %122, %cst_60 [1] : vector<16x32xf32> to vector<16xf32>
    %126 = vector.shape_cast %125 : vector<16xf32> to vector<16x1xf32>
    %cst_61 = arith.constant 3.200000e+01 : f32
    %127 = vector.broadcast %cst_61 : f32 to vector<16x1xf32>
    %128 = arith.divf %126, %127 : vector<16x1xf32>
    %129 = vector.broadcast %128 : vector<16x1xf32> to vector<16x32xf32>
    %130 = arith.subf %122, %129 : vector<16x32xf32>
    %131 = arith.mulf %130, %130 : vector<16x32xf32>
    %cst_62 = arith.constant dense<0.000000e+00> : vector<16xf32>
    %132 = vector.multi_reduction <add>, %131, %cst_62 [1] : vector<16x32xf32> to vector<16xf32>
    %133 = vector.shape_cast %132 : vector<16xf32> to vector<16x1xf32>
    %cst_63 = arith.constant 3.200000e+01 : f32
    %134 = vector.broadcast %cst_63 : f32 to vector<16x1xf32>
    %135 = arith.divf %133, %134 : vector<16x1xf32>
    %cst_64 = arith.constant 9.99999974E-5 : f32
    %136 = vector.broadcast %cst_64 : f32 to vector<16x1xf32>
    %137 = arith.addf %135, %136 : vector<16x1xf32>
    %138 = math.rsqrt %137 : vector<16x1xf32>
    %139 = vector.broadcast %138 : vector<16x1xf32> to vector<16x32xf32>
    %140 = arith.mulf %130, %139 : vector<16x32xf32>
    %141 = vector.broadcast %123 : vector<1x32xf32> to vector<16x32xf32>
    %142 = arith.mulf %140, %141 : vector<16x32xf32>
    %143 = vector.broadcast %124 : vector<1x32xf32> to vector<16x32xf32>
    %144 = arith.addf %142, %143 : vector<16x32xf32>
    %145 = vector.broadcast %1 : vector<16x1xf32> to vector<16x32xf32>
    %146 = arith.mulf %144, %145 : vector<16x32xf32>
    %c0_65 = arith.constant 0 : index
    %c0_66 = arith.constant 0 : index
    %c0_67 = arith.constant 0 : index
    %147 = vector.load %arg20[%c0_65, %c0_66, %c0_67] : memref<1x16x32xf32, #tpu.memory_space<vmem>>, vector<1x16x32xf32>
    %148 = vector.shape_cast %147 : vector<1x16x32xf32> to vector<16x32xf32>
    %149 = vector.shape_cast %146 : vector<16x32xf32> to vector<1x16x32xf32>
    tpu.vector_store %arg20[%c0_65, %c0_66, %c0_67], %149 {strides = array<i32>} : memref<1x16x32xf32, #tpu.memory_space<vmem>>, vector<1x16x32xf32>,
    return
  }
  func.func @transform_0(%arg0: i32) -> (i32, i32, i32) {
    %c0_i32 = arith.constant 0 : i32
    %c0_i32_0 = arith.constant 0 : i32
    %c0_i32_1 = arith.constant 0 : i32
    return %arg0, %c0_i32, %c0_i32_0 : i32, i32, i32
  }
  func.func @transform_1(%arg0: i32) -> (i32, i32, i32) {
    %c0_i32 = arith.constant 0 : i32
    %c0_i32_0 = arith.constant 0 : i32
    %c0_i32_1 = arith.constant 0 : i32
    return %arg0, %c0_i32, %c0_i32_0 : i32, i32, i32
  }
  func.func @transform_2(%arg0: i32) -> (i32, i32, i32) {
    %c0_i32 = arith.constant 0 : i32
    %c0_i32_0 = arith.constant 0 : i32
    %c0_i32_1 = arith.constant 0 : i32
    return %arg0, %c0_i32, %c0_i32_0 : i32, i32, i32
  }
  func.func @transform_3(%arg0: i32) -> (i32, i32) {
    %c0_i32 = arith.constant 0 : i32
    %c0_i32_0 = arith.constant 0 : i32
    %c0_i32_1 = arith.constant 0 : i32
    return %c0_i32, %c0_i32_0 : i32, i32
  }
  func.func @transform_4(%arg0: i32) -> (i32, i32) {
    %c0_i32 = arith.constant 0 : i32
    %c0_i32_0 = arith.constant 0 : i32
    %c0_i32_1 = arith.constant 0 : i32
    return %c0_i32, %c0_i32_0 : i32, i32
  }
  func.func @transform_5(%arg0: i32) -> (i32, i32) {
    %c0_i32 = arith.constant 0 : i32
    %c0_i32_0 = arith.constant 0 : i32
    %c0_i32_1 = arith.constant 0 : i32
    return %c0_i32, %c0_i32_0 : i32, i32
  }
  func.func @transform_6(%arg0: i32) -> (i32, i32) {
    %c0_i32 = arith.constant 0 : i32
    %c0_i32_0 = arith.constant 0 : i32
    %c0_i32_1 = arith.constant 0 : i32
    return %c0_i32, %c0_i32_0 : i32, i32
  }
  func.func @transform_7(%arg0: i32) -> (i32, i32) {
    %c0_i32 = arith.constant 0 : i32
    %c0_i32_0 = arith.constant 0 : i32
    %c0_i32_1 = arith.constant 0 : i32
    return %c0_i32, %c0_i32_0 : i32, i32
  }
  func.func @transform_8(%arg0: i32) -> (i32, i32) {
    %c0_i32 = arith.constant 0 : i32
    %c0_i32_0 = arith.constant 0 : i32
    %c0_i32_1 = arith.constant 0 : i32
    return %c0_i32, %c0_i32_0 : i32, i32
  }
  func.func @transform_9(%arg0: i32) -> (i32, i32) {
    %c0_i32 = arith.constant 0 : i32
    %c0_i32_0 = arith.constant 0 : i32
    %c0_i32_1 = arith.constant 0 : i32
    return %c0_i32, %c0_i32_0 : i32, i32
  }
  func.func @transform_10(%arg0: i32) -> (i32, i32) {
    %c0_i32 = arith.constant 0 : i32
    %c0_i32_0 = arith.constant 0 : i32
    %c0_i32_1 = arith.constant 0 : i32
    return %c0_i32, %c0_i32_0 : i32, i32
  }
  func.func @transform_11(%arg0: i32) -> (i32, i32) {
    %c0_i32 = arith.constant 0 : i32
    %c0_i32_0 = arith.constant 0 : i32
    %c0_i32_1 = arith.constant 0 : i32
    return %c0_i32, %c0_i32_0 : i32, i32
  }
  func.func @transform_12(%arg0: i32) -> (i32, i32) {
    %c0_i32 = arith.constant 0 : i32
    %c0_i32_0 = arith.constant 0 : i32
    %c0_i32_1 = arith.constant 0 : i32
    return %c0_i32, %c0_i32_0 : i32, i32
  }
  func.func @transform_13(%arg0: i32) -> (i32, i32) {
    %c0_i32 = arith.constant 0 : i32
    %c0_i32_0 = arith.constant 0 : i32
    %c0_i32_1 = arith.constant 0 : i32
    return %c0_i32, %c0_i32_0 : i32, i32
  }
  func.func @transform_14(%arg0: i32) -> (i32, i32) {
    %c0_i32 = arith.constant 0 : i32
    %c0_i32_0 = arith.constant 0 : i32
    %c0_i32_1 = arith.constant 0 : i32
    return %c0_i32, %c0_i32_0 : i32, i32
  }
  func.func @transform_15(%arg0: i32) -> (i32, i32) {
    %c0_i32 = arith.constant 0 : i32
    %c0_i32_0 = arith.constant 0 : i32
    %c0_i32_1 = arith.constant 0 : i32
    return %c0_i32, %c0_i32_0 : i32, i32
  }
  func.func @transform_16(%arg0: i32) -> (i32, i32) {
    %c0_i32 = arith.constant 0 : i32
    %c0_i32_0 = arith.constant 0 : i32
    %c0_i32_1 = arith.constant 0 : i32
    return %c0_i32, %c0_i32_0 : i32, i32
  }
  func.func @transform_17(%arg0: i32) -> (i32, i32) {
    %c0_i32 = arith.constant 0 : i32
    %c0_i32_0 = arith.constant 0 : i32
    %c0_i32_1 = arith.constant 0 : i32
    return %c0_i32, %c0_i32_0 : i32, i32
  }
  func.func @transform_18(%arg0: i32) -> (i32, i32) {
    %c0_i32 = arith.constant 0 : i32
    %c0_i32_0 = arith.constant 0 : i32
    %c0_i32_1 = arith.constant 0 : i32
    return %c0_i32, %c0_i32_0 : i32, i32
  }
  func.func @transform_19(%arg0: i32) -> (i32, i32, i32) {
    %c0_i32 = arith.constant 0 : i32
    %c0_i32_0 = arith.constant 0 : i32
    %c0_i32_1 = arith.constant 0 : i32
    return %arg0, %c0_i32, %c0_i32_0 : i32, i32, i32
  }
}

</mosaic_0001>

<bundles_post_ra>
// kernel: rel_transformer_encoder_controlnet.7
= control target key start
LH: loop header
LB: loop body
LE: loop exit
PB: predicated region body
PF: predicated region fallthrough
CT: control target
= control target key end

     0   :  { %s2323_s0 = inlined_call_operand.vmem [shape: f32[2,16,32], index: 0, kind: input, shape index: {}]   ;;  %s2324_s1 = inlined_call_operand.vmem [shape: f32[2,16,32], index: 1, kind: input, shape index: {}]   ;;  %s2325_s2 = inlined_call_operand.vmem [shape: f32[2,16,1], index: 2, kind: input, shape index: {}]   ;;  %s2326_s3 = inlined_call_operand.vmem [shape: f32[1,32], index: 3, kind: input, shape index: {}]   ;;  %s2327_s4 = inlined_call_operand.vmem [shape: f32[1,32], index: 4, kind: input, shape index: {}]   ;;  %s2328_s5 = inlined_call_operand.vmem [shape: bf16[96,64], index: 5, kind: input, shape index: {}]   ;;  %s2329_s6 = inlined_call_operand.vmem [shape: f32[1,64], index: 6, kind: input, shape index: {}]   ;;  %s2330_s7 = inlined_call_operand.vmem [shape: bf16[192,32], index: 7, kind: input, shape index: {}]   ;;  %s2331_s8 = inlined_call_operand.vmem [shape: f32[1,32], index: 8, kind: input, shape index: {}]   ;;  %s2332_s9 = inlined_call_operand.vmem [shape: f32[1,32], index: 9, kind: input, shape index: {}]   ;;  %s2333_s10 = inlined_call_operand.vmem [shape: f32[1,32], index: 10, kind: input, shape index: {}]   ;;  %s2334_s11 = inlined_call_operand.vmem [shape: bf16[96,64], index: 11, kind: input, shape index: {}]   ;;  %s2335_s12 = inlined_call_operand.vmem [shape: f32[1,64], index: 12, kind: input, shape index: {}]   ;;  %s2336_s13 = inlined_call_operand.vmem [shape: bf16[192,32], index: 13, kind: input, shape index: {}]   ;;  %s2337_s14 = inlined_call_operand.vmem [shape: f32[1,32], index: 14, kind: input, shape index: {}]   ;;  %s2338_s15 = inlined_call_operand.vmem [shape: bf16[32,32], index: 15, kind: input, shape index: {}]   ;;  %s2339_s16 = inlined_call_operand.vmem [shape: f32[1,32], index: 16, kind: input, shape index: {}]   ;;  %s2340_s17 = inlined_call_operand.vmem [shape: f32[1,32], index: 17, kind: input, shape index: {}]   ;;  %s2341_s18 = inlined_call_operand.vmem [shape: f32[1,32], index: 18, kind: input, shape index: {}]   ;;  %s2342_s19 = inlined_call_operand.vmem [shape: f32[2,16,32], index: 19, kind: output, shape index: {}]  }
   0x1   :  { %2343 = sst [smem:[#allocation2_spill]] %s2323_s0  ;;  %s1982_s0 = smov 0  }
   0x2   :  { %2344 = sst [smem:[#allocation3_spill]] %s2324_s1 }
   0x3   :  { %2345 = sst [smem:[#allocation4_spill]] %s2325_s2 }
   0x4   :  { %2346 = sst [smem:[#allocation5_spill]] %s2326_s3 }
   0x5 LB: > { %s1650_s30 = sadd.s32 4294967295, %s1875_s0   ;;  %p1654_p0 = scmp.ge.s32.totalorder %s1875_s0, 1  ;;  %s1875_s0 = sphi %s1982_s0, %s29_s0  }
   0x6   : > { %p557_p1 = scmp.lt.s32.totalorder %s1875_s0, 3 }
   0x8   : > { %p558_p2 = pnand %p1654_p0, %p557_p1 }
   0x9   : > { %p623_p3 = scmp.lt.s32.totalorder (!%p558_p2), %s1650_s30, 1  ;;  %vm650_vm0 = vcmask (!%p558_p2), 261120   ;;  %s2347_s21 = sld [smem:[#allocation3_spill]] (!%p558_p2)  ;;  %v1877_v4 = vmov (!%p558_p2), 0   ;;  %v1878_v17 = vmov (!%p558_p2), 0.0   ;;  %v1823_v19 = vld [vmem:[%s2334_s11] sm:$0xff] (!%p558_p2)  }
   0xa   : > { %561 = sbr.rel (%p558_p2) target bundleno = 1421 (0x58d), region = 96  ;;  %s2348_s23 = sld [smem:[#allocation4_spill]] (!%p558_p2)  ;;  %1791 = vset.pattern.permute.xlu0 (!%p558_p2), %v1877_v4  ;;  %1792 = vset.pattern.permute.xlu1 (!%p558_p2), %v1877_v4  ;;  %v1687_v28 = vld [vmem:[%s2332_s9] ss:$0 sm:$0xff] (!%p558_p2)  ;;  %v1824_v31 = vld [vmem:[%s2334_s11 + $0x8] sm:$0xff] (!%p558_p2)   ;;  %v1825_v38 = vld [vmem:[%s2334_s11 + $0x10] sm:$0xff] (!%p558_p2)  }
   0xb   : > { %1754 = vmatprep.subr.bf16.mxu0 (!%p558_p2), %v1878_v17  ;;  %1738 = vmatprep.subr.bf16.mxu1 (!%p558_p2), %v1878_v17  ;;  %s2349_s26 = sld [smem:[#allocation2_spill]] (!%p558_p2)  ;;  %v1688_v30 = vld [vmem:[%s2333_s10] ss:$0 sm:$0xff] (!%p558_p2)  ;;  %v1826_v43 = vld [vmem:[%s2334_s11 + $0x18] sm:$0xff] (!%p558_p2)   ;;  %vm721_vm1 = vcmask (!%p558_p2), 1046528   ;;  %s1879_s3 = smov (!%p558_p2), 32  }
   0xc   : > { %1755 = vmatpush3.bf16.msra.mxu0 (!%p558_p2), %v1823_v19  ;;  %vm735_vm2 = vcmask (!%p558_p2), 1045504   ;;  %v1827_v48 = vld [vmem:[%s2334_s11 + $0x20] sm:$0xff] (!%p558_p2)   ;;  %v1828_v52 = vld [vmem:[%s2334_s11 + $0x28] sm:$0xff] (!%p558_p2)   ;;  %v2067_v54 = vrot.slane (!%p558_p2), %v1878_v17, 2  ;;  %vm1880_vm3 = vmmov (!%p558_p2), 0   ;;  %s1881_s18 = smov (!%p558_p2), 64  }
   0xd   : > { %1756 = vmatprep.subr.bf16.mxu0 (!%p558_p2), %v1878_v17  ;;  %1766 = vmatprep.mubr.msk.bf16.mxu0 (!%p558_p2), %vm1880_vm3, %v1878_v17  ;;  %vm753_vm4 = vcmask (!%p558_p2), 523264   ;;  %vm765_vm5 = vsmask.f32 (!%p558_p2), 4352  ;;  %vm819_vm6 = vcmask (!%p558_p2), 785408  }
   0xe   : > { %1750 = vmatprep.mubr.msk.bf16.mxu1 (!%p558_p2), %vm1880_vm3, %v1878_v17 }
  0x10   : > { %1757 = vmatpush3.bf16.msra.mxu0 (!%p558_p2), %v1824_v31 }
  0x11   : > { %s2352_s30 = smov (!%p623_p3, %s1650_s30), 1  ;;  %1758 = vmatprep.subr.bf16.mxu0 %v1878_v17 }
  0x12   : > { %s1990_s17 = sshll.u32 %s2352_s30, 4 }
  0x13   : > { %s632_s1 = scalar_lea.vmem %s2347_s21, %s1990_s17  ;;  %s637_s24 = scalar_lea.vmem %s2348_s23, %s1990_s17 }
  0x14   : > { %v1996_v0 = vld [vmem:[%s632_s1] sm:$0xff]  ;;  %v1998_v1 = vld [vmem:[%s632_s1 + $0x8] sm:$0xff]  ;;  %s2020_s27 = scalar_lea.vmem %s2349_s26, %s1990_s17  ;;  %1759 = vmatpush3.bf16.msra.mxu0 %v1825_v38  ;;  %s2350_s26 = sld [smem:[#allocation5_spill]] }
  0x15   : > { %v1086_v2 = vsel %vm650_vm0, %v1996_v0, 0.0  ;;  %v1089_v3 = vsel %vm650_vm0, %v1998_v1, 0.0  ;;  %v644_v5 = vld [vmem:[%s637_s24] sm:$0xff]  ;;  %v645_v16 = vld [vmem:[%s637_s24 + $0x8] sm:$0xff]  ;;  %1760 = vmatprep.subr.bf16.mxu0 %v1878_v17  ;;  %s642_s30 = scalar_lea.vmem %s2342_s19, %s1990_s17 }
  0x16   : > { %1087 = vadd.xlane.f32.xlu0 %v1086_v2  ;;  %v2023_v18 = vld [vmem:[%s2020_s27 + $0x8] sm:$0xff]  ;;  %v2079_v56 = vld [vmem:[%s2020_s27] sm:$0xff] }
  0x17   : > { %v654_v20 = vsel %vm650_vm0, %v2023_v18, 0.0  ;;  %v651_v57 = vsel %vm650_vm0, %v2079_v56, 0.0  ;;  %v1834_v38 = vld [vmem:[%s2328_s5] sm:$0xff]  }
  0x18   : > { %1761 = vmatpush3.bf16.msra.mxu0 %v1826_v43  ;;  %1739 = vmatpush3.bf16.msra.mxu1 %v1834_v38  ;;  %v1832_v43 = vld [vmem:[%s2336_s13 + $0x18] sm:$0xff]   ;;  %v1843_v38 = vld [vmem:[%s2336_s13 + $0x48] sm:$0xff]  }
  0x19   : > { %1762 = vmatprep.subr.bf16.mxu0 %v1878_v17  ;;  %1740 = vmatprep.subr.bf16.mxu1 %v1878_v17 }
  0x1a   : > { %1090 = vadd.xlane.f32.xlu0 %v1089_v3 }
  0x1c   : > { %1763 = vmatpush3.bf16.msra.mxu0 %v1827_v48 }
  0x1d   : > { %1764 = vmatprep.subr.bf16.mxu0 %v1878_v17 }
  0x20   : > { %1765 = vmatpush3.bf16.msra.mxu0 %v1828_v52 }
  0x21   : > { %1454 = vmatprep.subr.bf16.mxu0 %v1877_v4 }
  0x30   : > { %696 = vperm.xlu0 %1791, %v644_v5  }
  0x4f   : > { %655 = vadd.xlane.f32.xlu0 %v654_v20 }
  0xa3   : > { %v1088_v6 = vpop.xlane.xlu0 %1087 }
  0xa4   : > { %v1092_v7 = vmul.f32 0.03125, %v1088_v6 }
  0xa6   : > { %v1094_v8 = vsub.f32 %v1996_v0, %v1092_v7 }
  0xa7   : > { %v1091_v9 = vpop.xlane.xlu0 %1090 }
  0xa8   : > { %v1093_v10 = vmul.f32 0.03125, %v1091_v9  ;;  %v1096_v11 = vmul.f32 %v1094_v8, %v1094_v8 }
  0xaa   : > { %v1095_v12 = vsub.f32 %v1998_v1, %v1093_v10  ;;  %v1098_v13 = vsel %vm650_vm0, %v1096_v11, 0.0 }
  0xab   : > { %1099 = vadd.xlane.f32.xlu1 %v1098_v13 }
  0xac   : > { %v1097_v14 = vmul.f32 %v1095_v12, %v1095_v12 }
  0xae   : > { %v1101_v15 = vsel %vm650_vm0, %v1097_v14, 0.0 }
  0xaf   : > { %1102 = vadd.xlane.f32.xlu1 %v1101_v15  ;;  %v2041_v36 = vpop.permute.xlu0 %696 }
  0xc0   : > { %701 = vperm.xlu1 %1792, %v645_v16  }
 0x138   : > { %v1100_v21 = vpop.xlane.xlu1 %1099 }
 0x139   : > { %v1104_v22 = vmul.f32 0.03125, %v1100_v21 }
 0x13b   : > { %v1106_v23 = vadd.f32 0.0001, %v1104_v22 }
 0x13c   : > { %v1103_v24 = vpop.xlane.xlu1 %1102 }
 0x13d   : > { %1861 = vrsqrt.f32 %v1106_v23  ;;  %v1105_v25 = vmul.f32 0.03125, %v1103_v24 }
 0x13f   : > { %v1107_v26 = vadd.f32 0.0001, %v1105_v25 }
 0x140   : > { %v2046_v39 = vpop.permute.xlu1 %701 }
 0x141   : > { %1863 = vrsqrt.f32 %v1107_v26  ;;  %v656_v26 = vpop.xlane.xlu0 %655 }
 0x147   : > { %v1862_v27 = vpop.eup %1861 }
 0x148   : > { %v1110_v29 = vmul.f32 %v1862_v27, %v1094_v8  ;;  %v659_v27 = vmul.f32 0.03125, %v656_v26 }
 0x14a   : > { %v1118_v32 = vmul.f32 %v1687_v28, %v1110_v29 }
 0x14b   : > { %v1864_v33 = vpop.eup %1863 }
 0x14c   : > { %v1111_v34 = vmul.f32 %v1864_v33, %v1095_v12  ;;  %v1126_v35 = vadd.f32 %v1688_v30, %v1118_v32 }
 0x14e   : > { %v1119_v37 = vmul.f32 %v1687_v28, %v1111_v34  ;;  %v1128_v41 = vmul.f32 %v1126_v35, %v2041_v36 }
 0x150   : > { %v1127_v40 = vadd.f32 %v1688_v30, %v1119_v37  ;;  %v1145_v45 = vrot.slane %v1128_v41, 1  ;;  %v1157_v50 = vrot.slane %v1128_v41, 2  ;;  %v2092_v30 = vsub.f32 %v2023_v18, %v659_v27  ;;  %v1829_v37 = vld [vmem:[%s2336_s13] sm:$0xff]  }
 0x152   : > { %v1129_v42 = vmul.f32 %v1127_v40, %v2046_v39  ;;  %v663_v33 = vmul.f32 %v2092_v30, %v2092_v30  ;;  %v1830_v40 = vld [vmem:[%s2336_s13 + $0x8] sm:$0xff]  }
 0x154   : > { %v1146_v44 = vrot.slane %v1129_v42, 1  ;;  %v1158_v46 = vrot.slane %v1129_v42, 2  ;;  %v667_v35 = vsel %vm650_vm0, %v663_v33, 0.0 }
 0x156   : > { %1152 = vrot.lane.b32.xlu1 %v1146_v44, %s1879_s3  ;;  %v1147_v47 = vsel %vm721_vm1, %v1145_v45, %v1146_v44  ;;  %v1159_v51 = vsel %vm735_vm2, %v1157_v50, %v1158_v46  ;;  %v1160_v55 = vsel %vm735_vm2, %v1158_v46, %v2067_v54  ;;  %v1833_v44 = vld [vmem:[%s2336_s13 + $0x20] sm:$0xff]   ;;  %v1837_v46 = vld [vmem:[%s2336_s13 + $0x30] sm:$0xff]  }
 0x157   : > { %v1793_v49 = vpack.i.bf16 %v1147_v47, %v1145_v45  ;;  %v1798_v53 = vpack.i.bf16 %v1159_v51, %v1157_v50  ;;  %v1835_v45 = vld [vmem:[%s2336_s13 + $0x28] sm:$0xff]  }
 0x15a   : > { %1794 = vrot.lane.b32.xlu1 %v1793_v49, %s1879_s3 }
 0x15e   : > { %1799 = vrot.lane.b32.xlu1 %v1798_v53, %s1881_s18  ;;  %v1689_v53 = vld [vmem:[%s2335_s12] ss:$0 sm:$0xff] }
 0x162   : > { %1165 = vrot.lane.b32.xlu1 %v1160_v55, %s1881_s18 }
 0x186   : > { %652 = vadd.xlane.f32.xlu1 %v651_v57 }
 0x1c8   : > { %v1153_v58 = vpop.permute.xlu1 %1152 }
 0x1c9   : > { %v1172_v8 = vsel %vm650_vm0, %v1129_v42, %v1153_v58  ;;  %v1831_v42 = vld [vmem:[%s2336_s13 + $0x10] sm:$0xff]  }
 0x1cc   : > { %v1795_v59 = vpop.permute.xlu1 %1794 }
 0x1cd   : > { %v1797_v60 = vunpack.i.h.bf16 %v1795_v59  ;;  %v1796_v61 = vunpack.i.l.bf16 %v1795_v59 }
 0x1cf   : > { %v1171_v3 = vsel %vm650_vm0, %v1128_v41, %v1797_v60  ;;  %v1170_v5 = vsel %vm650_vm0, 0.0, %v1796_v61  ;;  %v1836_v41 = vld [vmem:[%s2328_s5 + $0x8] sm:$0xff]  }
 0x1d0   : > { %v1800_v62 = vpop.permute.xlu1 %1799  ;;  %1741 = vmatpush3.bf16.msra.mxu1 %v1836_v41 }
 0x1d1   : > { %v1802_v63 = vunpack.i.h.bf16 %v1800_v62  ;;  %v1801_v2 = vunpack.i.l.bf16 %v1800_v62  ;;  %1742 = vmatprep.subr.bf16.mxu1 %v1878_v17 }
 0x1d3   : > { %v1173_v6 = vsel %vm753_vm4, %v1170_v5, %v1801_v2  ;;  %v1174_v7 = vsel %vm753_vm4, %v1171_v3, %v1802_v63  ;;  %v1663_v5 = vld [vmem:[%s2350_s26] ss:$0 sm:$0xff] }
 0x1d4   : > { %v1176_v9 = vpack.c.bf16 %v1174_v7, %v1173_v6  ;;  %v1166_v10 = vpop.permute.xlu1 %1165 }
 0x1d5   : > { %v1175_v11 = vsel %vm753_vm4, %v1172_v8, %v1166_v10  ;;  %v1664_v8 = vld [vmem:[%s2327_s4] ss:$0 sm:$0xff]  ;;  %v1839_v10 = vld [vmem:[%s2336_s13 + $0x38] sm:$0xff]  }
 0x1d6   : > { %v1185_v12 = vshrl.u32 %v1176_v9, 16  ;;  %v1188_v13 = vshll.u32 %v1176_v9, 16  ;;  %v1177_v14 = vpack.c.bf16 %v1175_v11, %v1175_v11  ;;  %v1838_v9 = vld [vmem:[%s2328_s5 + $0x10] sm:$0xff]  }
 0x1d7   : > { %1743 = vmatpush3.bf16.msra.mxu1 %v1838_v9 }
 0x1d8   : > { %v1187_v15 = vrot.slane %v1185_v12, 3  ;;  %v1190_v16 = vrot.slane %v1188_v13, 4  ;;  %v1193_v19 = vshrl.u32 %v1177_v14, 16  ;;  %v1196_v20 = vshll.u32 %v1177_v14, 16  ;;  %1744 = vmatprep.subr.bf16.mxu1 %v1878_v17 }
 0x1da   : > { %v1195_v21 = vrot.slane %v1193_v19, 3  ;;  %v1198_v22 = vrot.slane %v1196_v20, 4  ;;  %v1191_v24 = vor.u32 %v1190_v16, %v1187_v15 }
 0x1dc   : > { %v1199_v23 = vor.u32 %v1198_v22, %v1195_v21 }
 0x1de   : > { %v1200_v25 = vsel %vm765_vm5, %v1191_v24, %v1199_v23  ;;  %v1840_v24 = vld [vmem:[%s2328_s5 + $0x18] sm:$0xff]  }
 0x1df   : > { %1767 = vmatmul.mubr.msk.bf16.vlgmr.msra.gmra.mrb[0].mxu0 %vm819_vm6, %v1200_v25  ;;  %v1841_v25 = vld [vmem:[%s2336_s13 + $0x40] sm:$0xff]   ;;  %1745 = vmatpush3.bf16.msra.mxu1 %v1840_v24 }
 0x1e0   : > { %1455 = vmatpush1.bf16.msra.mxu0 %v1829_v37  ;;  %1746 = vmatprep.subr.bf16.mxu1 %v1878_v17  ;;  %v1842_v37 = vld [vmem:[%s2328_s5 + $0x20] sm:$0xff]  }
 0x1e1   : > { %1456 = vmatprep.subr.bf16.mxu0 %v1877_v4 }
 0x1e3   : > { %1747 = vmatpush3.bf16.msra.mxu1 %v1842_v37 }
 0x1e4   : > { %1457 = vmatpush1.bf16.msra.mxu0 %v1830_v40  ;;  %1748 = vmatprep.subr.bf16.mxu1 %v1878_v17 }
 0x1e5   : > { %1458 = vmatprep.subr.bf16.mxu0 %v1877_v4 }
 0x1e8   : > { %1459 = vmatpush1.bf16.msra.mxu0 %v1831_v42 }
 0x1e9   : > { %1460 = vmatprep.subr.bf16.mxu0 %v1877_v4 }
 0x1ec   : > { %1461 = vmatpush1.bf16.msra.mxu0 %v1832_v43 }
 0x1ed   : > { %1462 = vmatprep.subr.bf16.mxu0 %v1877_v4 }
 0x1f0   : > { %1463 = vmatpush1.bf16.msra.mxu0 %v1833_v44 }
 0x1f1   : > { %1464 = vmatprep.subr.bf16.mxu0 %v1877_v4 }
 0x1f4   : > { %1465 = vmatpush1.bf16.msra.mxu0 %v1835_v45 }
 0x1f5   : > { %1466 = vmatprep.subr.bf16.mxu0 %v1877_v4 }
 0x1f8   : > { %1467 = vmatpush1.bf16.msra.mxu0 %v1837_v46 }
 0x1f9   : > { %1468 = vmatprep.subr.bf16.mxu0 %v1877_v4 }
 0x1fc   : > { %1469 = vmatpush1.bf16.msra.mxu0 %v1839_v10 }
 0x1fd   : > { %1470 = vmatprep.subr.bf16.mxu0 %v1877_v4 }
 0x200   : > { %1471 = vmatpush1.bf16.msra.mxu0 %v1841_v25 }
 0x201   : > { %1472 = vmatprep.subr.bf16.mxu0 %v1877_v4 }
 0x204   : > { %1473 = vmatpush1.bf16.msra.mxu0 %v1843_v38 }
 0x205   : > { %1474 = vmatprep.subr.bf16.mxu0 %v1877_v4 }
 0x213   : > { %v653_v28 = vpop.xlane.xlu1 %652 }
 0x214   : > { %v658_v29 = vmul.f32 0.03125, %v653_v28 }
 0x216   : > { %v660_v31 = vsub.f32 %v2079_v56, %v658_v29 }
 0x218   : > { %v662_v32 = vmul.f32 %v660_v31, %v660_v31 }
 0x21a   : > { %v664_v34 = vsel %vm650_vm0, %v662_v32, 0.0 }
 0x21b   : > { %665 = vadd.xlane.f32.xlu1 %v664_v34 }
 0x21f   : > { %668 = vadd.xlane.f32.xlu1 %v667_v35 }
 0x2a8   : > { %v666_v47 = vpop.xlane.xlu1 %665 }
 0x2a9   : > { %v670_v48 = vmul.f32 0.03125, %v666_v47 }
 0x2ab   : > { %v672_v49 = vadd.f32 0.0001, %v670_v48 }
 0x2ac   : > { %v669_v50 = vpop.xlane.xlu1 %668 }
 0x2ad   : > { %1865 = vrsqrt.f32 %v672_v49  ;;  %v671_v51 = vmul.f32 0.03125, %v669_v50  ;;  %v1844_v50 = vld [vmem:[%s2328_s5 + $0x28] sm:$0xff]  }
 0x2ae   : > { %1749 = vmatpush3.bf16.msra.mxu1 %v1844_v50 }
 0x2af   : > { %v673_v52 = vadd.f32 0.0001, %v671_v51  ;;  %v1845_v51 = vld [vmem:[%s2336_s13 + $0x50] sm:$0xff]   ;;  %1037 = vmatprep.subr.bf16.mxu1 %v1877_v4 }
 0x2b0   : > { %1475 = vmatpush1.bf16.msra.mxu0 %v1845_v51 }
 0x2b1   : > { %1867 = vrsqrt.f32 %v673_v52  ;;  %1476 = vmatprep.subr.bf16.mxu0 %v1877_v4 }
 0x2b2   : > { %v1274_v55 = vpop.f32.mrb[0].mxu0 }
 0x2b3   : > { %v1275_v57 = vadd.f32 %v1689_v53, %v1274_v55  ;;  %v1768_v58 = vpop.f32.mrb[1].mxu0 }
 0x2b4   : > { %v1277_v59 = vpop.f32.mrb[2].mxu0 }
 0x2b5   : > { %v1281_v60 = vmax.f32 %v1275_v57, 0.0  ;;  %v1278_v61 = vadd.f32 %v1689_v53, %v1277_v59  ;;  %v1769_v62 = vpop.f32.mrb[3].mxu0  ;;  %v1846_v59 = vld [vmem:[%s2336_s13 + $0x58] sm:$0xff]  }
 0x2b6   : > { %1477 = vmatpush1.bf16.msra.mxu0 %v1846_v59  ;;  %v1852_v59 = vld [vmem:[%s2330_s7 + $0x28] sm:$0xff]  }
 0x2b7   : > { %v1866_v63 = vpop.eup %1865  ;;  %v2139_v2 = vmul.f32 %v1281_v60, %v2041_v36  ;;  %v1282_v3 = vmax.f32 %v1278_v61, 0.0 }
 0x2b8   : > { %v676_v6 = vmul.f32 %v1866_v63, %v660_v31 }
 0x2b9   : > { %v2145_v7 = vmul.f32 %v1282_v3, %v2046_v39  ;;  %v1324_v13 = vrot.slane %v2139_v2, 2  ;;  %v1312_v57 = vrot.slane %v2139_v2, 1 }
 0x2ba   : > { %v684_v11 = vmul.f32 %v1663_v5, %v676_v6 }
 0x2bb   : > { %v1868_v12 = vpop.eup %1867  ;;  %v1325_v14 = vrot.slane %v2145_v7, 2  ;;  %v1313_v46 = vrot.slane %v2145_v7, 1 }
 0x2bc   : > { %v677_v15 = vmul.f32 %v1868_v12, %v2092_v30  ;;  %v692_v16 = vadd.f32 %v1664_v8, %v684_v11 }
 0x2bd   : > { %v1326_v19 = vsel %vm735_vm2, %v1324_v13, %v1325_v14  ;;  %v1327_v20 = vsel %vm735_vm2, %v1325_v14, %v2067_v54  ;;  %v1314_v58 = vsel %vm721_vm1, %v1312_v57, %v1313_v46 }
 0x2be   : > { %v1337_v21 = vpack.c.bf16 %v1327_v20, %v1327_v20  ;;  %v685_v22 = vmul.f32 %v1663_v5, %v677_v15  ;;  %v1335_v23 = vpack.c.bf16 %v1326_v19, %v1324_v13  ;;  %v704_v26 = vmul.f32 %v2041_v36, %v692_v16 }
 0x2bf   : > { %v1813_v61 = vpack.i.bf16 %v1314_v58, %v1312_v57  ;;  %v1850_v57 = vld [vmem:[%s2330_s7 + $0x18] sm:$0xff]   ;;  %v1851_v58 = vld [vmem:[%s2330_s7 + $0x20] sm:$0xff]  }
 0x2c0   : > { %v693_v27 = vadd.f32 %v1664_v8, %v685_v22  ;;  %v1362_v28 = vshrl.u32 %v1335_v23, 16  ;;  %v1365_v29 = vshll.u32 %v1335_v23, 16  ;;  %v1370_v30 = vshrl.u32 %v1337_v21, 16 }
 0x2c1   : > { %v1373_v31 = vshll.u32 %v1337_v21, 16  ;;  %v722_v41 = vrot.slane %v704_v26, 1  ;;  %v736_v44 = vrot.slane %v704_v26, 2 }
 0x2c2   : > { %v705_v32 = vmul.f32 %v2046_v39, %v693_v27  ;;  %v1364_v33 = vrot.slane %v1362_v28, 3  ;;  %v1367_v34 = vrot.slane %v1365_v29, 4  ;;  %v1372_v35 = vrot.slane %v1370_v30, 3 }
 0x2c3   : > { %v1375_v40 = vrot.slane %v1373_v31, 4 }
 0x2c4   : > { %v723_v42 = vrot.slane %v705_v32, 1  ;;  %v1368_v43 = vor.u32 %v1367_v34, %v1364_v33  ;;  %v737_v45 = vrot.slane %v705_v32, 2 }
 0x2c5   : > { %v1376_v47 = vor.u32 %v1375_v40, %v1372_v35 }
 0x2c6   : > { %729 = vrot.lane.b32.xlu1 %v723_v42, %s1879_s3  ;;  %v724_v48 = vsel %vm721_vm1, %v722_v41, %v723_v42  ;;  %v738_v49 = vsel %vm735_vm2, %v736_v44, %v737_v45  ;;  %v740_v60 = vsel %vm735_vm2, %v737_v45, %v2067_v54 }
 0x2c7   : > { %v1377_v52 = vsel %vm765_vm5, %v1368_v43, %v1376_v47  ;;  %v1803_v53 = vpack.i.bf16 %v724_v48, %v722_v41  ;;  %v1808_v55 = vpack.i.bf16 %v738_v49, %v736_v44 }
 0x2c8   : > { %1710 = vmatprep.mubr.msk.bf16.mxu0 %vm753_vm4, %v1377_v52  ;;  %v1847_v52 = vld [vmem:[%s2330_s7] sm:$0xff]  }
 0x2c9   : > { %1804 = vrot.lane.b32.xlu0 %v1803_v53, %s1879_s3  ;;  %v1848_v53 = vld [vmem:[%s2330_s7 + $0x8] sm:$0xff]  }
 0x2ca   : > { %1809 = vrot.lane.b32.xlu1 %v1808_v55, %s1881_s18  ;;  %v1849_v55 = vld [vmem:[%s2330_s7 + $0x10] sm:$0xff]  }
 0x2cd   : > { %745 = vrot.lane.b32.xlu0 %v740_v60, %s1881_s18  ;;  %v1853_v60 = vld [vmem:[%s2330_s7 + $0x30] sm:$0xff]  }
 0x2ce   : > { %1814 = vrot.lane.b32.xlu1 %v1813_v61, %s1881_s18  ;;  %v1854_v61 = vld [vmem:[%s2330_s7 + $0x38] sm:$0xff]  }
 0x2d1   : > { %1319 = vrot.lane.b32.xlu0 %v1313_v46, %s1881_s18 }
 0x338   : > { %v730_v62 = vpop.permute.xlu1 %729 }
 0x339   : > { %v752_v12 = vsel %vm650_vm0, %v705_v32, %v730_v62  ;;  %v1855_v62 = vld [vmem:[%s2330_s7 + $0x40] sm:$0xff]  }
 0x33b   : > { %v1805_v63 = vpop.permute.xlu0 %1804 }
 0x33c   : > { %v1807_v3 = vunpack.i.h.bf16 %v1805_v63  ;;  %v1806_v5 = vunpack.i.l.bf16 %v1805_v63  ;;  %v1810_v6 = vpop.permute.xlu1 %1809  ;;  %v1665_v63 = vld [vmem:[%s2329_s6] ss:$0 sm:$0xff] }
 0x33d   : > { %v1812_v8 = vunpack.i.h.bf16 %v1810_v6  ;;  %v1811_v9 = vunpack.i.l.bf16 %v1810_v6 }
 0x33e   : > { %v751_v10 = vsel %vm650_vm0, %v704_v26, %v1807_v3  ;;  %v750_v11 = vsel %vm650_vm0, 0.0, %v1806_v5 }
 0x33f   : > { %v754_v13 = vsel %vm753_vm4, %v750_v11, %v1811_v9  ;;  %v755_v14 = vsel %vm753_vm4, %v751_v10, %v1812_v8  ;;  %v746_v15 = vpop.permute.xlu0 %745  ;;  %v1856_v8 = vld [vmem:[%s2330_s7 + $0x48] sm:$0xff]   ;;  %v1697_v10 = vld [vmem:[%s2337_s14] ss:$0 sm:$0xff] }
 0x340   : > { %v757_v16 = vpack.c.bf16 %v755_v14, %v754_v13  ;;  %v756_v19 = vsel %vm753_vm4, %v752_v12, %v746_v15  ;;  %v1815_v20 = vpop.permute.xlu1 %1814 }
 0x341   : > { %v758_v21 = vpack.c.bf16 %v756_v19, %v756_v19  ;;  %v1817_v22 = vunpack.i.h.bf16 %v1815_v20  ;;  %v1816_v23 = vunpack.i.l.bf16 %v1815_v20 }
 0x342   : > { %v767_v24 = vshrl.u32 %v757_v16, 16  ;;  %v770_v25 = vshll.u32 %v757_v16, 16 }
 0x343   : > { %v775_v27 = vshrl.u32 %v758_v21, 16  ;;  %v778_v26 = vshll.u32 %v758_v21, 16  ;;  %v1332_v28 = vsel %vm753_vm4, %v2139_v2, %v1817_v22  ;;  %v1331_v29 = vsel %vm753_vm4, 0.0, %v1816_v23  ;;  %v1320_v30 = vpop.permute.xlu0 %1319  ;;  %v1857_v21 = vld [vmem:[%s2330_s7 + $0x50] sm:$0xff]  }
 0x344   : > { %v769_v31 = vrot.slane %v767_v24, 3  ;;  %v772_v32 = vrot.slane %v770_v25, 4  ;;  %v1334_v33 = vpack.c.bf16 %v1332_v28, %v1331_v29  ;;  %v1333_v34 = vsel %vm753_vm4, %v2145_v7, %v1320_v30  ;;  %v1858_v28 = vld [vmem:[%s2330_s7 + $0x58] sm:$0xff]  }
 0x345   : > { %v777_v35 = vrot.slane %v775_v27, 3  ;;  %v780_v37 = vrot.slane %v778_v26, 4  ;;  %v1336_v38 = vpack.c.bf16 %v1333_v34, %v1333_v34 }
 0x346   : > { %v1345_v40 = vshrl.u32 %v1334_v33, 16  ;;  %v1348_v41 = vshll.u32 %v1334_v33, 16  ;;  %v773_v42 = vor.u32 %v772_v32, %v769_v31 }
 0x347   : > { %v781_v43 = vor.u32 %v780_v37, %v777_v35  ;;  %v1353_v44 = vshrl.u32 %v1336_v38, 16  ;;  %v1356_v45 = vshll.u32 %v1336_v38, 16 }
 0x348   : > { %v1347_v46 = vrot.slane %v1345_v40, 3  ;;  %v1350_v2 = vrot.slane %v1348_v41, 4 }
 0x349   : > { %v1355_v47 = vrot.slane %v1353_v44, 3  ;;  %v1358_v48 = vrot.slane %v1356_v45, 4  ;;  %v782_v49 = vsel %vm765_vm5, %v773_v42, %v781_v43 }
 0x34a   : > { %1751 = vmatmul.mubr.msk.bf16.vlgmr.msra.gmra.mrb[0].mxu1 %vm819_vm6, %v782_v49  ;;  %v1351_v50 = vor.u32 %v1350_v2, %v1347_v46 }
 0x34b   : > { %v1359_v51 = vor.u32 %v1358_v48, %v1355_v47  ;;  %1038 = vmatpush1.bf16.msra.mxu1 %v1847_v52 }
 0x34c   : > { %1039 = vmatprep.subr.bf16.mxu1 %v1877_v4 }
 0x34d   : > { %v1360_v7 = vsel %vm765_vm5, %v1351_v50, %v1359_v51 }
 0x34e   : > { %1487 = vmatmul.mubr.bf16.vlgmr.msra.gmra.mrb[4].mxu0 %v1360_v7 }
 0x34f   : > { %1040 = vmatpush1.bf16.msra.mxu1 %v1848_v53 }
 0x350   : > { %1041 = vmatprep.subr.bf16.mxu1 %v1877_v4 }
 0x353   : > { %1042 = vmatpush1.bf16.msra.mxu1 %v1849_v55 }
 0x354   : > { %1043 = vmatprep.subr.bf16.mxu1 %v1877_v4 }
 0x357   : > { %1044 = vmatpush1.bf16.msra.mxu1 %v1850_v57 }
 0x358   : > { %1045 = vmatprep.subr.bf16.mxu1 %v1877_v4 }
 0x35b   : > { %1046 = vmatpush1.bf16.msra.mxu1 %v1851_v58 }
 0x35c   : > { %1047 = vmatprep.subr.bf16.mxu1 %v1877_v4 }
 0x35f   : > { %1048 = vmatpush1.bf16.msra.mxu1 %v1852_v59 }
 0x360   : > { %1049 = vmatprep.subr.bf16.mxu1 %v1877_v4 }
 0x363   : > { %1050 = vmatpush1.bf16.msra.mxu1 %v1853_v60 }
 0x364   : > { %1051 = vmatprep.subr.bf16.mxu1 %v1877_v4 }
 0x367   : > { %1052 = vmatpush1.bf16.msra.mxu1 %v1854_v61 }
 0x368   : > { %1053 = vmatprep.subr.bf16.mxu1 %v1877_v4 }
 0x36b   : > { %1054 = vmatpush1.bf16.msra.mxu1 %v1855_v62 }
 0x36c   : > { %1055 = vmatprep.subr.bf16.mxu1 %v1877_v4 }
 0x36f   : > { %1056 = vmatpush1.bf16.msra.mxu1 %v1856_v8 }
 0x370   : > { %1057 = vmatprep.subr.bf16.mxu1 %v1877_v4 }
 0x373   : > { %1058 = vmatpush1.bf16.msra.mxu1 %v1857_v21 }
 0x374   : > { %1059 = vmatprep.subr.bf16.mxu1 %v1877_v4 }
 0x377   : > { %1060 = vmatpush1.bf16.msra.mxu1 %v1858_v28 }
 0x378   : > { %1770 = vmatprep.subr.bf16.mxu1 %v1878_v17 }
 0x41d   : > { %v857_v3 = vpop.f32.mrb[0].mxu1 }
 0x41e   : > { %v858_v5 = vadd.f32 %v1665_v63, %v857_v3  ;;  %v1752_v6 = vpop.f32.mrb[1].mxu1 }
 0x41f   : > { %v860_v9 = vpop.f32.mrb[2].mxu1 }
 0x420   : > { %v864_v11 = vmax.f32 %v858_v5, 0.0  ;;  %v861_v12 = vadd.f32 %v1665_v63, %v860_v9  ;;  %v1753_v13 = vpop.f32.mrb[3].mxu1 }
 0x421   : > { %v1488_v14 = vpop.f32.mrb[4].mxu0  ;;  %v1860_v13 = vld [vmem:[%s2338_s15 + $0x8] sm:$0xff]  }
 0x422   : > { %v866_v15 = vmul.f32 %v864_v11, %v2041_v36  ;;  %v865_v16 = vmax.f32 %v861_v12, 0.0  ;;  %v1489_v19 = vadd.f32 %v1697_v10, %v1488_v14  ;;  %v1490_v20 = vpop.f32.mrb[5].mxu0  ;;  %v1859_v11 = vld [vmem:[%s2338_s15] sm:$0xff]  }
 0x423   : > { %v1491_v22 = vpop.f32.mrb[6].mxu0  ;;  %v1673_v14 = vld [vmem:[%s2331_s8] ss:$0 sm:$0xff] }
 0x424   : > { %v867_v23 = vmul.f32 %v865_v16, %v2046_v39  ;;  %v1495_v24 = vmul.f32 %v1489_v19, %v2041_v36  ;;  %v1492_v25 = vadd.f32 %v1697_v10, %v1491_v22  ;;  %v1493_v27 = vpop.f32.mrb[7].mxu0  ;;  %v907_v26 = vrot.slane %v866_v15, 2 }
 0x425   : > { %v895_v32 = vrot.slane %v866_v15, 1 }
 0x426   : > { %v908_v29 = vrot.slane %v867_v23, 2  ;;  %v1496_v30 = vmul.f32 %v1492_v25, %v2046_v39  ;;  %v896_v31 = vrot.slane %v867_v23, 1  ;;  %v1497_v33 = vadd.f32 %v1495_v24, %v1996_v0 }
 0x428   : > { %v909_v34 = vsel %vm735_vm2, %v907_v26, %v908_v29  ;;  %v910_v35 = vsel %vm735_vm2, %v908_v29, %v2067_v54  ;;  %v1498_v37 = vadd.f32 %v1496_v30, %v1998_v1  ;;  %902 = vrot.lane.b32.xlu0 %v896_v31, %s1881_s18  ;;  %v897_v4 = vsel %vm721_vm1, %v895_v32, %v896_v31 }
 0x429   : > { %v920_v38 = vpack.c.bf16 %v910_v35, %v910_v35  ;;  %v1818_v40 = vpack.i.bf16 %v897_v4, %v895_v32  ;;  %v918_v41 = vpack.c.bf16 %v909_v34, %v907_v26 }
 0x42a   : > { %v1499_v42 = vpack.c.bf16 %v1498_v37, %v1497_v33 }
 0x42b   : > { %1819 = vrot.lane.b32.xlu1 %v1818_v40, %s1881_s18  ;;  %v945_v0 = vshrl.u32 %v918_v41, 16  ;;  %v948_v43 = vshll.u32 %v918_v41, 16  ;;  %v953_v44 = vshrl.u32 %v920_v38, 16  ;;  %v956_v45 = vshll.u32 %v920_v38, 16 }
 0x42d   : > { %v947_v54 = vrot.slane %v945_v0, 3  ;;  %v950_v46 = vrot.slane %v948_v43, 4  ;;  %v955_v1 = vrot.slane %v953_v44, 3  ;;  %v958_v2 = vrot.slane %v956_v45, 4 }
 0x42f   : > { %v951_v47 = vor.u32 %v950_v46, %v947_v54  ;;  %v959_v48 = vor.u32 %v958_v2, %v955_v1 }
 0x431   : > { %v960_v49 = vsel %vm765_vm5, %v951_v47, %v959_v48 }
 0x432   : > { %1686 = vmatprep.mubr.msk.bf16.mxu1 %vm753_vm4, %v960_v49 }
 0x49a   : > { %v903_v50 = vpop.permute.xlu0 %902 }
 0x49b   : > { %v916_v51 = vsel %vm753_vm4, %v867_v23, %v903_v50 }
 0x49c   : > { %v919_v7 = vpack.c.bf16 %v916_v51, %v916_v51 }
 0x49d   : > { %v1820_v52 = vpop.permute.xlu1 %1819 }
 0x49e   : > { %v1822_v53 = vunpack.i.h.bf16 %v1820_v52  ;;  %v1821_v55 = vunpack.i.l.bf16 %v1820_v52  ;;  %v936_v57 = vshrl.u32 %v919_v7, 16  ;;  %v939_v58 = vshll.u32 %v919_v7, 16 }
 0x4a0   : > { %v915_v59 = vsel %vm753_vm4, %v866_v15, %v1822_v53  ;;  %v914_v60 = vsel %vm753_vm4, 0.0, %v1821_v55  ;;  %v938_v62 = vrot.slane %v936_v57, 3  ;;  %v941_v63 = vrot.slane %v939_v58, 4 }
 0x4a1   : > { %v917_v61 = vpack.c.bf16 %v915_v59, %v914_v60 }
 0x4a2   : > { %v942_v9 = vor.u32 %v941_v63, %v938_v62 }
 0x4a3   : > { %v928_v3 = vshrl.u32 %v917_v61, 16  ;;  %v931_v5 = vshll.u32 %v917_v61, 16 }
 0x4a5   : > { %v930_v6 = vrot.slane %v928_v3, 3  ;;  %v933_v8 = vrot.slane %v931_v5, 4 }
 0x4a7   : > { %v934_v10 = vor.u32 %v933_v8, %v930_v6 }
 0x4a9   : > { %v943_v12 = vsel %vm765_vm5, %v934_v10, %v942_v9 }
 0x4aa   : > { %1070 = vmatmul.mubr.bf16.vlgmr.msra.gmra.mrb[4].mxu1 %v943_v12 }
 0x4ab   : > { %1771 = vmatpush3.bf16.msra.mxu1 %v1859_v11  ;;  %1774 = vmatprep.mubr.msk.bf16.mxu1 %vm1880_vm3, %v1878_v17 }
 0x4ac   : > { %1772 = vmatprep.subr.bf16.mxu1 %v1878_v17  ;;  %v1711_v17 = vld [vmem:[%s2339_s16] ss:$0 sm:$0xff] }
 0x4af   : > { %1773 = vmatpush3.bf16.msra.mxu1 %v1860_v13 }
 0x4b2   : > { %1775 = vmatmul.mubr.msk.bf16.vlgmr.msra.gmra.mrb[8].mxu1 %vm650_vm0, %v1499_v42 }
 0x57d   : > { %v1071_v15 = vpop.f32.mrb[4].mxu1 }
 0x57e   : > { %v1072_v16 = vadd.f32 %v1673_v14, %v1071_v15  ;;  %v1073_v19 = vpop.f32.mrb[5].mxu1 }
 0x57f   : > { %v1074_v20 = vpop.f32.mrb[6].mxu1 }
 0x580   : > { %v1075_v21 = vadd.f32 %v1673_v14, %v1074_v20  ;;  %v1076_v22 = vpop.f32.mrb[7].mxu1  ;;  %v1078_v23 = vmul.f32 %v1072_v16, %v2041_v36 }
 0x582   : > { %v1079_v24 = vmul.f32 %v1075_v21, %v2046_v39  ;;  %v1080_v27 = vadd.f32 %v1078_v23, %v2079_v56 }
 0x584   : > { %v1081_v31 = vadd.f32 %v1079_v24, %v2023_v18 }
 0x585   : > { %v1560_v25 = vpop.f32.mrb[8].mxu1 }
 0x586   : > { %v1561_v26 = vadd.f32 %v1711_v17, %v1560_v25  ;;  %v1776_v28 = vpop.f32.mrb[9].mxu1 }
 0x587   : > { %v1563_v29 = vpop.f32.mrb[10].mxu1 }
 0x588   : > { %v1567_v30 = vadd.f32 %v1561_v26, %v1080_v27  ;;  %v1564_v36 = vadd.f32 %v1711_v17, %v1563_v29  ;;  %v1777_v32 = vpop.f32.mrb[11].mxu1 }
 0x58a   : > { %1569 = vst.msk [vmem:[%s642_s30] sm:$0xff] %vm650_vm0, %v1567_v30  ;;  %v1568_v33 = vadd.f32 %v1564_v36, %v1081_v31 }
 0x58c   : > { %1570 = vst.msk [vmem:[%s642_s30 + $0x8] sm:$0xff] %vm650_vm0, %v1568_v33 }
 0x58d PF: > { %s29_s0 = sadd.s32 1, %s1875_s0  }
 0x58e   : > { %p26_p4 = scmp.ge.s32.totalorder %s29_s0, 4  }
 0x590   :  { %28 = sbr.rel (!%p26_p4) target bundleno = 5 (0x5), region = 132 }

// kernel: rel_transformer_encoder_controlnet.9
= control target key start
LH: loop header
LB: loop body
LE: loop exit
PB: predicated region body
PF: predicated region fallthrough
CT: control target
= control target key end

     0   :  { %s2584_s0 = inlined_call_operand.vmem [shape: f32[2,16,32], index: 0, kind: input, shape index: {}]   ;;  %s2585_s1 = inlined_call_operand.vmem [shape: f32[2,16,32], index: 1, kind: input, shape index: {}]   ;;  %s2586_s2 = inlined_call_operand.vmem [shape: f32[2,16,1], index: 2, kind: input, shape index: {}]   ;;  %s2587_s3 = inlined_call_operand.vmem [shape: f32[1,32], index: 3, kind: input, shape index: {}]   ;;  %s2588_s4 = inlined_call_operand.vmem [shape: f32[1,32], index: 4, kind: input, shape index: {}]   ;;  %s2589_s5 = inlined_call_operand.vmem [shape: bf16[96,64], index: 5, kind: input, shape index: {}]   ;;  %s2590_s6 = inlined_call_operand.vmem [shape: f32[1,64], index: 6, kind: input, shape index: {}]   ;;  %s2591_s7 = inlined_call_operand.vmem [shape: bf16[192,32], index: 7, kind: input, shape index: {}]   ;;  %s2592_s8 = inlined_call_operand.vmem [shape: f32[1,32], index: 8, kind: input, shape index: {}]   ;;  %s2593_s9 = inlined_call_operand.vmem [shape: f32[1,32], index: 9, kind: input, shape index: {}]   ;;  %s2594_s10 = inlined_call_operand.vmem [shape: f32[1,32], index: 10, kind: input, shape index: {}]   ;;  %s2595_s11 = inlined_call_operand.vmem [shape: bf16[96,64], index: 11, kind: input, shape index: {}]   ;;  %s2596_s12 = inlined_call_operand.vmem [shape: f32[1,64], index: 12, kind: input, shape index: {}]   ;;  %s2597_s13 = inlined_call_operand.vmem [shape: bf16[192,32], index: 13, kind: input, shape index: {}]   ;;  %s2598_s14 = inlined_call_operand.vmem [shape: f32[1,32], index: 14, kind: input, shape index: {}]   ;;  %s2599_s15 = inlined_call_operand.vmem [shape: bf16[32,32], index: 15, kind: input, shape index: {}]   ;;  %s2600_s16 = inlined_call_operand.vmem [shape: f32[1,32], index: 16, kind: input, shape index: {}]   ;;  %s2601_s17 = inlined_call_operand.vmem [shape: f32[1,32], index: 17, kind: input, shape index: {}]   ;;  %s2602_s18 = inlined_call_operand.vmem [shape: f32[1,32], index: 18, kind: input, shape index: {}]   ;;  %s2603_s19 = inlined_call_operand.hbm [shape: f32[2,16,32], index: 19, kind: output, shape index: {}]  }
   0x1   :  { %2611 = sst [smem:[#allocation8_spill]] %s2584_s0 }
   0x2   :  { %2612 = sst [smem:[#allocation9_spill]] %s2585_s1 }
   0x3   :  { %2613 = sst [smem:[#allocation10_spill]] %s2586_s2 }
   0x4   :  { %2614 = sst [smem:[#allocation11_spill]] %s2587_s3 }
   0x5   :  { %2615 = sst [smem:[#allocation12_spill]] %s2588_s4 }
   0x6   :  { %24 = vsyncpa [#allocation3], 0 }
   0x7   :  { %26 = vsyncpa [#allocation3 + $0x1], 0  ;;  %s2146_s0 = smov 0   ;;  %s2148_s30 = smov 0  }
   0x8   :  { %s2150_s20 = smov 0   ;;  %s2152_s21 = smov 0  }
   0x9 LB: > { %2616 = sst [smem:[#allocation5_spill]] %s2032_s20  ;;  %s2167_s1 = sadd.s32 4294967295, %s2036_s21   ;;  %s2036_s21 = sphi %s2152_s21, %s2628_s21   ;;  %s2032_s20 = sphi %s2150_s20, %s2633_s20   ;;  %s2028_s30 = sphi %s2148_s30, %s2632_s30   ;;  %s2024_s0 = sphi %s2146_s0, %s2631_s0  }
   0xa   : > { %s1715_s22 = sadd.s32 4294967294, %s2036_s21   ;;  %s2171_s2 = sadd.s32 1, %s2036_s21  }
   0xb   : > { %2617 = sst [smem:[#allocation6_spill]] %s2171_s2  ;;  %s453_s23 = sadd.s32 1, %s2032_s20 }
   0xc   : > { %s450_s24 = ssub.s32 %s2036_s21, %s2171_s2  ;;  %p463_p0 = scmp.ne.s32.totalorder %s2032_s20, %s2028_s30 }
   0xd   : > { %p451_p1 = scmp.eq.s32.totalorder %s450_s24, 0  ;;  %p464_p2 = scmp.eq.s32.totalorder %s2167_s1, 1 }
   0xe   : > { %p469_p3 = scmp.ne.s32.totalorder %s2028_s30, %s2024_s0  ;;  %p470_p4 = scmp.eq.s32.totalorder %s1715_s22, 1 }
   0xf   : > { %s2182_s25 = scalar_select %p451_p1, %s2032_s20, %s453_s23  }
  0x10   : > { %p2184_p5 = por %p464_p2, %p463_p0  ;;  %p2188_p6 = por %p470_p4, %p469_p3 }
  0x11   : > { %2618 = sst [smem:[#allocation7_spill]] %s2182_s25  ;;  %p1718_p7 = scmp.ge.s32.totalorder %s2036_s21, 1 }
  0x12   : > { %p560_p8 = scmp.lt.s32.totalorder %s2036_s21, 3 }
  0x14   : > { %p561_p9 = pnand %p1718_p7, %p560_p8 }
  0x15   : > { %p626_p10 = scmp.lt.s32.totalorder (!%p561_p9), %s2167_s1, 1  ;;  %vm648_vm0 = vcmask (!%p561_p9), 261120   ;;  %s2621_s23 = sld [smem:[#allocation9_spill]] (!%p561_p9)  ;;  %v2038_v4 = vmov (!%p561_p9), 0   ;;  %v2039_v17 = vmov (!%p561_p9), 0.0   ;;  %v1924_v19 = vld [vmem:[%s2595_s11] sm:$0xff] (!%p561_p9)  }
  0x16   : > { %564 = sbr.rel (%p561_p9) target bundleno = 1763 (0x6e3), region = 96  ;;  %s2622_s20 = sld [smem:[#allocation10_spill]] (!%p561_p9)  ;;  %1892 = vset.pattern.permute.xlu0 (!%p561_p9), %v2038_v4  ;;  %1893 = vset.pattern.permute.xlu1 (!%p561_p9), %v2038_v4  ;;  %v1750_v28 = vld [vmem:[%s2593_s9] ss:$0 sm:$0xff] (!%p561_p9)  ;;  %v1925_v31 = vld [vmem:[%s2595_s11 + $0x8] sm:$0xff] (!%p561_p9)   ;;  %v1926_v38 = vld [vmem:[%s2595_s11 + $0x10] sm:$0xff] (!%p561_p9)  }
  0x17   : > { %1822 = vmatprep.subr.bf16.mxu0 (!%p561_p9), %v2039_v17  ;;  %1806 = vmatprep.subr.bf16.mxu1 (!%p561_p9), %v2039_v17  ;;  %s2623_s29 = sld [smem:[#allocation8_spill]] (!%p561_p9)  ;;  %v1751_v30 = vld [vmem:[%s2594_s10] ss:$0 sm:$0xff] (!%p561_p9)  ;;  %v1927_v43 = vld [vmem:[%s2595_s11 + $0x18] sm:$0xff] (!%p561_p9)   ;;  %vm719_vm1 = vcmask (!%p561_p9), 1046528   ;;  %vm733_vm2 = vcmask (!%p561_p9), 1045504  }
  0x18   : > { %1823 = vmatpush3.bf16.msra.mxu0 (!%p561_p9), %v1924_v19  ;;  %v1928_v48 = vld [vmem:[%s2595_s11 + $0x20] sm:$0xff] (!%p561_p9)   ;;  %v1929_v52 = vld [vmem:[%s2595_s11 + $0x28] sm:$0xff] (!%p561_p9)   ;;  %v2273_v54 = vrot.slane (!%p561_p9), %v2039_v17, 2  ;;  %vm2041_vm3 = vmmov (!%p561_p9), 0   ;;  %vm751_vm4 = vcmask (!%p561_p9), 523264   ;;  %vm817_vm6 = vcmask (!%p561_p9), 785408  }
  0x19   : > { %1824 = vmatprep.subr.bf16.mxu0 (!%p561_p9), %v2039_v17  ;;  %1834 = vmatprep.mubr.msk.bf16.mxu0 (!%p561_p9), %vm2041_vm3, %v2039_v17  ;;  %vm763_vm5 = vsmask.f32 (!%p561_p9), 4352  ;;  %s2625_s4 = sld [smem:[#allocation12_spill]] (!%p561_p9) }
  0x1a   : > { %1818 = vmatprep.mubr.msk.bf16.mxu1 (!%p561_p9), %vm2041_vm3, %v2039_v17 }
  0x1c   : > { %1825 = vmatpush3.bf16.msra.mxu0 (!%p561_p9), %v1925_v31 }
  0x1d   : > { %s627_s27 = scalar_select %p626_p10, %s2167_s1, 1  ;;  %1826 = vmatprep.subr.bf16.mxu0 %v2039_v17 }
  0x1f   : > { %s2196_s28 = sshll.u32 %s627_s27, 4  ;;  %s2609_s27 = smov 32  }
  0x20   : > { %s635_s24 = scalar_lea.vmem %s2621_s23, %s2196_s28  ;;  %s640_s2 = scalar_lea.vmem %s2622_s20, %s2196_s28  ;;  %1827 = vmatpush3.bf16.msra.mxu0 %v1926_v38  ;;  %v1935_v38 = vld [vmem:[%s2589_s5] sm:$0xff]  }
  0x21   : > { %v2202_v0 = vld [vmem:[%s635_s24] sm:$0xff]  ;;  %v2204_v1 = vld [vmem:[%s635_s24 + $0x8] sm:$0xff]  ;;  %s2226_s22 = scalar_lea.vmem %s2623_s29, %s2196_s28  ;;  %1828 = vmatprep.subr.bf16.mxu0 %v2039_v17  ;;  %s2607_s24 = smov 64   ;;  %1807 = vmatpush3.bf16.msra.mxu1 %v1935_v38 }
  0x22   : > { %v1084_v2 = vsel %vm648_vm0, %v2202_v0, 0.0  ;;  %v1087_v3 = vsel %vm648_vm0, %v2204_v1, 0.0  ;;  %v642_v5 = vld [vmem:[%s640_s2] sm:$0xff]  ;;  %v643_v16 = vld [vmem:[%s640_s2 + $0x8] sm:$0xff]  ;;  %1808 = vmatprep.subr.bf16.mxu1 %v2039_v17  ;;  %s2624_s29 = sld [smem:[#allocation11_spill]]  ;;  %s2626_s20 = smov 32  }
  0x23   : > { %1085 = vadd.xlane.f32.xlu0 %v1084_v2  ;;  %v2229_v18 = vld [vmem:[%s2226_s22 + $0x8] sm:$0xff]  ;;  %v2285_v56 = vld [vmem:[%s2226_s22] sm:$0xff]  ;;  %s2627_s23 = smov 64   ;;  %s1788_s28 = sshll.u32 %s2167_s1, 8 }
  0x24   : > { %v652_v20 = vsel %vm648_vm0, %v2229_v18, 0.0  ;;  %1829 = vmatpush3.bf16.msra.mxu0 %v1927_v43  ;;  %v649_v57 = vsel %vm648_vm0, %v2285_v56, 0.0  ;;  %v1933_v43 = vld [vmem:[%s2597_s13 + $0x18] sm:$0xff]   ;;  %v1944_v38 = vld [vmem:[%s2597_s13 + $0x48] sm:$0xff]  }
  0x25   : > { %1830 = vmatprep.subr.bf16.mxu0 %v2039_v17 }
  0x27   : > { %1088 = vadd.xlane.f32.xlu0 %v1087_v3 }
  0x28   : > { %1831 = vmatpush3.bf16.msra.mxu0 %v1928_v48 }
  0x29   : > { %1832 = vmatprep.subr.bf16.mxu0 %v2039_v17 }
  0x2c   : > { %1833 = vmatpush3.bf16.msra.mxu0 %v1929_v52 }
  0x2d   : > { %1452 = vmatprep.subr.bf16.mxu0 %v2038_v4 }
  0x3d   : > { %694 = vperm.xlu0 %1892, %v642_v5  }
  0x5c   : > { %653 = vadd.xlane.f32.xlu0 %v652_v20 }
  0xb0   : > { %v1086_v6 = vpop.xlane.xlu0 %1085 }
  0xb1   : > { %v1090_v7 = vmul.f32 0.03125, %v1086_v6 }
  0xb3   : > { %v1092_v8 = vsub.f32 %v2202_v0, %v1090_v7 }
  0xb4   : > { %v1089_v9 = vpop.xlane.xlu0 %1088 }
  0xb5   : > { %v1091_v10 = vmul.f32 0.03125, %v1089_v9  ;;  %v1094_v11 = vmul.f32 %v1092_v8, %v1092_v8 }
  0xb7   : > { %v1093_v12 = vsub.f32 %v2204_v1, %v1091_v10  ;;  %v1096_v13 = vsel %vm648_vm0, %v1094_v11, 0.0 }
  0xb8   : > { %1097 = vadd.xlane.f32.xlu1 %v1096_v13 }
  0xb9   : > { %v1095_v14 = vmul.f32 %v1093_v12, %v1093_v12 }
  0xbb   : > { %v1099_v15 = vsel %vm648_vm0, %v1095_v14, 0.0 }
  0xbc   : > { %1100 = vadd.xlane.f32.xlu1 %v1099_v15  ;;  %v2247_v36 = vpop.permute.xlu0 %694 }
  0xcd   : > { %699 = vperm.xlu1 %1893, %v643_v16  }
 0x145   : > { %v1098_v21 = vpop.xlane.xlu1 %1097 }
 0x146   : > { %v1102_v22 = vmul.f32 0.03125, %v1098_v21 }
 0x148   : > { %v1104_v23 = vadd.f32 0.0001, %v1102_v22 }
 0x149   : > { %v1101_v24 = vpop.xlane.xlu1 %1100 }
 0x14a   : > { %1962 = vrsqrt.f32 %v1104_v23  ;;  %v1103_v25 = vmul.f32 0.03125, %v1101_v24 }
 0x14c   : > { %v1105_v26 = vadd.f32 0.0001, %v1103_v25 }
 0x14d   : > { %v2252_v39 = vpop.permute.xlu1 %699 }
 0x14e   : > { %1964 = vrsqrt.f32 %v1105_v26  ;;  %v654_v26 = vpop.xlane.xlu0 %653 }
 0x154   : > { %v1963_v27 = vpop.eup %1962 }
 0x155   : > { %v1108_v29 = vmul.f32 %v1963_v27, %v1092_v8  ;;  %v657_v27 = vmul.f32 0.03125, %v654_v26 }
 0x157   : > { %v1116_v32 = vmul.f32 %v1750_v28, %v1108_v29 }
 0x158   : > { %v1965_v33 = vpop.eup %1964 }
 0x159   : > { %v1109_v34 = vmul.f32 %v1965_v33, %v1093_v12  ;;  %v1124_v35 = vadd.f32 %v1751_v30, %v1116_v32 }
 0x15b   : > { %v1117_v37 = vmul.f32 %v1750_v28, %v1109_v34  ;;  %v1126_v41 = vmul.f32 %v1124_v35, %v2247_v36 }
 0x15d   : > { %v1125_v40 = vadd.f32 %v1751_v30, %v1117_v37  ;;  %v1143_v45 = vrot.slane %v1126_v41, 1  ;;  %v1155_v50 = vrot.slane %v1126_v41, 2  ;;  %v2298_v30 = vsub.f32 %v2229_v18, %v657_v27  ;;  %v1930_v37 = vld [vmem:[%s2597_s13] sm:$0xff]  }
 0x15f   : > { %v1127_v42 = vmul.f32 %v1125_v40, %v2252_v39  ;;  %v661_v33 = vmul.f32 %v2298_v30, %v2298_v30  ;;  %v1931_v40 = vld [vmem:[%s2597_s13 + $0x8] sm:$0xff]  }
 0x161   : > { %v1144_v44 = vrot.slane %v1127_v42, 1  ;;  %v1156_v46 = vrot.slane %v1127_v42, 2  ;;  %v665_v35 = vsel %vm648_vm0, %v661_v33, 0.0 }
 0x163   : > { %1150 = vrot.lane.b32.xlu1 %v1144_v44, %s2609_s27  ;;  %v1145_v47 = vsel %vm719_vm1, %v1143_v45, %v1144_v44  ;;  %v1157_v51 = vsel %vm733_vm2, %v1155_v50, %v1156_v46  ;;  %v1158_v55 = vsel %vm733_vm2, %v1156_v46, %v2273_v54  ;;  %v1934_v44 = vld [vmem:[%s2597_s13 + $0x20] sm:$0xff]   ;;  %v1938_v46 = vld [vmem:[%s2597_s13 + $0x30] sm:$0xff]  }
 0x164   : > { %v1894_v49 = vpack.i.bf16 %v1145_v47, %v1143_v45  ;;  %v1899_v53 = vpack.i.bf16 %v1157_v51, %v1155_v50  ;;  %v1936_v45 = vld [vmem:[%s2597_s13 + $0x28] sm:$0xff]  }
 0x167   : > { %1895 = vrot.lane.b32.xlu1 %v1894_v49, %s2609_s27 }
 0x16b   : > { %1900 = vrot.lane.b32.xlu1 %v1899_v53, %s2607_s24  ;;  %v1752_v53 = vld [vmem:[%s2596_s12] ss:$0 sm:$0xff] }
 0x16f   : > { %1163 = vrot.lane.b32.xlu1 %v1158_v55, %s2607_s24  ;;  %s623_s24 = sand.u32 1, %s2028_s30  }
 0x170   : > { %s2543_s1 = scalar_lea.sflag [#allocation3], %s623_s24 }
 0x193   : > { %650 = vadd.xlane.f32.xlu1 %v649_v57 }
 0x1d5   : > { %v1151_v58 = vpop.permute.xlu1 %1150 }
 0x1d6   : > { %v1170_v8 = vsel %vm648_vm0, %v1127_v42, %v1151_v58  ;;  %v1932_v42 = vld [vmem:[%s2597_s13 + $0x10] sm:$0xff]  }
 0x1d9   : > { %v1896_v59 = vpop.permute.xlu1 %1895 }
 0x1da   : > { %v1898_v60 = vunpack.i.h.bf16 %v1896_v59  ;;  %v1897_v61 = vunpack.i.l.bf16 %v1896_v59 }
 0x1dc   : > { %v1169_v3 = vsel %vm648_vm0, %v1126_v41, %v1898_v60  ;;  %v1168_v5 = vsel %vm648_vm0, 0.0, %v1897_v61  ;;  %v1937_v41 = vld [vmem:[%s2589_s5 + $0x8] sm:$0xff]  }
 0x1dd   : > { %v1901_v62 = vpop.permute.xlu1 %1900  ;;  %1809 = vmatpush3.bf16.msra.mxu1 %v1937_v41 }
 0x1de   : > { %v1903_v63 = vunpack.i.h.bf16 %v1901_v62  ;;  %v1902_v2 = vunpack.i.l.bf16 %v1901_v62  ;;  %1810 = vmatprep.subr.bf16.mxu1 %v2039_v17 }
 0x1e0   : > { %v1171_v6 = vsel %vm751_vm4, %v1168_v5, %v1902_v2  ;;  %v1172_v7 = vsel %vm751_vm4, %v1169_v3, %v1903_v63  ;;  %v1726_v5 = vld [vmem:[%s2624_s29] ss:$0 sm:$0xff]  ;;  %s2536_s29 = scalar_lea.hbm %s2603_s19, %s1788_s28 }
 0x1e1   : > { %v1174_v9 = vpack.c.bf16 %v1172_v7, %v1171_v6  ;;  %v1164_v10 = vpop.permute.xlu1 %1163 }
 0x1e2   : > { %v1173_v11 = vsel %vm751_vm4, %v1170_v8, %v1164_v10  ;;  %v1727_v8 = vld [vmem:[%s2625_s4] ss:$0 sm:$0xff]  ;;  %v1940_v10 = vld [vmem:[%s2597_s13 + $0x38] sm:$0xff]   ;;  %s2043_s4 = smov [#allocation2]  }
 0x1e3   : > { %v1183_v12 = vshrl.u32 %v1174_v9, 16  ;;  %v1186_v13 = vshll.u32 %v1174_v9, 16  ;;  %v1175_v14 = vpack.c.bf16 %v1173_v11, %v1173_v11  ;;  %v1939_v9 = vld [vmem:[%s2589_s5 + $0x10] sm:$0xff]   ;;  %s1978_s22 = sshll.u32 %s2043_s4, 4  ;;  %s1979_s22 = int_to_ptr.vmem [resolvable:$false] %s1978_s22 }
 0x1e4   : > { %1811 = vmatpush3.bf16.msra.mxu1 %v1939_v9  ;;  %s1980_s2 = scalar_lea.vmem %s1979_s22, 512 }
 0x1e5   : > { %v1185_v15 = vrot.slane %v1183_v12, 3  ;;  %v1188_v16 = vrot.slane %v1186_v13, 4  ;;  %v1191_v19 = vshrl.u32 %v1175_v14, 16  ;;  %v1194_v20 = vshll.u32 %v1175_v14, 16  ;;  %1812 = vmatprep.subr.bf16.mxu1 %v2039_v17 }
 0x1e7   : > { %v1193_v21 = vrot.slane %v1191_v19, 3  ;;  %v1196_v22 = vrot.slane %v1194_v20, 4  ;;  %v1189_v24 = vor.u32 %v1188_v16, %v1185_v15 }
 0x1e9   : > { %v1197_v23 = vor.u32 %v1196_v22, %v1193_v21 }
 0x1eb   : > { %v1198_v25 = vsel %vm763_vm5, %v1189_v24, %v1197_v23  ;;  %v1941_v24 = vld [vmem:[%s2589_s5 + $0x18] sm:$0xff]  }
 0x1ec   : > { %1835 = vmatmul.mubr.msk.bf16.vlgmr.msra.gmra.mrb[0].mxu0 %vm817_vm6, %v1198_v25  ;;  %v1942_v25 = vld [vmem:[%s2597_s13 + $0x40] sm:$0xff]   ;;  %1813 = vmatpush3.bf16.msra.mxu1 %v1941_v24 }
 0x1ed   : > { %1453 = vmatpush1.bf16.msra.mxu0 %v1930_v37  ;;  %1814 = vmatprep.subr.bf16.mxu1 %v2039_v17  ;;  %v1943_v37 = vld [vmem:[%s2589_s5 + $0x20] sm:$0xff]  }
 0x1ee   : > { %1454 = vmatprep.subr.bf16.mxu0 %v2038_v4 }
 0x1f0   : > { %1815 = vmatpush3.bf16.msra.mxu1 %v1943_v37 }
 0x1f1   : > { %1455 = vmatpush1.bf16.msra.mxu0 %v1931_v40  ;;  %1816 = vmatprep.subr.bf16.mxu1 %v2039_v17 }
 0x1f2   : > { %1456 = vmatprep.subr.bf16.mxu0 %v2038_v4 }
 0x1f5   : > { %1457 = vmatpush1.bf16.msra.mxu0 %v1932_v42 }
 0x1f6   : > { %1458 = vmatprep.subr.bf16.mxu0 %v2038_v4 }
 0x1f9   : > { %1459 = vmatpush1.bf16.msra.mxu0 %v1933_v43 }
 0x1fa   : > { %1460 = vmatprep.subr.bf16.mxu0 %v2038_v4 }
 0x1fd   : > { %1461 = vmatpush1.bf16.msra.mxu0 %v1934_v44 }
 0x1fe   : > { %1462 = vmatprep.subr.bf16.mxu0 %v2038_v4 }
 0x201   : > { %1463 = vmatpush1.bf16.msra.mxu0 %v1936_v45 }
 0x202   : > { %1464 = vmatprep.subr.bf16.mxu0 %v2038_v4 }
 0x205   : > { %1465 = vmatpush1.bf16.msra.mxu0 %v1938_v46 }
 0x206   : > { %1466 = vmatprep.subr.bf16.mxu0 %v2038_v4 }
 0x209   : > { %1467 = vmatpush1.bf16.msra.mxu0 %v1940_v10 }
 0x20a   : > { %1468 = vmatprep.subr.bf16.mxu0 %v2038_v4 }
 0x20d   : > { %1469 = vmatpush1.bf16.msra.mxu0 %v1942_v25 }
 0x20e   : > { %1470 = vmatprep.subr.bf16.mxu0 %v2038_v4 }
 0x211   : > { %1471 = vmatpush1.bf16.msra.mxu0 %v1944_v38 }
 0x212   : > { %1472 = vmatprep.subr.bf16.mxu0 %v2038_v4 }
 0x220   : > { %v651_v28 = vpop.xlane.xlu1 %650 }
 0x221   : > { %v656_v29 = vmul.f32 0.03125, %v651_v28 }
 0x223   : > { %v658_v31 = vsub.f32 %v2285_v56, %v656_v29 }
 0x225   : > { %v660_v32 = vmul.f32 %v658_v31, %v658_v31 }
 0x227   : > { %v662_v34 = vsel %vm648_vm0, %v660_v32, 0.0 }
 0x228   : > { %663 = vadd.xlane.f32.xlu1 %v662_v34 }
 0x22c   : > { %666 = vadd.xlane.f32.xlu1 %v665_v35 }
 0x2b5   : > { %v664_v47 = vpop.xlane.xlu1 %663 }
 0x2b6   : > { %v668_v48 = vmul.f32 0.03125, %v664_v47 }
 0x2b8   : > { %v670_v49 = vadd.f32 0.0001, %v668_v48 }
 0x2b9   : > { %v667_v50 = vpop.xlane.xlu1 %666 }
 0x2ba   : > { %1966 = vrsqrt.f32 %v670_v49  ;;  %v669_v51 = vmul.f32 0.03125, %v667_v50  ;;  %v1945_v50 = vld [vmem:[%s2589_s5 + $0x28] sm:$0xff]  }
 0x2bb   : > { %1817 = vmatpush3.bf16.msra.mxu1 %v1945_v50 }
 0x2bc   : > { %v671_v52 = vadd.f32 0.0001, %v669_v51  ;;  %v1946_v51 = vld [vmem:[%s2597_s13 + $0x50] sm:$0xff]   ;;  %1035 = vmatprep.subr.bf16.mxu1 %v2038_v4 }
 0x2bd   : > { %1473 = vmatpush1.bf16.msra.mxu0 %v1946_v51 }
 0x2be   : > { %1968 = vrsqrt.f32 %v671_v52  ;;  %1474 = vmatprep.subr.bf16.mxu0 %v2038_v4 }
 0x2bf   : > { %v1272_v55 = vpop.f32.mrb[0].mxu0 }
 0x2c0   : > { %v1273_v57 = vadd.f32 %v1752_v53, %v1272_v55  ;;  %v1836_v58 = vpop.f32.mrb[1].mxu0 }
 0x2c1   : > { %v1275_v59 = vpop.f32.mrb[2].mxu0 }
 0x2c2   : > { %v1279_v60 = vmax.f32 %v1273_v57, 0.0  ;;  %v1276_v61 = vadd.f32 %v1752_v53, %v1275_v59  ;;  %v1837_v62 = vpop.f32.mrb[3].mxu0  ;;  %v1947_v59 = vld [vmem:[%s2597_s13 + $0x58] sm:$0xff]  }
 0x2c3   : > { %1475 = vmatpush1.bf16.msra.mxu0 %v1947_v59  ;;  %v1953_v59 = vld [vmem:[%s2591_s7 + $0x28] sm:$0xff]  }
 0x2c4   : > { %v1967_v63 = vpop.eup %1966  ;;  %v2345_v2 = vmul.f32 %v1279_v60, %v2247_v36  ;;  %v1280_v3 = vmax.f32 %v1276_v61, 0.0 }
 0x2c5   : > { %v674_v6 = vmul.f32 %v1967_v63, %v658_v31 }
 0x2c6   : > { %v2351_v7 = vmul.f32 %v1280_v3, %v2252_v39  ;;  %v1322_v13 = vrot.slane %v2345_v2, 2  ;;  %v1310_v57 = vrot.slane %v2345_v2, 1 }
 0x2c7   : > { %v682_v11 = vmul.f32 %v1726_v5, %v674_v6 }
 0x2c8   : > { %v1969_v12 = vpop.eup %1968  ;;  %v1323_v14 = vrot.slane %v2351_v7, 2  ;;  %v1311_v46 = vrot.slane %v2351_v7, 1 }
 0x2c9   : > { %v675_v15 = vmul.f32 %v1969_v12, %v2298_v30  ;;  %v690_v16 = vadd.f32 %v1727_v8, %v682_v11 }
 0x2ca   : > { %v1324_v19 = vsel %vm733_vm2, %v1322_v13, %v1323_v14  ;;  %v1325_v20 = vsel %vm733_vm2, %v1323_v14, %v2273_v54  ;;  %v1312_v58 = vsel %vm719_vm1, %v1310_v57, %v1311_v46 }
 0x2cb   : > { %v1335_v21 = vpack.c.bf16 %v1325_v20, %v1325_v20  ;;  %v683_v22 = vmul.f32 %v1726_v5, %v675_v15  ;;  %v1333_v23 = vpack.c.bf16 %v1324_v19, %v1322_v13  ;;  %v702_v26 = vmul.f32 %v2247_v36, %v690_v16 }
 0x2cc   : > { %v1914_v61 = vpack.i.bf16 %v1312_v58, %v1310_v57  ;;  %v1951_v57 = vld [vmem:[%s2591_s7 + $0x18] sm:$0xff]   ;;  %v1952_v58 = vld [vmem:[%s2591_s7 + $0x20] sm:$0xff]  }
 0x2cd   : > { %v691_v27 = vadd.f32 %v1727_v8, %v683_v22  ;;  %v1360_v28 = vshrl.u32 %v1333_v23, 16  ;;  %v1363_v29 = vshll.u32 %v1333_v23, 16  ;;  %v1368_v30 = vshrl.u32 %v1335_v21, 16 }
 0x2ce   : > { %v1371_v31 = vshll.u32 %v1335_v21, 16  ;;  %v720_v41 = vrot.slane %v702_v26, 1  ;;  %v734_v44 = vrot.slane %v702_v26, 2 }
 0x2cf   : > { %v703_v32 = vmul.f32 %v2252_v39, %v691_v27  ;;  %v1362_v33 = vrot.slane %v1360_v28, 3  ;;  %v1365_v34 = vrot.slane %v1363_v29, 4  ;;  %v1370_v35 = vrot.slane %v1368_v30, 3 }
 0x2d0   : > { %v1373_v40 = vrot.slane %v1371_v31, 4 }
 0x2d1   : > { %v721_v42 = vrot.slane %v703_v32, 1  ;;  %v1366_v43 = vor.u32 %v1365_v34, %v1362_v33  ;;  %v735_v45 = vrot.slane %v703_v32, 2 }
 0x2d2   : > { %v1374_v47 = vor.u32 %v1373_v40, %v1370_v35 }
 0x2d3   : > { %727 = vrot.lane.b32.xlu1 %v721_v42, %s2626_s20  ;;  %v722_v48 = vsel %vm719_vm1, %v720_v41, %v721_v42  ;;  %v736_v49 = vsel %vm733_vm2, %v734_v44, %v735_v45  ;;  %v738_v60 = vsel %vm733_vm2, %v735_v45, %v2273_v54 }
 0x2d4   : > { %v1375_v52 = vsel %vm763_vm5, %v1366_v43, %v1374_v47  ;;  %v1904_v53 = vpack.i.bf16 %v722_v48, %v720_v41  ;;  %v1909_v55 = vpack.i.bf16 %v736_v49, %v734_v44 }
 0x2d5   : > { %1773 = vmatprep.mubr.msk.bf16.mxu0 %vm751_vm4, %v1375_v52  ;;  %v1948_v52 = vld [vmem:[%s2591_s7] sm:$0xff]  }
 0x2d6   : > { %1905 = vrot.lane.b32.xlu0 %v1904_v53, %s2626_s20  ;;  %v1949_v53 = vld [vmem:[%s2591_s7 + $0x8] sm:$0xff]  }
 0x2d7   : > { %1910 = vrot.lane.b32.xlu1 %v1909_v55, %s2627_s23  ;;  %v1950_v55 = vld [vmem:[%s2591_s7 + $0x10] sm:$0xff]  }
 0x2da   : > { %743 = vrot.lane.b32.xlu0 %v738_v60, %s2627_s23  ;;  %v1954_v60 = vld [vmem:[%s2591_s7 + $0x30] sm:$0xff]  }
 0x2db   : > { %1915 = vrot.lane.b32.xlu1 %v1914_v61, %s2627_s23  ;;  %v1955_v61 = vld [vmem:[%s2591_s7 + $0x38] sm:$0xff]  }
 0x2de   : > { %1317 = vrot.lane.b32.xlu0 %v1311_v46, %s2627_s23 }
 0x345   : > { %v728_v62 = vpop.permute.xlu1 %727 }
 0x346   : > { %v750_v12 = vsel %vm648_vm0, %v703_v32, %v728_v62  ;;  %v1956_v62 = vld [vmem:[%s2591_s7 + $0x40] sm:$0xff]  }
 0x348   : > { %v1906_v63 = vpop.permute.xlu0 %1905 }
 0x349   : > { %v1908_v3 = vunpack.i.h.bf16 %v1906_v63  ;;  %v1907_v5 = vunpack.i.l.bf16 %v1906_v63  ;;  %v1911_v6 = vpop.permute.xlu1 %1910  ;;  %v1728_v63 = vld [vmem:[%s2590_s6] ss:$0 sm:$0xff] }
 0x34a   : > { %v1913_v8 = vunpack.i.h.bf16 %v1911_v6  ;;  %v1912_v9 = vunpack.i.l.bf16 %v1911_v6 }
 0x34b   : > { %v749_v10 = vsel %vm648_vm0, %v702_v26, %v1908_v3  ;;  %v748_v11 = vsel %vm648_vm0, 0.0, %v1907_v5 }
 0x34c   : > { %v752_v13 = vsel %vm751_vm4, %v748_v11, %v1912_v9  ;;  %v753_v14 = vsel %vm751_vm4, %v749_v10, %v1913_v8  ;;  %v744_v15 = vpop.permute.xlu0 %743  ;;  %v1957_v8 = vld [vmem:[%s2591_s7 + $0x48] sm:$0xff]   ;;  %v1760_v10 = vld [vmem:[%s2598_s14] ss:$0 sm:$0xff] }
 0x34d   : > { %v755_v16 = vpack.c.bf16 %v753_v14, %v752_v13  ;;  %v754_v19 = vsel %vm751_vm4, %v750_v12, %v744_v15  ;;  %v1916_v20 = vpop.permute.xlu1 %1915 }
 0x34e   : > { %v756_v21 = vpack.c.bf16 %v754_v19, %v754_v19  ;;  %v1918_v22 = vunpack.i.h.bf16 %v1916_v20  ;;  %v1917_v23 = vunpack.i.l.bf16 %v1916_v20 }
 0x34f   : > { %v765_v24 = vshrl.u32 %v755_v16, 16  ;;  %v768_v25 = vshll.u32 %v755_v16, 16 }
 0x350   : > { %v773_v27 = vshrl.u32 %v756_v21, 16  ;;  %v776_v26 = vshll.u32 %v756_v21, 16  ;;  %v1330_v28 = vsel %vm751_vm4, %v2345_v2, %v1918_v22  ;;  %v1329_v29 = vsel %vm751_vm4, 0.0, %v1917_v23  ;;  %v1318_v30 = vpop.permute.xlu0 %1317  ;;  %v1958_v21 = vld [vmem:[%s2591_s7 + $0x50] sm:$0xff]  }
 0x351   : > { %v767_v31 = vrot.slane %v765_v24, 3  ;;  %v770_v32 = vrot.slane %v768_v25, 4  ;;  %v1332_v33 = vpack.c.bf16 %v1330_v28, %v1329_v29  ;;  %v1331_v34 = vsel %vm751_vm4, %v2351_v7, %v1318_v30  ;;  %v1959_v28 = vld [vmem:[%s2591_s7 + $0x58] sm:$0xff]  }
 0x352   : > { %v775_v35 = vrot.slane %v773_v27, 3  ;;  %v778_v37 = vrot.slane %v776_v26, 4  ;;  %v1334_v38 = vpack.c.bf16 %v1331_v34, %v1331_v34 }
 0x353   : > { %v1343_v40 = vshrl.u32 %v1332_v33, 16  ;;  %v1346_v41 = vshll.u32 %v1332_v33, 16  ;;  %v771_v42 = vor.u32 %v770_v32, %v767_v31 }
 0x354   : > { %v779_v43 = vor.u32 %v778_v37, %v775_v35  ;;  %v1351_v44 = vshrl.u32 %v1334_v38, 16  ;;  %v1354_v45 = vshll.u32 %v1334_v38, 16 }
 0x355   : > { %v1345_v46 = vrot.slane %v1343_v40, 3  ;;  %v1348_v2 = vrot.slane %v1346_v41, 4 }
 0x356   : > { %v1353_v47 = vrot.slane %v1351_v44, 3  ;;  %v1356_v48 = vrot.slane %v1354_v45, 4  ;;  %v780_v49 = vsel %vm763_vm5, %v771_v42, %v779_v43 }
 0x357   : > { %1819 = vmatmul.mubr.msk.bf16.vlgmr.msra.gmra.mrb[0].mxu1 %vm817_vm6, %v780_v49  ;;  %v1349_v50 = vor.u32 %v1348_v2, %v1345_v46 }
 0x358   : > { %v1357_v51 = vor.u32 %v1356_v48, %v1353_v47  ;;  %1036 = vmatpush1.bf16.msra.mxu1 %v1948_v52 }
 0x359   : > { %1037 = vmatprep.subr.bf16.mxu1 %v2038_v4 }
 0x35a   : > { %v1358_v7 = vsel %vm763_vm5, %v1349_v50, %v1357_v51 }
 0x35b   : > { %1485 = vmatmul.mubr.bf16.vlgmr.msra.gmra.mrb[4].mxu0 %v1358_v7 }
 0x35c   : > { %1038 = vmatpush1.bf16.msra.mxu1 %v1949_v53 }
 0x35d   : > { %1039 = vmatprep.subr.bf16.mxu1 %v2038_v4 }
 0x360   : > { %1040 = vmatpush1.bf16.msra.mxu1 %v1950_v55 }
 0x361   : > { %1041 = vmatprep.subr.bf16.mxu1 %v2038_v4 }
 0x364   : > { %1042 = vmatpush1.bf16.msra.mxu1 %v1951_v57 }
 0x365   : > { %1043 = vmatprep.subr.bf16.mxu1 %v2038_v4 }
 0x368   : > { %1044 = vmatpush1.bf16.msra.mxu1 %v1952_v58 }
 0x369   : > { %1045 = vmatprep.subr.bf16.mxu1 %v2038_v4 }
 0x36c   : > { %1046 = vmatpush1.bf16.msra.mxu1 %v1953_v59 }
 0x36d   : > { %1047 = vmatprep.subr.bf16.mxu1 %v2038_v4 }
 0x370   : > { %1048 = vmatpush1.bf16.msra.mxu1 %v1954_v60 }
 0x371   : > { %1049 = vmatprep.subr.bf16.mxu1 %v2038_v4 }
 0x374   : > { %1050 = vmatpush1.bf16.msra.mxu1 %v1955_v61 }
 0x375   : > { %1051 = vmatprep.subr.bf16.mxu1 %v2038_v4 }
 0x378   : > { %1052 = vmatpush1.bf16.msra.mxu1 %v1956_v62 }
 0x379   : > { %1053 = vmatprep.subr.bf16.mxu1 %v2038_v4 }
 0x37c   : > { %1054 = vmatpush1.bf16.msra.mxu1 %v1957_v8 }
 0x37d   : > { %1055 = vmatprep.subr.bf16.mxu1 %v2038_v4 }
 0x380   : > { %1056 = vmatpush1.bf16.msra.mxu1 %v1958_v21 }
 0x381   : > { %1057 = vmatprep.subr.bf16.mxu1 %v2038_v4 }
 0x384   : > { %1058 = vmatpush1.bf16.msra.mxu1 %v1959_v28 }
 0x385   : > { %1838 = vmatprep.subr.bf16.mxu1 %v2039_v17 }
 0x42a   : > { %v855_v3 = vpop.f32.mrb[0].mxu1 }
 0x42b   : > { %v856_v5 = vadd.f32 %v1728_v63, %v855_v3  ;;  %v1820_v6 = vpop.f32.mrb[1].mxu1 }
 0x42c   : > { %v858_v9 = vpop.f32.mrb[2].mxu1 }
 0x42d   : > { %v862_v11 = vmax.f32 %v856_v5, 0.0  ;;  %v859_v12 = vadd.f32 %v1728_v63, %v858_v9  ;;  %v1821_v13 = vpop.f32.mrb[3].mxu1 }
 0x42e   : > { %v1486_v14 = vpop.f32.mrb[4].mxu0  ;;  %v1961_v13 = vld [vmem:[%s2599_s15 + $0x8] sm:$0xff]  }
 0x42f   : > { %v864_v15 = vmul.f32 %v862_v11, %v2247_v36  ;;  %v863_v16 = vmax.f32 %v859_v12, 0.0  ;;  %v1487_v19 = vadd.f32 %v1760_v10, %v1486_v14  ;;  %v1488_v20 = vpop.f32.mrb[5].mxu0  ;;  %v1960_v11 = vld [vmem:[%s2599_s15] sm:$0xff]  }
 0x430   : > { %v1489_v22 = vpop.f32.mrb[6].mxu0  ;;  %v1736_v14 = vld [vmem:[%s2592_s8] ss:$0 sm:$0xff] }
 0x431   : > { %v865_v23 = vmul.f32 %v863_v16, %v2252_v39  ;;  %v1493_v24 = vmul.f32 %v1487_v19, %v2247_v36  ;;  %v1490_v25 = vadd.f32 %v1760_v10, %v1489_v22  ;;  %v1491_v27 = vpop.f32.mrb[7].mxu0  ;;  %v905_v26 = vrot.slane %v864_v15, 2 }
 0x432   : > { %v893_v32 = vrot.slane %v864_v15, 1 }
 0x433   : > { %v906_v29 = vrot.slane %v865_v23, 2  ;;  %v1494_v30 = vmul.f32 %v1490_v25, %v2252_v39  ;;  %v894_v31 = vrot.slane %v865_v23, 1  ;;  %v1495_v33 = vadd.f32 %v1493_v24, %v2202_v0  ;;  %v1774_v24 = vld [vmem:[%s2600_s16] ss:$0 sm:$0xff] }
 0x435   : > { %v907_v34 = vsel %vm733_vm2, %v905_v26, %v906_v29  ;;  %v908_v35 = vsel %vm733_vm2, %v906_v29, %v2273_v54  ;;  %v1496_v37 = vadd.f32 %v1494_v30, %v2204_v1  ;;  %900 = vrot.lane.b32.xlu0 %v894_v31, %s2627_s23  ;;  %v895_v4 = vsel %vm719_vm1, %v893_v32, %v894_v31 }
 0x436   : > { %v918_v38 = vpack.c.bf16 %v908_v35, %v908_v35  ;;  %v1919_v40 = vpack.i.bf16 %v895_v4, %v893_v32  ;;  %v916_v41 = vpack.c.bf16 %v907_v34, %v905_v26 }
 0x437   : > { %v1497_v42 = vpack.c.bf16 %v1496_v37, %v1495_v33 }
 0x438   : > { %1920 = vrot.lane.b32.xlu1 %v1919_v40, %s2627_s23  ;;  %v943_v0 = vshrl.u32 %v916_v41, 16  ;;  %v946_v43 = vshll.u32 %v916_v41, 16  ;;  %v951_v44 = vshrl.u32 %v918_v38, 16  ;;  %v954_v45 = vshll.u32 %v918_v38, 16  ;;  %s1719_s23 = sshll.u32 %s623_s24, 4 }
 0x439   : > { %s625_s20 = scalar_lea.vmem [#allocation2], %s1719_s23 }
 0x43a   : > { %v945_v54 = vrot.slane %v943_v0, 3  ;;  %v948_v46 = vrot.slane %v946_v43, 4  ;;  %v953_v1 = vrot.slane %v951_v44, 3  ;;  %v956_v2 = vrot.slane %v954_v45, 4  ;;  %s1629_s27 = sshll.u32 %s625_s20, 4  ;;  %s2538_s27 = int_to_ptr.vmem [resolvable:$true] %s1629_s27 }
 0x43b   : > { %s1974_s23 = scalar_lea.vmem %s2538_s27, 256  ;;  %p1981_p0 = scmp.lt.s32.totalorder %s2538_s27, %s1979_s22 }
 0x43c   : > { %v949_v47 = vor.u32 %v948_v46, %v945_v54  ;;  %v957_v48 = vor.u32 %v956_v2, %v953_v1  ;;  %p1975_p11 = scmp.ne.s32.totalorder %s2538_s27, %s1974_s23  ;;  %p1982_p1 = scmp.lt.s32.totalorder %s1980_s2, %s1974_s23 }
 0x43e   : > { %v958_v49 = vsel %vm763_vm5, %v949_v47, %v957_v48  ;;  %p1976_p12 = pnand %p1975_p11, %p2184_p5  ;;  %p1983_p2 = por %p1982_p1, %p1981_p0 }
 0x43f   : > { %1749 = vmatprep.mubr.msk.bf16.mxu1 %vm751_vm4, %v958_v49  ;;  %v1778_v49 = vld [vmem:[%s2601_s17] ss:$0 sm:$0xff] }
 0x440   : > { %p1977_p13 = pneg %p1976_p12 }
 0x442   : > { %p1984_p3 = pnand %p1983_p2, %p1977_p13 }
 0x4a7   : > { %v901_v50 = vpop.permute.xlu0 %900 }
 0x4a8   : > { %v914_v51 = vsel %vm751_vm4, %v865_v23, %v901_v50 }
 0x4a9   : > { %v917_v7 = vpack.c.bf16 %v914_v51, %v914_v51 }
 0x4aa   : > { %v1921_v52 = vpop.permute.xlu1 %1920 }
 0x4ab   : > { %v1923_v53 = vunpack.i.h.bf16 %v1921_v52  ;;  %v1922_v55 = vunpack.i.l.bf16 %v1921_v52  ;;  %v934_v57 = vshrl.u32 %v917_v7, 16  ;;  %v937_v58 = vshll.u32 %v917_v7, 16  ;;  %v1779_v7 = vld [vmem:[%s2602_s18] ss:$0 sm:$0xff] }
 0x4ad   : > { %v913_v59 = vsel %vm751_vm4, %v864_v15, %v1923_v53  ;;  %v912_v60 = vsel %vm751_vm4, 0.0, %v1922_v55  ;;  %v936_v62 = vrot.slane %v934_v57, 3  ;;  %v939_v63 = vrot.slane %v937_v58, 4 }
 0x4ae   : > { %v915_v61 = vpack.c.bf16 %v913_v59, %v912_v60 }
 0x4af   : > { %v940_v9 = vor.u32 %v939_v63, %v936_v62 }
 0x4b0   : > { %v926_v3 = vshrl.u32 %v915_v61, 16  ;;  %v929_v5 = vshll.u32 %v915_v61, 16 }
 0x4b2   : > { %v928_v6 = vrot.slane %v926_v3, 3  ;;  %v931_v8 = vrot.slane %v929_v5, 4 }
 0x4b4   : > { %v932_v10 = vor.u32 %v931_v8, %v928_v6 }
 0x4b6   : > { %v941_v12 = vsel %vm763_vm5, %v932_v10, %v940_v9 }
 0x4b7   : > { %1068 = vmatmul.mubr.bf16.vlgmr.msra.gmra.mrb[4].mxu1 %v941_v12 }
 0x4b8   : > { %1839 = vmatpush3.bf16.msra.mxu1 %v1960_v11  ;;  %1842 = vmatprep.mubr.msk.bf16.mxu1 %vm2041_vm3, %v2039_v17 }
 0x4b9   : > { %1840 = vmatprep.subr.bf16.mxu1 %v2039_v17 }
 0x4bc   : > { %1841 = vmatpush3.bf16.msra.mxu1 %v1961_v13 }
 0x4bf   : > { %1843 = vmatmul.mubr.msk.bf16.vlgmr.msra.gmra.mrb[8].mxu1 %vm648_vm0, %v1497_v42 }
 0x58a   : > { %v1069_v15 = vpop.f32.mrb[4].mxu1 }
 0x58b   : > { %v1070_v16 = vadd.f32 %v1736_v14, %v1069_v15  ;;  %v1071_v19 = vpop.f32.mrb[5].mxu1 }
 0x58c   : > { %v1072_v20 = vpop.f32.mrb[6].mxu1 }
 0x58d   : > { %v1073_v21 = vadd.f32 %v1736_v14, %v1072_v20  ;;  %v1074_v22 = vpop.f32.mrb[7].mxu1  ;;  %v1076_v23 = vmul.f32 %v1070_v16, %v2247_v36 }
 0x58f   : > { %v1077_v17 = vmul.f32 %v1073_v21, %v2252_v39  ;;  %v1078_v28 = vadd.f32 %v1076_v23, %v2285_v56 }
 0x591   : > { %v1079_v33 = vadd.f32 %v1077_v17, %v2229_v18 }
 0x592   : > { %v1558_v25 = vpop.f32.mrb[8].mxu1 }
 0x593   : > { %v1559_v27 = vadd.f32 %v1774_v24, %v1558_v25  ;;  %v1844_v26 = vpop.f32.mrb[9].mxu1 }
 0x594   : > { %v1561_v29 = vpop.f32.mrb[10].mxu1 }
 0x595   : > { %v1562_v30 = vadd.f32 %v1774_v24, %v1561_v29  ;;  %v1845_v31 = vpop.f32.mrb[11].mxu1  ;;  %v1565_v32 = vadd.f32 %v1559_v27, %v1078_v28 }
 0x597   : > { %v1569_v34 = vsel %vm648_vm0, %v1565_v32, 0.0  ;;  %v1566_v35 = vadd.f32 %v1562_v30, %v1079_v33 }
 0x598   : > { %1570 = vadd.xlane.f32.xlu1 %v1569_v34 }
 0x599   : > { %v1572_v37 = vsel %vm648_vm0, %v1566_v35, 0.0 }
 0x59a   : > { %1573 = vadd.xlane.f32.xlu0 %v1572_v37 }
 0x625   : > { %v1571_v4 = vpop.xlane.xlu1 %1570 }
 0x626   : > { %v1575_v38 = vmul.f32 0.03125, %v1571_v4 }
 0x627   : > { %v1574_v40 = vpop.xlane.xlu0 %1573 }
 0x628   : > { %v1577_v41 = vsub.f32 %v1565_v32, %v1575_v38  ;;  %v1576_v42 = vmul.f32 0.03125, %v1574_v40 }
 0x62a   : > { %v1578_v56 = vsub.f32 %v1566_v35, %v1576_v42  ;;  %v1579_v0 = vmul.f32 %v1577_v41, %v1577_v41 }
 0x62c   : > { %v1581_v43 = vsel %vm648_vm0, %v1579_v0, 0.0  ;;  %v1580_v44 = vmul.f32 %v1578_v56, %v1578_v56 }
 0x62d   : > { %1582 = vadd.xlane.f32.xlu0 %v1581_v43 }
 0x62e   : > { %v1584_v18 = vsel %vm648_vm0, %v1580_v44, 0.0 }
 0x62f   : > { %1585 = vadd.xlane.f32.xlu1 %v1584_v18 }
 0x6ba   : > { %v1583_v45 = vpop.xlane.xlu0 %1582 }
 0x6bb   : > { %v1587_v54 = vmul.f32 0.03125, %v1583_v45 }
 0x6bc   : > { %v1586_v46 = vpop.xlane.xlu1 %1585 }
 0x6bd   : > { %v1589_v1 = vadd.f32 0.0001, %v1587_v54  ;;  %v1588_v2 = vmul.f32 0.03125, %v1586_v46 }
 0x6bf   : > { %1970 = vrsqrt.f32 %v1589_v1  ;;  %v1590_v47 = vadd.f32 0.0001, %v1588_v2 }
 0x6c1   : > { %1972 = vrsqrt.f32 %v1590_v47 }
 0x6c9   : > { %v1971_v48 = vpop.eup %1970 }
 0x6ca   : > { %v1593_v50 = vmul.f32 %v1971_v48, %v1577_v41 }
 0x6cb   : > { %v1973_v51 = vpop.eup %1972 }
 0x6cc   : > { %v1601_v52 = vmul.f32 %v1778_v49, %v1593_v50  ;;  %v1594_v53 = vmul.f32 %v1973_v51, %v1578_v56 }
 0x6ce   : > { %v1609_v55 = vadd.f32 %v1779_v7, %v1601_v52  ;;  %v1602_v57 = vmul.f32 %v1778_v49, %v1594_v53 }
 0x6d0   : > { %v1610_v58 = vadd.f32 %v1779_v7, %v1602_v57  ;;  %v1611_v59 = vmul.f32 %v1609_v55, %v2247_v36 }
 0x6d2   : > { %v1612_v60 = vmul.f32 %v1610_v58, %v2252_v39  ;;  %1613 = vst.msk [vmem:[%s625_s20] sm:$0xff] %vm648_vm0, %v1611_v59 }
 0x6d4   : > { %1614 = vst.msk [vmem:[%s625_s20 + $0x8] sm:$0xff] %vm648_vm0, %v1612_v60 }
 0x6d5   : > { %1987 = shalt.err (!%p1984_p3)
}
 0x6d6   : > { %s1988_s24 = scalar_lea.hbm %s2536_s29, 256  ;;  %s1992_s25 = scalar_lea.hbm %s2603_s19, 512 }
 0x6d7   : > { %p1989_p4 = scmp.ne.s32.totalorder %s2536_s29, %s1988_s24  ;;  %p1993_p9 = scmp.lt.u32.totalorder %s2536_s29, %s2603_s19 }
 0x6d8   : > { %p1994_p10 = scmp.lt.u32.totalorder %s1992_s25, %s1988_s24  ;;  %p1996_p12 = scmp.lt.u32.totalorder %s1988_s24, %s2536_s29 }
 0x6d9   : > { %p1990_p7 = pnand %p1989_p4, %p2184_p5 }
 0x6da   : > { %p1995_p11 = por %p1994_p10, %p1993_p9 }
 0x6db   : > { %p1991_p8 = pneg %p1990_p7 }
 0x6dc   : > { %p1997_p13 = por %p1996_p12, %p1995_p11 }
 0x6de   : > { %p1998_p0 = pnand %p1997_p13, %p1991_p8 }
 0x6e0   : > { %2001 = shalt.err (!%p1998_p0)
}
 0x6e1   : > { %s2044_s23 = smov 128   ;;  %s2045_s2 = smov 8  }
 0x6e2   : > { %1846 = dma.vmem_to_hbm [thread:$0]  (%p2184_p5), %s2538_s27, 256, %s2536_s29, %s2543_s1, %s2044_s23, %s2044_s23, %s2045_s2  }
 0x6e3 PF: > { %p1852_p1 = scmp.ge.s32.totalorder %s2036_s21, 2  ;;  %s1644_s28 = sand.u32 1, %s2024_s0  }
 0x6e4   : > { %s1645_s24 = scalar_lea.sflag [#allocation3], %s1644_s28 }
 0x6e5   : > { %p1849_p2 = pnand %p1852_p1, %p2188_p6 }
 0x6e7   : > { %2019 = dma.done.wait (!%p1849_p2), %s1645_s24, 256  }
 0x6e8   : > { %2021 = vsyncadd (!%p1849_p2), %s1645_s24, 4294967040  ;;  %s2628_s21 = sld [smem:[#allocation6_spill]]  ;;  %s2629_s20 = sld [smem:[#allocation5_spill]] }
 0x6e9   : > { %s2630_s25 = sld [smem:[#allocation7_spill]]  ;;  %s2631_s0 = smov %s2028_s30 }
 0x6ee   : > { %p29_p3 = scmp.ge.s32.totalorder %s2628_s21, 4   ;;  %s2632_s30 = smov %s2629_s20 }
 0x6ef   : > { %s2633_s20 = smov %s2630_s25 }
 0x6f0   :  { %31 = sbr.rel (!%p29_p3) target bundleno = 9 (0x9), region = 137 }
 0x6f7   :  { %1650 = vsyncpa [#allocation3], 1 }
 0x6f8   :  { %1652 = vsyncpa [#allocation3 + $0x1], 1 }

// kernel: rel_transformer_encoder_controlnet.6
= control target key start
LH: loop header
LB: loop body
LE: loop exit
PB: predicated region body
PF: predicated region fallthrough
CT: control target
= control target key end

     0   :  { %s4315_s0 = inlined_call_operand.vmem [shape: f32[2,16,32], index: 0, kind: input, shape index: {}]   ;;  %s4316_s1 = inlined_call_operand.vmem [shape: f32[2,16,1], index: 1, kind: input, shape index: {}]   ;;  %s4317_s2 = inlined_call_operand.vmem [shape: f32[2,1,16], index: 2, kind: input, shape index: {}]   ;;  %s4318_s3 = inlined_call_operand.vmem [shape: f32[1,32], index: 3, kind: input, shape index: {}]   ;;  %s4319_s4 = inlined_call_operand.vmem [shape: f32[1,32], index: 4, kind: input, shape index: {}]   ;;  %s4320_s5 = inlined_call_operand.vmem [shape: bf16[32,96], index: 5, kind: input, shape index: {}]   ;;  %s4321_s6 = inlined_call_operand.vmem [shape: f32[1,96], index: 6, kind: input, shape index: {}]   ;;  %s4322_s7 = inlined_call_operand.vmem [shape: bf16[32,32], index: 7, kind: input, shape index: {}]   ;;  %s4323_s8 = inlined_call_operand.vmem [shape: f32[1,32], index: 8, kind: input, shape index: {}]   ;;  %s4324_s9 = inlined_call_operand.vmem [shape: bf16[32,18], index: 9, kind: input, shape index: {}]   ;;  %s4325_s10 = inlined_call_operand.vmem [shape: bf16[18,32], index: 10, kind: input, shape index: {}]   ;;  %s4326_s11 = inlined_call_operand.vmem [shape: f32[1,32], index: 11, kind: input, shape index: {}]   ;;  %s4327_s12 = inlined_call_operand.vmem [shape: f32[1,32], index: 12, kind: input, shape index: {}]   ;;  %s4328_s13 = inlined_call_operand.vmem [shape: bf16[32,96], index: 13, kind: input, shape index: {}]   ;;  %s4329_s14 = inlined_call_operand.vmem [shape: f32[1,96], index: 14, kind: input, shape index: {}]   ;;  %s4330_s15 = inlined_call_operand.vmem [shape: bf16[32,32], index: 15, kind: input, shape index: {}]   ;;  %s4331_s16 = inlined_call_operand.vmem [shape: f32[1,32], index: 16, kind: input, shape index: {}]   ;;  %s4332_s17 = inlined_call_operand.vmem [shape: bf16[32,18], index: 17, kind: input, shape index: {}]   ;;  %s4333_s18 = inlined_call_operand.vmem [shape: bf16[18,32], index: 18, kind: input, shape index: {}]   ;;  %s4334_s19 = inlined_call_operand.vmem [shape: f32[2,16,32], index: 19, kind: output, shape index: {0}]   ;;  %s4335_s20 = inlined_call_operand.vmem [shape: f32[2,16,32], index: 20, kind: output, shape index: {1}]  }
   0x1   :  { %4361 = sst [smem:[#allocation2_spill]] %s4315_s0 }
   0x2   :  { %4362 = sst [smem:[#allocation3_spill]] %s4316_s1  ;;  %s3300_s1 = smov 0  }
   0x3   :  { %4363 = sst [smem:[#allocation4_spill]] %s4317_s2 }
   0x4   :  { %4364 = sst [smem:[#allocation5_spill]] %s4318_s3 }
   0x5   :  { %4365 = sst [smem:[#allocation6_spill]] %s4319_s4 }
   0x6 LB: > { %s2777_s22 = sadd.s32 4294967295, %s3166_s1   ;;  %p2781_p0 = scmp.ge.s32.totalorder %s3166_s1, 1  ;;  %s3166_s1 = sphi %s3300_s1, %s31_s1  }
   0x7   : > { %p583_p1 = scmp.lt.s32.totalorder %s3166_s1, 3 }
   0x9   : > { %p584_p2 = pnand %p2781_p0, %p583_p1 }
   0xa   : > { %p654_p3 = scmp.lt.s32.totalorder (!%p584_p2), %s2777_s22, 1  ;;  %v3168_v0 = vmov (!%p584_p2), 0   ;;  %s4366_s25 = sld [smem:[#allocation3_spill]] (!%p584_p2)  ;;  %vm4336_vm0 = vcmask (!%p584_p2), 261120   ;;  %v3108_v21 = vld [vmem:[%s4320_s5] sm:$0xff] (!%p584_p2)   ;;  %v3169_v22 = vmov (!%p584_p2), 0.0  }
   0xb   : > { %587 = sbr.rel (%p584_p2) target bundleno = 3399 (0xd47), region = 96  ;;  %3024 = vset.pattern.permute.xlu0 (!%p584_p2), %v3168_v0  ;;  %s4367_s28 = sld [smem:[#allocation2_spill]] (!%p584_p2)  ;;  %2877 = vmatprep.subr.bf16.mxu0 (!%p584_p2), %v3169_v22  ;;  %vm4337_vm1 = vmmov (!%p584_p2), 0   ;;  %v3109_v23 = vld [vmem:[%s4320_s5 + $0x8] sm:$0xff] (!%p584_p2)   ;;  %v2811_v33 = vld [vmem:[%s4326_s11] ss:$0 sm:$0xff] (!%p584_p2) }
   0xc   : > { %2881 = vmatprep.mubr.msk.bf16.mxu0 (!%p584_p2), %vm4337_vm1, %v3169_v22  ;;  %2878 = vmatpush3.bf16.msra.mxu0 (!%p584_p2), %v3108_v21  ;;  %v2812_v39 = vld [vmem:[%s4327_s12] ss:$0 sm:$0xff] (!%p584_p2)  ;;  %v3111_v49 = vld [vmem:[%s4324_s9 + $0x8] sm:$0xff] (!%p584_p2)   ;;  %s3171_s26 = smov (!%p584_p2), 96   ;;  %s3172_s27 = smov (!%p584_p2), 80   ;;  %v3174_v58 = vmov (!%p584_p2), 9  }
   0xd   : > { %2885 = vmatprep.subr.bf16.mxu1 (!%p584_p2), %v3169_v22  ;;  %2879 = vmatprep.subr.bf16.mxu0 (!%p584_p2), %v3169_v22  ;;  %v3110_v48 = vld [vmem:[%s4324_s9] sm:$0xff] (!%p584_p2)   ;;  %v3175_v59 = vmov (!%p584_p2), 17   ;;  %vm910_vm2 = vcmask (!%p584_p2), 130048   ;;  %v3185_v21 = vmov (!%p584_p2), 16   ;;  %s4370_s30 = sld [smem:[#allocation4_spill]] (!%p584_p2)  ;;  %s3192_s21 = smov (!%p584_p2), 48  }
   0xe   : > { %2889 = vmatprep.mubr.msk.bf16.mxu1 (!%p584_p2), %vm4337_vm1, %v3169_v22  ;;  %2886 = vmatpush3.bf16.msra.mxu1 (!%p584_p2), %v3110_v48  ;;  %v2793_v50 = vld [vmem:[%s4321_s6] ss:$0 sm:$0xff] (!%p584_p2) }
   0xf   : > { %2887 = vmatprep.subr.bf16.mxu1 (!%p584_p2), %v3169_v22  ;;  %3025 = vset.pattern.permute.xlu1 (!%p584_p2), %v3174_v58 }
  0x10   : > { %2880 = vmatpush3.bf16.msra.mxu0 (!%p584_p2), %v3109_v23  ;;  %v3186_v23 = vmov (!%p584_p2), 3  }
  0x11   : > { %2893 = vmatprep.subr.bf16.mxu0 (!%p584_p2), %v3169_v22 }
  0x12   : > { %s4473_s22 = smov (!%p654_p3, %s2777_s22), 1  ;;  %2888 = vmatpush3.bf16.msra.mxu1 %v3111_v49 }
  0x13   : > { %s3312_s23 = sshll.u32 %s4473_s22, 4  ;;  %2899 = vmatprep.subr.bf16.mxu1 %v3169_v22  ;;  %s666_s0 = scalar_lea.vmem %s4370_s30, %s4473_s22 }
  0x14   : > { %s663_s3 = scalar_lea.vmem %s4366_s25, %s3312_s23  ;;  %s658_s4 = scalar_lea.vmem %s4367_s28, %s3312_s23 }
  0x15   : > { %v680_v1 = vld [vmem:[%s663_s3] sm:$0xff]  ;;  %v681_v2 = vld [vmem:[%s663_s3 + $0x8] sm:$0xff]  ;;  %s4368_s25 = sld [smem:[#allocation5_spill]]  ;;  %s3173_s28 = smov 112  }
  0x16   : > { %685 = vperm.xlu0 %3024, %v680_v1   ;;  %v678_v3 = vld [vmem:[%s658_s4] sm:$0xff]  ;;  %v679_v6 = vld [vmem:[%s658_s4 + $0x8] sm:$0xff]  ;;  %s4369_s4 = sld [smem:[#allocation6_spill]]  ;;  %s3191_s22 = smov 64  }
  0x17   : > { %s3194_s30 = smov 16   ;;  %s671_s24 = scalar_lea.vmem %s4334_s19, %s3312_s23 }
  0x1a   : > { %690 = vperm.xlu0 %3024, %v681_v2  }
  0x1b   : > { %v2791_v32 = vld [vmem:[%s4368_s25] ss:$0 sm:$0xff] }
  0x1c   : > { %v2792_v38 = vld [vmem:[%s4369_s4] ss:$0 sm:$0xff]  ;;  %s3193_s4 = smov 9  }
  0x1e   : > { %3033 = vset.pattern.permute.xlu0 %v3175_v59 }
  0x95   : > { %v3322_v4 = vpop.permute.xlu0 %685 }
  0x96   : > { %v3325_v5 = vmul.f32 %v3322_v4, %v678_v3 }
  0x98   : > { %v733_v7 = vsel %vm4336_vm0, %v3325_v5, 0.0 }
  0x99   : > { %v3329_v8 = vpop.permute.xlu0 %690  ;;  %734 = vadd.xlane.f32.xlu1 %v733_v7 }
  0x9a   : > { %v3332_v9 = vmul.f32 %v3329_v8, %v679_v6 }
  0x9c   : > { %v736_v10 = vsel %vm4336_vm0, %v3332_v9, 0.0 }
  0x9d   : > { %737 = vadd.xlane.f32.xlu1 %v736_v10 }
 0x126   : > { %v735_v11 = vpop.xlane.xlu1 %734 }
 0x127   : > { %v740_v12 = vmul.f32 0.03125, %v735_v11 }
 0x129   : > { %v742_v13 = vsub.f32 %v3325_v5, %v740_v12  ;;  %v3176_v12 = vmov 10  }
 0x12a   : > { %v738_v14 = vpop.xlane.xlu1 %737 }
 0x12b   : > { %v741_v15 = vmul.f32 0.03125, %v738_v14  ;;  %v744_v16 = vmul.f32 %v742_v13, %v742_v13  ;;  %v3178_v14 = vmov 15  }
 0x12d   : > { %v743_v17 = vsub.f32 %v3332_v9, %v741_v15  ;;  %v746_v18 = vsel %vm4336_vm0, %v744_v16, 0.0  ;;  %v3179_v15 = vmov 12   ;;  %v3180_v16 = vmov 2  }
 0x12e   : > { %747 = vadd.xlane.f32.xlu0 %v746_v18  ;;  %v3182_v18 = vmov 5  }
 0x12f   : > { %v745_v19 = vmul.f32 %v743_v17, %v743_v17 }
 0x131   : > { %v749_v20 = vsel %vm4336_vm0, %v745_v19, 0.0  ;;  %v3183_v19 = vmov 14  }
 0x132   : > { %750 = vadd.xlane.f32.xlu1 %v749_v20  ;;  %v3184_v20 = vmov 8  }
 0x1bb   : > { %v748_v24 = vpop.xlane.xlu0 %747 }
 0x1bc   : > { %v752_v25 = vmul.f32 0.03125, %v748_v24  ;;  %v3187_v24 = vmov 6  }
 0x1be   : > { %v754_v26 = vadd.f32 0.0001, %v752_v25  ;;  %v3188_v25 = vmov 1  }
 0x1bf   : > { %v751_v27 = vpop.xlane.xlu1 %750 }
 0x1c0   : > { %3124 = vrsqrt.f32 %v754_v26  ;;  %v753_v28 = vmul.f32 0.03125, %v751_v27  ;;  %v3189_v26 = vmov 4   ;;  %v3190_v27 = vmov 7  }
 0x1c2   : > { %v755_v29 = vadd.f32 0.0001, %v753_v28 }
 0x1c4   : > { %3126 = vrsqrt.f32 %v755_v29 }
 0x1ca   : > { %v3125_v30 = vpop.eup %3124 }
 0x1cb   : > { %v758_v31 = vmul.f32 %v3125_v30, %v742_v13  ;;  %v3177_v13 = vmov 11  }
 0x1cd   : > { %v766_v36 = vmul.f32 %v2791_v32, %v758_v31  ;;  %v1727_v37 = vmul.f32 %v2811_v33, %v758_v31 }
 0x1ce   : > { %v3127_v34 = vpop.eup %3126 }
 0x1cf   : > { %v759_v35 = vmul.f32 %v3127_v34, %v743_v17  ;;  %v774_v42 = vadd.f32 %v2792_v38, %v766_v36  ;;  %v3366_v44 = vadd.f32 %v2812_v39, %v1727_v37  ;;  %v3181_v17 = vmov 13  }
 0x1d0   : > { %v695_v37 = vlaneseq }
 0x1d1   : > { %v767_v40 = vmul.f32 %v2791_v32, %v759_v35  ;;  %v1728_v41 = vmul.f32 %v2811_v33, %v759_v35 }
 0x1d3   : > { %v775_v43 = vadd.f32 %v2792_v38, %v767_v40  ;;  %v3368_v45 = vadd.f32 %v2812_v39, %v1728_v41  ;;  %v696_v39 = vand.u32 127, %v695_v37  ;;  %v698_v40 = vshrl.u32 %v695_v37, 7 }
 0x1d5   : > { %v776_v46 = vpack.c.bf16 %v775_v43, %v774_v42  ;;  %v1737_v47 = vpack.c.bf16 %v3368_v45, %v3366_v44  ;;  %v3491_v42 = vsub.s32 %v696_v39, %v698_v40  ;;  %v3117_v44 = vld [vmem:[%s4322_s7 + $0x8] sm:$0xff]  }
 0x1d7   : > { %2882 = vmatmul.mubr.msk.bf16.vlgmr.msra.gmra.mrb[0].mxu0 %vm4336_vm0, %v776_v46  ;;  %vm712_vm3 = vcmp.eq.s32.totalorder %v3491_v42, 4294967292  ;;  %vm714_vm4 = vcmp.eq.s32.totalorder %v3491_v42, 4294967293  ;;  %vm716_vm5 = vcmp.eq.s32.totalorder %v3491_v42, 4294967294  ;;  %vm718_vm6 = vcmp.eq.s32.totalorder %v3491_v42, 4294967295 }
 0x1d8   : > { %2895 = vmatprep.mubr.msk.bf16.mxu0 %vm4337_vm1, %v3169_v22  ;;  %vm720_vm7 = vcmp.eq.s32.totalorder %v3491_v42, 0  ;;  %vm4344_vm8 = vcmp.eq.s32.totalorder %v3491_v42, 1  ;;  %vm4345_vm9 = vcmp.eq.s32.totalorder %v3491_v42, 2  ;;  %vm4353_vm10 = vcmp.eq.s32.totalorder %v3491_v42, 3 }
 0x1d9   : > { %vm4346_vm11 = vcmp.eq.s32.totalorder %v3491_v42, 4 }
 0x2aa   : > { %v837_v51 = vpop.f32.mrb[0].mxu0 }
 0x2ab   : > { %v2883_v52 = vpop.f32.mrb[1].mxu0  ;;  %v838_v54 = vadd.f32 %v2793_v50, %v837_v51 }
 0x2ac   : > { %v840_v53 = vpop.f32.mrb[2].mxu0 }
 0x2ad   : > { %v841_v55 = vadd.f32 %v2793_v50, %v840_v53  ;;  %v2884_v56 = vpop.f32.mrb[3].mxu0 }
 0x2af   : > { %v3386_v57 = vpack.c.bf16 %v841_v55, %v838_v54 }
 0x2b1   : > { %908 = vrot.lane.b32.xlu1 %v3386_v57, %s3171_s26  ;;  %2890 = vmatmul.mubr.msk.bf16.vlgmr.msra.gmra.mrb[0].mxu1 %vm4336_vm0, %v3386_v57 }
 0x2b2   : > { %2901 = vmatprep.mubr.msk.bf16.mxu1 %vm4337_vm1, %v3169_v22 }
 0x2b5   : > { %1241 = vrot.lane.b32.xlu1 %v3386_v57, %s3172_s27 }
 0x2b9   : > { %1239 = vrot.lane.b32.xlu1 %v3386_v57, %s3173_s28 }
 0x323   : > { %v909_v60 = vpop.permute.xlu1 %908 }
 0x324   : > { %v914_v61 = vsel %vm910_vm2, %v909_v60, 0 }
 0x325   : > { %2894 = vmatpush3.bf16.xpose.msra.mxu0 %v914_v61 }
 0x326   : > { %2905 = vmatprep.subr.bf16.mxu0 %v3169_v22 }
 0x327   : > { %v1242_v62 = vpop.permute.xlu1 %1241 }
 0x328   : > { %v1247_v63 = vsel %vm910_vm2, %v1242_v62, 0 }
 0x32b   : > { %v1240_v1 = vpop.permute.xlu1 %1239 }
 0x32c   : > { %2896 = vmatmul.mubr.msk.bf16.vlgmr.msra.gmra.mrb[4].mxu0 %vm910_vm2, %v3386_v57 }
 0x32d   : > { %2906 = vmatpush3.bf16.xpose.msra.mxu0 %v1247_v63  ;;  %2907 = vmatprep.mubr.msk.bf16.mxu0 %vm4337_vm1, %v3169_v22 }
 0x32e   : > { %2917 = vmatprep.subr.bf16.mxu0 %v3169_v22 }
 0x334   : > { %2908 = vmatmul.mubr.msk.bf16.vlgmr.msra.gmra.mrb[8].mxu0 %vm910_vm2, %v1240_v1 }
 0x335   : > { %2921 = vmatprep.mubr.msk.bf16.mxu0 %vm4337_vm1, %v3169_v22 }
 0x384   : > { %v898_v2 = vpop.f32.mrb[0].mxu1 }
 0x385   : > { %v3411_v3 = vmul.f32 0.25, %v898_v2  ;;  %v2891_v6 = vpop.f32.mrb[1].mxu1 }
 0x386   : > { %v901_v7 = vpop.f32.mrb[2].mxu1 }
 0x387   : > { %1389 = vperm.xlu0 %3033, %v3411_v3   ;;  %1293 = vperm.xlu1 %3025, %v3411_v3   ;;  %v2892_v10 = vpop.f32.mrb[3].mxu1  ;;  %v3415_v11 = vmul.f32 0.25, %v901_v7 }
 0x38b   : > { %3034 = vset.pattern.permute.xlu0 %v3174_v58  ;;  %3026 = vset.pattern.permute.xlu1 %v3176_v12 }
 0x38c   : > { %1305 = vperm.xlu1 %3026, %v3411_v3   ;;  %1297 = vperm.xlu0 %3034, %v3415_v11  }
 0x390   : > { %3027 = vset.pattern.permute.xlu1 %v3177_v13  ;;  %3040 = vset.pattern.permute.xlu0 %v3178_v14 }
 0x391   : > { %1317 = vperm.xlu1 %3027, %v3411_v3   ;;  %1369 = vperm.xlu0 %3040, %v3415_v11  }
 0x395   : > { %3028 = vset.pattern.permute.xlu1 %v3179_v15  ;;  %3045 = vset.pattern.permute.xlu0 %v3180_v16 }
 0x396   : > { %1329 = vperm.xlu1 %3028, %v3411_v3   ;;  %986 = vperm.xlu0 %3045, %v3411_v3  }
 0x39a   : > { %3029 = vset.pattern.permute.xlu1 %v3181_v17  ;;  %3048 = vset.pattern.permute.xlu0 %v3182_v18 }
 0x39b   : > { %1341 = vperm.xlu1 %3029, %v3411_v3   ;;  %1022 = vperm.xlu0 %3048, %v3411_v3  }
 0x39f   : > { %3030 = vset.pattern.permute.xlu1 %v3183_v19  ;;  %3051 = vset.pattern.permute.xlu0 %v3184_v20 }
 0x3a0   : > { %1353 = vperm.xlu1 %3030, %v3411_v3   ;;  %1058 = vperm.xlu0 %3051, %v3411_v3  }
 0x3a4   : > { %3031 = vset.pattern.permute.xlu1 %v3178_v14  ;;  %3052 = vset.pattern.permute.xlu0 %v3168_v0 }
 0x3a5   : > { %1365 = vperm.xlu1 %3031, %v3411_v3   ;;  %966 = vperm.xlu0 %3052, %v3415_v11  }
 0x3a9   : > { %3032 = vset.pattern.permute.xlu1 %v3185_v21  ;;  %3055 = vset.pattern.permute.xlu0 %v3186_v23 }
 0x3aa   : > { %1377 = vperm.xlu1 %3032, %v3411_v3   ;;  %1002 = vperm.xlu0 %3055, %v3415_v11  }
 0x3ae   : > { %3035 = vset.pattern.permute.xlu1 %v3176_v12  ;;  %3058 = vset.pattern.permute.xlu0 %v3187_v24 }
 0x3af   : > { %1309 = vperm.xlu1 %3035, %v3415_v11   ;;  %1038 = vperm.xlu0 %3058, %v3415_v11  }
 0x3b3   : > { %3036 = vset.pattern.permute.xlu1 %v3177_v13  ;;  %3068 = vset.pattern.permute.xlu0 %v3177_v13 }
 0x3b4   : > { %1321 = vperm.xlu1 %3036, %v3415_v11  }
 0x3b8   : > { %3037 = vset.pattern.permute.xlu1 %v3179_v15 }
 0x3b9   : > { %1333 = vperm.xlu1 %3037, %v3415_v11  }
 0x3bd   : > { %3038 = vset.pattern.permute.xlu1 %v3181_v17 }
 0x3be   : > { %1345 = vperm.xlu1 %3038, %v3415_v11  }
 0x3c2   : > { %3039 = vset.pattern.permute.xlu1 %v3183_v19 }
 0x3c3   : > { %1357 = vperm.xlu1 %3039, %v3415_v11  }
 0x3c7   : > { %3041 = vset.pattern.permute.xlu1 %v3185_v21 }
 0x3c8   : > { %1381 = vperm.xlu1 %3041, %v3415_v11  }
 0x3cc   : > { %3042 = vset.pattern.permute.xlu1 %v3175_v59 }
 0x3cd   : > { %1393 = vperm.xlu1 %3042, %v3415_v11  }
 0x3d1   : > { %3043 = vset.pattern.permute.xlu1 %v3168_v0 }
 0x3d2   : > { %961 = vperm.xlu1 %3043, %v3411_v3  }
 0x3d6   : > { %3044 = vset.pattern.permute.xlu1 %v3188_v25 }
 0x3d7   : > { %974 = vperm.xlu1 %3044, %v3411_v3  }
 0x3db   : > { %3046 = vset.pattern.permute.xlu1 %v3186_v23 }
 0x3dc   : > { %998 = vperm.xlu1 %3046, %v3411_v3  }
 0x3e0   : > { %3047 = vset.pattern.permute.xlu1 %v3189_v26 }
 0x3e1   : > { %1010 = vperm.xlu1 %3047, %v3411_v3  }
 0x3e5   : > { %3049 = vset.pattern.permute.xlu1 %v3187_v24 }
 0x3e6   : > { %1034 = vperm.xlu1 %3049, %v3411_v3  }
 0x3ea   : > { %3050 = vset.pattern.permute.xlu1 %v3190_v27 }
 0x3eb   : > { %1046 = vperm.xlu1 %3050, %v3411_v3   ;;  %v2790_v3 = vld [vmem:[%s666_s0] ss:$0 sm:$0xff] }
 0x3ef   : > { %3053 = vset.pattern.permute.xlu1 %v3188_v25 }
 0x3f0   : > { %978 = vperm.xlu1 %3053, %v3415_v11  }
 0x3f4   : > { %3054 = vset.pattern.permute.xlu1 %v3180_v16 }
 0x3f5   : > { %990 = vperm.xlu1 %3054, %v3415_v11  }
 0x3f9   : > { %3056 = vset.pattern.permute.xlu1 %v3189_v26 }
 0x3fa   : > { %1014 = vperm.xlu1 %3056, %v3415_v11  }
 0x3fe   : > { %3057 = vset.pattern.permute.xlu1 %v3182_v18 }
 0x3ff   : > { %1026 = vperm.xlu1 %3057, %v3415_v11   ;;  %v3482_v28 = vpop.f32.mrb[4].mxu0 }
 0x400   : > { %v2897_v29 = vpop.f32.mrb[5].mxu0 }
 0x401   : > { %v3484_v30 = vpop.f32.mrb[6].mxu0  ;;  %v3521_v29 = vmul.f32 %v2790_v3, %v3322_v4 }
 0x402   : > { %v2898_v31 = vpop.f32.mrb[7].mxu0 }
 0x403   : > { %3059 = vset.pattern.permute.xlu1 %v3190_v27  ;;  %vm4341_vm12 = vcmp.eq.f32.partialorder %v3521_v29, 0.0 }
 0x404   : > { %1050 = vperm.xlu1 %3059, %v3415_v11  }
 0x406   : > { %v1294_v32 = vpop.permute.xlu1 %1293  ;;  %v1390_v7 = vpop.permute.xlu0 %1389 }
 0x407   : > { %v1283_v33 = vpop.f32.mrb[8].mxu0  ;;  %v1300_v48 = vsel %vm712_vm3, %v1294_v32, 0.0 }
 0x408   : > { %3060 = vset.pattern.permute.xlu1 %v3184_v20  ;;  %v2909_v34 = vpop.f32.mrb[9].mxu0  ;;  %v1290_v46 = vmul.f32 0.25, %v1283_v33  ;;  %v1396_v33 = vsel %vm4346_vm11, %v1390_v7, 0.0 }
 0x409   : > { %1062 = vperm.xlu1 %3060, %v3415_v11   ;;  %v1286_v35 = vpop.f32.mrb[10].mxu0  ;;  %v699_v34 = vadd.s32 8, %v698_v40 }
 0x40a   : > { %v2910_v36 = vpop.f32.mrb[11].mxu0  ;;  %v1302_v50 = vadd.f32 %v1300_v48, %v1290_v46  ;;  %v1291_v48 = vmul.f32 0.25, %v1286_v35 }
 0x40b   : > { %v1306_v38 = vpop.permute.xlu1 %1305  ;;  %v1298_v46 = vpop.permute.xlu0 %1297 }
 0x40c   : > { %v1312_v51 = vsel %vm714_vm4, %v1306_v38, 0.0 }
 0x40d   : > { %3066 = vset.pattern.permute.xlu1 %v3174_v58  ;;  %v1314_v53 = vadd.f32 %v1312_v51, %v1302_v50 }
 0x410   : > { %v1318_v41 = vpop.permute.xlu1 %1317 }
 0x411   : > { %v1324_v52 = vsel %vm716_vm5, %v1318_v41, 0.0  ;;  %v3532_v41 = vsub.s32 %v696_v39, %v699_v34 }
 0x412   : > { %v1326_v56 = vadd.f32 %v1324_v52, %v1314_v53 }
 0x413   : > { %vm4352_vm13 = vcmp.eq.s32.totalorder %v3532_v41, 4294967292  ;;  %vm4339_vm14 = vcmp.eq.s32.totalorder %v3532_v41, 4294967293  ;;  %vm4340_vm15 = vcmp.eq.s32.totalorder %v3532_v41, 4294967294  ;;  %vm4351_vm0 = vcmp.eq.s32.totalorder %v3532_v41, 4294967295 }
 0x414   : > { %v1301_v40 = vsel %vm4352_vm13, %v1298_v46, 0.0  ;;  %vm4342_vm1 = vcmp.eq.s32.totalorder %v3532_v41, 0 }
 0x415   : > { %v1330_v43 = vpop.permute.xlu1 %1329  ;;  %v1303_v50 = vadd.f32 %v1301_v40, %v1291_v48 }
 0x416   : > { %v1336_v55 = vsel %vm718_vm6, %v1330_v43, 0.0 }
 0x417   : > { %v1338_v61 = vadd.f32 %v1336_v55, %v1326_v56 }
 0x41a   : > { %v1342_v49 = vpop.permute.xlu1 %1341 }
 0x41b   : > { %v1348_v60 = vsel %vm720_vm7, %v1342_v49, 0.0 }
 0x41c   : > { %v1350_v1 = vadd.f32 %v1348_v60, %v1338_v61 }
 0x41f   : > { %v1354_v54 = vpop.permute.xlu1 %1353 }
 0x420   : > { %v1360_v62 = vsel %vm4344_vm8, %v1354_v54, 0.0 }
 0x421   : > { %v1362_v6 = vadd.f32 %v1360_v62, %v1350_v1 }
 0x424   : > { %v1366_v63 = vpop.permute.xlu1 %1365 }
 0x425   : > { %v1372_v2 = vsel %vm4345_vm9, %v1366_v63, 0.0  ;;  %v1370_v63 = vpop.permute.xlu0 %1369 }
 0x426   : > { %v1374_v10 = vadd.f32 %v1372_v2, %v1362_v6 }
 0x429   : > { %v1378_v11 = vpop.permute.xlu1 %1377  ;;  %v987_v40 = vpop.permute.xlu0 %986 }
 0x42a   : > { %v1384_v31 = vsel %vm4353_vm10, %v1378_v11, 0.0  ;;  %v3562_v11 = vmul.f32 %v2790_v3, %v3329_v8  ;;  %v957_v3 = vmul.f32 0.25, %v3482_v28 }
 0x42b   : > { %v1386_v32 = vadd.f32 %v1384_v31, %v1374_v10 }
 0x42d   : > { %v1398_v36 = vadd.f32 %v1396_v33, %v1386_v32 }
 0x42e   : > { %v1310_v37 = vpop.permute.xlu1 %1309 }
 0x42f   : > { %v3530_v38 = vsel %vm4341_vm12, -10000.0, %v1398_v36  ;;  %v1313_v39 = vsel %vm4339_vm14, %v1310_v37, 0.0  ;;  %vm4343_vm14 = vcmp.eq.s32.totalorder %v3532_v41, 1  ;;  %vm4349_vm12 = vcmp.eq.s32.totalorder %v3532_v41, 3 }
 0x430   : > { %v1402_v4 = vsel %vm910_vm2, %v3530_v38, -inf  ;;  %v1315_v52 = vadd.f32 %v1313_v39, %v1303_v50  ;;  %v993_v39 = vsel %vm716_vm5, %v987_v40, 0.0 }
 0x431   : > { %1403 = vmax.xlane.f32.xlu1 %v1402_v4 }
 0x433   : > { %v1322_v43 = vpop.permute.xlu1 %1321 }
 0x434   : > { %v1325_v51 = vsel %vm4340_vm15, %v1322_v43, 0.0  ;;  %vm4350_vm15 = vcmp.eq.s32.totalorder %v3532_v41, 2 }
 0x435   : > { %v1327_v54 = vadd.f32 %v1325_v51, %v1315_v52  ;;  %v1373_v2 = vsel %vm4350_vm15, %v1370_v63, 0.0 }
 0x438   : > { %v1334_v49 = vpop.permute.xlu1 %1333 }
 0x439   : > { %v1337_v35 = vsel %vm4351_vm0, %v1334_v49, 0.0 }
 0x43a   : > { %v1339_v56 = vadd.f32 %v1337_v35, %v1327_v54  ;;  %v1023_v35 = vpop.permute.xlu0 %1022 }
 0x43d   : > { %v1346_v53 = vpop.permute.xlu1 %1345 }
 0x43e   : > { %v1349_v55 = vsel %vm4342_vm1, %v1346_v53, 0.0  ;;  %vm4348_vm1 = vcmp.eq.s32.totalorder %v3532_v41, 4 }
 0x43f   : > { %v1351_v60 = vadd.f32 %v1349_v55, %v1339_v56  ;;  %v1029_v56 = vsel %vm4344_vm8, %v1023_v35, 0.0  ;;  %vm4371_vm8 = vcmp.eq.f32.partialorder %v3521_v29, 0.0 }
 0x442   : > { %v1358_v61 = vpop.permute.xlu1 %1357 }
 0x443   : > { %v1361_v62 = vsel %vm4343_vm14, %v1358_v61, 0.0  ;;  %vm4347_vm14 = vcmp.eq.f32.partialorder %v3562_v11, 0.0  ;;  %v1059_v61 = vpop.permute.xlu0 %1058 }
 0x444   : > { %v1363_v1 = vadd.f32 %v1361_v62, %v1351_v60 }
 0x446   : > { %v1375_v7 = vadd.f32 %v1373_v2, %v1363_v1 }
 0x447   : > { %v1382_v6 = vpop.permute.xlu1 %1381 }
 0x448   : > { %v1385_v10 = vsel %vm4349_vm12, %v1382_v6, 0.0 }
 0x449   : > { %v1387_v31 = vadd.f32 %v1385_v10, %v1375_v7  ;;  %v967_v7 = vpop.permute.xlu0 %966 }
 0x44c   : > { %v1394_v32 = vpop.permute.xlu1 %1393 }
 0x44d   : > { %v1397_v33 = vsel %vm4348_vm1, %v1394_v32, 0.0 }
 0x44e   : > { %v1399_v34 = vadd.f32 %v1397_v33, %v1387_v31  ;;  %v1065_v31 = vsel %vm4346_vm11, %v1059_v61, 0.0  ;;  %v970_v33 = vsel %vm4352_vm13, %v967_v7, 0.0  ;;  %vm4373_vm11 = vcmp.eq.s32.totalorder %v3532_v41, 4294967294 }
 0x450   : > { %v3569_v36 = vsel %vm4347_vm14, -10000.0, %v1399_v34 }
 0x451   : > { %v962_v37 = vpop.permute.xlu1 %961  ;;  %v1405_v4 = vsel %vm910_vm2, %v3569_v36, -inf }
 0x452   : > { %1406 = vmax.xlane.f32.xlu0 %v1405_v4  ;;  %v969_v8 = vsel %vm712_vm3, %v962_v37, 0.0  ;;  %v958_v37 = vmul.f32 0.25, %v3484_v30 }
 0x453   : > { %v971_v43 = vadd.f32 %v969_v8, %v957_v3 }
 0x456   : > { %v975_v46 = vpop.permute.xlu1 %974 }
 0x457   : > { %v981_v48 = vsel %vm714_vm4, %v975_v46, 0.0 }
 0x458   : > { %v983_v49 = vadd.f32 %v981_v48, %v971_v43  ;;  %v972_v43 = vadd.f32 %v970_v33, %v958_v37 }
 0x45a   : > { %v995_v51 = vadd.f32 %v993_v39, %v983_v49  ;;  %v1003_v49 = vpop.permute.xlu0 %1002 }
 0x45b   : > { %v999_v50 = vpop.permute.xlu1 %998  ;;  %v1006_v30 = vsel %vm4351_vm0, %v1003_v49, 0.0 }
 0x45c   : > { %v1005_v52 = vsel %vm718_vm6, %v999_v50, 0.0 }
 0x45d   : > { %v1007_v53 = vadd.f32 %v1005_v52, %v995_v51 }
 0x460   : > { %v1011_v54 = vpop.permute.xlu1 %1010 }
 0x461   : > { %v1017_v28 = vsel %vm720_vm7, %v1011_v54, 0.0 }
 0x462   : > { %v1019_v55 = vadd.f32 %v1017_v28, %v1007_v53  ;;  %v1039_v28 = vpop.permute.xlu0 %1038 }
 0x464   : > { %v1031_v62 = vadd.f32 %v1029_v56, %v1019_v55  ;;  %v1042_v56 = vsel %vm4350_vm15, %v1039_v28, 0.0 }
 0x465   : > { %v1035_v60 = vpop.permute.xlu1 %1034 }
 0x466   : > { %v1041_v63 = vsel %vm4345_vm9, %v1035_v60, 0.0  ;;  %vm4372_vm9 = vcmp.eq.s32.totalorder %v3532_v41, 4294967293 }
 0x467   : > { %v1043_v1 = vadd.f32 %v1041_v63, %v1031_v62 }
 0x46a   : > { %v1047_v2 = vpop.permute.xlu1 %1046 }
 0x46b   : > { %v1053_v6 = vsel %vm4353_vm10, %v1047_v2, 0.0 }
 0x46c   : > { %v1055_v10 = vadd.f32 %v1053_v6, %v1043_v1 }
 0x46e   : > { %v1067_v32 = vadd.f32 %v1065_v31, %v1055_v10 }
 0x46f   : > { %v979_v34 = vpop.permute.xlu1 %978 }
 0x470   : > { %v1069_v4 = vsel %vm4371_vm8, -10000.0, %v1067_v32  ;;  %v982_v8 = vsel %vm4372_vm9, %v979_v34, 0.0  ;;  %vm4374_vm8 = vcmp.eq.s32.totalorder %v3532_v41, 0  ;;  %vm4375_vm9 = vcmp.eq.s32.totalorder %v3532_v41, 1 }
 0x471   : > { %v1071_v3 = vsel %vm910_vm2, %v1069_v4, -inf  ;;  %v984_v46 = vadd.f32 %v982_v8, %v972_v43 }
 0x472   : > { %1072 = vmax.xlane.f32.xlu0 %v1071_v3 }
 0x474   : > { %v991_v48 = vpop.permute.xlu1 %990 }
 0x475   : > { %v994_v40 = vsel %vm4373_vm11, %v991_v48, 0.0  ;;  %vm4376_vm11 = vcmp.eq.s32.totalorder %v3491_v42, 1 }
 0x476   : > { %v996_v39 = vadd.f32 %v994_v40, %v984_v46 }
 0x478   : > { %v1008_v51 = vadd.f32 %v1006_v30, %v996_v39 }
 0x479   : > { %v1015_v50 = vpop.permute.xlu1 %1014 }
 0x47a   : > { %v1018_v52 = vsel %vm4374_vm8, %v1015_v50, 0.0  ;;  %vm4377_vm8 = vcmp.eq.s32.totalorder %v3491_v42, 2 }
 0x47b   : > { %v1020_v35 = vadd.f32 %v1018_v52, %v1008_v51 }
 0x47e   : > { %v1027_v53 = vpop.permute.xlu1 %1026 }
 0x47f   : > { %v1030_v54 = vsel %vm4375_vm9, %v1027_v53, 0.0  ;;  %vm4378_vm9 = vcmp.eq.s32.totalorder %v3491_v42, 4 }
 0x480   : > { %v1032_v55 = vadd.f32 %v1030_v54, %v1020_v35 }
 0x482   : > { %v1044_v61 = vadd.f32 %v1042_v56, %v1032_v55 }
 0x483   : > { %v1051_v60 = vpop.permute.xlu1 %1050 }
 0x484   : > { %v1054_v62 = vsel %vm4349_vm12, %v1051_v60, 0.0 }
 0x485   : > { %v1056_v63 = vadd.f32 %v1054_v62, %v1044_v61 }
 0x488   : > { %v1063_v1 = vpop.permute.xlu1 %1062 }
 0x489   : > { %v1066_v2 = vsel %vm4348_vm1, %v1063_v1, 0.0 }
 0x48a   : > { %v1068_v6 = vadd.f32 %v1066_v2, %v1056_v63 }
 0x48c   : > { %v1070_v7 = vsel %vm4347_vm14, -10000.0, %v1068_v6  ;;  %vm1221_vm14 = vcmask 23552  }
 0x48d   : > { %v1074_v10 = vsel %vm910_vm2, %v1070_v7, -inf }
 0x48e   : > { %1075 = vmax.xlane.f32.xlu1 %v1074_v10 }
 0x4be   : > { %v1404_v31 = vpop.xlane.xlu1 %1403 }
 0x4bf   : > { %v1408_v32 = vsub.f32 %v3530_v38, %v1404_v31 }
 0x4c1   : > { %v1410_v33 = vmul.f32 1.442695, %v1408_v32 }
 0x4c3   : > { %3128 = vpow2.f32 %v1410_v33 }
 0x4cd   : > { %v3129_v34 = vpop.eup %3128 }
 0x4ce   : > { %v1414_v37 = vsel %vm910_vm2, %v3129_v34, 0.0 }
 0x4cf   : > { %1415 = vadd.xlane.f32.xlu0 %v1414_v37 }
 0x4df   : > { %v1407_v8 = vpop.xlane.xlu0 %1406 }
 0x4e0   : > { %v1409_v3 = vsub.f32 %v3569_v36, %v1407_v8 }
 0x4e2   : > { %v1412_v43 = vmul.f32 1.442695, %v1409_v3 }
 0x4e4   : > { %3130 = vpow2.f32 %v1412_v43 }
 0x4ee   : > { %v3131_v46 = vpop.eup %3130 }
 0x4ef   : > { %v1417_v48 = vsel %vm910_vm2, %v3131_v46, 0.0 }
 0x4f0   : > { %1418 = vadd.xlane.f32.xlu1 %v1417_v48 }
 0x4ff   : > { %v1073_v40 = vpop.xlane.xlu0 %1072 }
 0x500   : > { %v1077_v49 = vsub.f32 %v1069_v4, %v1073_v40 }
 0x502   : > { %v1079_v39 = vmul.f32 1.442695, %v1077_v49 }
 0x504   : > { %3132 = vpow2.f32 %v1079_v39 }
 0x50e   : > { %v3621_v38 = vpop.eup %3132 }
 0x50f   : > { %v1083_v30 = vsel %vm910_vm2, %v3621_v38, 0.0 }
 0x510   : > { %1084 = vadd.xlane.f32.xlu0 %v1083_v30 }
 0x51b   : > { %v1076_v50 = vpop.xlane.xlu1 %1075 }
 0x51c   : > { %v1078_v51 = vsub.f32 %v1070_v7, %v1076_v50 }
 0x51e   : > { %v1081_v52 = vmul.f32 1.442695, %v1078_v51 }
 0x520   : > { %3134 = vpow2.f32 %v1081_v52 }
 0x52a   : > { %v3625_v36 = vpop.eup %3134 }
 0x52b   : > { %v1086_v35 = vsel %vm910_vm2, %v3625_v36, 0.0 }
 0x52c   : > { %1087 = vadd.xlane.f32.xlu1 %v1086_v35 }
 0x55c   : > { %v1416_v53 = vpop.xlane.xlu0 %1415 }
 0x55d   : > { %3136 = vrcp.f32 %v1416_v53 }
 0x567   : > { %v3137_v4 = vpop.eup %3136 }
 0x568   : > { %v3629_v54 = vmul.f32 %v3137_v4, %v3129_v34 }
 0x56a   : > { %v1474_v28 = vsel %vm712_vm3, %v3629_v54, 0.0  ;;  %v1482_v56 = vsel %vm714_vm4, %v3629_v54, 0.0  ;;  %v1490_v61 = vsel %vm716_vm5, %v3629_v54, 0.0  ;;  %v1498_v63 = vsel %vm718_vm6, %v3629_v54, 0.0 }
 0x56b   : > { %v1476_v55 = vsel %vm910_vm2, %v1474_v28, 0.0  ;;  %v1484_v60 = vsel %vm910_vm2, %v1482_v56, 0.0  ;;  %v1492_v62 = vsel %vm910_vm2, %v1490_v61, 0.0  ;;  %v1500_v1 = vsel %vm910_vm2, %v1498_v63, 0.0 }
 0x56c   : > { %1477 = vadd.xlane.f32.xlu0 %v1476_v55  ;;  %v1506_v2 = vsel %vm720_vm7, %v3629_v54, 0.0  ;;  %v1514_v7 = vsel %vm4376_vm11, %v3629_v54, 0.0  ;;  %v1522_v32 = vsel %vm4377_vm8, %v3629_v54, 0.0  ;;  %v1530_v34 = vsel %vm4353_vm10, %v3629_v54, 0.0 }
 0x56d   : > { %v1508_v6 = vsel %vm910_vm2, %v1506_v2, 0.0  ;;  %v1516_v31 = vsel %vm910_vm2, %v1514_v7, 0.0  ;;  %v1524_v33 = vsel %vm910_vm2, %v1522_v32, 0.0  ;;  %v1532_v37 = vsel %vm910_vm2, %v1530_v34, 0.0 }
 0x56e   : > { %v1538_v3 = vsel %vm4378_vm9, %v3629_v54, 0.0  ;;  %vm4379_vm11 = vcmp.eq.s32.totalorder %v3532_v41, 4294967293  ;;  %vm4380_vm8 = vcmp.eq.s32.totalorder %v3532_v41, 4294967294  ;;  %vm4381_vm9 = vcmp.eq.s32.totalorder %v3532_v41, 0 }
 0x56f   : > { %v1540_v48 = vsel %vm910_vm2, %v1538_v3, 0.0 }
 0x570   : > { %1485 = vadd.xlane.f32.xlu0 %v1484_v60 }
 0x574   : > { %1493 = vadd.xlane.f32.xlu0 %v1492_v62 }
 0x578   : > { %1501 = vadd.xlane.f32.xlu0 %v1500_v1 }
 0x57c   : > { %1509 = vadd.xlane.f32.xlu0 %v1508_v6 }
 0x57d   : > { %v1419_v10 = vpop.xlane.xlu1 %1418 }
 0x57e   : > { %3138 = vrcp.f32 %v1419_v10 }
 0x580   : > { %1517 = vadd.xlane.f32.xlu0 %v1516_v31 }
 0x584   : > { %1525 = vadd.xlane.f32.xlu0 %v1524_v33 }
 0x588   : > { %v3139_v8 = vpop.eup %3138  ;;  %1533 = vadd.xlane.f32.xlu0 %v1532_v37 }
 0x589   : > { %v3666_v43 = vmul.f32 %v3139_v8, %v3131_v46 }
 0x58b   : > { %v1475_v40 = vsel %vm4352_vm13, %v3666_v43, 0.0  ;;  %v1483_v39 = vsel %vm4379_vm11, %v3666_v43, 0.0  ;;  %v1426_v30 = vpack.c.bf16 %v3666_v43, %v3629_v54  ;;  %v1491_v50 = vsel %vm4380_vm8, %v3666_v43, 0.0 }
 0x58c   : > { %1541 = vadd.xlane.f32.xlu0 %v1540_v48  ;;  %v1479_v49 = vsel %vm910_vm2, %v1475_v40, 0.0  ;;  %v1487_v46 = vsel %vm910_vm2, %v1483_v39, 0.0  ;;  %v1495_v51 = vsel %vm910_vm2, %v1491_v50, 0.0  ;;  %v1499_v52 = vsel %vm4351_vm0, %v3666_v43, 0.0 }
 0x58d   : > { %1480 = vadd.xlane.f32.xlu1 %v1479_v49  ;;  %v1503_v35 = vsel %vm910_vm2, %v1499_v52, 0.0  ;;  %v1507_v53 = vsel %vm4381_vm9, %v3666_v43, 0.0  ;;  %vm4382_vm11 = vcmp.eq.s32.totalorder %v3532_v41, 1  ;;  %v1523_v56 = vsel %vm4350_vm15, %v3666_v43, 0.0 }
 0x58e   : > { %v1511_v4 = vsel %vm910_vm2, %v1507_v53, 0.0  ;;  %v1515_v28 = vsel %vm4382_vm11, %v3666_v43, 0.0  ;;  %v1527_v60 = vsel %vm910_vm2, %v1523_v56, 0.0  ;;  %v1531_v61 = vsel %vm4349_vm12, %v3666_v43, 0.0 }
 0x58f   : > { %v1519_v55 = vsel %vm910_vm2, %v1515_v28, 0.0  ;;  %v1535_v62 = vsel %vm910_vm2, %v1531_v61, 0.0  ;;  %v1539_v63 = vsel %vm4348_vm1, %v3666_v43, 0.0  ;;  %vm4383_vm8 = vcmp.eq.s32.totalorder %v3491_v42, 1 }
 0x590   : > { %v1543_v1 = vsel %vm910_vm2, %v1539_v63, 0.0  ;;  %vm4384_vm9 = vcmp.eq.s32.totalorder %v3491_v42, 2  ;;  %vm4385_vm11 = vcmp.eq.s32.totalorder %v3532_v41, 4294967293 }
 0x591   : > { %1488 = vadd.xlane.f32.xlu1 %v1487_v46 }
 0x595   : > { %1496 = vadd.xlane.f32.xlu1 %v1495_v51 }
 0x599   : > { %1504 = vadd.xlane.f32.xlu1 %v1503_v35 }
 0x59d   : > { %1512 = vadd.xlane.f32.xlu1 %v1511_v4  ;;  %v1085_v2 = vpop.xlane.xlu0 %1084 }
 0x59e   : > { %3140 = vrcp.f32 %v1085_v2 }
 0x5a1   : > { %1520 = vadd.xlane.f32.xlu1 %v1519_v55 }
 0x5a2   : > { %1096 = vrot.lane.b32.xlu0 %v3386_v57, %s3191_s22 }
 0x5a5   : > { %1528 = vadd.xlane.f32.xlu1 %v1527_v60 }
 0x5a8   : > { %v3141_v7 = vpop.eup %3140 }
 0x5a9   : > { %1536 = vadd.xlane.f32.xlu1 %v1535_v62  ;;  %v3712_v31 = vmul.f32 %v3141_v7, %v3621_v38 }
 0x5ab   : > { %v1151_v37 = vsel %vm714_vm4, %v3712_v31, 0.0  ;;  %v1167_v3 = vsel %vm718_vm6, %v3712_v31, 0.0  ;;  %v1175_v40 = vsel %vm720_vm7, %v3712_v31, 0.0  ;;  %v1183_v39 = vsel %vm4383_vm8, %v3712_v31, 0.0 }
 0x5ac   : > { %v1153_v38 = vsel %vm910_vm2, %v1151_v37, 0.0  ;;  %v1169_v48 = vsel %vm910_vm2, %v1167_v3, 0.0  ;;  %v1177_v49 = vsel %vm910_vm2, %v1175_v40, 0.0  ;;  %v1185_v46 = vsel %vm910_vm2, %v1183_v39, 0.0 }
 0x5ad   : > { %1544 = vadd.xlane.f32.xlu1 %v1543_v1  ;;  %v1191_v50 = vsel %vm4384_vm9, %v3712_v31, 0.0  ;;  %v1143_v51 = vsel %vm712_vm3, %v3712_v31, 0.0  ;;  %v1199_v53 = vsel %vm4353_vm10, %v3712_v31, 0.0  ;;  %vm4386_vm8 = vcmp.eq.s32.totalorder %v3491_v42, 4 }
 0x5ae   : > { %v1193_v52 = vsel %vm910_vm2, %v1191_v50, 0.0  ;;  %v1145_v35 = vsel %vm910_vm2, %v1143_v51, 0.0  ;;  %v1201_v28 = vsel %vm910_vm2, %v1199_v53, 0.0  ;;  %v1207_v56 = vsel %vm4386_vm8, %v3712_v31, 0.0  ;;  %v3112_v50 = vld [vmem:[%s4325_s10] sm:$0xff]  }
 0x5af   : > { %vm4387_vm9 = vcmp.eq.s32.totalorder %v3532_v41, 4294967294  ;;  %v1209_v61 = vsel %vm910_vm2, %v1207_v56, 0.0  ;;  %vm4389_vm8 = vcmp.eq.s32.totalorder %v3532_v41, 1  ;;  %2918 = vmatpush3.bf16.msra.mxu0 %v3112_v50  ;;  %vm4358_vm10 = vcmask 64512  }
 0x5b0   : > { %2919 = vmatprep.subr.bf16.mxu0 %v3169_v22 }
 0x5b9   : > { %v1088_v6 = vpop.xlane.xlu1 %1087 }
 0x5ba   : > { %3142 = vrcp.f32 %v1088_v6 }
 0x5be   : > { %1427 = vrot.lane.b32.xlu1 %v3386_v57, %s3192_s21 }
 0x5c4   : > { %v3143_v10 = vpop.eup %3142 }
 0x5c5   : > { %v3715_v32 = vmul.f32 %v3143_v10, %v3625_v36  ;;  %v1159_v36 = vsel %vm716_vm5, %v3712_v31, 0.0 }
 0x5c6   : > { %v1161_v8 = vsel %vm910_vm2, %v1159_v36, 0.0 }
 0x5c7   : > { %v1144_v33 = vsel %vm4352_vm13, %v3715_v32, 0.0  ;;  %v1095_v57 = vpack.c.bf16 %v3715_v32, %v3712_v31  ;;  %v1152_v4 = vsel %vm4385_vm11, %v3715_v32, 0.0  ;;  %v1160_v60 = vsel %vm4387_vm9, %v3715_v32, 0.0  ;;  %v3113_v31 = vld [vmem:[%s4325_s10 + $0x8] ss:$0 sps:$4 sm:$0x11]  }
 0x5c8   : > { %v1148_v34 = vsel %vm910_vm2, %v1144_v33, 0.0  ;;  %v1156_v55 = vsel %vm910_vm2, %v1152_v4, 0.0  ;;  %v1164_v62 = vsel %vm910_vm2, %v1160_v60, 0.0  ;;  %v1168_v63 = vsel %vm4351_vm0, %v3715_v32, 0.0 }
 0x5c9   : > { %1149 = vadd.xlane.f32.xlu0 %v1148_v34  ;;  %v1172_v1 = vsel %vm910_vm2, %v1168_v63, 0.0  ;;  %vm4388_vm11 = vcmp.eq.s32.totalorder %v3532_v41, 0  ;;  %v1184_v7 = vsel %vm4389_vm8, %v3715_v32, 0.0  ;;  %v1192_v33 = vsel %vm4350_vm15, %v3715_v32, 0.0 }
 0x5ca   : > { %v1176_v2 = vsel %vm4388_vm11, %v3715_v32, 0.0  ;;  %v1188_v10 = vsel %vm910_vm2, %v1184_v7, 0.0  ;;  %v1196_v37 = vsel %vm910_vm2, %v1192_v33, 0.0  ;;  %v1208_v3 = vsel %vm4348_vm1, %v3715_v32, 0.0 }
 0x5cb   : > { %v1180_v6 = vsel %vm910_vm2, %v1176_v2, 0.0  ;;  %v1212_v40 = vsel %vm910_vm2, %v1208_v3, 0.0  ;;  %vm4390_vm9 = vmmov 0   ;;  %vm1215_vm11 = vcmask 7168  }
 0x5cc   : > { %vm1218_vm8 = vcmask 15360   ;;  %vm4355_vm1 = vcmask 31744   ;;  %vm1227_vm15 = vcmask 39936   ;;  %vm4360_vm0 = vcmask 48128  }
 0x5cd   : > { %1154 = vadd.xlane.f32.xlu0 %v1153_v38  ;;  %v1200_v38 = vsel %vm4349_vm12, %v3715_v32, 0.0  ;;  %vm4354_vm12 = vcmask 1040384   ;;  %vm4359_vm13 = vcmask 56320  }
 0x5d1   : > { %1162 = vadd.xlane.f32.xlu0 %v1161_v8  ;;  %v1204_v8 = vsel %vm910_vm2, %v1200_v38, 0.0 }
 0x5d5   : > { %1170 = vadd.xlane.f32.xlu0 %v1169_v48 }
 0x5d9   : > { %1178 = vadd.xlane.f32.xlu0 %v1177_v49 }
 0x5dd   : > { %1186 = vadd.xlane.f32.xlu0 %v1185_v46 }
 0x5e1   : > { %1194 = vadd.xlane.f32.xlu0 %v1193_v52 }
 0x5e2   : > { %1146 = vadd.xlane.f32.xlu1 %v1145_v35 }
 0x5e5   : > { %1202 = vadd.xlane.f32.xlu0 %v1201_v28 }
 0x5e6   : > { %1157 = vadd.xlane.f32.xlu1 %v1156_v55 }
 0x5e9   : > { %1210 = vadd.xlane.f32.xlu0 %v1209_v61 }
 0x5ea   : > { %1165 = vadd.xlane.f32.xlu1 %v1164_v62 }
 0x5ee   : > { %1173 = vadd.xlane.f32.xlu1 %v1172_v1 }
 0x5f2   : > { %1181 = vadd.xlane.f32.xlu1 %v1180_v6 }
 0x5f6   : > { %1189 = vadd.xlane.f32.xlu1 %v1188_v10  ;;  %v1602_v10 = vsel %vm4354_vm12, %v3113_v31, 0  ;;  %vm4356_vm12 = vcmask 72704  }
 0x5f7   : > { %2920 = vmatpush3.bf16.msra.mxu0 %v1602_v10 }
 0x5f8   : > { %2933 = vmatprep.subr.bf16.mxu0 %v3169_v22 }
 0x5f9   : > { %v1478_v34 = vpop.xlane.xlu0 %1477 }
 0x5fa   : > { %1197 = vadd.xlane.f32.xlu1 %v1196_v37 }
 0x5fd   : > { %v1486_v36 = vpop.xlane.xlu0 %1485 }
 0x5fe   : > { %1205 = vadd.xlane.f32.xlu1 %v1204_v8  ;;  %v1546_v63 = vsel %vm1215_vm11, %v1478_v34, %v1486_v36 }
 0x601   : > { %v1494_v48 = vpop.xlane.xlu0 %1493 }
 0x602   : > { %1213 = vadd.xlane.f32.xlu1 %v1212_v40  ;;  %v1548_v32 = vsel %vm1218_vm8, %v1546_v63, %v1494_v48 }
 0x605   : > { %v1502_v49 = vpop.xlane.xlu0 %1501 }
 0x606   : > { %v1550_v2 = vsel %vm1221_vm14, %v1548_v32, %v1502_v49 }
 0x609   : > { %v1510_v39 = vpop.xlane.xlu0 %1509 }
 0x60a   : > { %v1552_v33 = vsel %vm4355_vm1, %v1550_v2, %v1510_v39 }
 0x60d   : > { %v1518_v46 = vpop.xlane.xlu0 %1517 }
 0x60e   : > { %v1554_v37 = vsel %vm1227_vm15, %v1552_v33, %v1518_v46 }
 0x611   : > { %v1526_v51 = vpop.xlane.xlu0 %1525 }
 0x612   : > { %v1556_v36 = vsel %vm4360_vm0, %v1554_v37, %v1526_v51 }
 0x615   : > { %v1534_v52 = vpop.xlane.xlu0 %1533 }
 0x616   : > { %v1558_v3 = vsel %vm4359_vm13, %v1556_v36, %v1534_v52 }
 0x619   : > { %v1542_v35 = vpop.xlane.xlu0 %1541 }
 0x61a   : > { %v1481_v53 = vpop.xlane.xlu1 %1480  ;;  %v1560_v49 = vsel %vm4358_vm10, %v1558_v3, %v1542_v35 }
 0x61d   : > { %v1097_v4 = vpop.permute.xlu0 %1096 }
 0x61e   : > { %v1489_v28 = vpop.xlane.xlu1 %1488  ;;  %2900 = vmatpush3.bf16.msra.mxu1 %v1097_v4 }
 0x61f   : > { %2911 = vmatprep.subr.bf16.mxu1 %v3169_v22  ;;  %v1547_v1 = vsel %vm1215_vm11, %v1481_v53, %v1489_v28 }
 0x621   : > { %2902 = vmatmul.mubr.msk.bf16.vlgmr.msra.gmra.mrb[4].mxu1 %vm910_vm2, %v1095_v57 }
 0x622   : > { %v1497_v55 = vpop.xlane.xlu1 %1496  ;;  %2913 = vmatprep.mubr.msk.bf16.mxu1 %vm4390_vm9, %v3169_v22 }
 0x623   : > { %v1549_v57 = vsel %vm1218_vm8, %v1547_v1, %v1497_v55 }
 0x626   : > { %v1505_v56 = vpop.xlane.xlu1 %1504 }
 0x627   : > { %v1551_v6 = vsel %vm1221_vm14, %v1549_v57, %v1505_v56 }
 0x62a   : > { %v1513_v60 = vpop.xlane.xlu1 %1512 }
 0x62b   : > { %v1553_v34 = vsel %vm4355_vm1, %v1551_v6, %v1513_v60 }
 0x62e   : > { %v1521_v61 = vpop.xlane.xlu1 %1520 }
 0x62f   : > { %v1555_v38 = vsel %vm1227_vm15, %v1553_v34, %v1521_v61 }
 0x632   : > { %v1529_v62 = vpop.xlane.xlu1 %1528 }
 0x633   : > { %v1557_v8 = vsel %vm4360_vm0, %v1555_v38, %v1529_v62 }
 0x636   : > { %v1537_v7 = vpop.xlane.xlu1 %1536 }
 0x637   : > { %v1559_v48 = vsel %vm4359_vm13, %v1557_v8, %v1537_v7 }
 0x63a   : > { %v1545_v40 = vpop.xlane.xlu1 %1544 }
 0x63b   : > { %v1561_v39 = vsel %vm4358_vm10, %v1559_v48, %v1545_v40 }
 0x63c   : > { %v3061_v50 = vpack.i.bf16 %v1561_v39, %v1560_v49 }
 0x63e   : > { %v1428_v46 = vpop.permute.xlu1 %1427  ;;  %3062 = vrot.lane.b32.xlu0 %v3061_v50, %s3193_s4 }
 0x63f   : > { %2912 = vmatpush3.bf16.msra.mxu1 %v1428_v46 }
 0x640   : > { %2925 = vmatprep.subr.bf16.mxu1 %v3169_v22 }
 0x642   : > { %2914 = vmatmul.mubr.msk.bf16.vlgmr.msra.gmra.mrb[8].mxu1 %vm910_vm2, %v1426_v30 }
 0x643   : > { %2929 = vmatprep.mubr.msk.bf16.mxu1 %vm4390_vm9, %v3169_v22 }
 0x656   : > { %v1150_v51 = vpop.xlane.xlu0 %1149 }
 0x65a   : > { %v1155_v35 = vpop.xlane.xlu0 %1154 }
 0x65e   : > { %v1163_v4 = vpop.xlane.xlu0 %1162 }
 0x662   : > { %v1171_v55 = vpop.xlane.xlu0 %1170 }
 0x666   : > { %v1179_v60 = vpop.xlane.xlu0 %1178 }
 0x66a   : > { %v1187_v62 = vpop.xlane.xlu0 %1186 }
 0x66e   : > { %v1195_v54 = vpop.xlane.xlu0 %1194 }
 0x66f   : > { %v1147_v52 = vpop.xlane.xlu1 %1146 }
 0x670   : > { %v1216_v63 = vsel %vm1215_vm11, %v1147_v52, %v1155_v35 }
 0x671   : > { %v1219_v43 = vsel %vm1218_vm8, %v1216_v63, %v1163_v4 }
 0x672   : > { %v1222_v30 = vsel %vm1221_vm14, %v1219_v43, %v1171_v55  ;;  %v1203_v57 = vpop.xlane.xlu0 %1202 }
 0x673   : > { %v1158_v53 = vpop.xlane.xlu1 %1157  ;;  %v1225_v32 = vsel %vm4355_vm1, %v1222_v30, %v1179_v60 }
 0x674   : > { %v1228_v2 = vsel %vm1227_vm15, %v1225_v32, %v1187_v62  ;;  %v1217_v7 = vsel %vm1215_vm11, %v1150_v51, %v1158_v53  ;;  %v3114_v53 = vld [vmem:[%s4328_s13] sm:$0xff]  }
 0x675   : > { %v1231_v10 = vsel %vm4360_vm0, %v1228_v2, %v1195_v54  ;;  %v3116_v62 = vld [vmem:[%s4322_s7] sm:$0xff]  }
 0x676   : > { %v1211_v33 = vpop.xlane.xlu0 %1210  ;;  %v1234_v36 = vsel %vm4359_vm13, %v1231_v10, %v1203_v57  ;;  %2926 = vmatpush3.bf16.msra.mxu1 %v3116_v62 }
 0x677   : > { %v1166_v28 = vpop.xlane.xlu1 %1165  ;;  %v1237_v46 = vsel %vm4358_vm10, %v1234_v36, %v1211_v33  ;;  %2927 = vmatprep.subr.bf16.mxu1 %v3169_v22  ;;  %v3118_v33 = vld [vmem:[%s4332_s17] sm:$0xff]  }
 0x678   : > { %v1220_v34 = vsel %vm1218_vm8, %v1217_v7, %v1166_v28  ;;  %v3115_v28 = vld [vmem:[%s4328_s13 + $0x8] sm:$0xff]  }
 0x67a   : > { %2928 = vmatpush3.bf16.msra.mxu1 %v3117_v44 }
 0x67b   : > { %v1174_v56 = vpop.xlane.xlu1 %1173  ;;  %2941 = vmatprep.subr.bf16.mxu1 %v3169_v22 }
 0x67c   : > { %v1223_v37 = vsel %vm1221_vm14, %v1220_v34, %v1174_v56 }
 0x67f   : > { %v1182_v61 = vpop.xlane.xlu1 %1181 }
 0x680   : > { %v1226_v38 = vsel %vm4355_vm1, %v1223_v37, %v1182_v61  ;;  %vm4357_vm1 = vcmask 146432   ;;  %v2813_v37 = vld [vmem:[%s4329_s14] ss:$0 sm:$0xff] }
 0x683   : > { %v1190_v1 = vpop.xlane.xlu1 %1189 }
 0x684   : > { %v1229_v8 = vsel %vm1227_vm15, %v1226_v38, %v1190_v1 }
 0x687   : > { %v1198_v31 = vpop.xlane.xlu1 %1197 }
 0x688   : > { %v1232_v48 = vsel %vm4360_vm0, %v1229_v8, %v1198_v31  ;;  %vm4397_vm0 = vcmp.eq.s32.totalorder %v3532_v41, 4294967292 }
 0x68b   : > { %v1206_v6 = vpop.xlane.xlu1 %1205 }
 0x68c   : > { %v1235_v49 = vsel %vm4359_vm13, %v1232_v48, %v1206_v6  ;;  %vm4396_vm13 = vcmp.eq.s32.totalorder %v3491_v42, 4 }
 0x68f   : > { %v1214_v3 = vpop.xlane.xlu1 %1213 }
 0x690   : > { %v1238_v51 = vsel %vm4358_vm10, %v1235_v49, %v1214_v3  ;;  %v3119_v3 = vld [vmem:[%s4332_s17 + $0x8] sm:$0xff]   ;;  %vm4395_vm10 = vcmp.eq.s32.totalorder %v3491_v42, 3 }
 0x6b0   : > { %v3063_v40 = vpop.permute.xlu0 %3062 }
 0x6b1   : > { %v3065_v39 = vunpack.i.h.bf16 %v3063_v40  ;;  %v3064_v50 = vunpack.i.l.bf16 %v3063_v40 }
 0x6b3   : > { %v1582_v52 = vsel %vm4356_vm12, %v1238_v51, %v3065_v39  ;;  %v1581_v35 = vsel %vm4356_vm12, %v1237_v46, %v3064_v50  ;;  %vm4391_vm12 = vcmask 261120  }
 0x6b4   : > { %v1583_v4 = vpack.c.bf16 %v1582_v52, %v1581_v35 }
 0x6b6   : > { %2922 = vmatmul.mubr.msk.bf16.vlgmr.msra.gmra.mrb[12].mxu0 %vm4357_vm1, %v1583_v4  ;;  %vm4392_vm1 = vmmov %vm4391_vm12 }
 0x6b7   : > { %2934 = vmatpush3.bf16.msra.mxu0 %v3114_v53  ;;  %2937 = vmatprep.mubr.msk.bf16.mxu0 %vm4390_vm9, %v3169_v22  ;;  %v2807_v53 = vld [vmem:[%s4323_s8] ss:$0 sm:$0xff] }
 0x6b8   : > { %2935 = vmatprep.subr.bf16.mxu0 %v3169_v22 }
 0x6bb   : > { %2936 = vmatpush3.bf16.msra.mxu0 %v3115_v28 }
 0x6bc   : > { %2949 = vmatprep.subr.bf16.mxu0 %v3169_v22 }
 0x6be   : > { %2938 = vmatmul.mubr.msk.bf16.vlgmr.msra.gmra.mrb[16].mxu0 %vm4391_vm12, %v1737_v47 }
 0x6bf   : > { %2951 = vmatprep.mubr.msk.bf16.mxu0 %vm4390_vm9, %v3169_v22 }
 0x6f4   : > { %v1136_v55 = vpop.f32.mrb[4].mxu1 }
 0x6f5   : > { %v2903_v56 = vpop.f32.mrb[5].mxu1 }
 0x6f6   : > { %v1139_v60 = vpop.f32.mrb[6].mxu1 }
 0x6f7   : > { %v2904_v61 = vpop.f32.mrb[7].mxu1 }
 0x715   : > { %v1467_v45 = vpop.f32.mrb[8].mxu1 }
 0x716   : > { %1564 = vrot.lane.b32.xlu1 %v1467_v45, %s3194_s30  ;;  %v2915_v47 = vpop.f32.mrb[9].mxu1 }
 0x717   : > { %v1470_v63 = vpop.f32.mrb[10].mxu1 }
 0x718   : > { %v2916_v1 = vpop.f32.mrb[11].mxu1 }
 0x71a   : > { %1566 = vrot.lane.b32.xlu1 %v1470_v63, %s3194_s30 }
 0x788   : > { %v1565_v54 = vpop.permute.xlu1 %1564 }
 0x789   : > { %v1570_v43 = vsel %vm910_vm2, %v1136_v55, %v1565_v54  ;;  %v1638_v30 = vpop.f32.mrb[12].mxu0 }
 0x78a   : > { %v1645_v31 = vadd.f32 %v1638_v30, %v1570_v43  ;;  %v2923_v32 = vpop.f32.mrb[13].mxu0 }
 0x78b   : > { %v1641_v57 = vpop.f32.mrb[14].mxu0 }
 0x78c   : > { %v1567_v2 = vpop.permute.xlu1 %1566  ;;  %v2924_v6 = vpop.f32.mrb[15].mxu0 }
 0x78d   : > { %v1571_v7 = vsel %vm910_vm2, %v1139_v60, %v1567_v2 }
 0x78e   : > { %v1646_v10 = vadd.f32 %v1641_v57, %v1571_v7 }
 0x790   : > { %v1647_v34 = vpack.c.bf16 %v1646_v10, %v1645_v31 }
 0x791   : > { %v1798_v38 = vpop.f32.mrb[16].mxu0 }
 0x792   : > { %2930 = vmatmul.mubr.msk.bf16.vlgmr.msra.gmra.mrb[12].mxu1 %vm4391_vm12, %v1647_v34  ;;  %v2939_v36 = vpop.f32.mrb[17].mxu0  ;;  %v1799_v48 = vadd.f32 %v2813_v37, %v1798_v38 }
 0x793   : > { %v1801_v8 = vpop.f32.mrb[18].mxu0  ;;  %2942 = vmatpush3.bf16.msra.mxu1 %v3118_v33  ;;  %2945 = vmatprep.mubr.msk.bf16.mxu1 %vm4390_vm9, %v3169_v22 }
 0x794   : > { %v1802_v40 = vadd.f32 %v2813_v37, %v1801_v8  ;;  %v2940_v49 = vpop.f32.mrb[19].mxu0  ;;  %2943 = vmatprep.subr.bf16.mxu1 %v3169_v22 }
 0x796   : > { %v3891_v39 = vpack.c.bf16 %v1802_v40, %v1799_v48 }
 0x797   : > { %2944 = vmatpush3.bf16.msra.mxu1 %v3119_v3 }
 0x798   : > { %2193 = vrot.lane.b32.xlu1 %v3891_v39, %s3172_s27  ;;  %1869 = vrot.lane.b32.xlu0 %v3891_v39, %s3171_s26 }
 0x799   : > { %2955 = vmatprep.subr.bf16.mxu1 %v3169_v22 }
 0x79a   : > { %2946 = vmatmul.mubr.msk.bf16.vlgmr.msra.gmra.mrb[16].mxu1 %vm4391_vm12, %v3891_v39 }
 0x79b   : > { %2957 = vmatprep.mubr.msk.bf16.mxu1 %vm4390_vm9, %v3169_v22 }
 0x79c   : > { %2191 = vrot.lane.b32.xlu0 %v3891_v39, %s3173_s28 }
 0x80a   : > { %v1870_v50 = vpop.permute.xlu0 %1869  ;;  %v2194_v51 = vpop.permute.xlu1 %2193 }
 0x80b   : > { %v1874_v46 = vsel %vm910_vm2, %v1870_v50, 0  ;;  %v2199_v52 = vsel %vm910_vm2, %v2194_v51, 0 }
 0x80c   : > { %2950 = vmatpush3.bf16.xpose.msra.mxu0 %v1874_v46 }
 0x80d   : > { %2961 = vmatprep.subr.bf16.mxu0 %v3169_v22 }
 0x80e   : > { %v2192_v35 = vpop.permute.xlu0 %2191 }
 0x813   : > { %2952 = vmatmul.mubr.msk.bf16.vlgmr.msra.gmra.mrb[20].mxu0 %vm910_vm2, %v3891_v39 }
 0x814   : > { %2962 = vmatpush3.bf16.xpose.msra.mxu0 %v2199_v52  ;;  %2963 = vmatprep.mubr.msk.bf16.mxu0 %vm4390_vm9, %v3169_v22 }
 0x815   : > { %2973 = vmatprep.subr.bf16.mxu0 %v3169_v22 }
 0x81b   : > { %2964 = vmatmul.mubr.msk.bf16.vlgmr.msra.gmra.mrb[24].mxu0 %vm910_vm2, %v2192_v35 }
 0x81c   : > { %2977 = vmatprep.mubr.msk.bf16.mxu0 %vm4390_vm9, %v3169_v22 }
 0x865   : > { %v1708_v4 = vpop.f32.mrb[12].mxu1 }
 0x866   : > { %v1709_v28 = vadd.f32 %v2807_v53, %v1708_v4  ;;  %v2931_v55 = vpop.f32.mrb[13].mxu1 }
 0x867   : > { %v1711_v56 = vpop.f32.mrb[14].mxu1 }
 0x868   : > { %v1715_v60 = vadd.f32 %v1709_v28, %v3325_v5  ;;  %v1712_v61 = vadd.f32 %v2807_v53, %v1711_v56  ;;  %v2932_v62 = vpop.f32.mrb[15].mxu1 }
 0x86a   : > { %1717 = vst.msk [vmem:[%s671_s24] sm:$0xff] %vm4391_vm12, %v1715_v60  ;;  %v1716_v44 = vadd.f32 %v1712_v61, %v3332_v9  ;;  %vm4394_vm12 = vcmp.eq.s32.totalorder %v3491_v42, 2 }
 0x86c   : > { %1718 = vst.msk [vmem:[%s671_s24 + $0x8] sm:$0xff] %vm4392_vm1, %v1716_v44  ;;  %vm4393_vm1 = vcmp.eq.s32.totalorder %v3491_v42, 1  ;;  %s676_s24 = scalar_lea.vmem %s4335_s20, %s3312_s23 }
 0x86d   : > { %v1859_v45 = vpop.f32.mrb[16].mxu1 }
 0x86e   : > { %v1866_v47 = vmul.f32 0.25, %v1859_v45  ;;  %v2947_v63 = vpop.f32.mrb[17].mxu1 }
 0x86f   : > { %v1862_v1 = vpop.f32.mrb[18].mxu1 }
 0x870   : > { %2269 = vperm.xlu0 %3068, %v1866_v47   ;;  %2245 = vperm.xlu1 %3066, %v1866_v47   ;;  %v2948_v54 = vpop.f32.mrb[19].mxu1  ;;  %v1867_v43 = vmul.f32 0.25, %v1862_v1 }
 0x874   : > { %3071 = vset.pattern.permute.xlu0 %v3183_v19  ;;  %3067 = vset.pattern.permute.xlu1 %v3176_v12 }
 0x875   : > { %2305 = vperm.xlu0 %3071, %v1866_v47   ;;  %2257 = vperm.xlu1 %3067, %v1866_v47  }
 0x879   : > { %3074 = vset.pattern.permute.xlu0 %v3175_v59  ;;  %3069 = vset.pattern.permute.xlu1 %v3179_v15 }
 0x87a   : > { %2341 = vperm.xlu0 %3074, %v1866_v47   ;;  %2281 = vperm.xlu1 %3069, %v1866_v47  }
 0x87e   : > { %3075 = vset.pattern.permute.xlu0 %v3174_v58  ;;  %3070 = vset.pattern.permute.xlu1 %v3181_v17 }
 0x87f   : > { %2293 = vperm.xlu1 %3070, %v1866_v47   ;;  %2249 = vperm.xlu0 %3075, %v1867_v43  }
 0x883   : > { %3072 = vset.pattern.permute.xlu1 %v3178_v14  ;;  %3078 = vset.pattern.permute.xlu0 %v3179_v15 }
 0x884   : > { %2317 = vperm.xlu1 %3072, %v1866_v47   ;;  %2285 = vperm.xlu0 %3078, %v1867_v43  }
 0x888   : > { %3073 = vset.pattern.permute.xlu1 %v3185_v21  ;;  %3081 = vset.pattern.permute.xlu0 %v3178_v14 }
 0x889   : > { %2329 = vperm.xlu1 %3073, %v1866_v47   ;;  %2321 = vperm.xlu0 %3081, %v1867_v43  }
 0x88d   : > { %3076 = vset.pattern.permute.xlu1 %v3176_v12  ;;  %3086 = vset.pattern.permute.xlu0 %v3180_v16 }
 0x88e   : > { %2261 = vperm.xlu1 %3076, %v1867_v43   ;;  %1946 = vperm.xlu0 %3086, %v1866_v47  }
 0x892   : > { %3077 = vset.pattern.permute.xlu1 %v3177_v13  ;;  %3089 = vset.pattern.permute.xlu0 %v3182_v18 }
 0x893   : > { %2273 = vperm.xlu1 %3077, %v1867_v43   ;;  %1982 = vperm.xlu0 %3089, %v1866_v47  }
 0x897   : > { %3079 = vset.pattern.permute.xlu1 %v3181_v17  ;;  %3092 = vset.pattern.permute.xlu0 %v3184_v20 }
 0x898   : > { %2297 = vperm.xlu1 %3079, %v1867_v43   ;;  %2018 = vperm.xlu0 %3092, %v1866_v47  }
 0x89c   : > { %3080 = vset.pattern.permute.xlu1 %v3183_v19  ;;  %3093 = vset.pattern.permute.xlu0 %v3168_v0 }
 0x89d   : > { %2309 = vperm.xlu1 %3080, %v1867_v43   ;;  %1926 = vperm.xlu0 %3093, %v1867_v43  }
 0x8a1   : > { %3082 = vset.pattern.permute.xlu1 %v3185_v21  ;;  %3096 = vset.pattern.permute.xlu0 %v3186_v23 }
 0x8a2   : > { %2333 = vperm.xlu1 %3082, %v1867_v43   ;;  %1962 = vperm.xlu0 %3096, %v1867_v43  }
 0x8a6   : > { %3083 = vset.pattern.permute.xlu1 %v3175_v59  ;;  %3099 = vset.pattern.permute.xlu0 %v3187_v24 }
 0x8a7   : > { %2345 = vperm.xlu1 %3083, %v1867_v43   ;;  %1998 = vperm.xlu0 %3099, %v1867_v43  }
 0x8ab   : > { %3084 = vset.pattern.permute.xlu1 %v3168_v0  ;;  %3107 = vset.pattern.permute.xlu0 %v3175_v59 }
 0x8ac   : > { %1921 = vperm.xlu1 %3084, %v1866_v47  }
 0x8b0   : > { %3085 = vset.pattern.permute.xlu1 %v3188_v25 }
 0x8b1   : > { %1934 = vperm.xlu1 %3085, %v1866_v47  }
 0x8b5   : > { %3087 = vset.pattern.permute.xlu1 %v3186_v23 }
 0x8b6   : > { %1958 = vperm.xlu1 %3087, %v1866_v47  }
 0x8ba   : > { %3088 = vset.pattern.permute.xlu1 %v3189_v26 }
 0x8bb   : > { %1970 = vperm.xlu1 %3088, %v1866_v47  }
 0x8bf   : > { %3090 = vset.pattern.permute.xlu1 %v3187_v24 }
 0x8c0   : > { %1994 = vperm.xlu1 %3090, %v1866_v47  }
 0x8c4   : > { %3091 = vset.pattern.permute.xlu1 %v3190_v27 }
 0x8c5   : > { %2006 = vperm.xlu1 %3091, %v1866_v47  }
 0x8c9   : > { %3094 = vset.pattern.permute.xlu1 %v3188_v25 }
 0x8ca   : > { %1938 = vperm.xlu1 %3094, %v1867_v43  }
 0x8ce   : > { %3095 = vset.pattern.permute.xlu1 %v3180_v16 }
 0x8cf   : > { %1950 = vperm.xlu1 %3095, %v1867_v43  }
 0x8d3   : > { %3097 = vset.pattern.permute.xlu1 %v3189_v26 }
 0x8d4   : > { %1974 = vperm.xlu1 %3097, %v1867_v43  }
 0x8d8   : > { %3098 = vset.pattern.permute.xlu1 %v3182_v18 }
 0x8d9   : > { %1986 = vperm.xlu1 %3098, %v1867_v43  }
 0x8dd   : > { %3100 = vset.pattern.permute.xlu1 %v3190_v27 }
 0x8de   : > { %2010 = vperm.xlu1 %3100, %v1867_v43  }
 0x8e2   : > { %3101 = vset.pattern.permute.xlu1 %v3184_v20 }
 0x8e3   : > { %2022 = vperm.xlu1 %3101, %v1867_v43  }
 0x8e6   : > { %v3961_v0 = vpop.f32.mrb[20].mxu0 }
 0x8e7   : > { %v2953_v58 = vpop.f32.mrb[21].mxu0 }
 0x8e8   : > { %v3963_v59 = vpop.f32.mrb[22].mxu0 }
 0x8e9   : > { %v2954_v12 = vpop.f32.mrb[23].mxu0 }
 0x8ee   : > { %v2235_v13 = vpop.f32.mrb[24].mxu0 }
 0x8ef   : > { %v2246_v14 = vpop.permute.xlu1 %2245  ;;  %v2242_v15 = vmul.f32 0.25, %v2235_v13  ;;  %v2965_v16 = vpop.f32.mrb[25].mxu0 }
 0x8f0   : > { %v2252_v17 = vsel %vm712_vm3, %v2246_v14, 0.0  ;;  %v2238_v18 = vpop.f32.mrb[26].mxu0  ;;  %v2270_v24 = vpop.permute.xlu0 %2269 }
 0x8f1   : > { %v2966_v19 = vpop.f32.mrb[27].mxu0  ;;  %v2254_v21 = vadd.f32 %v2252_v17, %v2242_v15  ;;  %v2276_v26 = vsel %vm716_vm5, %v2270_v24, 0.0  ;;  %v2243_v52 = vmul.f32 0.25, %v2238_v18 }
 0x8f4   : > { %v2258_v23 = vpop.permute.xlu1 %2257  ;;  %v2306_v32 = vpop.permute.xlu0 %2305 }
 0x8f5   : > { %v2264_v20 = vsel %vm714_vm4, %v2258_v23, 0.0  ;;  %v2312_v10 = vsel %vm4393_vm1, %v2306_v32, 0.0  ;;  %vm4398_vm1 = vcmp.eq.f32.partialorder %v3521_v29, 0.0 }
 0x8f6   : > { %v2266_v25 = vadd.f32 %v2264_v20, %v2254_v21 }
 0x8f8   : > { %v2278_v30 = vadd.f32 %v2276_v26, %v2266_v25  ;;  %v1917_v26 = vmul.f32 0.25, %v3961_v0 }
 0x8f9   : > { %v2282_v27 = vpop.permute.xlu1 %2281  ;;  %v2342_v34 = vpop.permute.xlu0 %2341 }
 0x8fa   : > { %v2288_v31 = vsel %vm718_vm6, %v2282_v27, 0.0  ;;  %v2348_v49 = vsel %vm4396_vm13, %v2342_v34, 0.0  ;;  %vm4402_vm13 = vcmp.eq.s32.totalorder %v3532_v41, 0 }
 0x8fb   : > { %v2290_v57 = vadd.f32 %v2288_v31, %v2278_v30 }
 0x8fe   : > { %v2294_v2 = vpop.permute.xlu1 %2293  ;;  %v2250_v48 = vpop.permute.xlu0 %2249 }
 0x8ff   : > { %v2300_v6 = vsel %vm720_vm7, %v2294_v2, 0.0  ;;  %v2253_v46 = vsel %vm4397_vm0, %v2250_v48, 0.0  ;;  %vm4401_vm0 = vcmp.eq.s32.totalorder %v3532_v41, 4294967295 }
 0x900   : > { %v2302_v7 = vadd.f32 %v2300_v6, %v2290_v57  ;;  %v2255_v28 = vadd.f32 %v2253_v46, %v2243_v52 }
 0x902   : > { %v2314_v37 = vadd.f32 %v2312_v10, %v2302_v7 }
 0x903   : > { %v2318_v33 = vpop.permute.xlu1 %2317  ;;  %v2286_v61 = vpop.permute.xlu0 %2285 }
 0x904   : > { %v2324_v38 = vsel %vm4394_vm12, %v2318_v33, 0.0  ;;  %vm4399_vm12 = vcmp.eq.s32.totalorder %v3532_v41, 4294967293  ;;  %v2289_v44 = vsel %vm4401_vm0, %v2286_v61, 0.0  ;;  %vm4406_vm0 = vcmp.eq.s32.totalorder %v3532_v41, 4 }
 0x905   : > { %v2326_v36 = vadd.f32 %v2324_v38, %v2314_v37 }
 0x908   : > { %v2330_v8 = vpop.permute.xlu1 %2329  ;;  %v2322_v58 = vpop.permute.xlu0 %2321 }
 0x909   : > { %v2336_v3 = vsel %vm4395_vm10, %v2330_v8, 0.0  ;;  %vm4400_vm10 = vcmp.eq.s32.totalorder %v3532_v41, 4294967294 }
 0x90a   : > { %v2338_v40 = vadd.f32 %v2336_v3, %v2326_v36 }
 0x90c   : > { %v2350_v50 = vadd.f32 %v2348_v49, %v2338_v40 }
 0x90d   : > { %v2262_v51 = vpop.permute.xlu1 %2261  ;;  %v1947_v32 = vpop.permute.xlu0 %1946 }
 0x90e   : > { %v3987_v35 = vsel %vm4398_vm1, -10000.0, %v2350_v50  ;;  %v2265_v53 = vsel %vm4399_vm12, %v2262_v51, 0.0  ;;  %vm4403_vm1 = vcmp.eq.s32.totalorder %v3532_v41, 1  ;;  %vm4404_vm12 = vcmp.eq.s32.totalorder %v3532_v41, 2 }
 0x90f   : > { %v2354_v4 = vsel %vm910_vm2, %v3987_v35, -inf  ;;  %v2267_v55 = vadd.f32 %v2265_v53, %v2255_v28  ;;  %v2325_v13 = vsel %vm4404_vm12, %v2322_v58, 0.0  ;;  %v1953_v2 = vsel %vm716_vm5, %v1947_v32, 0.0 }
 0x910   : > { %2355 = vmax.xlane.f32.xlu1 %v2354_v4  ;;  %vm4409_vm12 = vcmp.eq.s32.totalorder %v3491_v42, 2 }
 0x912   : > { %v2274_v56 = vpop.permute.xlu1 %2273  ;;  %v1983_v33 = vpop.permute.xlu0 %1982 }
 0x913   : > { %v2277_v60 = vsel %vm4400_vm10, %v2274_v56, 0.0  ;;  %vm4405_vm10 = vcmp.eq.s32.totalorder %v3532_v41, 3  ;;  %v1918_v56 = vmul.f32 0.25, %v3963_v59 }
 0x914   : > { %v2279_v62 = vadd.f32 %v2277_v60, %v2267_v55 }
 0x916   : > { %v2291_v47 = vadd.f32 %v2289_v44, %v2279_v62 }
 0x917   : > { %v2298_v45 = vpop.permute.xlu1 %2297  ;;  %v2019_v3 = vpop.permute.xlu0 %2018 }
 0x918   : > { %v2301_v63 = vsel %vm4402_vm13, %v2298_v45, 0.0  ;;  %vm4407_vm13 = vcmp.eq.f32.partialorder %v3562_v11, 0.0 }
 0x919   : > { %v2303_v1 = vadd.f32 %v2301_v63, %v2291_v47 }
 0x91c   : > { %v2310_v54 = vpop.permute.xlu1 %2309  ;;  %v1927_v51 = vpop.permute.xlu0 %1926 }
 0x91d   : > { %v2313_v43 = vsel %vm4403_vm1, %v2310_v54, 0.0  ;;  %vm4408_vm1 = vcmp.eq.s32.totalorder %v3491_v42, 1 }
 0x91e   : > { %v2315_v12 = vadd.f32 %v2313_v43, %v2303_v1  ;;  %v1989_v36 = vsel %vm4408_vm1, %v1983_v33, 0.0  ;;  %vm4413_vm1 = vcmp.eq.f32.partialorder %v3521_v29, 0.0 }
 0x920   : > { %v2327_v15 = vadd.f32 %v2325_v13, %v2315_v12 }
 0x921   : > { %v2334_v14 = vpop.permute.xlu1 %2333  ;;  %v1963_v1 = vpop.permute.xlu0 %1962 }
 0x922   : > { %v2337_v16 = vsel %vm4405_vm10, %v2334_v14, 0.0  ;;  %vm4410_vm10 = vcmp.eq.s32.totalorder %v3491_v42, 3 }
 0x923   : > { %v2339_v17 = vadd.f32 %v2337_v16, %v2327_v15 }
 0x926   : > { %v2346_v18 = vpop.permute.xlu1 %2345  ;;  %v1999_v15 = vpop.permute.xlu0 %1998 }
 0x927   : > { %v2349_v19 = vsel %vm4406_vm0, %v2346_v18, 0.0  ;;  %vm4411_vm0 = vcmp.eq.s32.totalorder %v3491_v42, 4 }
 0x928   : > { %v2351_v21 = vadd.f32 %v2349_v19, %v2339_v17  ;;  %v2025_v53 = vsel %vm4411_vm0, %v2019_v3, 0.0  ;;  %vm4416_vm0 = vcmp.eq.s32.totalorder %v3532_v41, 4294967295 }
 0x929   : > { %v1966_v59 = vsel %vm4416_vm0, %v1963_v1, 0.0  ;;  %vm4421_vm0 = vcmp.eq.s32.totalorder %v3532_v41, 4 }
 0x92a   : > { %v4009_v23 = vsel %vm4407_vm13, -10000.0, %v2351_v21  ;;  %vm4412_vm13 = vcmp.eq.s32.totalorder %v3532_v41, 4294967292 }
 0x92b   : > { %v1922_v20 = vpop.permute.xlu1 %1921  ;;  %v2357_v24 = vsel %vm910_vm2, %v4009_v23, -inf  ;;  %v1930_v28 = vsel %vm4412_vm13, %v1927_v51, 0.0  ;;  %vm4417_vm13 = vcmp.eq.s32.totalorder %v3532_v41, 0 }
 0x92c   : > { %2358 = vmax.xlane.f32.xlu0 %v2357_v24  ;;  %v1929_v25 = vsel %vm712_vm3, %v1922_v20, 0.0  ;;  %v1932_v44 = vadd.f32 %v1930_v28, %v1918_v56 }
 0x92d   : > { %v1931_v27 = vadd.f32 %v1929_v25, %v1917_v26 }
 0x930   : > { %v1935_v30 = vpop.permute.xlu1 %1934 }
 0x931   : > { %v1941_v31 = vsel %vm714_vm4, %v1935_v30, 0.0 }
 0x932   : > { %v1943_v57 = vadd.f32 %v1941_v31, %v1931_v27 }
 0x934   : > { %v1955_v7 = vadd.f32 %v1953_v2, %v1943_v57 }
 0x935   : > { %v1959_v6 = vpop.permute.xlu1 %1958 }
 0x936   : > { %v1965_v10 = vsel %vm718_vm6, %v1959_v6, 0.0 }
 0x937   : > { %v1967_v34 = vadd.f32 %v1965_v10, %v1955_v7 }
 0x93a   : > { %v1971_v37 = vpop.permute.xlu1 %1970 }
 0x93b   : > { %v1977_v0 = vsel %vm720_vm7, %v1971_v37, 0.0 }
 0x93c   : > { %v1979_v38 = vadd.f32 %v1977_v0, %v1967_v34 }
 0x93e   : > { %v1991_v48 = vadd.f32 %v1989_v36, %v1979_v38 }
 0x93f   : > { %v1995_v8 = vpop.permute.xlu1 %1994 }
 0x940   : > { %v2001_v40 = vsel %vm4409_vm12, %v1995_v8, 0.0  ;;  %vm4414_vm12 = vcmp.eq.s32.totalorder %v3532_v41, 4294967293 }
 0x941   : > { %v2003_v49 = vadd.f32 %v2001_v40, %v1991_v48 }
 0x944   : > { %v2007_v50 = vpop.permute.xlu1 %2006 }
 0x945   : > { %v2013_v46 = vsel %vm4410_vm10, %v2007_v50, 0.0  ;;  %vm4415_vm10 = vcmp.eq.s32.totalorder %v3532_v41, 4294967294 }
 0x946   : > { %v2015_v52 = vadd.f32 %v2013_v46, %v2003_v49 }
 0x948   : > { %v2027_v4 = vadd.f32 %v2025_v53, %v2015_v52 }
 0x949   : > { %v1939_v55 = vpop.permute.xlu1 %1938 }
 0x94a   : > { %v2029_v60 = vsel %vm4413_vm1, -10000.0, %v2027_v4  ;;  %v1942_v61 = vsel %vm4414_vm12, %v1939_v55, 0.0  ;;  %vm4418_vm1 = vcmp.eq.s32.totalorder %v3532_v41, 1  ;;  %vm4419_vm12 = vcmp.eq.s32.totalorder %v3532_v41, 2 }
 0x94b   : > { %v2031_v62 = vsel %vm910_vm2, %v2029_v60, -inf  ;;  %v1944_v45 = vadd.f32 %v1942_v61, %v1932_v44  ;;  %v2002_v17 = vsel %vm4419_vm12, %v1999_v15, 0.0  ;;  %vm4424_vm12 = vcmp.eq.s32.totalorder %v3491_v42, 2 }
 0x94c   : > { %2032 = vmax.xlane.f32.xlu0 %v2031_v62 }
 0x94e   : > { %v1951_v47 = vpop.permute.xlu1 %1950 }
 0x94f   : > { %v1954_v63 = vsel %vm4415_vm10, %v1951_v47, 0.0  ;;  %vm4420_vm10 = vcmp.eq.s32.totalorder %v3532_v41, 3 }
 0x950   : > { %v1956_v54 = vadd.f32 %v1954_v63, %v1944_v45 }
 0x952   : > { %v1968_v29 = vadd.f32 %v1966_v59, %v1956_v54 }
 0x953   : > { %v1975_v43 = vpop.permute.xlu1 %1974 }
 0x954   : > { %v1978_v58 = vsel %vm4417_vm13, %v1975_v43, 0.0  ;;  %vm4422_vm13 = vcmp.eq.f32.partialorder %v3562_v11, 0.0 }
 0x955   : > { %v1980_v12 = vadd.f32 %v1978_v58, %v1968_v29 }
 0x958   : > { %v1987_v13 = vpop.permute.xlu1 %1986 }
 0x959   : > { %v1990_v14 = vsel %vm4418_vm1, %v1987_v13, 0.0  ;;  %vm4423_vm1 = vcmp.eq.s32.totalorder %v3491_v42, 1 }
 0x95a   : > { %v1992_v16 = vadd.f32 %v1990_v14, %v1980_v12 }
 0x95c   : > { %v2004_v19 = vadd.f32 %v2002_v17, %v1992_v16 }
 0x95d   : > { %v2011_v18 = vpop.permute.xlu1 %2010 }
 0x95e   : > { %v2014_v21 = vsel %vm4420_vm10, %v2011_v18, 0.0  ;;  %vm4425_vm10 = vcmp.eq.s32.totalorder %v3491_v42, 3 }
 0x95f   : > { %v2016_v20 = vadd.f32 %v2014_v21, %v2004_v19 }
 0x962   : > { %v2023_v24 = vpop.permute.xlu1 %2022 }
 0x963   : > { %v2026_v25 = vsel %vm4421_vm0, %v2023_v24, 0.0  ;;  %vm4426_vm0 = vcmp.eq.s32.totalorder %v3532_v41, 4294967292 }
 0x964   : > { %v2028_v26 = vadd.f32 %v2026_v25, %v2016_v20 }
 0x966   : > { %v2030_v27 = vsel %vm4422_vm13, -10000.0, %v2028_v26  ;;  %vm4427_vm13 = vcmp.eq.s32.totalorder %v3532_v41, 4294967293 }
 0x967   : > { %v2034_v30 = vsel %vm910_vm2, %v2030_v27, -inf }
 0x968   : > { %2035 = vmax.xlane.f32.xlu1 %v2034_v30 }
 0x99d   : > { %v2356_v31 = vpop.xlane.xlu1 %2355 }
 0x99e   : > { %v2360_v32 = vsub.f32 %v3987_v35, %v2356_v31 }
 0x9a0   : > { %v2362_v57 = vmul.f32 1.442695, %v2360_v32 }
 0x9a2   : > { %3144 = vpow2.f32 %v2362_v57 }
 0x9ac   : > { %v3145_v2 = vpop.eup %3144 }
 0x9ad   : > { %v2366_v6 = vsel %vm910_vm2, %v3145_v2, 0.0 }
 0x9ae   : > { %2367 = vadd.xlane.f32.xlu0 %v2366_v6 }
 0x9b9   : > { %v2359_v7 = vpop.xlane.xlu0 %2358 }
 0x9ba   : > { %v2361_v10 = vsub.f32 %v4009_v23, %v2359_v7 }
 0x9bc   : > { %v2364_v33 = vmul.f32 1.442695, %v2361_v10 }
 0x9be   : > { %3146 = vpow2.f32 %v2364_v33 }
 0x9c8   : > { %v3147_v34 = vpop.eup %3146 }
 0x9c9   : > { %v2369_v11 = vsel %vm910_vm2, %v3147_v34, 0.0 }
 0x9ca   : > { %2370 = vadd.xlane.f32.xlu1 %v2369_v11 }
 0x9d9   : > { %v2033_v37 = vpop.xlane.xlu0 %2032 }
 0x9da   : > { %v2037_v0 = vsub.f32 %v2029_v60, %v2033_v37 }
 0x9dc   : > { %v2039_v38 = vmul.f32 1.442695, %v2037_v0 }
 0x9de   : > { %3148 = vpow2.f32 %v2039_v38 }
 0x9e8   : > { %v4061_v35 = vpop.eup %3148 }
 0x9e9   : > { %v2043_v36 = vsel %vm910_vm2, %v4061_v35, 0.0 }
 0x9ea   : > { %2044 = vadd.xlane.f32.xlu0 %v2043_v36 }
 0x9f5   : > { %v2036_v8 = vpop.xlane.xlu1 %2035 }
 0x9f6   : > { %v2038_v3 = vsub.f32 %v2030_v27, %v2036_v8 }
 0x9f8   : > { %v2041_v48 = vmul.f32 1.442695, %v2038_v3 }
 0x9fa   : > { %3150 = vpow2.f32 %v2041_v48 }
 0xa04   : > { %v4065_v23 = vpop.eup %3150 }
 0xa05   : > { %v2046_v40 = vsel %vm910_vm2, %v4065_v23, 0.0 }
 0xa06   : > { %2047 = vadd.xlane.f32.xlu1 %v2046_v40 }
 0xa3b   : > { %v2368_v49 = vpop.xlane.xlu0 %2367 }
 0xa3c   : > { %3152 = vrcp.f32 %v2368_v49 }
 0xa46   : > { %v3153_v50 = vpop.eup %3152 }
 0xa47   : > { %v4069_v46 = vmul.f32 %v3153_v50, %v3145_v2 }
 0xa49   : > { %v2426_v51 = vsel %vm712_vm3, %v4069_v46, 0.0  ;;  %v2434_v53 = vsel %vm714_vm4, %v4069_v46, 0.0  ;;  %v2442_v28 = vsel %vm716_vm5, %v4069_v46, 0.0  ;;  %v2450_v56 = vsel %vm718_vm6, %v4069_v46, 0.0 }
 0xa4a   : > { %v2428_v52 = vsel %vm910_vm2, %v2426_v51, 0.0  ;;  %v2436_v4 = vsel %vm910_vm2, %v2434_v53, 0.0  ;;  %v2444_v55 = vsel %vm910_vm2, %v2442_v28, 0.0  ;;  %v2452_v60 = vsel %vm910_vm2, %v2450_v56, 0.0 }
 0xa4b   : > { %2429 = vadd.xlane.f32.xlu0 %v2428_v52  ;;  %v2458_v62 = vsel %vm720_vm7, %v4069_v46, 0.0  ;;  %v2466_v45 = vsel %vm4423_vm1, %v4069_v46, 0.0  ;;  %v2474_v63 = vsel %vm4424_vm12, %v4069_v46, 0.0  ;;  %v2482_v43 = vsel %vm4425_vm10, %v4069_v46, 0.0 }
 0xa4c   : > { %v2460_v44 = vsel %vm910_vm2, %v2458_v62, 0.0  ;;  %v2468_v47 = vsel %vm910_vm2, %v2466_v45, 0.0  ;;  %v2476_v54 = vsel %vm910_vm2, %v2474_v63, 0.0  ;;  %v2484_v12 = vsel %vm910_vm2, %v2482_v43, 0.0 }
 0xa4d   : > { %vm4428_vm1 = vcmp.eq.s32.totalorder %v3491_v42, 4  ;;  %vm4429_vm12 = vcmp.eq.s32.totalorder %v3532_v41, 4294967294  ;;  %vm4430_vm10 = vcmp.eq.s32.totalorder %v3532_v41, 4294967295 }
 0xa4e   : > { %v2490_v14 = vsel %vm4428_vm1, %v4069_v46, 0.0  ;;  %vm4433_vm1 = vcmp.eq.s32.totalorder %v3532_v41, 2 }
 0xa4f   : > { %2437 = vadd.xlane.f32.xlu0 %v2436_v4  ;;  %v2492_v17 = vsel %vm910_vm2, %v2490_v14, 0.0 }
 0xa53   : > { %2445 = vadd.xlane.f32.xlu0 %v2444_v55 }
 0xa57   : > { %v2371_v61 = vpop.xlane.xlu1 %2370  ;;  %2453 = vadd.xlane.f32.xlu0 %v2452_v60 }
 0xa58   : > { %3154 = vrcp.f32 %v2371_v61 }
 0xa5b   : > { %2461 = vadd.xlane.f32.xlu0 %v2460_v44 }
 0xa5f   : > { %2469 = vadd.xlane.f32.xlu0 %v2468_v47 }
 0xa62   : > { %v3155_v1 = vpop.eup %3154 }
 0xa63   : > { %v4099_v59 = vmul.f32 %v3155_v1, %v3147_v34  ;;  %2477 = vadd.xlane.f32.xlu0 %v2476_v54 }
 0xa65   : > { %v2427_v29 = vsel %vm4426_vm0, %v4099_v59, 0.0  ;;  %v2435_v13 = vsel %vm4427_vm13, %v4099_v59, 0.0  ;;  %v2378_v15 = vpack.c.bf16 %v4099_v59, %v4069_v46  ;;  %v2443_v18 = vsel %vm4429_vm12, %v4099_v59, 0.0 }
 0xa66   : > { %v2431_v58 = vsel %vm910_vm2, %v2427_v29, 0.0  ;;  %v2439_v16 = vsel %vm910_vm2, %v2435_v13, 0.0  ;;  %v2447_v19 = vsel %vm910_vm2, %v2443_v18, 0.0  ;;  %v2451_v21 = vsel %vm4430_vm10, %v4099_v59, 0.0 }
 0xa67   : > { %2432 = vadd.xlane.f32.xlu1 %v2431_v58  ;;  %2485 = vadd.xlane.f32.xlu0 %v2484_v12  ;;  %v2455_v20 = vsel %vm910_vm2, %v2451_v21, 0.0  ;;  %vm4431_vm0 = vcmp.eq.s32.totalorder %v3532_v41, 0  ;;  %vm4432_vm13 = vcmp.eq.s32.totalorder %v3532_v41, 1  ;;  %v2475_v30 = vsel %vm4433_vm1, %v4099_v59, 0.0 }
 0xa68   : > { %v2459_v24 = vsel %vm4431_vm0, %v4099_v59, 0.0  ;;  %v2467_v26 = vsel %vm4432_vm13, %v4099_v59, 0.0  ;;  %v2479_v31 = vsel %vm910_vm2, %v2475_v30, 0.0  ;;  %vm4434_vm12 = vcmp.eq.s32.totalorder %v3532_v41, 3 }
 0xa69   : > { %v2463_v25 = vsel %vm910_vm2, %v2459_v24, 0.0  ;;  %v2471_v27 = vsel %vm910_vm2, %v2467_v26, 0.0  ;;  %v2483_v32 = vsel %vm4434_vm12, %v4099_v59, 0.0  ;;  %vm4435_vm10 = vcmp.eq.s32.totalorder %v3532_v41, 4 }
 0xa6a   : > { %v2487_v57 = vsel %vm910_vm2, %v2483_v32, 0.0  ;;  %v2491_v2 = vsel %vm4435_vm10, %v4099_v59, 0.0  ;;  %vm4436_vm0 = vcmp.eq.s32.totalorder %v3532_v41, 4294967292  ;;  %vm4442_vm13 = vcmp.eq.s32.totalorder %v3532_v41, 4294967294 }
 0xa6b   : > { %2440 = vadd.xlane.f32.xlu1 %v2439_v16  ;;  %2493 = vadd.xlane.f32.xlu0 %v2492_v17  ;;  %v2495_v6 = vsel %vm910_vm2, %v2491_v2, 0.0  ;;  %vm4443_vm1 = vcmp.eq.s32.totalorder %v3532_v41, 4294967295  ;;  %vm4444_vm12 = vcmp.eq.s32.totalorder %v3532_v41, 0  ;;  %vm4445_vm10 = vcmp.eq.s32.totalorder %v3532_v41, 1 }
 0xa6f   : > { %2448 = vadd.xlane.f32.xlu1 %v2447_v19 }
 0xa73   : > { %2456 = vadd.xlane.f32.xlu1 %v2455_v20 }
 0xa77   : > { %2464 = vadd.xlane.f32.xlu1 %v2463_v25  ;;  %v2045_v7 = vpop.xlane.xlu0 %2044  ;;  %v3120_v25 = vld [vmem:[%s4333_s18] sm:$0xff]  }
 0xa78   : > { %3156 = vrcp.f32 %v2045_v7  ;;  %2974 = vmatpush3.bf16.msra.mxu0 %v3120_v25 }
 0xa79   : > { %2975 = vmatprep.subr.bf16.mxu0 %v3169_v22 }
 0xa7b   : > { %2472 = vadd.xlane.f32.xlu1 %v2471_v27 }
 0xa7f   : > { %2480 = vadd.xlane.f32.xlu1 %v2479_v31 }
 0xa81   : > { %2056 = vrot.lane.b32.xlu0 %v3891_v39, %s3191_s22 }
 0xa82   : > { %v3157_v33 = vpop.eup %3156 }
 0xa83   : > { %2488 = vadd.xlane.f32.xlu1 %v2487_v57  ;;  %v4152_v11 = vmul.f32 %v3157_v33, %v4061_v35 }
 0xa85   : > { %v2111_v36 = vsel %vm714_vm4, %v4152_v11, 0.0  ;;  %v2119_v8 = vsel %vm716_vm5, %v4152_v11, 0.0  ;;  %v2127_v48 = vsel %vm718_vm6, %v4152_v11, 0.0  ;;  %v2135_v40 = vsel %vm720_vm7, %v4152_v11, 0.0 }
 0xa86   : > { %v2113_v35 = vsel %vm910_vm2, %v2111_v36, 0.0  ;;  %v2121_v3 = vsel %vm910_vm2, %v2119_v8, 0.0  ;;  %v2137_v49 = vsel %vm910_vm2, %v2135_v40, 0.0  ;;  %vm4437_vm4 = vcmp.eq.s32.totalorder %v3491_v42, 1 }
 0xa87   : > { %2496 = vadd.xlane.f32.xlu1 %v2495_v6  ;;  %v2143_v50 = vsel %vm4437_vm4, %v4152_v11, 0.0  ;;  %vm4438_vm5 = vcmp.eq.s32.totalorder %v3491_v42, 2  ;;  %v2103_v53 = vsel %vm712_vm3, %v4152_v11, 0.0  ;;  %vm4439_vm6 = vcmp.eq.s32.totalorder %v3491_v42, 3 }
 0xa88   : > { %v2145_v51 = vsel %vm910_vm2, %v2143_v50, 0.0  ;;  %v2151_v52 = vsel %vm4438_vm5, %v4152_v11, 0.0  ;;  %v2105_v28 = vsel %vm910_vm2, %v2103_v53, 0.0  ;;  %v2159_v55 = vsel %vm4439_vm6, %v4152_v11, 0.0 }
 0xa89   : > { %v2153_v4 = vsel %vm910_vm2, %v2151_v52, 0.0  ;;  %vm4440_vm7 = vcmp.eq.s32.totalorder %v3532_v41, 4294967293  ;;  %v2161_v60 = vsel %vm910_vm2, %v2159_v55, 0.0  ;;  %vm4441_vm3 = vcmp.eq.s32.totalorder %v3491_v42, 4 }
 0xa8a   : > { %v2167_v62 = vsel %vm4441_vm3, %v4152_v11, 0.0  ;;  %vm4447_vm4 = vcmp.eq.s32.totalorder %v3532_v41, 3  ;;  %vm4448_vm5 = vcmp.eq.s32.totalorder %v3532_v41, 4  ;;  %vm4449_vm6 = vcmask 1040384  }
 0xa8b   : > { %v2169_v45 = vsel %vm910_vm2, %v2167_v62, 0.0 }
 0xa93   : > { %v2048_v10 = vpop.xlane.xlu1 %2047 }
 0xa94   : > { %3158 = vrcp.f32 %v2048_v10 }
 0xa98   : > { %2379 = vrot.lane.b32.xlu1 %v3891_v39, %s3192_s21 }
 0xa9e   : > { %v3159_v34 = vpop.eup %3158 }
 0xa9f   : > { %v4155_v37 = vmul.f32 %v3159_v34, %v4065_v23  ;;  %v2129_v23 = vsel %vm910_vm2, %v2127_v48, 0.0 }
 0xaa1   : > { %v2104_v0 = vsel %vm4436_vm0, %v4155_v37, 0.0  ;;  %v2055_v39 = vpack.c.bf16 %v4155_v37, %v4152_v11  ;;  %v2112_v56 = vsel %vm4440_vm7, %v4155_v37, 0.0  ;;  %v2120_v44 = vsel %vm4442_vm13, %v4155_v37, 0.0 }
 0xaa2   : > { %v2108_v38 = vsel %vm910_vm2, %v2104_v0, 0.0  ;;  %v2116_v61 = vsel %vm910_vm2, %v2112_v56, 0.0  ;;  %v2124_v47 = vsel %vm910_vm2, %v2120_v44, 0.0  ;;  %v2128_v63 = vsel %vm4443_vm1, %v4155_v37, 0.0 }
 0xaa3   : > { %2109 = vadd.xlane.f32.xlu0 %v2108_v38  ;;  %v2132_v1 = vsel %vm910_vm2, %v2128_v63, 0.0  ;;  %v2136_v42 = vsel %vm4444_vm12, %v4155_v37, 0.0  ;;  %v2144_v43 = vsel %vm4445_vm10, %v4155_v37, 0.0  ;;  %vm4446_vm0 = vcmp.eq.s32.totalorder %v3532_v41, 2 }
 0xaa4   : > { %v2140_v54 = vsel %vm910_vm2, %v2136_v42, 0.0  ;;  %v2148_v29 = vsel %vm910_vm2, %v2144_v43, 0.0  ;;  %v2152_v58 = vsel %vm4446_vm0, %v4155_v37, 0.0  ;;  %v2160_v13 = vsel %vm4447_vm4, %v4155_v37, 0.0 }
 0xaa5   : > { %v2156_v12 = vsel %vm910_vm2, %v2152_v58, 0.0  ;;  %v2164_v14 = vsel %vm910_vm2, %v2160_v13, 0.0  ;;  %v2168_v17 = vsel %vm4448_vm5, %v4155_v37, 0.0  ;;  %v3121_v38 = vld [vmem:[%s4333_s18 + $0x8] ss:$0 sps:$4 sm:$0x11]  }
 0xaa6   : > { %v2172_v18 = vsel %vm910_vm2, %v2168_v17, 0.0  ;;  %v2551_v8 = vsel %vm4449_vm6, %v3121_v38, 0  ;;  %vm4450_vm7 = vcmask 31744   ;;  %vm4452_vm13 = vcmask 48128  }
 0xaa7   : > { %2114 = vadd.xlane.f32.xlu0 %v2113_v35  ;;  %vm4451_vm3 = vmmov %vm4450_vm7  ;;  %2976 = vmatpush3.bf16.msra.mxu0 %v2551_v8  ;;  %vm4454_vm12 = vcmask 56320   ;;  %vm4456_vm0 = vcmask 64512  }
 0xaa8   : > { %vm4453_vm1 = vmmov %vm4452_vm13 }
 0xaa9   : > { %vm4455_vm10 = vmmov %vm4454_vm12 }
 0xaaa   : > { %vm4457_vm4 = vmmov %vm4456_vm0 }
 0xaab   : > { %2122 = vadd.xlane.f32.xlu0 %v2121_v3  ;;  %vm4459_vm5 = vmmov %vm4453_vm1 }
 0xaac   : > { %vm4460_vm6 = vmmov %vm4451_vm3 }
 0xaaf   : > { %2130 = vadd.xlane.f32.xlu0 %v2129_v23 }
 0xab3   : > { %2138 = vadd.xlane.f32.xlu0 %v2137_v49 }
 0xab7   : > { %2146 = vadd.xlane.f32.xlu0 %v2145_v51 }
 0xabb   : > { %2154 = vadd.xlane.f32.xlu0 %v2153_v4 }
 0xabc   : > { %2106 = vadd.xlane.f32.xlu1 %v2105_v28 }
 0xabf   : > { %2162 = vadd.xlane.f32.xlu0 %v2161_v60 }
 0xac0   : > { %2117 = vadd.xlane.f32.xlu1 %v2116_v61 }
 0xac3   : > { %2170 = vadd.xlane.f32.xlu0 %v2169_v45 }
 0xac4   : > { %2125 = vadd.xlane.f32.xlu1 %v2124_v47 }
 0xac8   : > { %2133 = vadd.xlane.f32.xlu1 %v2132_v1 }
 0xacc   : > { %2141 = vadd.xlane.f32.xlu1 %v2140_v54 }
 0xad0   : > { %2149 = vadd.xlane.f32.xlu1 %v2148_v29 }
 0xad4   : > { %2157 = vadd.xlane.f32.xlu1 %v2156_v12 }
 0xad8   : > { %2165 = vadd.xlane.f32.xlu1 %v2164_v14  ;;  %v2430_v16 = vpop.xlane.xlu0 %2429 }
 0xadc   : > { %2173 = vadd.xlane.f32.xlu1 %v2172_v18  ;;  %v2438_v19 = vpop.xlane.xlu0 %2437 }
 0xadd   : > { %v2498_v34 = vsel %vm1215_vm11, %v2430_v16, %v2438_v19 }
 0xae0   : > { %v2446_v21 = vpop.xlane.xlu0 %2445 }
 0xae1   : > { %v2500_v36 = vsel %vm1218_vm8, %v2498_v34, %v2446_v21 }
 0xae4   : > { %v2454_v20 = vpop.xlane.xlu0 %2453 }
 0xae5   : > { %v2502_v37 = vsel %vm1221_vm14, %v2500_v36, %v2454_v20 }
 0xae8   : > { %v2462_v24 = vpop.xlane.xlu0 %2461 }
 0xae9   : > { %v2504_v3 = vsel %vm4450_vm7, %v2502_v37, %v2462_v24  ;;  %vm4461_vm7 = vmmov %vm4455_vm10  ;;  %v3122_v37 = vld [vmem:[%s4330_s15] sm:$0xff]  }
 0xaec   : > { %v2470_v26 = vpop.xlane.xlu0 %2469 }
 0xaed   : > { %v2506_v23 = vsel %vm1227_vm15, %v2504_v3, %v2470_v26 }
 0xaf0   : > { %v2478_v27 = vpop.xlane.xlu0 %2477 }
 0xaf1   : > { %v2508_v49 = vsel %vm4452_vm13, %v2506_v23, %v2478_v27  ;;  %vm4463_vm13 = vmmov %vm4461_vm7 }
 0xaf4   : > { %v2433_v30 = vpop.xlane.xlu1 %2432  ;;  %v2486_v31 = vpop.xlane.xlu0 %2485 }
 0xaf5   : > { %v2510_v51 = vsel %vm4454_vm12, %v2508_v49, %v2486_v31  ;;  %vm4468_vm12 = vcmask 146432  }
 0xaf8   : > { %v2441_v41 = vpop.xlane.xlu1 %2440  ;;  %v2494_v32 = vpop.xlane.xlu0 %2493 }
 0xaf9   : > { %v2499_v0 = vsel %vm1215_vm11, %v2433_v30, %v2441_v41  ;;  %v2512_v4 = vsel %vm4456_vm0, %v2510_v51, %v2494_v32 }
 0xafc   : > { %v2449_v57 = vpop.xlane.xlu1 %2448  ;;  %v2057_v2 = vpop.permute.xlu0 %2056 }
 0xafd   : > { %2956 = vmatpush3.bf16.msra.mxu1 %v2057_v2  ;;  %v2501_v11 = vsel %vm1218_vm8, %v2499_v0, %v2449_v57 }
 0xafe   : > { %2967 = vmatprep.subr.bf16.mxu1 %v3169_v22 }
 0xb00   : > { %v2457_v6 = vpop.xlane.xlu1 %2456  ;;  %2958 = vmatmul.mubr.msk.bf16.vlgmr.msra.gmra.mrb[20].mxu1 %vm910_vm2, %v2055_v39 }
 0xb01   : > { %2969 = vmatprep.mubr.msk.bf16.mxu1 %vm4390_vm9, %v3169_v22  ;;  %v2503_v39 = vsel %vm1221_vm14, %v2501_v11, %v2457_v6 }
 0xb04   : > { %v2465_v7 = vpop.xlane.xlu1 %2464 }
 0xb05   : > { %v2505_v48 = vsel %vm4451_vm3, %v2503_v39, %v2465_v7  ;;  %v3123_v39 = vld [vmem:[%s4330_s15 + $0x8] sm:$0xff]  }
 0xb08   : > { %v2473_v10 = vpop.xlane.xlu1 %2472 }
 0xb09   : > { %v2507_v40 = vsel %vm1227_vm15, %v2505_v48, %v2473_v10 }
 0xb0c   : > { %v2481_v33 = vpop.xlane.xlu1 %2480 }
 0xb0d   : > { %v2509_v50 = vsel %vm4453_vm1, %v2507_v40, %v2481_v33 }
 0xb10   : > { %v2489_v35 = vpop.xlane.xlu1 %2488 }
 0xb11   : > { %v2511_v52 = vsel %vm4455_vm10, %v2509_v50, %v2489_v35 }
 0xb14   : > { %v2497_v53 = vpop.xlane.xlu1 %2496 }
 0xb15   : > { %v2513_v28 = vsel %vm4457_vm4, %v2511_v52, %v2497_v53 }
 0xb16   : > { %v3102_v55 = vpack.i.bf16 %v2513_v28, %v2512_v4 }
 0xb18   : > { %v2380_v56 = vpop.permute.xlu1 %2379  ;;  %3103 = vrot.lane.b32.xlu0 %v3102_v55, %s3193_s4 }
 0xb19   : > { %2968 = vmatpush3.bf16.msra.mxu1 %v2380_v56  ;;  %v2827_v56 = vld [vmem:[%s4331_s16] ss:$0 sm:$0xff] }
 0xb1a   : > { %2981 = vmatprep.subr.bf16.mxu1 %v3169_v22 }
 0xb1c   : > { %2970 = vmatmul.mubr.msk.bf16.vlgmr.msra.gmra.mrb[24].mxu1 %vm910_vm2, %v2378_v15 }
 0xb1d   : > { %2985 = vmatprep.mubr.msk.bf16.mxu1 %vm4390_vm9, %v3169_v22  ;;  %vm4458_vm9 = vmmov %vm4451_vm3  ;;  %2982 = vmatpush3.bf16.msra.mxu1 %v3122_v37 }
 0xb1e   : > { %vm4462_vm3 = vmmov %vm4453_vm1  ;;  %2983 = vmatprep.subr.bf16.mxu1 %v3169_v22 }
 0xb1f   : > { %vm4465_vm1 = vmmov %vm4456_vm0 }
 0xb21   : > { %2984 = vmatpush3.bf16.msra.mxu1 %v3123_v39 }
 0xb30   : > { %v2110_v60 = vpop.xlane.xlu0 %2109 }
 0xb34   : > { %v2115_v62 = vpop.xlane.xlu0 %2114 }
 0xb38   : > { %v2123_v45 = vpop.xlane.xlu0 %2122 }
 0xb3c   : > { %v2131_v63 = vpop.xlane.xlu0 %2130 }
 0xb40   : > { %v2139_v42 = vpop.xlane.xlu0 %2138 }
 0xb44   : > { %v2147_v43 = vpop.xlane.xlu0 %2146 }
 0xb48   : > { %v2155_v46 = vpop.xlane.xlu0 %2154 }
 0xb49   : > { %v2107_v61 = vpop.xlane.xlu1 %2106 }
 0xb4a   : > { %v2175_v29 = vsel %vm1215_vm11, %v2107_v61, %v2115_v62 }
 0xb4b   : > { %v2177_v59 = vsel %vm1218_vm8, %v2175_v29, %v2123_v45 }
 0xb4c   : > { %v2179_v15 = vsel %vm1221_vm14, %v2177_v59, %v2131_v63  ;;  %v2163_v14 = vpop.xlane.xlu0 %2162 }
 0xb4d   : > { %v2118_v44 = vpop.xlane.xlu1 %2117  ;;  %v2181_v13 = vsel %vm4458_vm9, %v2179_v15, %v2139_v42 }
 0xb4e   : > { %v2183_v16 = vsel %vm1227_vm15, %v2181_v13, %v2147_v43  ;;  %v2176_v18 = vsel %vm1215_vm11, %v2110_v60, %v2118_v44  ;;  %vm4464_vm11 = vmmov %vm4456_vm0 }
 0xb4f   : > { %v2185_v19 = vsel %vm4459_vm5, %v2183_v16, %v2155_v46 }
 0xb50   : > { %v2171_v21 = vpop.xlane.xlu0 %2170  ;;  %v2187_v26 = vsel %vm4461_vm7, %v2185_v19, %v2163_v14 }
 0xb51   : > { %v2126_v47 = vpop.xlane.xlu1 %2125  ;;  %v2189_v6 = vsel %vm4464_vm11, %v2187_v26, %v2171_v21 }
 0xb52   : > { %v2178_v20 = vsel %vm1218_vm8, %v2176_v18, %v2126_v47  ;;  %vm4466_vm8 = vcmask 72704  }
 0xb55   : > { %v2134_v1 = vpop.xlane.xlu1 %2133 }
 0xb56   : > { %v2180_v24 = vsel %vm1221_vm14, %v2178_v20, %v2134_v1  ;;  %vm4467_vm14 = vmmov %vm4466_vm8 }
 0xb59   : > { %v2142_v54 = vpop.xlane.xlu1 %2141 }
 0xb5a   : > { %v2182_v25 = vsel %vm4460_vm6, %v2180_v24, %v2142_v54 }
 0xb5d   : > { %v2150_v58 = vpop.xlane.xlu1 %2149 }
 0xb5e   : > { %v2184_v27 = vsel %vm1227_vm15, %v2182_v25, %v2150_v58  ;;  %vm4469_vm15 = vcmask 261120  }
 0xb61   : > { %v2158_v12 = vpop.xlane.xlu1 %2157 }
 0xb62   : > { %v2186_v31 = vsel %vm4462_vm3, %v2184_v27, %v2158_v12 }
 0xb65   : > { %v2166_v17 = vpop.xlane.xlu1 %2165 }
 0xb66   : > { %v2188_v32 = vsel %vm4463_vm13, %v2186_v31, %v2166_v17 }
 0xb69   : > { %v2174_v30 = vpop.xlane.xlu1 %2173 }
 0xb6a   : > { %v2190_v7 = vsel %vm4465_vm1, %v2188_v32, %v2174_v30 }
 0xb8a   : > { %v3104_v41 = vpop.permute.xlu0 %3103 }
 0xb8b   : > { %v3106_v57 = vunpack.i.h.bf16 %v3104_v41  ;;  %v3105_v2 = vunpack.i.l.bf16 %v3104_v41 }
 0xb8d   : > { %v2533_v10 = vsel %vm4466_vm8, %v2190_v7, %v3106_v57  ;;  %v2532_v33 = vsel %vm4467_vm14, %v2189_v6, %v3105_v2 }
 0xb8e   : > { %v2534_v34 = vpack.c.bf16 %v2533_v10, %v2532_v33 }
 0xb90   : > { %2978 = vmatmul.mubr.msk.bf16.vlgmr.msra.gmra.mrb[28].mxu0 %vm4468_vm12, %v2534_v34 }
 0xbd3   : > { %v2096_v0 = vpop.f32.mrb[20].mxu1 }
 0xbd4   : > { %v2959_v38 = vpop.f32.mrb[21].mxu1 }
 0xbd5   : > { %v2099_v36 = vpop.f32.mrb[22].mxu1 }
 0xbd6   : > { %v2960_v11 = vpop.f32.mrb[23].mxu1 }
 0xbef   : > { %v2419_v35 = vpop.f32.mrb[24].mxu1 }
 0xbf0   : > { %2516 = vrot.lane.b32.xlu1 %v2419_v35, %s3194_s30  ;;  %v2971_v8 = vpop.f32.mrb[25].mxu1 }
 0xbf1   : > { %v2422_v3 = vpop.f32.mrb[26].mxu1 }
 0xbf2   : > { %v2972_v48 = vpop.f32.mrb[27].mxu1 }
 0xbf4   : > { %2518 = vrot.lane.b32.xlu1 %v2422_v3, %s3194_s30 }
 0xc62   : > { %v2517_v23 = vpop.permute.xlu1 %2516 }
 0xc63   : > { %v2522_v40 = vsel %vm910_vm2, %v2096_v0, %v2517_v23  ;;  %v2587_v49 = vpop.f32.mrb[28].mxu0 }
 0xc64   : > { %v2594_v50 = vadd.f32 %v2587_v49, %v2522_v40  ;;  %v2979_v22 = vpop.f32.mrb[29].mxu0 }
 0xc65   : > { %v2590_v51 = vpop.f32.mrb[30].mxu0 }
 0xc66   : > { %v2519_v52 = vpop.permute.xlu1 %2518  ;;  %v2980_v53 = vpop.f32.mrb[31].mxu0 }
 0xc67   : > { %v2523_v4 = vsel %vm910_vm2, %v2099_v36, %v2519_v52  ;;  %vm4470_vm2 = vmmov %vm4469_vm15 }
 0xc68   : > { %v2595_v28 = vadd.f32 %v2590_v51, %v2523_v4  ;;  %vm4471_vm10 = vmmov %vm4470_vm2 }
 0xc6a   : > { %v2596_v55 = vpack.c.bf16 %v2595_v28, %v2594_v50 }
 0xc6c   : > { %2986 = vmatmul.mubr.msk.bf16.vlgmr.msra.gmra.mrb[28].mxu1 %vm4469_vm15, %v2596_v55 }
 0xd3f   : > { %v2657_v60 = vpop.f32.mrb[28].mxu1 }
 0xd40   : > { %v2658_v61 = vadd.f32 %v2827_v56, %v2657_v60  ;;  %v2987_v62 = vpop.f32.mrb[29].mxu1 }
 0xd41   : > { %v2660_v44 = vpop.f32.mrb[30].mxu1 }
 0xd42   : > { %v2664_v45 = vadd.f32 %v2658_v61, %v3325_v5  ;;  %v2661_v47 = vadd.f32 %v2827_v56, %v2660_v44  ;;  %v2988_v63 = vpop.f32.mrb[31].mxu1 }
 0xd44   : > { %2666 = vst.msk [vmem:[%s676_s24] sm:$0xff] %vm4470_vm2, %v2664_v45  ;;  %v2665_v1 = vadd.f32 %v2661_v47, %v3332_v9 }
 0xd46   : > { %2667 = vst.msk [vmem:[%s676_s24 + $0x8] sm:$0xff] %vm4471_vm10, %v2665_v1 }
 0xd47 PF: > { %s31_s1 = sadd.s32 1, %s3166_s1  }
 0xd48   : > { %p28_p4 = scmp.ge.s32.totalorder %s31_s1, 4  }
 0xd4a   :  { %30 = sbr.rel (!%p28_p4) target bundleno = 6 (0x6), region = 144 }

// kernel: rel_transformer_encoder_controlnet.5
= control target key start
LH: loop header
LB: loop body
LE: loop exit
PB: predicated region body
PF: predicated region fallthrough
CT: control target
= control target key end

     0   :  { %s3104_s6 = smov 1   ;;  %s3105_s10 = smov 2   ;;  %s3702_s0 = inlined_call_operand.smem [shape: u32[35], index: -1, kind: input, shape index: {}] }
   0x1   :  { %s3152_s5 = sld [smem:[%s3702_s0]]   ;;  %s3106_s14 = smov 3  }
   0x2   :  { %s3157_s9 = sld [smem:[%s3702_s0 + %s3104_s6]]   ;;  %s3107_s18 = smov 4  }
   0x3   :  { %s3162_s13 = sld [smem:[%s3702_s0 + %s3105_s10]]   ;;  %s3108_s22 = smov 5  }
   0x4   :  { %s3167_s17 = sld [smem:[%s3702_s0 + %s3106_s14]]   ;;  %s3109_s26 = smov 6  }
   0x5   :  { %s3172_s21 = sld [smem:[%s3702_s0 + %s3107_s18]]   ;;  %s3110_s30 = smov 7  }
   0x6   :  { %s3177_s25 = sld [smem:[%s3702_s0 + %s3108_s22]]   ;;  %s3111_s4 = smov 8  }
   0x7   :  { %s3182_s29 = sld [smem:[%s3702_s0 + %s3109_s26]]   ;;  %s3112_s10 = smov 9  }
   0x8   :  { %s3187_s3 = sld [smem:[%s3702_s0 + %s3110_s30]]   ;;  %s3113_s15 = smov 10  }
   0x9   :  { %s3192_s8 = sld [smem:[%s3702_s0 + %s3111_s4]]   ;;  %s3114_s20 = smov 11  }
   0xa   :  { %s3197_s14 = sld [smem:[%s3702_s0 + %s3112_s10]]   ;;  %s3115_s26 = smov 12  }
   0xb   :  { %s3202_s19 = sld [smem:[%s3702_s0 + %s3113_s15]]   ;;  %s3116_s1 = smov 13  }
   0xc   :  { %s3207_s24 = sld [smem:[%s3702_s0 + %s3114_s20]]   ;;  %s3117_s7 = smov 14  }
   0xd   :  { %s3212_s30 = sld [smem:[%s3702_s0 + %s3115_s26]]   ;;  %s3118_s15 = smov 15  }
   0xe   :  { %s3217_s6 = sld [smem:[%s3702_s0 + %s3116_s1]]   ;;  %s3119_s22 = smov 16  }
   0xf   :  { %s3222_s12 = sld [smem:[%s3702_s0 + %s3117_s7]]   ;;  %s3120_s28 = smov 17  }
  0x10   :  { %s3227_s20 = sld [smem:[%s3702_s0 + %s3118_s15]]   ;;  %s3121_s7 = smov 18  }
  0x11   :  { %s3232_s27 = sld [smem:[%s3702_s0 + %s3119_s22]]   ;;  %s3122_s15 = smov 19  }
  0x12   :  { %s3237_s4 = sld [smem:[%s3702_s0 + %s3120_s28]]   ;;  %s3123_s22 = smov 20  }
  0x13   :  { %s3124_s28 = smov 21  }
  0x14   :  { %3707 = sst [smem:[#allocation2_spill]] %s3217_s6 }
  0x15   :  { %3708 = sst [smem:[#allocation3_spill]] %s3222_s12 }
  0x16   :  { %3709 = sst [smem:[#allocation4_spill]] %s3227_s20 }
  0x17   :  { %s3242_s12 = sld [smem:[%s3702_s0 + %s3121_s7]]   ;;  %s3125_s7 = smov 22  }
  0x18   :  { %3710 = sst [smem:[#allocation5_spill]] %s3237_s4 }
  0x19   :  { %s3247_s20 = sld [smem:[%s3702_s0 + %s3122_s15]]   ;;  %s3126_s15 = smov 23  }
  0x1a   :  { %s3252_s6 = sld [smem:[%s3702_s0 + %s3123_s22]]   ;;  %s3127_s22 = smov 24  }
  0x1b   :  { %s3257_s4 = sld [smem:[%s3702_s0 + %s3124_s28]]   ;;  %s3128_s28 = smov 25  }
  0x1d   :  { %3711 = sst [smem:[#allocation6_spill]] %s3242_s12 }
  0x1e   :  { %s3262_s12 = sld [smem:[%s3702_s0 + %s3125_s7]]   ;;  %s3129_s7 = smov 26  }
  0x1f   :  { %3712 = sst [smem:[#allocation7_spill]] %s3247_s20 }
  0x20   :  { %3713 = sst [smem:[#allocation8_spill]] %s3252_s6 }
  0x21   :  { %3714 = sst [smem:[#allocation9_spill]] %s3257_s4 }
  0x22   :  { %s3267_s20 = sld [smem:[%s3702_s0 + %s3126_s15]]   ;;  %s3130_s15 = smov 27  }
  0x23   :  { %s3272_s6 = sld [smem:[%s3702_s0 + %s3127_s22]]   ;;  %s3131_s22 = smov 28  }
  0x24   :  { %3715 = sst [smem:[#allocation10_spill]] %s3262_s12 }
  0x25   :  { %s3277_s4 = sld [smem:[%s3702_s0 + %s3128_s28]]   ;;  %s3132_s28 = smov 29  }
  0x26   :  { %s3282_s12 = sld [smem:[%s3702_s0 + %s3129_s7]]   ;;  %s3133_s7 = smov 30  }
  0x28   :  { %3716 = sst [smem:[#allocation11_spill]] %s3267_s20 }
  0x29   :  { %3717 = sst [smem:[#allocation12_spill]] %s3272_s6 }
  0x2a   :  { %s3287_s20 = sld [smem:[%s3702_s0 + %s3130_s15]]   ;;  %s3134_s15 = smov 31  }
  0x2b   :  { %3718 = sst [smem:[#allocation13_spill]] %s3277_s4 }
  0x2c   :  { %3719 = sst [smem:[#allocation14_spill]] %s3282_s12 }
  0x2d   :  { %s3292_s6 = sld [smem:[%s3702_s0 + %s3131_s22]]   ;;  %s3135_s22 = smov 32  }
  0x2e   :  { %s3297_s4 = sld [smem:[%s3702_s0 + %s3132_s28]]   ;;  %s3136_s28 = smov 33  }
  0x2f   :  { %s3302_s12 = sld [smem:[%s3702_s0 + %s3133_s7]]   ;;  %s3137_s7 = smov 34  }
  0x30   :  { %3720 = sst [smem:[#allocation15_spill]] %s3287_s20 }
  0x31   :  { %s3307_s20 = sld [smem:[%s3702_s0 + %s3134_s15]]   ;;  %s3324_s15 = smov 0  }
  0x33   :  { %3721 = sst [smem:[#allocation16_spill]] %s3292_s6 }
  0x34   :  { %3722 = sst [smem:[#allocation17_spill]] %s3297_s4 }
  0x35   :  { %3723 = sst [smem:[#allocation18_spill]] %s3302_s12 }
  0x36   :  { %s3312_s6 = sld [smem:[%s3702_s0 + %s3135_s22]]  }
  0x37   :  { %s3317_s4 = sld [smem:[%s3702_s0 + %s3136_s28]]  }
  0x38   :  { %s3322_s12 = sld [smem:[%s3702_s0 + %s3137_s7]]  }
  0x39 LB: > { %s2748_s16 = sadd.s32 4294967295, %s3102_s15   ;;  %p2752_p0 = scmp.ge.s32.totalorder %s3102_s15, 1  ;;  %s3102_s15 = sphi %s3324_s15, %s79_s15  }
  0x3a   : > { %p957_p1 = scmp.lt.s32.totalorder %s3102_s15, 3 }
  0x3c   : > { %p958_p2 = pnand %p2752_p0, %p957_p1 }
  0x3d   : > { %p1048_p3 = scmp.lt.s32.totalorder (!%p958_p2), %s2748_s16, 1  ;;  %v3138_v0 = vmov (!%p958_p2), 0   ;;  %v3002_v3 = vld [vmem:[%s3162_s13] sm:$0xff] (!%p958_p2)   ;;  %v3004_v5 = vld [vmem:[%s3162_s13 + $0x8] sm:$0xff] (!%p958_p2)   ;;  %v3006_v7 = vld [vmem:[%s3162_s13 + $0x10] sm:$0xff] (!%p958_p2)   ;;  %v3139_v25 = vmov (!%p958_p2), 0.0  }
  0x3e   : > { %961 = sbr.rel (%p958_p2) target bundleno = 3098 (0xc1a), region = 156  ;;  %2956 = vset.pattern.permute.xlu0 (!%p958_p2), %v3138_v0  ;;  %1253 = vmatprep.subr.bf16.mxu0 (!%p958_p2), %v3138_v0  ;;  %v3003_v4 = vld [vmem:[%s3182_s29] sm:$0xff] (!%p958_p2)   ;;  %v3005_v6 = vld [vmem:[%s3182_s29 + $0x8] sm:$0xff] (!%p958_p2)   ;;  %v3007_v8 = vld [vmem:[%s3182_s29 + $0x10] sm:$0xff] (!%p958_p2)   ;;  %v3386_v26 = vrot.slane (!%p958_p2), %v3139_v25, 4  ;;  %vm1119_vm0 = vcmask (!%p958_p2), 1045504  }
  0x3f   : > { %1428 = vmatprep.subr.bf16.mxu1 (!%p958_p2), %v3138_v0  ;;  %1254 = vmatpush1.bf16.msra.mxu0 (!%p958_p2), %v3002_v3  ;;  %v3008_v9 = vld [vmem:[%s3162_s13 + $0x18] sm:$0xff] (!%p958_p2)   ;;  %v3010_v11 = vld [vmem:[%s3162_s13 + $0x20] sm:$0xff] (!%p958_p2)   ;;  %v3012_v13 = vld [vmem:[%s3162_s13 + $0x28] sm:$0xff] (!%p958_p2)   ;;  %vm1147_vm1 = vcmask (!%p958_p2), 1043456   ;;  %vm1132_vm2 = vcmask (!%p958_p2), 1044480   ;;  %v3399_v35 = vrot.slane (!%p958_p2), %v3139_v25, 1 }
  0x40   : > { %1429 = vmatpush1.bf16.msra.mxu1 (!%p958_p2), %v3003_v4  ;;  %1255 = vmatprep.subr.bf16.mxu0 (!%p958_p2), %v3138_v0  ;;  %v3009_v10 = vld [vmem:[%s3182_s29 + $0x18] sm:$0xff] (!%p958_p2)   ;;  %v3011_v12 = vld [vmem:[%s3182_s29 + $0x20] sm:$0xff] (!%p958_p2)   ;;  %v3013_v14 = vld [vmem:[%s3182_s29 + $0x28] sm:$0xff] (!%p958_p2)   ;;  %s3140_s23 = smov (!%p958_p2), 32   ;;  %vm1104_vm3 = vcmask (!%p958_p2), 1046528   ;;  %s3141_s26 = smov (!%p958_p2), 64  }
  0x41   : > { %1430 = vmatprep.subr.bf16.mxu1 (!%p958_p2), %v3138_v0  ;;  %v3014_v16 = vld [vmem:[%s3162_s13 + $0x30] sm:$0xff] (!%p958_p2)   ;;  %v3016_v21 = vld [vmem:[%s3162_s13 + $0x38] sm:$0xff] (!%p958_p2)   ;;  %v3018_v33 = vld [vmem:[%s3162_s13 + $0x40] sm:$0xff] (!%p958_p2)   ;;  %vm1156_vm4 = vcmask (!%p958_p2), 261120   ;;  %s3142_s28 = smov (!%p958_p2), 96   ;;  %v3423_v54 = vrot.slane (!%p958_p2), %v3139_v25, 3 }
  0x42   : > { %v3015_v17 = vld [vmem:[%s3182_s29 + $0x30] sm:$0xff] (!%p958_p2)   ;;  %v3017_v22 = vld [vmem:[%s3182_s29 + $0x38] sm:$0xff] (!%p958_p2)   ;;  %v3019_v34 = vld [vmem:[%s3182_s29 + $0x40] sm:$0xff] (!%p958_p2)   ;;  %vm1160_vm5 = vcmask (!%p958_p2), 523264   ;;  %vm1164_vm6 = vcmask (!%p958_p2), 785408   ;;  %vm3143_vm7 = vmmov (!%p958_p2), 0  }
  0x43   : > { %1256 = vmatpush1.bf16.msra.mxu0 (!%p958_p2), %v3004_v5  ;;  %v3020_v45 = vld [vmem:[%s3162_s13 + $0x48] sm:$0xff] (!%p958_p2)   ;;  %s3724_s1 = sld [smem:[#allocation5_spill]] (!%p958_p2)  ;;  %s3725_s2 = sld [smem:[#allocation2_spill]] (!%p958_p2) }
  0x44   : > { %1431 = vmatpush1.bf16.msra.mxu1 (!%p958_p2), %v3005_v6  ;;  %1257 = vmatprep.subr.bf16.mxu0 (!%p958_p2), %v3138_v0  ;;  %v3021_v49 = vld [vmem:[%s3182_s29 + $0x48] sm:$0xff] (!%p958_p2)   ;;  %s3726_s7 = sld [smem:[#allocation8_spill]] (!%p958_p2)  ;;  %s3727_s10 = sld [smem:[#allocation6_spill]] (!%p958_p2) }
  0x45   : > { %s3742_s16 = smov (!%p1048_p3, %s2748_s16), 1  ;;  %1432 = vmatprep.subr.bf16.mxu1 %v3138_v0  ;;  %s3728_s11 = sld [smem:[#allocation7_spill]] }
  0x46   : > { %s3335_s0 = sshll.u32 %s3742_s16, 4  ;;  %s3729_s16 = sld [smem:[#allocation10_spill]] }
  0x47   : > { %s1057_s18 = scalar_lea.vmem %s3157_s9, %s3335_s0  ;;  %1258 = vmatpush1.bf16.msra.mxu0 %v3006_v7  ;;  %s3365_s22 = scalar_lea.vmem %s3152_s5, %s3335_s0 }
  0x48   : > { %v1066_v1 = vld [vmem:[%s1057_s18] sm:$0xff]  ;;  %v1067_v2 = vld [vmem:[%s1057_s18 + $0x8] sm:$0xff]  ;;  %1433 = vmatpush1.bf16.msra.mxu1 %v3007_v8  ;;  %1259 = vmatprep.subr.bf16.mxu0 %v3138_v0  ;;  %s3730_s18 = sld [smem:[#allocation14_spill]] }
  0x49   : > { %1070 = vperm.xlu0 %2956, %v1066_v1   ;;  %1434 = vmatprep.subr.bf16.mxu1 %v3138_v0  ;;  %v1064_v15 = vld [vmem:[%s3365_s22] sm:$0xff]  ;;  %v1065_v20 = vld [vmem:[%s3365_s22 + $0x8] sm:$0xff] }
  0x4b   : > { %1260 = vmatpush1.bf16.msra.mxu0 %v3008_v9 }
  0x4c   : > { %1435 = vmatpush1.bf16.msra.mxu1 %v3009_v10  ;;  %1261 = vmatprep.subr.bf16.mxu0 %v3138_v0 }
  0x4d   : > { %1075 = vperm.xlu0 %2956, %v1067_v2   ;;  %1436 = vmatprep.subr.bf16.mxu1 %v3138_v0 }
  0x4f   : > { %1262 = vmatpush1.bf16.msra.mxu0 %v3010_v11 }
  0x50   : > { %1437 = vmatpush1.bf16.msra.mxu1 %v3011_v12  ;;  %1263 = vmatprep.subr.bf16.mxu0 %v3138_v0 }
  0x51   : > { %1438 = vmatprep.subr.bf16.mxu1 %v3138_v0 }
  0x53   : > { %1264 = vmatpush1.bf16.msra.mxu0 %v3012_v13 }
  0x54   : > { %1439 = vmatpush1.bf16.msra.mxu1 %v3013_v14  ;;  %1265 = vmatprep.subr.bf16.mxu0 %v3138_v0 }
  0x55   : > { %1440 = vmatprep.subr.bf16.mxu1 %v3138_v0 }
  0x57   : > { %1266 = vmatpush1.bf16.msra.mxu0 %v3014_v16 }
  0x58   : > { %1441 = vmatpush1.bf16.msra.mxu1 %v3015_v17  ;;  %1267 = vmatprep.subr.bf16.mxu0 %v3138_v0 }
  0x59   : > { %1442 = vmatprep.subr.bf16.mxu1 %v3138_v0 }
  0x5b   : > { %1268 = vmatpush1.bf16.msra.mxu0 %v3016_v21 }
  0x5c   : > { %1443 = vmatpush1.bf16.msra.mxu1 %v3017_v22  ;;  %1269 = vmatprep.subr.bf16.mxu0 %v3138_v0 }
  0x5d   : > { %1444 = vmatprep.subr.bf16.mxu1 %v3138_v0 }
  0x5f   : > { %1270 = vmatpush1.bf16.msra.mxu0 %v3018_v33 }
  0x60   : > { %1445 = vmatpush1.bf16.msra.mxu1 %v3019_v34  ;;  %1271 = vmatprep.subr.bf16.mxu0 %v3138_v0 }
  0x61   : > { %1446 = vmatprep.subr.bf16.mxu1 %v3138_v0 }
  0x63   : > { %1272 = vmatpush1.bf16.msra.mxu0 %v3020_v45 }
  0x64   : > { %1447 = vmatpush1.bf16.msra.mxu1 %v3021_v49  ;;  %2876 = vmatprep.subr.bf16.mxu0 %v3139_v25 }
  0x65   : > { %1748 = vmatprep.subr.bf16.mxu1 %v3138_v0 }
  0xc8   : > { %v3370_v18 = vpop.permute.xlu0 %1070 }
  0xc9   : > { %v3373_v19 = vmul.f32 %v3370_v18, %v1064_v15 }
  0xcb   : > { %v1120_v27 = vrot.slane %v3373_v19, 2  ;;  %v1148_v28 = vrot.slane %v3373_v19, 4  ;;  %v1133_v39 = vrot.slane %v3373_v19, 3  ;;  %v1106_v43 = vrot.slane %v3373_v19, 1 }
  0xcc   : > { %v3380_v23 = vpop.permute.xlu0 %1075 }
  0xcd   : > { %v3383_v24 = vmul.f32 %v3380_v23, %v1065_v20  ;;  %v1107_v52 = vsel %vm1104_vm3, %v3399_v35, %v1106_v43  ;;  %v2773_v20 = vld [vmem:[%s3187_s3] ss:$0 sm:$0xff] }
  0xcf   : > { %v1108_v29 = vrot.slane %v3383_v24, 1  ;;  %v1121_v30 = vrot.slane %v3383_v24, 2  ;;  %v1149_v31 = vrot.slane %v3383_v24, 4  ;;  %v1134_v32 = vrot.slane %v3383_v24, 3 }
  0xd1   : > { %1114 = vrot.lane.b32.xlu1 %v1108_v29, %s3140_s23  ;;  %v1122_v36 = vsel %vm1119_vm0, %v1120_v27, %v1121_v30  ;;  %v1150_v37 = vsel %vm1147_vm1, %v1148_v28, %v1149_v31  ;;  %v1152_v38 = vsel %vm1147_vm1, %v1149_v31, %v3386_v26  ;;  %v1135_v44 = vsel %vm1132_vm2, %v1133_v39, %v1134_v32 }
  0xd2   : > { %v2962_v40 = vpack.i.bf16 %v1122_v36, %v1120_v27  ;;  %v1169_v41 = vpack.c.bf16 %v1150_v37, %v1148_v28  ;;  %v1171_v42 = vpack.c.bf16 %v1152_v38, %v1152_v38  ;;  %v1109_v48 = vsel %vm1104_vm3, %v1106_v43, %v1108_v29  ;;  %v2759_v29 = vld [vmem:[%s3167_s17] ss:$0 sm:$0xff] }
  0xd3   : > { %v2967_v51 = vpack.i.bf16 %v1135_v44, %v1133_v39  ;;  %v2957_v53 = vpack.i.bf16 %v1109_v48, %v1107_v52  ;;  %v1137_v55 = vsel %vm1132_vm2, %v1134_v32, %v3423_v54 }
  0xd4   : > { %2963 = vrot.lane.b32.xlu0 %v2962_v40, %s3141_s26  ;;  %v1186_v46 = vrot.slane %v1169_v41, 3  ;;  %v1187_v47 = vrot.slane %v1171_v42, 3 }
  0xd5   : > { %1127 = vrot.lane.b32.xlu1 %v1121_v30, %s3141_s26 }
  0xd6   : > { %v1188_v50 = vsel %vm1132_vm2, %v1186_v46, %v1187_v47 }
  0xd7   : > { %2770 = vmatprep.mubr.msk.bf16.mxu0 %vm1156_vm4, %v1188_v50  ;;  %2784 = vmatprep.mubr.msk.bf16.mxu1 %vm1156_vm4, %v1188_v50 }
  0xd8   : > { %2968 = vrot.lane.b32.xlu0 %v2967_v51, %s3142_s28 }
  0xd9   : > { %2958 = vrot.lane.b32.xlu1 %v2957_v53, %s3140_s23 }
  0xdd   : > { %1142 = vrot.lane.b32.xlu1 %v1137_v55, %s3142_s28 }
 0x143   : > { %v1115_v56 = vpop.permute.xlu1 %1114 }
 0x144   : > { %v1159_v63 = vsel %vm1156_vm4, %v3383_v24, %v1115_v56 }
 0x146   : > { %v2964_v57 = vpop.permute.xlu0 %2963 }
 0x147   : > { %v1128_v58 = vpop.permute.xlu1 %1127  ;;  %v2966_v1 = vunpack.i.h.bf16 %v2964_v57  ;;  %v2965_v2 = vunpack.i.l.bf16 %v2964_v57 }
 0x148   : > { %v1163_v7 = vsel %vm1160_vm5, %v1159_v63, %v1128_v58  ;;  %v3022_v58 = vld [vmem:[%s3202_s19] sm:$0xff]  }
 0x14a   : > { %v2969_v59 = vpop.permute.xlu0 %2968 }
 0x14b   : > { %v2959_v60 = vpop.permute.xlu1 %2958  ;;  %v2971_v3 = vunpack.i.h.bf16 %v2969_v59  ;;  %v2970_v4 = vunpack.i.l.bf16 %v2969_v59  ;;  %v3023_v59 = vld [vmem:[%s3202_s19 + $0x8] sm:$0xff]  }
 0x14c   : > { %v2961_v61 = vunpack.i.h.bf16 %v2959_v60  ;;  %v2960_v62 = vunpack.i.l.bf16 %v2959_v60 }
 0x14e   : > { %v1158_v5 = vsel %vm1156_vm4, %v3373_v19, %v2961_v61  ;;  %v1157_v6 = vsel %vm1156_vm4, 0.0, %v2960_v62 }
 0x14f   : > { %v1162_v8 = vsel %vm1160_vm5, %v1158_v5, %v2966_v1  ;;  %v1161_v9 = vsel %vm1160_vm5, %v1157_v6, %v2965_v2  ;;  %v1143_v10 = vpop.permute.xlu1 %1142 }
 0x150   : > { %v1167_v11 = vsel %vm1164_vm6, %v1163_v7, %v1143_v10  ;;  %v1165_v12 = vsel %vm1164_vm6, %v1161_v9, %v2970_v4  ;;  %v1166_v13 = vsel %vm1164_vm6, %v1162_v8, %v2971_v3  ;;  %v2785_v8 = vld [vmem:[%s3192_s8] ss:$0 sm:$0xff] }
 0x151   : > { %v1170_v14 = vpack.c.bf16 %v1167_v11, %v1167_v11  ;;  %v1168_v15 = vpack.c.bf16 %v1166_v13, %v1165_v12  ;;  %v2786_v13 = vld [vmem:[%s3197_s14] ss:$0 sm:$0xff] }
 0x153   : > { %v1184_v16 = vrot.slane %v1170_v14, 3  ;;  %v1183_v17 = vrot.slane %v1168_v15, 3 }
 0x155   : > { %v1185_v19 = vsel %vm1132_vm2, %v1183_v17, %v1184_v16 }
 0x156   : > { %1286 = vmatmul.mubr.bf16.vlgmr.msra.gmra.mrb[0].mxu0 %v1185_v19  ;;  %1461 = vmatmul.mubr.bf16.vlgmr.msra.gmra.mrb[0].mxu1 %v1185_v19 }
 0x157   : > { %2880 = vmatprep.mubr.msk.bf16.mxu0 %vm3143_vm7, %v3139_v25  ;;  %2877 = vmatpush3.bf16.msra.mxu0 %v3022_v58  ;;  %v3037_v58 = vld [vmem:[%s3232_s27 + $0x30] sm:$0xff]  }
 0x158   : > { %2878 = vmatprep.subr.bf16.mxu0 %v3139_v25 }
 0x15b   : > { %2879 = vmatpush3.bf16.msra.mxu0 %v3023_v59 }
 0x15c   : > { %1922 = vmatprep.subr.bf16.mxu0 %v3138_v0 }
 0x229   : > { %v1287_v21 = vpop.f32.mrb[0].mxu0  ;;  %v1462_v22 = vpop.f32.mrb[0].mxu1 }
 0x22a   : > { %v1463_v24 = vadd.f32 %v2773_v20, %v1462_v22  ;;  %v1289_v27 = vpop.f32.mrb[1].mxu0  ;;  %v1464_v28 = vpop.f32.mrb[1].mxu1  ;;  %v1288_v38 = vadd.f32 %v2759_v29, %v1287_v21  ;;  %v3024_v22 = vld [vmem:[%s3212_s30] sm:$0xff]  }
 0x22b   : > { %v1290_v30 = vpop.f32.mrb[2].mxu0  ;;  %v1465_v31 = vpop.f32.mrb[2].mxu1  ;;  %1749 = vmatpush1.bf16.msra.mxu1 %v3024_v22  ;;  %v3026_v27 = vld [vmem:[%s3212_s30 + $0x8] sm:$0xff]  }
 0x22c   : > { %v1291_v32 = vadd.f32 %v2759_v29, %v1290_v30  ;;  %v1466_v33 = vadd.f32 %v2773_v20, %v1465_v31  ;;  %v1292_v34 = vpop.f32.mrb[3].mxu0  ;;  %v1467_v36 = vpop.f32.mrb[3].mxu1  ;;  %v1471_v37 = vsel %vm1156_vm4, %v1463_v24, 0.0  ;;  %v1296_v40 = vsel %vm1156_vm4, %v1288_v38, 0.0  ;;  %v3027_v28 = vld [vmem:[%s3232_s27 + $0x8] sm:$0xff]   ;;  %1750 = vmatprep.subr.bf16.mxu1 %v3138_v0  ;;  %v3028_v29 = vld [vmem:[%s3212_s30 + $0x10] sm:$0xff]  }
 0x22d   : > { %1472 = vadd.xlane.f32.xlu0 %v1471_v37  ;;  %v3029_v30 = vld [vmem:[%s3232_s27 + $0x10] sm:$0xff]   ;;  %v3030_v31 = vld [vmem:[%s3212_s30 + $0x18] sm:$0xff]   ;;  %v3033_v34 = vld [vmem:[%s3232_s27 + $0x20] sm:$0xff]  }
 0x22e   : > { %v1474_v39 = vsel %vm1156_vm4, %v1466_v33, 0.0  ;;  %v1299_v57 = vsel %vm1156_vm4, %v1291_v32, 0.0  ;;  %v3034_v36 = vld [vmem:[%s3212_s30 + $0x28] sm:$0xff]  }
 0x22f   : > { %1475 = vadd.xlane.f32.xlu1 %v1474_v39  ;;  %1751 = vmatpush1.bf16.msra.mxu1 %v3026_v27  ;;  %v3035_v37 = vld [vmem:[%s3232_s27 + $0x28] sm:$0xff]  }
 0x230   : > { %1752 = vmatprep.subr.bf16.mxu1 %v3138_v0 }
 0x233   : > { %1297 = vadd.xlane.f32.xlu1 %v1296_v40  ;;  %1753 = vmatpush1.bf16.msra.mxu1 %v3028_v29 }
 0x234   : > { %1754 = vmatprep.subr.bf16.mxu1 %v3138_v0 }
 0x237   : > { %1755 = vmatpush1.bf16.msra.mxu1 %v3030_v31 }
 0x238   : > { %1756 = vmatprep.subr.bf16.mxu1 %v3138_v0 }
 0x2ba   : > { %v1473_v41 = vpop.xlane.xlu0 %1472 }
 0x2bb   : > { %v1477_v42 = vmul.f32 0.03125, %v1473_v41 }
 0x2bc   : > { %v1476_v43 = vpop.xlane.xlu1 %1475 }
 0x2bd   : > { %v1479_v44 = vsub.f32 %v1463_v24, %v1477_v42  ;;  %v1478_v45 = vmul.f32 0.03125, %v1476_v43  ;;  %v3025_v24 = vld [vmem:[%s3232_s27] sm:$0xff]  }
 0x2bf   : > { %v1480_v46 = vsub.f32 %v1466_v33, %v1478_v45  ;;  %v1481_v47 = vmul.f32 %v1479_v44, %v1479_v44  ;;  %v3032_v33 = vld [vmem:[%s3212_s30 + $0x20] sm:$0xff]  }
 0x2c0   : > { %v1298_v48 = vpop.xlane.xlu1 %1297  ;;  %1757 = vmatpush1.bf16.msra.mxu1 %v3032_v33  ;;  %v3043_v33 = vld [vmem:[%s3232_s27 + $0x48] sm:$0xff]  }
 0x2c1   : > { %v1303_v49 = vmul.f32 0.03125, %v1298_v48  ;;  %v1483_v50 = vsel %vm1156_vm4, %v1481_v47, 0.0  ;;  %v1482_v51 = vmul.f32 %v1480_v46, %v1480_v46  ;;  %1758 = vmatprep.subr.bf16.mxu1 %v3138_v0  ;;  %v2771_v47 = vld [vmem:[%s3172_s21] ss:$0 sm:$0xff] }
 0x2c2   : > { %1484 = vadd.xlane.f32.xlu0 %v1483_v50  ;;  %v2772_v50 = vld [vmem:[%s3177_s25] ss:$0 sm:$0xff] }
 0x2c3   : > { %v3449_v52 = vsub.f32 %v1288_v38, %v1303_v49  ;;  %v1486_v53 = vsel %vm1156_vm4, %v1482_v51, 0.0 }
 0x2c4   : > { %1759 = vmatpush1.bf16.msra.mxu1 %v3034_v36 }
 0x2c5   : > { %v1307_v55 = vmul.f32 %v3449_v52, %v3449_v52  ;;  %1760 = vmatprep.subr.bf16.mxu1 %v3138_v0 }
 0x2c6   : > { %1487 = vadd.xlane.f32.xlu0 %v1486_v53 }
 0x2c7   : > { %v1309_v56 = vsel %vm1156_vm4, %v1307_v55, 0.0  ;;  %v2787_v55 = vld [vmem:[%s3207_s24] ss:$0 sm:$0xff] }
 0x2c8   : > { %1310 = vadd.xlane.f32.xlu1 %v1309_v56 }
 0x2ca   : > { %1300 = vadd.xlane.f32.xlu0 %v1299_v57  ;;  %v3036_v57 = vld [vmem:[%s3212_s30 + $0x30] sm:$0xff]  }
 0x2cb   : > { %1761 = vmatpush1.bf16.msra.mxu1 %v3036_v57 }
 0x2cc   : > { %1762 = vmatprep.subr.bf16.mxu1 %v3138_v0 }
 0x34f   : > { %v1485_v60 = vpop.xlane.xlu0 %1484 }
 0x350   : > { %v1489_v61 = vmul.f32 0.03125, %v1485_v60 }
 0x352   : > { %v1491_v62 = vadd.f32 0.0001, %v1489_v61 }
 0x353   : > { %v1488_v63 = vpop.xlane.xlu0 %1487 }
 0x354   : > { %3070 = vrsqrt.f32 %v1491_v62  ;;  %v1490_v1 = vmul.f32 0.03125, %v1488_v63 }
 0x355   : > { %v1311_v38 = vpop.xlane.xlu1 %1310 }
 0x356   : > { %v1492_v2 = vadd.f32 0.0001, %v1490_v1  ;;  %v1315_v40 = vmul.f32 0.03125, %v1311_v38 }
 0x357   : > { %v1301_v3 = vpop.xlane.xlu0 %1300 }
 0x358   : > { %3072 = vrsqrt.f32 %v1492_v2  ;;  %v1304_v4 = vmul.f32 0.03125, %v1301_v3  ;;  %v1317_v42 = vadd.f32 0.0001, %v1315_v40 }
 0x35a   : > { %v3462_v5 = vsub.f32 %v1291_v32, %v1304_v4  ;;  %v3031_v32 = vld [vmem:[%s3232_s27 + $0x18] sm:$0xff]   ;;  %3074 = vrsqrt.f32 %v1317_v42 }
 0x35b   : > { %v3038_v4 = vld [vmem:[%s3212_s30 + $0x38] sm:$0xff]  }
 0x35c   : > { %v1308_v6 = vmul.f32 %v3462_v5, %v3462_v5  ;;  %1763 = vmatpush1.bf16.msra.mxu1 %v3038_v4 }
 0x35d   : > { %1764 = vmatprep.subr.bf16.mxu1 %v3138_v0 }
 0x35e   : > { %v3071_v7 = vpop.eup %3070  ;;  %v1312_v9 = vsel %vm1156_vm4, %v1308_v6, 0.0 }
 0x35f   : > { %v1495_v10 = vmul.f32 %v3071_v7, %v1479_v44  ;;  %1313 = vadd.xlane.f32.xlu0 %v1312_v9 }
 0x361   : > { %v1503_v11 = vmul.f32 %v2785_v8, %v1495_v10 }
 0x362   : > { %v3073_v12 = vpop.eup %3072 }
 0x363   : > { %v1496_v14 = vmul.f32 %v3073_v12, %v1480_v46  ;;  %v1511_v16 = vadd.f32 %v2786_v13, %v1503_v11 }
 0x364   : > { %v3075_v44 = vpop.eup %3074 }
 0x365   : > { %v1504_v15 = vmul.f32 %v2785_v8, %v1496_v14  ;;  %v1513_v19 = vmax.f32 %v1511_v16, 0.0  ;;  %v1321_v46 = vmul.f32 %v3075_v44, %v3449_v52  ;;  %v3040_v14 = vld [vmem:[%s3212_s30 + $0x40] sm:$0xff]  }
 0x366   : > { %1765 = vmatpush1.bf16.msra.mxu1 %v3040_v14 }
 0x367   : > { %v1512_v17 = vadd.f32 %v2786_v13, %v1504_v15  ;;  %v1329_v49 = vmul.f32 %v2771_v47, %v1321_v46  ;;  %v3041_v15 = vld [vmem:[%s3232_s27 + $0x40] sm:$0xff]   ;;  %1766 = vmatprep.subr.bf16.mxu1 %v3138_v0 }
 0x369   : > { %v1514_v20 = vmax.f32 %v1512_v17, 0.0  ;;  %v1337_v53 = vadd.f32 %v2772_v50, %v1329_v49 }
 0x36b   : > { %v1515_v21 = vpack.c.bf16 %v1514_v20, %v1513_v19  ;;  %v1339_v60 = vmax.f32 %v1337_v53, 0.0 }
 0x36d   : > { %2881 = vmatmul.mubr.msk.bf16.vlgmr.msra.gmra.mrb[4].mxu0 %vm1156_vm4, %v1515_v21 }
 0x36e   : > { %1923 = vmatpush1.bf16.msra.mxu0 %v3025_v24 }
 0x36f   : > { %1924 = vmatprep.subr.bf16.mxu0 %v3138_v0 }
 0x372   : > { %1925 = vmatpush1.bf16.msra.mxu0 %v3027_v28 }
 0x373   : > { %1926 = vmatprep.subr.bf16.mxu0 %v3138_v0 }
 0x376   : > { %1927 = vmatpush1.bf16.msra.mxu0 %v3029_v30 }
 0x377   : > { %1928 = vmatprep.subr.bf16.mxu0 %v3138_v0 }
 0x37a   : > { %1929 = vmatpush1.bf16.msra.mxu0 %v3031_v32  ;;  %v3042_v32 = vld [vmem:[%s3212_s30 + $0x48] sm:$0xff]  }
 0x37b   : > { %1930 = vmatprep.subr.bf16.mxu0 %v3138_v0  ;;  %1767 = vmatpush1.bf16.msra.mxu1 %v3042_v32 }
 0x37c   : > { %2884 = vmatprep.subr.bf16.mxu1 %v3139_v25 }
 0x37e   : > { %1931 = vmatpush1.bf16.msra.mxu0 %v3033_v34 }
 0x37f   : > { %1932 = vmatprep.subr.bf16.mxu0 %v3138_v0 }
 0x382   : > { %1933 = vmatpush1.bf16.msra.mxu0 %v3035_v37 }
 0x383   : > { %1934 = vmatprep.subr.bf16.mxu0 %v3138_v0 }
 0x386   : > { %1935 = vmatpush1.bf16.msra.mxu0 %v3037_v58 }
 0x387   : > { %1936 = vmatprep.subr.bf16.mxu0 %v3138_v0 }
 0x3ec   : > { %v1314_v39 = vpop.xlane.xlu0 %1313 }
 0x3ed   : > { %v1316_v41 = vmul.f32 0.03125, %v1314_v39 }
 0x3ef   : > { %v1318_v43 = vadd.f32 0.0001, %v1316_v41 }
 0x3f1   : > { %3076 = vrsqrt.f32 %v1318_v43 }
 0x3fb   : > { %v3077_v45 = vpop.eup %3076 }
 0x3fc   : > { %v1322_v48 = vmul.f32 %v3077_v45, %v3462_v5  ;;  %v3039_v5 = vld [vmem:[%s3232_s27 + $0x38] sm:$0xff]  }
 0x3fd   : > { %1937 = vmatpush1.bf16.msra.mxu0 %v3039_v5  ;;  %v2805_v5 = vld [vmem:[%s3724_s1] ss:$0 sm:$0xff]  ;;  %s3731_s1 = sld [smem:[#allocation3_spill]] }
 0x3fe   : > { %v1330_v51 = vmul.f32 %v2771_v47, %v1322_v48  ;;  %1938 = vmatprep.subr.bf16.mxu0 %v3138_v0 }
 0x400   : > { %v1338_v56 = vadd.f32 %v2772_v50, %v1330_v51 }
 0x401   : > { %1939 = vmatpush1.bf16.msra.mxu0 %v3041_v15 }
 0x402   : > { %v1340_v1 = vmax.f32 %v1338_v56, 0.0  ;;  %1940 = vmatprep.subr.bf16.mxu0 %v3138_v0 }
 0x405   : > { %1941 = vmatpush1.bf16.msra.mxu0 %v3043_v33 }
 0x406   : > { %2242 = vmatprep.subr.bf16.mxu0 %v3138_v0 }
 0x440   : > { %v1576_v59 = vpop.f32.mrb[4].mxu0 }
 0x441   : > { %v1577_v61 = vadd.f32 %v2787_v55, %v1576_v59  ;;  %v2882_v62 = vpop.f32.mrb[5].mxu0 }
 0x442   : > { %v1579_v52 = vpop.f32.mrb[6].mxu0 }
 0x443   : > { %v1583_v63 = vadd.f32 %v1577_v61, %v1339_v60  ;;  %v1580_v2 = vadd.f32 %v2787_v55, %v1579_v52  ;;  %v2883_v3 = vpop.f32.mrb[7].mxu0 }
 0x445   : > { %v3506_v6 = vmul.f32 %v1583_v63, %v3370_v18  ;;  %v1584_v7 = vadd.f32 %v1580_v2, %v1340_v1 }
 0x447   : > { %v1586_v8 = vmul.f32 %v1584_v7, %v3380_v23  ;;  %v1610_v9 = vrot.slane %v3506_v6, 1  ;;  %v1635_v12 = vrot.slane %v3506_v6, 3  ;;  %v1648_v16 = vrot.slane %v3506_v6, 4 }
 0x448   : > { %v1623_v22 = vrot.slane %v3506_v6, 2 }
 0x449   : > { %v1612_v10 = vrot.slane %v1586_v8, 1  ;;  %v1624_v11 = vrot.slane %v1586_v8, 2  ;;  %v1636_v13 = vrot.slane %v1586_v8, 3  ;;  %v1649_v17 = vrot.slane %v1586_v8, 4 }
 0x44a   : > { %v1611_v20 = vsel %vm1104_vm3, %v3399_v35, %v1610_v9 }
 0x44b   : > { %1618 = vrot.lane.b32.xlu0 %v1612_v10, %s3140_s23  ;;  %1630 = vrot.lane.b32.xlu1 %v1624_v11, %s3141_s26  ;;  %v1637_v19 = vsel %vm1132_vm2, %v1635_v12, %v1636_v13  ;;  %v1613_v21 = vsel %vm1104_vm3, %v1610_v9, %v1612_v10  ;;  %v1650_v28 = vsel %vm1147_vm1, %v1648_v16, %v1649_v17 }
 0x44c   : > { %v2982_v24 = vpack.i.bf16 %v1637_v19, %v1635_v12  ;;  %v2972_v27 = vpack.i.bf16 %v1613_v21, %v1611_v20  ;;  %v1651_v29 = vsel %vm1147_vm1, %v1649_v17, %v3386_v26  ;;  %v1665_v30 = vpack.c.bf16 %v1650_v28, %v1648_v16 }
 0x44d   : > { %v1667_v31 = vpack.c.bf16 %v1651_v29, %v1651_v29  ;;  %v1625_v34 = vsel %vm1119_vm0, %v1623_v22, %v1624_v11  ;;  %v1638_v40 = vsel %vm1132_vm2, %v1636_v13, %v3423_v54  ;;  %v2791_v11 = vld [vmem:[%s3725_s2] ss:$0 sm:$0xff]  ;;  %s3732_s2 = sld [smem:[#allocation4_spill]] }
 0x44e   : > { %v1681_v36 = vrot.slane %v1665_v30, 3  ;;  %v2977_v39 = vpack.i.bf16 %v1625_v34, %v1623_v22 }
 0x44f   : > { %2983 = vrot.lane.b32.xlu0 %v2982_v24, %s3142_s28  ;;  %2973 = vrot.lane.b32.xlu1 %v2972_v27, %s3140_s23  ;;  %v1682_v37 = vrot.slane %v1667_v31, 3 }
 0x451   : > { %v1683_v38 = vsel %vm1132_vm2, %v1681_v36, %v1682_v37 }
 0x452   : > { %2802 = vmatprep.mubr.msk.bf16.mxu1 %vm1156_vm4, %v1683_v38  ;;  %2816 = vmatprep.mubr.msk.bf16.mxu0 %vm1156_vm4, %v1683_v38 }
 0x453   : > { %2978 = vrot.lane.b32.xlu1 %v2977_v39, %s3141_s26 }
 0x457   : > { %1643 = vrot.lane.b32.xlu1 %v1638_v40, %s3142_s28 }
 0x4bd   : > { %v1631_v41 = vpop.permute.xlu1 %1630  ;;  %v1619_v42 = vpop.permute.xlu0 %1618 }
 0x4be   : > { %v1657_v48 = vsel %vm1156_vm4, %v1586_v8, %v1619_v42 }
 0x4bf   : > { %v1660_v59 = vsel %vm1160_vm5, %v1657_v48, %v1631_v41 }
 0x4c1   : > { %v2974_v43 = vpop.permute.xlu1 %2973  ;;  %v2984_v46 = vpop.permute.xlu0 %2983 }
 0x4c2   : > { %v2976_v44 = vunpack.i.h.bf16 %v2974_v43  ;;  %v2975_v45 = vunpack.i.l.bf16 %v2974_v43  ;;  %v2986_v51 = vunpack.i.h.bf16 %v2984_v46  ;;  %v2985_v53 = vunpack.i.l.bf16 %v2984_v46  ;;  %v3044_v43 = vld [vmem:[%s3726_s7] sm:$0xff]  }
 0x4c4   : > { %v1656_v55 = vsel %vm1156_vm4, %v3506_v6, %v2976_v44  ;;  %v1655_v56 = vsel %vm1156_vm4, 0.0, %v2975_v45  ;;  %v3045_v44 = vld [vmem:[%s3726_s7 + $0x8] sm:$0xff]  }
 0x4c5   : > { %v2979_v47 = vpop.permute.xlu1 %2978 }
 0x4c6   : > { %v2981_v49 = vunpack.i.h.bf16 %v2979_v47  ;;  %v2980_v50 = vunpack.i.l.bf16 %v2979_v47 }
 0x4c8   : > { %v1658_v57 = vsel %vm1160_vm5, %v1655_v56, %v2980_v50  ;;  %v1659_v58 = vsel %vm1160_vm5, %v1656_v55, %v2981_v49 }
 0x4c9   : > { %v1661_v60 = vsel %vm1164_vm6, %v1658_v57, %v2985_v53  ;;  %v1662_v61 = vsel %vm1164_vm6, %v1659_v58, %v2986_v51  ;;  %v1644_v62 = vpop.permute.xlu1 %1643  ;;  %v2817_v58 = vld [vmem:[%s3727_s10] ss:$0 sm:$0xff]  ;;  %s3733_s10 = sld [smem:[#allocation9_spill]] }
 0x4ca   : > { %v1663_v52 = vsel %vm1164_vm6, %v1660_v59, %v1644_v62  ;;  %v1664_v63 = vpack.c.bf16 %v1662_v61, %v1661_v60 }
 0x4cb   : > { %v1666_v1 = vpack.c.bf16 %v1663_v52, %v1663_v52  ;;  %v2818_v52 = vld [vmem:[%s3728_s11] ss:$0 sm:$0xff]  ;;  %s3737_s11 = sld [smem:[#allocation16_spill]] }
 0x4cc   : > { %v1678_v2 = vrot.slane %v1664_v63, 3 }
 0x4cd   : > { %v1679_v3 = vrot.slane %v1666_v1, 3 }
 0x4cf   : > { %v1680_v4 = vsel %vm1132_vm2, %v1678_v2, %v1679_v3 }
 0x4d0   : > { %1781 = vmatmul.mubr.bf16.vlgmr.msra.gmra.mrb[4].mxu1 %v1680_v4  ;;  %1955 = vmatmul.mubr.bf16.vlgmr.msra.gmra.mrb[8].mxu0 %v1680_v4 }
 0x4d1   : > { %2888 = vmatprep.mubr.msk.bf16.mxu1 %vm3143_vm7, %v3139_v25  ;;  %2885 = vmatpush3.bf16.msra.mxu1 %v3044_v43  ;;  %v3059_v43 = vld [vmem:[%s3730_s18 + $0x30] sm:$0xff]  }
 0x4d2   : > { %2886 = vmatprep.subr.bf16.mxu1 %v3139_v25 }
 0x4d5   : > { %2887 = vmatpush3.bf16.msra.mxu1 %v3045_v44 }
 0x4d6   : > { %2416 = vmatprep.subr.bf16.mxu1 %v3138_v0 }
 0x5a3   : > { %v1782_v6 = vpop.f32.mrb[4].mxu1  ;;  %v1956_v7 = vpop.f32.mrb[8].mxu0 }
 0x5a4   : > { %v1957_v8 = vadd.f32 %v2805_v5, %v1956_v7  ;;  %v1784_v9 = vpop.f32.mrb[5].mxu1  ;;  %v1958_v10 = vpop.f32.mrb[9].mxu0  ;;  %v1783_v20 = vadd.f32 %v2791_v11, %v1782_v6  ;;  %v3046_v7 = vld [vmem:[%s3729_s16] sm:$0xff]  }
 0x5a5   : > { %v1785_v12 = vpop.f32.mrb[6].mxu1  ;;  %v1959_v13 = vpop.f32.mrb[10].mxu0  ;;  %2243 = vmatpush1.bf16.msra.mxu0 %v3046_v7  ;;  %v3048_v9 = vld [vmem:[%s3729_s16 + $0x8] sm:$0xff]  }
 0x5a6   : > { %v1786_v14 = vadd.f32 %v2791_v11, %v1785_v12  ;;  %v1960_v15 = vadd.f32 %v2805_v5, %v1959_v13  ;;  %v1787_v16 = vpop.f32.mrb[7].mxu1  ;;  %v1961_v17 = vpop.f32.mrb[11].mxu0  ;;  %v1965_v19 = vsel %vm1156_vm4, %v1957_v8, 0.0  ;;  %v1791_v22 = vsel %vm1156_vm4, %v1783_v20, 0.0  ;;  %v3049_v10 = vld [vmem:[%s3730_s18 + $0x8] sm:$0xff]   ;;  %2244 = vmatprep.subr.bf16.mxu0 %v3138_v0  ;;  %v3050_v11 = vld [vmem:[%s3729_s16 + $0x10] sm:$0xff]  }
 0x5a7   : > { %1966 = vadd.xlane.f32.xlu0 %v1965_v19  ;;  %v3051_v12 = vld [vmem:[%s3730_s18 + $0x10] sm:$0xff]   ;;  %v3052_v13 = vld [vmem:[%s3729_s16 + $0x18] sm:$0xff]   ;;  %v3055_v16 = vld [vmem:[%s3730_s18 + $0x20] sm:$0xff]  }
 0x5a8   : > { %v1968_v21 = vsel %vm1156_vm4, %v1960_v15, 0.0  ;;  %v1794_v42 = vsel %vm1156_vm4, %v1786_v14, 0.0  ;;  %v3056_v17 = vld [vmem:[%s3729_s16 + $0x28] sm:$0xff]  }
 0x5a9   : > { %1969 = vadd.xlane.f32.xlu1 %v1968_v21  ;;  %2245 = vmatpush1.bf16.msra.mxu0 %v3048_v9  ;;  %v3057_v19 = vld [vmem:[%s3730_s18 + $0x28] sm:$0xff]  }
 0x5aa   : > { %2246 = vmatprep.subr.bf16.mxu0 %v3138_v0 }
 0x5ad   : > { %1792 = vadd.xlane.f32.xlu1 %v1791_v22  ;;  %2247 = vmatpush1.bf16.msra.mxu0 %v3050_v11 }
 0x5ae   : > { %2248 = vmatprep.subr.bf16.mxu0 %v3138_v0 }
 0x5b1   : > { %2249 = vmatpush1.bf16.msra.mxu0 %v3052_v13 }
 0x5b2   : > { %2250 = vmatprep.subr.bf16.mxu0 %v3138_v0 }
 0x634   : > { %v1967_v24 = vpop.xlane.xlu0 %1966 }
 0x635   : > { %v1971_v27 = vmul.f32 0.03125, %v1967_v24 }
 0x636   : > { %v1970_v28 = vpop.xlane.xlu1 %1969 }
 0x637   : > { %v1973_v29 = vsub.f32 %v1957_v8, %v1971_v27  ;;  %v1972_v30 = vmul.f32 0.03125, %v1970_v28  ;;  %v3047_v8 = vld [vmem:[%s3730_s18] sm:$0xff]  }
 0x639   : > { %v1974_v31 = vsub.f32 %v1960_v15, %v1972_v30  ;;  %v1975_v32 = vmul.f32 %v1973_v29, %v1973_v29  ;;  %v3054_v15 = vld [vmem:[%s3729_s16 + $0x20] sm:$0xff]  }
 0x63a   : > { %v1793_v33 = vpop.xlane.xlu1 %1792  ;;  %2251 = vmatpush1.bf16.msra.mxu0 %v3054_v15  ;;  %v3065_v15 = vld [vmem:[%s3730_s18 + $0x48] sm:$0xff]  }
 0x63b   : > { %v1797_v34 = vmul.f32 0.03125, %v1793_v33  ;;  %v1977_v36 = vsel %vm1156_vm4, %v1975_v32, 0.0  ;;  %v1976_v37 = vmul.f32 %v1974_v31, %v1974_v31  ;;  %2252 = vmatprep.subr.bf16.mxu0 %v3138_v0  ;;  %v2803_v32 = vld [vmem:[%s3731_s1] ss:$0 sm:$0xff]  ;;  %s3738_s1 = sld [smem:[#allocation17_spill]] }
 0x63c   : > { %1978 = vadd.xlane.f32.xlu0 %v1977_v36  ;;  %v2804_v36 = vld [vmem:[%s3732_s2] ss:$0 sm:$0xff]  ;;  %s3739_s2 = sld [smem:[#allocation12_spill]] }
 0x63d   : > { %v3561_v38 = vsub.f32 %v1783_v20, %v1797_v34  ;;  %v1980_v39 = vsel %vm1156_vm4, %v1976_v37, 0.0 }
 0x63e   : > { %2253 = vmatpush1.bf16.msra.mxu0 %v3056_v17 }
 0x63f   : > { %v1801_v40 = vmul.f32 %v3561_v38, %v3561_v38  ;;  %2254 = vmatprep.subr.bf16.mxu0 %v3138_v0 }
 0x640   : > { %1981 = vadd.xlane.f32.xlu0 %v1980_v39 }
 0x641   : > { %v1803_v41 = vsel %vm1156_vm4, %v1801_v40, 0.0  ;;  %v2819_v40 = vld [vmem:[%s3733_s10] ss:$0 sm:$0xff]  ;;  %s3740_s10 = sld [smem:[#allocation13_spill]] }
 0x642   : > { %1804 = vadd.xlane.f32.xlu1 %v1803_v41 }
 0x644   : > { %1795 = vadd.xlane.f32.xlu0 %v1794_v42  ;;  %v3058_v42 = vld [vmem:[%s3729_s16 + $0x30] sm:$0xff]  }
 0x645   : > { %2255 = vmatpush1.bf16.msra.mxu0 %v3058_v42 }
 0x646   : > { %2256 = vmatprep.subr.bf16.mxu0 %v3138_v0 }
 0x6c9   : > { %v1979_v45 = vpop.xlane.xlu0 %1978 }
 0x6ca   : > { %v1983_v46 = vmul.f32 0.03125, %v1979_v45 }
 0x6cc   : > { %v1985_v47 = vadd.f32 0.0001, %v1983_v46 }
 0x6cd   : > { %v1982_v48 = vpop.xlane.xlu0 %1981 }
 0x6ce   : > { %3078 = vrsqrt.f32 %v1985_v47  ;;  %v1984_v49 = vmul.f32 0.03125, %v1982_v48 }
 0x6cf   : > { %v1805_v20 = vpop.xlane.xlu1 %1804 }
 0x6d0   : > { %v1986_v50 = vadd.f32 0.0001, %v1984_v49  ;;  %v1809_v22 = vmul.f32 0.03125, %v1805_v20 }
 0x6d1   : > { %v1796_v51 = vpop.xlane.xlu0 %1795 }
 0x6d2   : > { %3080 = vrsqrt.f32 %v1986_v50  ;;  %v1798_v53 = vmul.f32 0.03125, %v1796_v51  ;;  %v1811_v27 = vadd.f32 0.0001, %v1809_v22 }
 0x6d4   : > { %v3572_v55 = vsub.f32 %v1786_v14, %v1798_v53  ;;  %v3053_v14 = vld [vmem:[%s3730_s18 + $0x18] sm:$0xff]   ;;  %3082 = vrsqrt.f32 %v1811_v27 }
 0x6d5   : > { %v3060_v53 = vld [vmem:[%s3729_s16 + $0x38] sm:$0xff]  }
 0x6d6   : > { %v1802_v56 = vmul.f32 %v3572_v55, %v3572_v55  ;;  %2257 = vmatpush1.bf16.msra.mxu0 %v3060_v53 }
 0x6d7   : > { %2258 = vmatprep.subr.bf16.mxu0 %v3138_v0 }
 0x6d8   : > { %v3079_v57 = vpop.eup %3078  ;;  %v1806_v59 = vsel %vm1156_vm4, %v1802_v56, 0.0 }
 0x6d9   : > { %v1989_v60 = vmul.f32 %v3079_v57, %v1973_v29  ;;  %1807 = vadd.xlane.f32.xlu0 %v1806_v59 }
 0x6db   : > { %v1997_v61 = vmul.f32 %v2817_v58, %v1989_v60 }
 0x6dc   : > { %v3081_v62 = vpop.eup %3080 }
 0x6dd   : > { %v1990_v63 = vmul.f32 %v3081_v62, %v1974_v31  ;;  %v2005_v2 = vadd.f32 %v2818_v52, %v1997_v61 }
 0x6de   : > { %v3083_v29 = vpop.eup %3082 }
 0x6df   : > { %v1998_v1 = vmul.f32 %v2817_v58, %v1990_v63  ;;  %v2007_v4 = vmax.f32 %v2005_v2, 0.0  ;;  %v1815_v31 = vmul.f32 %v3083_v29, %v3561_v38  ;;  %v3062_v63 = vld [vmem:[%s3729_s16 + $0x40] sm:$0xff]  }
 0x6e0   : > { %2259 = vmatpush1.bf16.msra.mxu0 %v3062_v63 }
 0x6e1   : > { %v2006_v3 = vadd.f32 %v2818_v52, %v1998_v1  ;;  %v1823_v34 = vmul.f32 %v2803_v32, %v1815_v31  ;;  %v3063_v1 = vld [vmem:[%s3730_s18 + $0x40] sm:$0xff]   ;;  %2260 = vmatprep.subr.bf16.mxu0 %v3138_v0 }
 0x6e3   : > { %v2008_v5 = vmax.f32 %v2006_v3, 0.0  ;;  %v1831_v39 = vadd.f32 %v2804_v36, %v1823_v34 }
 0x6e5   : > { %v2009_v6 = vpack.c.bf16 %v2008_v5, %v2007_v4  ;;  %v1833_v45 = vmax.f32 %v1831_v39, 0.0 }
 0x6e7   : > { %2889 = vmatmul.mubr.msk.bf16.vlgmr.msra.gmra.mrb[8].mxu1 %vm1156_vm4, %v2009_v6 }
 0x6e8   : > { %2417 = vmatpush1.bf16.msra.mxu1 %v3047_v8 }
 0x6e9   : > { %2418 = vmatprep.subr.bf16.mxu1 %v3138_v0 }
 0x6ec   : > { %2419 = vmatpush1.bf16.msra.mxu1 %v3049_v10 }
 0x6ed   : > { %2420 = vmatprep.subr.bf16.mxu1 %v3138_v0 }
 0x6f0   : > { %2421 = vmatpush1.bf16.msra.mxu1 %v3051_v12 }
 0x6f1   : > { %2422 = vmatprep.subr.bf16.mxu1 %v3138_v0 }
 0x6f4   : > { %2423 = vmatpush1.bf16.msra.mxu1 %v3053_v14  ;;  %v3064_v14 = vld [vmem:[%s3729_s16 + $0x48] sm:$0xff]  }
 0x6f5   : > { %2424 = vmatprep.subr.bf16.mxu1 %v3138_v0  ;;  %2261 = vmatpush1.bf16.msra.mxu0 %v3064_v14 }
 0x6f6   : > { %2892 = vmatprep.subr.bf16.mxu0 %v3139_v25 }
 0x6f8   : > { %2425 = vmatpush1.bf16.msra.mxu1 %v3055_v16 }
 0x6f9   : > { %2426 = vmatprep.subr.bf16.mxu1 %v3138_v0 }
 0x6fc   : > { %2427 = vmatpush1.bf16.msra.mxu1 %v3057_v19 }
 0x6fd   : > { %2428 = vmatprep.subr.bf16.mxu1 %v3138_v0 }
 0x700   : > { %2429 = vmatpush1.bf16.msra.mxu1 %v3059_v43 }
 0x701   : > { %2430 = vmatprep.subr.bf16.mxu1 %v3138_v0 }
 0x766   : > { %v1808_v21 = vpop.xlane.xlu0 %1807 }
 0x767   : > { %v1810_v24 = vmul.f32 0.03125, %v1808_v21 }
 0x769   : > { %v1812_v28 = vadd.f32 0.0001, %v1810_v24 }
 0x76b   : > { %3084 = vrsqrt.f32 %v1812_v28 }
 0x775   : > { %v3085_v30 = vpop.eup %3084 }
 0x776   : > { %v1816_v33 = vmul.f32 %v3085_v30, %v3572_v55  ;;  %v3061_v55 = vld [vmem:[%s3730_s18 + $0x38] sm:$0xff]  }
 0x777   : > { %2431 = vmatpush1.bf16.msra.mxu1 %v3061_v55 }
 0x778   : > { %v1824_v37 = vmul.f32 %v2803_v32, %v1816_v33  ;;  %2432 = vmatprep.subr.bf16.mxu1 %v3138_v0 }
 0x77a   : > { %v1832_v41 = vadd.f32 %v2804_v36, %v1824_v37 }
 0x77b   : > { %2433 = vmatpush1.bf16.msra.mxu1 %v3063_v1 }
 0x77c   : > { %v1834_v49 = vmax.f32 %v1832_v41, 0.0  ;;  %2434 = vmatprep.subr.bf16.mxu1 %v3138_v0 }
 0x77f   : > { %2435 = vmatpush1.bf16.msra.mxu1 %v3065_v15 }
 0x780   : > { %2900 = vmatprep.subr.bf16.mxu1 %v3139_v25 }
 0x7ba   : > { %v2070_v44 = vpop.f32.mrb[8].mxu1 }
 0x7bb   : > { %v2071_v46 = vadd.f32 %v2819_v40, %v2070_v44  ;;  %v2890_v47 = vpop.f32.mrb[9].mxu1 }
 0x7bc   : > { %v2073_v38 = vpop.f32.mrb[10].mxu1 }
 0x7bd   : > { %v2077_v48 = vadd.f32 %v2071_v46, %v1833_v45  ;;  %v2074_v50 = vadd.f32 %v2819_v40, %v2073_v38  ;;  %v2891_v51 = vpop.f32.mrb[11].mxu1 }
 0x7bf   : > { %v3616_v56 = vmul.f32 %v2077_v48, %v3370_v18  ;;  %v2078_v57 = vadd.f32 %v2074_v50, %v1834_v49 }
 0x7c1   : > { %v2080_v58 = vmul.f32 %v2078_v57, %v3380_v23  ;;  %v2104_v59 = vrot.slane %v3616_v56, 1  ;;  %v2129_v62 = vrot.slane %v3616_v56, 3  ;;  %v2142_v2 = vrot.slane %v3616_v56, 4 }
 0x7c2   : > { %v2117_v7 = vrot.slane %v3616_v56, 2 }
 0x7c3   : > { %v2106_v60 = vrot.slane %v2080_v58, 1  ;;  %v2118_v61 = vrot.slane %v2080_v58, 2  ;;  %v2130_v52 = vrot.slane %v2080_v58, 3  ;;  %v2143_v3 = vrot.slane %v2080_v58, 4 }
 0x7c4   : > { %v2105_v5 = vsel %vm1104_vm3, %v3399_v35, %v2104_v59 }
 0x7c5   : > { %2112 = vrot.lane.b32.xlu0 %v2106_v60, %s3140_s23  ;;  %2124 = vrot.lane.b32.xlu1 %v2118_v61, %s3141_s26  ;;  %v2131_v4 = vsel %vm1132_vm2, %v2129_v62, %v2130_v52  ;;  %v2107_v6 = vsel %vm1104_vm3, %v2104_v59, %v2106_v60  ;;  %v2144_v10 = vsel %vm1147_vm1, %v2142_v2, %v2143_v3 }
 0x7c6   : > { %v2997_v8 = vpack.i.bf16 %v2131_v4, %v2129_v62  ;;  %v2987_v9 = vpack.i.bf16 %v2107_v6, %v2105_v5  ;;  %v2145_v11 = vsel %vm1147_vm1, %v2143_v3, %v3386_v26  ;;  %v2159_v12 = vpack.c.bf16 %v2144_v10, %v2142_v2 }
 0x7c7   : > { %v2161_v13 = vpack.c.bf16 %v2145_v11, %v2145_v11  ;;  %v2119_v16 = vsel %vm1119_vm0, %v2117_v7, %v2118_v61  ;;  %v2132_v0 = vsel %vm1132_vm2, %v2130_v52, %v3423_v54 }
 0x7c8   : > { %v2175_v35 = vrot.slane %v2159_v12, 3  ;;  %v2992_v19 = vpack.i.bf16 %v2119_v16, %v2117_v7 }
 0x7c9   : > { %2998 = vrot.lane.b32.xlu0 %v2997_v8, %s3142_s28  ;;  %2988 = vrot.lane.b32.xlu1 %v2987_v9, %s3140_s23  ;;  %v2176_v17 = vrot.slane %v2161_v13, 3  ;;  %s3734_s23 = sld [smem:[#allocation15_spill]] }
 0x7cb   : > { %v2177_v26 = vsel %vm1132_vm2, %v2175_v35, %v2176_v17 }
 0x7cc   : > { %2834 = vmatprep.mubr.msk.bf16.mxu0 %vm1156_vm4, %v2177_v26  ;;  %2848 = vmatprep.mubr.msk.bf16.mxu1 %vm1156_vm4, %v2177_v26 }
 0x7cd   : > { %2993 = vrot.lane.b32.xlu1 %v2992_v19, %s3141_s26  ;;  %s3735_s26 = sld [smem:[#allocation11_spill]] }
 0x7cf   : > { %v2837_v49 = vld [vmem:[%s3734_s23] ss:$0 sm:$0xff]  ;;  %s1062_s23 = scalar_lea.vmem %s3322_s12, %s3335_s0 }
 0x7d1   : > { %2137 = vrot.lane.b32.xlu1 %v2132_v0, %s3142_s28  ;;  %s3736_s28 = sld [smem:[#allocation18_spill]] }
 0x7d3   : > { %v2823_v57 = vld [vmem:[%s3735_s26] ss:$0 sm:$0xff] }
 0x7d7   : > { %v3066_v19 = vld [vmem:[%s3736_s28] sm:$0xff]   ;;  %v3067_v0 = vld [vmem:[%s3736_s28 + $0x8] sm:$0xff]  }
 0x837   : > { %v2125_v20 = vpop.permute.xlu1 %2124  ;;  %v2113_v21 = vpop.permute.xlu0 %2112 }
 0x838   : > { %v2151_v30 = vsel %vm1156_vm4, %v2080_v58, %v2113_v21 }
 0x839   : > { %v2154_v40 = vsel %vm1160_vm5, %v2151_v30, %v2125_v20 }
 0x83b   : > { %v2989_v22 = vpop.permute.xlu1 %2988  ;;  %v2999_v28 = vpop.permute.xlu0 %2998 }
 0x83c   : > { %v2991_v24 = vunpack.i.h.bf16 %v2989_v22  ;;  %v2990_v27 = vunpack.i.l.bf16 %v2989_v22  ;;  %v3001_v33 = vunpack.i.h.bf16 %v2999_v28  ;;  %v3000_v34 = vunpack.i.l.bf16 %v2999_v28 }
 0x83e   : > { %v2150_v36 = vsel %vm1156_vm4, %v3616_v56, %v2991_v24  ;;  %v2149_v54 = vsel %vm1156_vm4, 0.0, %v2990_v27 }
 0x83f   : > { %v2994_v29 = vpop.permute.xlu1 %2993 }
 0x840   : > { %v2996_v31 = vunpack.i.h.bf16 %v2994_v29  ;;  %v2995_v32 = vunpack.i.l.bf16 %v2994_v29 }
 0x842   : > { %v2152_v37 = vsel %vm1160_vm5, %v2149_v54, %v2995_v32  ;;  %v2153_v39 = vsel %vm1160_vm5, %v2150_v36, %v2996_v31 }
 0x843   : > { %v2155_v41 = vsel %vm1164_vm6, %v2152_v37, %v3000_v34  ;;  %v2156_v42 = vsel %vm1164_vm6, %v2153_v39, %v3001_v33  ;;  %v2138_v43 = vpop.permute.xlu1 %2137  ;;  %v2849_v34 = vld [vmem:[%s3737_s11] ss:$0 sm:$0xff] }
 0x844   : > { %v2157_v44 = vsel %vm1164_vm6, %v2154_v40, %v2138_v43  ;;  %v2158_v45 = vpack.c.bf16 %v2156_v42, %v2155_v41  ;;  %v2850_v40 = vld [vmem:[%s3738_s1] ss:$0 sm:$0xff] }
 0x845   : > { %v2160_v46 = vpack.c.bf16 %v2157_v44, %v2157_v44 }
 0x846   : > { %v2172_v47 = vrot.slane %v2158_v45, 3 }
 0x847   : > { %v2173_v38 = vrot.slane %v2160_v46, 3 }
 0x849   : > { %v2174_v48 = vsel %vm1132_vm2, %v2172_v47, %v2173_v38  ;;  %v3068_v38 = vld [vmem:[%s3312_s6] sm:$0xff]  }
 0x84a   : > { %2275 = vmatmul.mubr.bf16.vlgmr.msra.gmra.mrb[12].mxu0 %v2174_v48  ;;  %2449 = vmatmul.mubr.bf16.vlgmr.msra.gmra.mrb[12].mxu1 %v2174_v48  ;;  %v3069_v48 = vld [vmem:[%s3312_s6 + $0x8] sm:$0xff]  }
 0x84b   : > { %2896 = vmatprep.mubr.msk.bf16.mxu0 %vm3143_vm7, %v3139_v25  ;;  %2904 = vmatprep.mubr.msk.bf16.mxu1 %vm3143_vm7, %v3139_v25 }
 0x84c   : > { %2893 = vmatpush3.bf16.msra.mxu0 %v3066_v19  ;;  %2901 = vmatpush3.bf16.msra.mxu1 %v3068_v38 }
 0x84d   : > { %2894 = vmatprep.subr.bf16.mxu0 %v3139_v25  ;;  %2902 = vmatprep.subr.bf16.mxu1 %v3139_v25  ;;  %v2836_v25 = vld [vmem:[%s3740_s10] ss:$0 sm:$0xff] }
 0x850   : > { %2895 = vmatpush3.bf16.msra.mxu0 %v3067_v0  ;;  %2903 = vmatpush3.bf16.msra.mxu1 %v3069_v48 }
 0x91d   : > { %v2276_v50 = vpop.f32.mrb[12].mxu0  ;;  %v2450_v51 = vpop.f32.mrb[12].mxu1 }
 0x91e   : > { %v2451_v53 = vadd.f32 %v2837_v49, %v2450_v51  ;;  %v2278_v55 = vpop.f32.mrb[13].mxu0  ;;  %v2452_v56 = vpop.f32.mrb[13].mxu1  ;;  %v2277_v1 = vadd.f32 %v2823_v57, %v2276_v50 }
 0x91f   : > { %v2279_v58 = vpop.f32.mrb[14].mxu0  ;;  %v2453_v59 = vpop.f32.mrb[14].mxu1 }
 0x920   : > { %v2280_v60 = vadd.f32 %v2823_v57, %v2279_v58  ;;  %v2454_v61 = vadd.f32 %v2837_v49, %v2453_v59  ;;  %v2281_v62 = vpop.f32.mrb[15].mxu0  ;;  %v2455_v52 = vpop.f32.mrb[15].mxu1  ;;  %v2459_v63 = vsel %vm1156_vm4, %v2451_v53, 0.0  ;;  %v2285_v3 = vsel %vm1156_vm4, %v2277_v1, 0.0 }
 0x921   : > { %2460 = vadd.xlane.f32.xlu0 %v2459_v63  ;;  %v2851_v63 = vld [vmem:[%s3307_s20] ss:$0 sm:$0xff] }
 0x922   : > { %v2462_v2 = vsel %vm1156_vm4, %v2454_v61, 0.0  ;;  %v2288_v26 = vsel %vm1156_vm4, %v2280_v60, 0.0 }
 0x923   : > { %2463 = vadd.xlane.f32.xlu1 %v2462_v2 }
 0x927   : > { %2286 = vadd.xlane.f32.xlu1 %v2285_v3 }
 0x9ae   : > { %v2461_v4 = vpop.xlane.xlu0 %2460 }
 0x9af   : > { %v2465_v5 = vmul.f32 0.03125, %v2461_v4 }
 0x9b0   : > { %v2464_v6 = vpop.xlane.xlu1 %2463 }
 0x9b1   : > { %v2467_v7 = vsub.f32 %v2451_v53, %v2465_v5  ;;  %v2466_v8 = vmul.f32 0.03125, %v2464_v6 }
 0x9b3   : > { %v2468_v9 = vsub.f32 %v2454_v61, %v2466_v8  ;;  %v2469_v10 = vmul.f32 %v2467_v7, %v2467_v7  ;;  %v2835_v61 = vld [vmem:[%s3739_s2] ss:$0 sm:$0xff] }
 0x9b4   : > { %v2287_v11 = vpop.xlane.xlu1 %2286 }
 0x9b5   : > { %v2291_v12 = vmul.f32 0.03125, %v2287_v11  ;;  %v2471_v13 = vsel %vm1156_vm4, %v2469_v10, 0.0  ;;  %v2470_v14 = vmul.f32 %v2468_v9, %v2468_v9 }
 0x9b6   : > { %2472 = vadd.xlane.f32.xlu0 %v2471_v13 }
 0x9b7   : > { %v2293_v15 = vsub.f32 %v2277_v1, %v2291_v12  ;;  %v2474_v16 = vsel %vm1156_vm4, %v2470_v14, 0.0  ;;  %v2855_v14 = vld [vmem:[%s3317_s4] ss:$0 sm:$0xff] }
 0x9b9   : > { %v2295_v35 = vmul.f32 %v2293_v15, %v2293_v15 }
 0x9ba   : > { %2475 = vadd.xlane.f32.xlu0 %v2474_v16 }
 0x9bb   : > { %v2297_v17 = vsel %vm1156_vm4, %v2295_v35, 0.0 }
 0x9bc   : > { %2298 = vadd.xlane.f32.xlu1 %v2297_v17 }
 0x9be   : > { %2289 = vadd.xlane.f32.xlu0 %v2288_v26  ;;  %v3094_v26 = vld [vmem:[%s3365_s22] sm:$0xff] }
 0xa43   : > { %v2473_v20 = vpop.xlane.xlu0 %2472 }
 0xa44   : > { %v2477_v21 = vmul.f32 0.03125, %v2473_v20 }
 0xa46   : > { %v2479_v22 = vadd.f32 0.0001, %v2477_v21 }
 0xa47   : > { %v2476_v24 = vpop.xlane.xlu0 %2475 }
 0xa48   : > { %3086 = vrsqrt.f32 %v2479_v22  ;;  %v2478_v27 = vmul.f32 0.03125, %v2476_v24  ;;  %v3095_v22 = vld [vmem:[%s3365_s22 + $0x8] sm:$0xff] }
 0xa49   : > { %v2299_v49 = vpop.xlane.xlu1 %2298 }
 0xa4a   : > { %v2480_v28 = vadd.f32 0.0001, %v2478_v27  ;;  %v2303_v51 = vmul.f32 0.03125, %v2299_v49 }
 0xa4b   : > { %v2290_v29 = vpop.xlane.xlu0 %2289 }
 0xa4c   : > { %3088 = vrsqrt.f32 %v2480_v28  ;;  %v2292_v30 = vmul.f32 0.03125, %v2290_v29  ;;  %v2305_v55 = vadd.f32 0.0001, %v2303_v51 }
 0xa4e   : > { %v2294_v31 = vsub.f32 %v2280_v60, %v2292_v30  ;;  %3090 = vrsqrt.f32 %v2305_v55 }
 0xa50   : > { %v2296_v32 = vmul.f32 %v2294_v31, %v2294_v31 }
 0xa52   : > { %v3087_v33 = vpop.eup %3086  ;;  %v2300_v36 = vsel %vm1156_vm4, %v2296_v32, 0.0 }
 0xa53   : > { %v2483_v54 = vmul.f32 %v3087_v33, %v2467_v7  ;;  %2301 = vadd.xlane.f32.xlu0 %v2300_v36 }
 0xa55   : > { %v2491_v37 = vmul.f32 %v2849_v34, %v2483_v54 }
 0xa56   : > { %v3089_v39 = vpop.eup %3088 }
 0xa57   : > { %v2484_v41 = vmul.f32 %v3089_v39, %v2468_v9  ;;  %v2499_v43 = vadd.f32 %v2850_v40, %v2491_v37 }
 0xa58   : > { %v3091_v57 = vpop.eup %3090 }
 0xa59   : > { %v2492_v42 = vmul.f32 %v2849_v34, %v2484_v41  ;;  %v2501_v45 = vmax.f32 %v2499_v43, 0.0  ;;  %v2309_v59 = vmul.f32 %v3091_v57, %v2293_v15 }
 0xa5b   : > { %v2500_v44 = vadd.f32 %v2850_v40, %v2492_v42  ;;  %v2317_v62 = vmul.f32 %v2835_v61, %v2309_v59 }
 0xa5d   : > { %v2502_v46 = vmax.f32 %v2500_v44, 0.0  ;;  %v2325_v1 = vadd.f32 %v2836_v25, %v2317_v62 }
 0xa5f   : > { %v2503_v47 = vpack.c.bf16 %v2502_v46, %v2501_v45  ;;  %v2327_v7 = vmax.f32 %v2325_v1, 0.0 }
 0xa61   : > { %2897 = vmatmul.mubr.msk.bf16.vlgmr.msra.gmra.mrb[16].mxu0 %vm1156_vm4, %v2503_v47 }
 0xae0   : > { %v2302_v50 = vpop.xlane.xlu0 %2301 }
 0xae1   : > { %v2304_v53 = vmul.f32 0.03125, %v2302_v50 }
 0xae3   : > { %v2306_v56 = vadd.f32 0.0001, %v2304_v53 }
 0xae5   : > { %3092 = vrsqrt.f32 %v2306_v56 }
 0xaef   : > { %v3093_v58 = vpop.eup %3092 }
 0xaf0   : > { %v2310_v60 = vmul.f32 %v3093_v58, %v2294_v31 }
 0xaf2   : > { %v2318_v52 = vmul.f32 %v2835_v61, %v2310_v60 }
 0xaf4   : > { %v2326_v2 = vadd.f32 %v2836_v25, %v2318_v52 }
 0xaf6   : > { %v2328_v8 = vmax.f32 %v2326_v2, 0.0 }
 0xb34   : > { %v2564_v3 = vpop.f32.mrb[16].mxu0 }
 0xb35   : > { %v2565_v4 = vadd.f32 %v2851_v63, %v2564_v3  ;;  %v2898_v5 = vpop.f32.mrb[17].mxu0 }
 0xb36   : > { %v2567_v6 = vpop.f32.mrb[18].mxu0 }
 0xb37   : > { %v2568_v9 = vadd.f32 %v2851_v63, %v2567_v6  ;;  %v2899_v10 = vpop.f32.mrb[19].mxu0  ;;  %v2571_v11 = vadd.f32 %v2565_v4, %v2327_v7 }
 0xb39   : > { %v2572_v12 = vadd.f32 %v2568_v9, %v2328_v8 }
 0xb3b   : > { %v2573_v13 = vpack.c.bf16 %v2572_v12, %v2571_v11 }
 0xb3d   : > { %2905 = vmatmul.mubr.msk.bf16.vlgmr.msra.gmra.mrb[16].mxu1 %vm1156_vm4, %v2573_v13 }
 0xc10   : > { %v2634_v15 = vpop.f32.mrb[16].mxu1 }
 0xc11   : > { %v2635_v16 = vadd.f32 %v2855_v14, %v2634_v15  ;;  %v2906_v35 = vpop.f32.mrb[17].mxu1 }
 0xc12   : > { %v2637_v17 = vpop.f32.mrb[18].mxu1 }
 0xc13   : > { %v2641_v19 = vadd.f32 %v3094_v26, %v2635_v16  ;;  %v2638_v0 = vadd.f32 %v2855_v14, %v2637_v17  ;;  %v2907_v20 = vpop.f32.mrb[19].mxu1 }
 0xc15   : > { %v2643_v21 = vmul.f32 %v2641_v19, %v3370_v18  ;;  %v2642_v24 = vadd.f32 %v3095_v22, %v2638_v0 }
 0xc17   : > { %2645 = vst.msk [vmem:[%s1062_s23] sm:$0xff] %vm1156_vm4, %v2643_v21  ;;  %v2644_v27 = vmul.f32 %v2642_v24, %v3380_v23 }
 0xc19   : > { %2646 = vst.msk [vmem:[%s1062_s23 + $0x8] sm:$0xff] %vm1156_vm4, %v2644_v27 }
 0xc1a PF: > { %s79_s15 = sadd.s32 1, %s3102_s15  }
 0xc1b   : > { %p76_p4 = scmp.ge.s32.totalorder %s79_s15, 4  }
 0xc1d   :  { %78 = sbr.rel (!%p76_p4) target bundleno = 57 (0x39), region = 223 }

</bundles_post_ra>
